<compile_context>
chip_gen: v6e
topology: v6e:2x2x1
jax: 0.10.0
libtpu: 0.0.40
codegen_flags: <defaults>
</compile_context>

<pallas_src>
import functools

import jax
import jax.numpy as jnp
from jax.experimental import pallas as pl
from jax.experimental.pallas import tpu as pltpu

KW = 4                 # kernel_size
PADW = 2               # int(ceil((4 - 1) / 2))
NEG_SLOPE = 0.2        # LeakyReLU slope
BN_EPS = 1e-5          # BatchNorm2d eps
VMEM_LIMIT = 48 * 1024 * 1024   # fits v7x's 64 MiB/TC; generous on v5e/v6e

MAX_TM = 1024          # output-row tile cap
MAX_TK = 1024          # reduction tile cap
MAX_TN = 512           # output-channel tile cap (>= every real cout -> nt == 1)

_MM_PARAMS = pltpu.CompilerParams(
    dimension_semantics=("parallel", "parallel", "arbitrary"),
    vmem_limit_bytes=VMEM_LIMIT)
_EPI_PARAMS = pltpu.CompilerParams(
    dimension_semantics=("parallel",),
    vmem_limit_bytes=VMEM_LIMIT)


def _round_up(x, m):
    return (x + m - 1) // m * m


def _pick_tile(size, max_tile, align):
    """Aligned tile <= max_tile minimizing padding waste; returns (tile, padded)."""
    size_a = _round_up(max(size, 1), align)
    n_tiles = -(-size_a // max_tile)
    tile = _round_up(-(-size_a // n_tiles), align)
    return tile, tile * n_tiles


# ---------------------------------------------------------------------------
# Pass 1a: tiled conv matmul + per-channel partial stats (BatchNorm layers)
# ---------------------------------------------------------------------------
def _conv_stats_kernel(p_ref, w_ref, o_ref, stats_ref, acc_ref, *, tk):
    kk = pl.program_id(2)

    @pl.when(kk == 0)
    def _():
        acc_ref[...] = jnp.zeros_like(acc_ref)

    # Weight slab is resident (full K); slice this step's 128-aligned chunk.
    k0 = pl.multiple_of(kk * tk, 128)
    acc_ref[...] += jnp.dot(p_ref[...], w_ref[pl.ds(k0, tk), :],
                            preferred_element_type=jnp.float32)

    @pl.when(kk == pl.num_programs(2) - 1)
    def _():
        acc = acc_ref[...]
        o_ref[...] = acc.astype(o_ref.dtype)
        # Per-channel partial sums over this m-tile (zero-padded rows add 0
        # because the bias is NOT applied on BN layers).
        ssum = jnp.sum(acc, axis=0, keepdims=True)            # (1, tn)
        ssq = jnp.sum(acc * acc, axis=0, keepdims=True)       # (1, tn)
        row = jax.lax.broadcasted_iota(jnp.int32, (8, acc.shape[1]), 0)
        stats_ref[...] = jnp.where(row == 0, ssum,
                                   jnp.where(row == 1, ssq, 0.0))


# ---------------------------------------------------------------------------
# Pass 1b: tiled conv matmul + bias (+ LeakyReLU) for non-BN layers
# ---------------------------------------------------------------------------
def _conv_bias_kernel(p_ref, w_ref, b_ref, o_ref, acc_ref, *, tk, apply_act):
    kk = pl.program_id(2)

    @pl.when(kk == 0)
    def _():
        acc_ref[...] = jnp.zeros_like(acc_ref)

    k0 = pl.multiple_of(kk * tk, 128)
    acc_ref[...] += jnp.dot(p_ref[...], w_ref[pl.ds(k0, tk), :],
                            preferred_element_type=jnp.float32)

    @pl.when(kk == pl.num_programs(2) - 1)
    def _():
        y = acc_ref[...] + b_ref[...]
        if apply_act:
            y = jnp.where(y >= 0, y, NEG_SLOPE * y)
        o_ref[...] = y.astype(o_ref.dtype)


# ---------------------------------------------------------------------------
# Pass 2: BatchNorm apply (per-channel scale/shift) + LeakyReLU epilogue
# ---------------------------------------------------------------------------
def _bn_act_kernel(x_ref, scale_ref, shift_ref, o_ref, *, apply_act):
    y = x_ref[...].astype(jnp.float32) * scale_ref[...] + shift_ref[...]
    if apply_act:
        y = jnp.where(y >= 0, y, NEG_SLOPE * y)
    o_ref[...] = y.astype(o_ref.dtype)


# ---------------------------------------------------------------------------
# JAX glue: im2col patch extraction (layout only; bf16 to halve HBM bytes)
# TODO(synk): replace with in-kernel tap reduction (manual DMA) to kill the
#             16x HBM-staged inflation.
# ---------------------------------------------------------------------------
def _im2col(x_nhwc, stride):
    n, h, w, c = x_nhwc.shape
    xp = jnp.pad(x_nhwc, ((0, 0), (PADW, PADW), (PADW, PADW), (0, 0)))
    hp, wp = h + 2 * PADW, w + 2 * PADW
    ho = (hp - KW) // stride + 1
    wo = (wp - KW) // stride + 1
    cols = []
    for dy in range(KW):
        for dx in range(KW):
            cols.append(xp[:, dy:dy + stride * (ho - 1) + 1:stride,
                              dx:dx + stride * (wo - 1) + 1:stride, :])
    patches = jnp.stack(cols, axis=3)                  # (N, Ho, Wo, KW*KW, C)
    return patches.reshape(n * ho * wo, KW * KW * c), ho, wo


# ---------------------------------------------------------------------------
# One fused conv [+ BN] [+ LeakyReLU] layer
# ---------------------------------------------------------------------------
def _conv_layer(x, p, cfg, *, out_dtype):
    n = x.shape[0]
    cin, cout, stride = cfg['cin'], cfg['cout'], cfg['stride']

    # Pad channels up front (tiny tensor) so K = 16*cin8 is already a multiple
    # of 128 -> no extra column pad copy of the big patch matrix.
    cin8 = _round_up(cin, 8)
    if cin8 != cin:
        x = jnp.pad(x, ((0, 0), (0, 0), (0, 0), (0, cin8 - cin)))

    patches, ho, wo = _im2col(x, stride)               # bf16 (M, 16*cin8)
    m, k = patches.shape                               # k already lane-aligned

    tm, m_pad = _pick_tile(m, MAX_TM, 256)             # 256-aligned m-tiles
    tk, k_pad = _pick_tile(k, MAX_TK, 128)             # k_pad == k
    tn, c_pad = _pick_tile(cout, MAX_TN, 128)          # cout=1 -> 128 lanes
    mt, nt, kt = m_pad // tm, c_pad // tn, k_pad // tk
    grid = (mt, nt, kt)

    if m_pad != m:
        patches = jnp.pad(patches, ((0, m_pad - m), (0, 0)))

    w_mat = p['w'].astype(jnp.bfloat16)
    if cin8 != cin:
        w_mat = jnp.pad(w_mat, ((0, 0), (0, 0), (0, cin8 - cin), (0, 0)))
    w_mat = w_mat.reshape(KW * KW * cin8, cout)
    w_mat = jnp.pad(w_mat, ((0, k_pad - k), (0, c_pad - cout)))

    # Resident weights: full-K block whose index depends only on j (nt == 1
    # for every real layer) -> DMA'd once per layer, not once per m-tile.
    p_spec = pl.BlockSpec((tm, tk), lambda i, j, kk: (i, kk))
    w_spec = pl.BlockSpec((k_pad, tn), lambda i, j, kk: (0, j))
    o_spec = pl.BlockSpec((tm, tn), lambda i, j, kk: (i, j))
    acc = pltpu.VMEM((tm, tn), jnp.float32)

    if cfg['bn']:
        # Pass 1: conv matmul, bf16 pre-BN output + per-tile per-channel stats.
        # (bias is skipped: it is cancelled by the BN mean subtraction)
        conv, stats = pl.pallas_call(
            functools.partial(_conv_stats_kernel, tk=tk),
            out_shape=(jax.ShapeDtypeStruct((m_pad, c_pad), jnp.bfloat16),
                       jax.ShapeDtypeStruct((mt * 8, c_pad), jnp.float32)),
            grid=grid,
            in_specs=[p_spec, w_spec],
            out_specs=(o_spec, pl.BlockSpec((8, tn), lambda i, j, kk: (i, j))),
            scratch_shapes=[acc],
            compiler_params=_MM_PARAMS,
        )(patches, w_mat)

        # Tiny per-channel reduction + scale/shift precompute (pure JAX, f32).
        stats = stats.reshape(mt, 8, c_pad)
        ssum = jnp.sum(stats[:, 0, :], axis=0)
        ssq = jnp.sum(stats[:, 1, :], axis=0)
        mean = ssum / m                                 # divide by TRUE row count
        var = jnp.maximum(ssq / m - mean * mean, 0.0)
        gamma = jnp.pad(p['gamma'], (0, c_pad - cout))
        beta = jnp.pad(p['beta'], (0, c_pad - cout))
        scale = gamma * jax.lax.rsqrt(var + BN_EPS)
        shift = beta - mean * scale

        # Pass 2: lane-dense normalize + LeakyReLU epilogue (mem-bound).
        out = pl.pallas_call(
            functools.partial(_bn_act_kernel, apply_act=cfg['act']),
            out_shape=jax.ShapeDtypeStruct((m_pad, c_pad), out_dtype),
            grid=(mt,),
            in_specs=[pl.BlockSpec((tm, c_pad), lambda i: (i, 0)),
                      pl.BlockSpec((1, c_pad), lambda i: (0, 0)),
                      pl.BlockSpec((1, c_pad), lambda i: (0, 0))],
            out_specs=pl.BlockSpec((tm, c_pad), lambda i: (i, 0)),
            compiler_params=_EPI_PARAMS,
        )(conv, scale[None, :], shift[None, :])
    else:
        bias = jnp.pad(p['b'], (0, c_pad - cout)).astype(jnp.float32)[None, :]
        out = pl.pallas_call(
            functools.partial(_conv_bias_kernel, tk=tk, apply_act=cfg['act']),
            out_shape=jax.ShapeDtypeStruct((m_pad, c_pad), out_dtype),
            grid=grid,
            in_specs=[p_spec, w_spec,
                      pl.BlockSpec((1, tn), lambda i, j, kk: (0, j))],
            out_specs=o_spec,
            scratch_shapes=[acc],
            compiler_params=_MM_PARAMS,
        )(patches, w_mat, bias)

    return out[:m, :cout].reshape(n, ho, wo, cout)


# ---------------------------------------------------------------------------
# Module structure (mirrors NLayerDiscriminator.__init__, defaults)
# ---------------------------------------------------------------------------
def discriminator_configs(input_nc, ndf=64, n_layers=3):
    cfgs = [dict(cin=input_nc, cout=ndf, stride=2, bn=False, act=True)]
    nf = ndf
    for _ in range(1, n_layers):
        nf_prev, nf = nf, min(nf * 2, 512)
        cfgs.append(dict(cin=nf_prev, cout=nf, stride=2, bn=True, act=True))
    nf_prev, nf = nf, min(nf * 2, 512)
    cfgs.append(dict(cin=nf_prev, cout=nf, stride=1, bn=True, act=True))
    cfgs.append(dict(cin=nf, cout=1, stride=1, bn=False, act=False))
    # use_sigmoid=False (default) -> no Sigmoid; getIntermFeat=False (default)
    return cfgs


def init_params(key, cfgs):
    params = []
    for cfg in cfgs:
        key, k_w, k_b, k_g, k_be = jax.random.split(key, 5)
        params.append(dict(
            w=0.02 * jax.random.normal(k_w, (KW, KW, cfg['cin'], cfg['cout']),
                                       jnp.float32),                    # HWIO
            b=0.01 * jax.random.normal(k_b, (cfg['cout'],), jnp.float32),
            gamma=1.0 + 0.1 * jax.random.normal(k_g, (cfg['cout'],), jnp.float32),
            beta=0.1 * jax.random.normal(k_be, (cfg['cout'],), jnp.float32),
        ))
    return params


def nlayer_discriminator_forward(x_nchw, params, cfgs):
    x = jnp.transpose(x_nchw, (0, 2, 3, 1)).astype(jnp.bfloat16)   # NCHW -> NHWC
    for li, (p, cfg) in enumerate(zip(params, cfgs)):
        last = li == len(cfgs) - 1
        x = _conv_layer(x, p, cfg,
                        out_dtype=jnp.float32 if last else jnp.bfloat16)
    return jnp.transpose(x, (0, 3, 1, 2)).astype(jnp.float32)      # NHWC -> NCHW


# ---------------------------------------------------------------------------
# Pure-JAX reference (lax.conv) mirroring the kernel's bf16 casting points
# ---------------------------------------------------------------------------
def reference_forward(x_nchw, params, cfgs):
    x = jnp.transpose(x_nchw, (0, 2, 3, 1)).astype(jnp.bfloat16)
    for li, (p, cfg) in enumerate(zip(params, cfgs)):
        conv = jax.lax.conv_general_dilated(
            x, p['w'].astype(jnp.bfloat16),
            window_strides=(cfg['stride'], cfg['stride']),
            padding=[(PADW, PADW), (PADW, PADW)],
            dimension_numbers=('NHWC', 'HWIO', 'NHWC'),
            preferred_element_type=jnp.float32)
        if cfg['bn']:
            mean = jnp.mean(conv, axis=(0, 1, 2))
            var = jnp.maximum(jnp.mean(conv * conv, axis=(0, 1, 2)) - mean * mean, 0.0)
            y = conv.astype(jnp.bfloat16).astype(jnp.float32)   # pre-BN staged in bf16
            y = (y - mean) * jax.lax.rsqrt(var + BN_EPS) * p['gamma'] + p['beta']
        else:
            y = conv + p['b']
        if cfg['act']:
            y = jnp.where(y >= 0, y, NEG_SLOPE * y)
        last = li == len(cfgs) - 1
        x = y.astype(jnp.float32 if last else jnp.bfloat16)
    return jnp.transpose(x, (0, 3, 1, 2)).astype(jnp.float32)


if __name__ == "__main__":
    key = jax.random.PRNGKey(0)
    k_x, k_p = jax.random.split(key)

    # Small synthetic shapes: batch=2, input_nc=4, 16x16 spatial, ndf=16, n_layers=3
    n, input_nc, h, w = 2, 4, 16, 16
    ndf, n_layers = 16, 3

    x = jax.random.normal(k_x, (n, input_nc, h, w), jnp.float32)   # NCHW like PyTorch
    cfgs = discriminator_configs(input_nc, ndf=ndf, n_layers=n_layers)
    params = init_params(k_p, cfgs)

    fwd = jax.jit(lambda xx, pp: nlayer_discriminator_forward(xx, pp, cfgs))
    ref_fn = jax.jit(lambda xx, pp: reference_forward(xx, pp, cfgs))

    out = jax.block_until_ready(fwd(x, params))
    ref = jax.block_until_ready(ref_fn(x, params))

    assert out.shape == ref.shape == (n, 1, 5, 5), out.shape
    assert bool(jnp.all(jnp.isfinite(out)))
    assert bool(jnp.allclose(out, ref, rtol=5e-2, atol=5e-2)), float(
        jnp.max(jnp.abs(out - ref)))

    print("KERNEL_OK")
</pallas_src>

<mosaic_0001>
module attributes {stable_mosaic.version = 11 : i64} {
  func.func @_conv_bias_kernel(%arg0: i32, %arg1: i32, %arg2: i32, %arg3: memref<256x128xbf16, #tpu.memory_space<vmem>>, %arg4: memref<128x128xbf16, #tpu.memory_space<vmem>>, %arg5: memref<1x128xf32, #tpu.memory_space<vmem>>, %arg6: memref<256x128xbf16, #tpu.memory_space<vmem>>, %arg7: memref<256x128xf32, #tpu.memory_space<vmem>>) attributes {dimension_semantics = [#tpu.dimension_semantics<parallel>, #tpu.dimension_semantics<parallel>, #tpu.dimension_semantics<arbitrary>], iteration_bounds = array<i64: 1, 1, 1>, scalar_prefetch = 0 : i64, scratch_operands = 1 : i64, tpu.core_type = #tpu.core_type<tc>, window_params = [{transform_indices = @transform_0, window_bounds = array<i64: 256, 128>}, {transform_indices = @transform_1, window_bounds = array<i64: 128, 128>}, {transform_indices = @transform_2, window_bounds = array<i64: 1, 128>}, {transform_indices = @transform_3, window_bounds = array<i64: 256, 128>}]} {
    %c0_i32 = arith.constant 0 : i32
    %0 = arith.cmpi eq, %arg2, %c0_i32 : i32
    %1 = arith.extui %0 : i1 to i32
    %c0_i32_0 = arith.constant 0 : i32
    %2 = arith.cmpi ne, %1, %c0_i32_0 : i32
    scf.if %2 {
      %cst_9 = arith.constant 0.000000e+00 : f32
      %15 = vector.broadcast %cst_9 : f32 to vector<256x128xf32>
      %c0_10 = arith.constant 0 : index
      %c0_11 = arith.constant 0 : index
      %16 = vector.load %arg7[%c0_10, %c0_11] : memref<256x128xf32, #tpu.memory_space<vmem>>, vector<256x128xf32>
      tpu.vector_store %arg7[%c0_10, %c0_11], %15 {strides = array<i32>} : memref<256x128xf32, #tpu.memory_space<vmem>>, vector<256x128xf32>,
    } else {
    }
    %c128_i32 = arith.constant 128 : i32
    %3 = arith.muli %arg2, %c128_i32 : i32
    %4 = tpu.assume_multiple %3, 128 : i32
    %c0 = arith.constant 0 : index
    %c0_1 = arith.constant 0 : index
    %5 = vector.load %arg7[%c0, %c0_1] : memref<256x128xf32, #tpu.memory_space<vmem>>, vector<256x128xf32>
    %c0_2 = arith.constant 0 : index
    %c0_3 = arith.constant 0 : index
    %6 = vector.load %arg3[%c0_2, %c0_3] : memref<256x128xbf16, #tpu.memory_space<vmem>>, vector<256x128xbf16>
    %7 = arith.index_cast %4 : i32 to index
    %c0_4 = arith.constant 0 : index
    %8 = vector.load %arg4[%7, %c0_4] : memref<128x128xbf16, #tpu.memory_space<vmem>>, vector<128x128xbf16>
    %cst = arith.constant dense<0.000000e+00> : vector<256x128xf32>
    %9 = tpu.matmul %6, %8, %cst {dimension_numbers = #tpu.dot_dimension_numbers<[1], [0], [0], [1], [0, 0, 1, 1], [], []>} : vector<256x128xbf16>, vector<128x128xbf16>, vector<256x128xf32> -> vector<256x128xf32>
    %10 = arith.addf %5, %9 : vector<256x128xf32>
    %c0_5 = arith.constant 0 : index
    %c0_6 = arith.constant 0 : index
    %11 = vector.load %arg7[%c0_5, %c0_6] : memref<256x128xf32, #tpu.memory_space<vmem>>, vector<256x128xf32>
    tpu.vector_store %arg7[%c0_5, %c0_6], %10 {strides = array<i32>} : memref<256x128xf32, #tpu.memory_space<vmem>>, vector<256x128xf32>,
    %c0_i32_7 = arith.constant 0 : i32
    %12 = arith.cmpi eq, %arg2, %c0_i32_7 : i32
    %13 = arith.extui %12 : i1 to i32
    %c0_i32_8 = arith.constant 0 : i32
    %14 = arith.cmpi ne, %13, %c0_i32_8 : i32
    scf.if %14 {
      %c0_9 = arith.constant 0 : index
      %c0_10 = arith.constant 0 : index
      %15 = vector.load %arg7[%c0_9, %c0_10] : memref<256x128xf32, #tpu.memory_space<vmem>>, vector<256x128xf32>
      %c0_11 = arith.constant 0 : index
      %c0_12 = arith.constant 0 : index
      %16 = vector.load %arg5[%c0_11, %c0_12] : memref<1x128xf32, #tpu.memory_space<vmem>>, vector<1x128xf32>
      %17 = vector.broadcast %16 : vector<1x128xf32> to vector<256x128xf32>
      %18 = arith.addf %15, %17 : vector<256x128xf32>
      %cst_13 = arith.constant 0.000000e+00 : f32
      %19 = vector.broadcast %cst_13 : f32 to vector<256x128xf32>
      %20 = arith.cmpf oge, %18, %19 : vector<256x128xf32>
      %cst_14 = arith.constant 2.000000e-01 : f32
      %21 = vector.broadcast %cst_14 : f32 to vector<256x128xf32>
      %22 = arith.mulf %21, %18 : vector<256x128xf32>
      %23 = arith.select %20, %18, %22 : vector<256x128xi1>, vector<256x128xf32>
      %24 = arith.truncf %23 : vector<256x128xf32> to vector<256x128xbf16>
      %c0_15 = arith.constant 0 : index
      %c0_16 = arith.constant 0 : index
      %25 = vector.load %arg6[%c0_15, %c0_16] : memref<256x128xbf16, #tpu.memory_space<vmem>>, vector<256x128xbf16>
      tpu.vector_store %arg6[%c0_15, %c0_16], %24 {strides = array<i32>} : memref<256x128xbf16, #tpu.memory_space<vmem>>, vector<256x128xbf16>,
    } else {
    }
    return
  }
  func.func @transform_0(%arg0: i32, %arg1: i32, %arg2: i32) -> (i32, i32) {
    %c0_i32 = arith.constant 0 : i32
    return %arg0, %arg2 : i32, i32
  }
  func.func @transform_1(%arg0: i32, %arg1: i32, %arg2: i32) -> (i32, i32) {
    %c0_i32 = arith.constant 0 : i32
    %c0_i32_0 = arith.constant 0 : i32
    return %c0_i32, %arg1 : i32, i32
  }
  func.func @transform_2(%arg0: i32, %arg1: i32, %arg2: i32) -> (i32, i32) {
    %c0_i32 = arith.constant 0 : i32
    %c0_i32_0 = arith.constant 0 : i32
    return %c0_i32, %arg1 : i32, i32
  }
  func.func @transform_3(%arg0: i32, %arg1: i32, %arg2: i32) -> (i32, i32) {
    %c0_i32 = arith.constant 0 : i32
    return %arg0, %arg1 : i32, i32
  }
}

module attributes {stable_mosaic.version = 11 : i64} {
  func.func @_conv_stats_kernel(%arg0: i32, %arg1: i32, %arg2: i32, %arg3: memref<256x256xbf16, #tpu.memory_space<vmem>>, %arg4: memref<256x128xbf16, #tpu.memory_space<vmem>>, %arg5: memref<256x128xbf16, #tpu.memory_space<vmem>>, %arg6: memref<8x128xf32, #tpu.memory_space<vmem>>, %arg7: memref<256x128xf32, #tpu.memory_space<vmem>>) attributes {dimension_semantics = [#tpu.dimension_semantics<parallel>, #tpu.dimension_semantics<parallel>, #tpu.dimension_semantics<arbitrary>], iteration_bounds = array<i64: 1, 1, 1>, scalar_prefetch = 0 : i64, scratch_operands = 1 : i64, tpu.core_type = #tpu.core_type<tc>, window_params = [{transform_indices = @transform_0, window_bounds = array<i64: 256, 256>}, {transform_indices = @transform_1, window_bounds = array<i64: 256, 128>}, {transform_indices = @transform_2, window_bounds = array<i64: 256, 128>}, {transform_indices = @transform_3, window_bounds = array<i64: 8, 128>}]} {
    %c0_i32 = arith.constant 0 : i32
    %0 = arith.cmpi eq, %arg2, %c0_i32 : i32
    %1 = arith.extui %0 : i1 to i32
    %c0_i32_0 = arith.constant 0 : i32
    %2 = arith.cmpi ne, %1, %c0_i32_0 : i32
    scf.if %2 {
      %cst_9 = arith.constant 0.000000e+00 : f32
      %15 = vector.broadcast %cst_9 : f32 to vector<256x128xf32>
      %c0_10 = arith.constant 0 : index
      %c0_11 = arith.constant 0 : index
      %16 = vector.load %arg7[%c0_10, %c0_11] : memref<256x128xf32, #tpu.memory_space<vmem>>, vector<256x128xf32>
      tpu.vector_store %arg7[%c0_10, %c0_11], %15 {strides = array<i32>} : memref<256x128xf32, #tpu.memory_space<vmem>>, vector<256x128xf32>,
    } else {
    }
    %c256_i32 = arith.constant 256 : i32
    %3 = arith.muli %arg2, %c256_i32 : i32
    %4 = tpu.assume_multiple %3, 128 : i32
    %c0 = arith.constant 0 : index
    %c0_1 = arith.constant 0 : index
    %5 = vector.load %arg7[%c0, %c0_1] : memref<256x128xf32, #tpu.memory_space<vmem>>, vector<256x128xf32>
    %c0_2 = arith.constant 0 : index
    %c0_3 = arith.constant 0 : index
    %6 = vector.load %arg3[%c0_2, %c0_3] : memref<256x256xbf16, #tpu.memory_space<vmem>>, vector<256x256xbf16>
    %7 = arith.index_cast %4 : i32 to index
    %c0_4 = arith.constant 0 : index
    %8 = vector.load %arg4[%7, %c0_4] : memref<256x128xbf16, #tpu.memory_space<vmem>>, vector<256x128xbf16>
    %cst = arith.constant dense<0.000000e+00> : vector<256x128xf32>
    %9 = tpu.matmul %6, %8, %cst {dimension_numbers = #tpu.dot_dimension_numbers<[1], [0], [0], [1], [0, 0, 1, 1], [], []>} : vector<256x256xbf16>, vector<256x128xbf16>, vector<256x128xf32> -> vector<256x128xf32>
    %10 = arith.addf %5, %9 : vector<256x128xf32>
    %c0_5 = arith.constant 0 : index
    %c0_6 = arith.constant 0 : index
    %11 = vector.load %arg7[%c0_5, %c0_6] : memref<256x128xf32, #tpu.memory_space<vmem>>, vector<256x128xf32>
    tpu.vector_store %arg7[%c0_5, %c0_6], %10 {strides = array<i32>} : memref<256x128xf32, #tpu.memory_space<vmem>>, vector<256x128xf32>,
    %c0_i32_7 = arith.constant 0 : i32
    %12 = arith.cmpi eq, %arg2, %c0_i32_7 : i32
    %13 = arith.extui %12 : i1 to i32
    %c0_i32_8 = arith.constant 0 : i32
    %14 = arith.cmpi ne, %13, %c0_i32_8 : i32
    scf.if %14 {
      %c0_9 = arith.constant 0 : index
      %c0_10 = arith.constant 0 : index
      %15 = vector.load %arg7[%c0_9, %c0_10] : memref<256x128xf32, #tpu.memory_space<vmem>>, vector<256x128xf32>
      %16 = arith.truncf %15 : vector<256x128xf32> to vector<256x128xbf16>
      %c0_11 = arith.constant 0 : index
      %c0_12 = arith.constant 0 : index
      %17 = vector.load %arg5[%c0_11, %c0_12] : memref<256x128xbf16, #tpu.memory_space<vmem>>, vector<256x128xbf16>
      tpu.vector_store %arg5[%c0_11, %c0_12], %16 {strides = array<i32>} : memref<256x128xbf16, #tpu.memory_space<vmem>>, vector<256x128xbf16>,
      %cst_13 = arith.constant dense<0.000000e+00> : vector<128xf32>
      %18 = vector.multi_reduction <add>, %15, %cst_13 [0] : vector<256x128xf32> to vector<128xf32>
      %19 = vector.shape_cast %18 : vector<128xf32> to vector<1x128xf32>
      %20 = arith.mulf %15, %15 : vector<256x128xf32>
      %cst_14 = arith.constant dense<0.000000e+00> : vector<128xf32>
      %21 = vector.multi_reduction <add>, %20, %cst_14 [0] : vector<256x128xf32> to vector<128xf32>
      %22 = vector.shape_cast %21 : vector<128xf32> to vector<1x128xf32>
      %23 = tpu.iota {dimensions = array<i32: 0>} : vector<8x128xi32>
      %c0_i32_15 = arith.constant 0 : i32
      %24 = vector.broadcast %c0_i32_15 : i32 to vector<8x128xi32>
      %25 = arith.cmpi eq, %23, %24 : vector<8x128xi32>
      %c1_i32 = arith.constant 1 : i32
      %26 = vector.broadcast %c1_i32 : i32 to vector<8x128xi32>
      %27 = arith.cmpi eq, %23, %26 : vector<8x128xi32>
      %cst_16 = arith.constant 0.000000e+00 : f32
      %28 = vector.shape_cast %22 : vector<1x128xf32> to vector<1x128xf32>
      %29 = vector.broadcast %28 : vector<1x128xf32> to vector<8x128xf32>
      %30 = vector.broadcast %cst_16 : f32 to vector<8x128xf32>
      %31 = arith.select %27, %29, %30 : vector<8x128xi1>, vector<8x128xf32>
      %32 = vector.shape_cast %19 : vector<1x128xf32> to vector<1x128xf32>
      %33 = vector.broadcast %32 : vector<1x128xf32> to vector<8x128xf32>
      %34 = arith.select %25, %33, %31 : vector<8x128xi1>, vector<8x128xf32>
      %c0_17 = arith.constant 0 : index
      %c0_18 = arith.constant 0 : index
      %35 = vector.load %arg6[%c0_17, %c0_18] : memref<8x128xf32, #tpu.memory_space<vmem>>, vector<8x128xf32>
      tpu.vector_store %arg6[%c0_17, %c0_18], %34 {strides = array<i32>} : memref<8x128xf32, #tpu.memory_space<vmem>>, vector<8x128xf32>,
    } else {
    }
    return
  }
  func.func @transform_0(%arg0: i32, %arg1: i32, %arg2: i32) -> (i32, i32) {
    %c0_i32 = arith.constant 0 : i32
    return %arg0, %arg2 : i32, i32
  }
  func.func @transform_1(%arg0: i32, %arg1: i32, %arg2: i32) -> (i32, i32) {
    %c0_i32 = arith.constant 0 : i32
    %c0_i32_0 = arith.constant 0 : i32
    return %c0_i32, %arg1 : i32, i32
  }
  func.func @transform_2(%arg0: i32, %arg1: i32, %arg2: i32) -> (i32, i32) {
    %c0_i32 = arith.constant 0 : i32
    return %arg0, %arg1 : i32, i32
  }
  func.func @transform_3(%arg0: i32, %arg1: i32, %arg2: i32) -> (i32, i32) {
    %c0_i32 = arith.constant 0 : i32
    return %arg0, %arg1 : i32, i32
  }
}

module attributes {stable_mosaic.version = 11 : i64} {
  func.func @_bn_act_kernel(%arg0: i32, %arg1: memref<256x128xbf16, #tpu.memory_space<vmem>>, %arg2: memref<1x128xf32, #tpu.memory_space<vmem>>, %arg3: memref<1x128xf32, #tpu.memory_space<vmem>>, %arg4: memref<256x128xbf16, #tpu.memory_space<vmem>>) attributes {dimension_semantics = [#tpu.dimension_semantics<parallel>], iteration_bounds = array<i64: 1>, scalar_prefetch = 0 : i64, scratch_operands = 0 : i64, tpu.core_type = #tpu.core_type<tc>, window_params = [{transform_indices = @transform_0, window_bounds = array<i64: 256, 128>}, {pipeline_mode = #tpu.pipeline_mode<synchronous>, transform_indices = @transform_1, window_bounds = array<i64: 1, 128>}, {pipeline_mode = #tpu.pipeline_mode<synchronous>, transform_indices = @transform_2, window_bounds = array<i64: 1, 128>}, {transform_indices = @transform_3, window_bounds = array<i64: 256, 128>}]} {
    %c0 = arith.constant 0 : index
    %c0_0 = arith.constant 0 : index
    %0 = vector.load %arg1[%c0, %c0_0] : memref<256x128xbf16, #tpu.memory_space<vmem>>, vector<256x128xbf16>
    %1 = arith.extf %0 : vector<256x128xbf16> to vector<256x128xf32>
    %c0_1 = arith.constant 0 : index
    %c0_2 = arith.constant 0 : index
    %2 = vector.load %arg2[%c0_1, %c0_2] : memref<1x128xf32, #tpu.memory_space<vmem>>, vector<1x128xf32>
    %3 = vector.broadcast %2 : vector<1x128xf32> to vector<256x128xf32>
    %4 = arith.mulf %1, %3 : vector<256x128xf32>
    %c0_3 = arith.constant 0 : index
    %c0_4 = arith.constant 0 : index
    %5 = vector.load %arg3[%c0_3, %c0_4] : memref<1x128xf32, #tpu.memory_space<vmem>>, vector<1x128xf32>
    %6 = vector.broadcast %5 : vector<1x128xf32> to vector<256x128xf32>
    %7 = arith.addf %4, %6 : vector<256x128xf32>
    %cst = arith.constant 0.000000e+00 : f32
    %8 = vector.broadcast %cst : f32 to vector<256x128xf32>
    %9 = arith.cmpf oge, %7, %8 : vector<256x128xf32>
    %cst_5 = arith.constant 2.000000e-01 : f32
    %10 = vector.broadcast %cst_5 : f32 to vector<256x128xf32>
    %11 = arith.mulf %10, %7 : vector<256x128xf32>
    %12 = arith.select %9, %7, %11 : vector<256x128xi1>, vector<256x128xf32>
    %13 = arith.truncf %12 : vector<256x128xf32> to vector<256x128xbf16>
    %c0_6 = arith.constant 0 : index
    %c0_7 = arith.constant 0 : index
    %14 = vector.load %arg4[%c0_6, %c0_7] : memref<256x128xbf16, #tpu.memory_space<vmem>>, vector<256x128xbf16>
    tpu.vector_store %arg4[%c0_6, %c0_7], %13 {strides = array<i32>} : memref<256x128xbf16, #tpu.memory_space<vmem>>, vector<256x128xbf16>,
    return
  }
  func.func @transform_0(%arg0: i32) -> (i32, i32) {
    %c0_i32 = arith.constant 0 : i32
    %c0_i32_0 = arith.constant 0 : i32
    return %arg0, %c0_i32 : i32, i32
  }
  func.func @transform_1(%arg0: i32) -> (i32, i32) {
    %c0_i32 = arith.constant 0 : i32
    %c0_i32_0 = arith.constant 0 : i32
    %c0_i32_1 = arith.constant 0 : i32
    return %c0_i32, %c0_i32_0 : i32, i32
  }
  func.func @transform_2(%arg0: i32) -> (i32, i32) {
    %c0_i32 = arith.constant 0 : i32
    %c0_i32_0 = arith.constant 0 : i32
    %c0_i32_1 = arith.constant 0 : i32
    return %c0_i32, %c0_i32_0 : i32, i32
  }
  func.func @transform_3(%arg0: i32) -> (i32, i32) {
    %c0_i32 = arith.constant 0 : i32
    %c0_i32_0 = arith.constant 0 : i32
    return %arg0, %c0_i32 : i32, i32
  }
}

module attributes {stable_mosaic.version = 11 : i64} {
  func.func @_conv_stats_kernel(%arg0: i32, %arg1: i32, %arg2: i32, %arg3: memref<256x512xbf16, #tpu.memory_space<vmem>>, %arg4: memref<512x128xbf16, #tpu.memory_space<vmem>>, %arg5: memref<256x128xbf16, #tpu.memory_space<vmem>>, %arg6: memref<8x128xf32, #tpu.memory_space<vmem>>, %arg7: memref<256x128xf32, #tpu.memory_space<vmem>>) attributes {dimension_semantics = [#tpu.dimension_semantics<parallel>, #tpu.dimension_semantics<parallel>, #tpu.dimension_semantics<arbitrary>], iteration_bounds = array<i64: 1, 1, 1>, scalar_prefetch = 0 : i64, scratch_operands = 1 : i64, tpu.core_type = #tpu.core_type<tc>, window_params = [{transform_indices = @transform_0, window_bounds = array<i64: 256, 512>}, {transform_indices = @transform_1, window_bounds = array<i64: 512, 128>}, {transform_indices = @transform_2, window_bounds = array<i64: 256, 128>}, {transform_indices = @transform_3, window_bounds = array<i64: 8, 128>}]} {
    %c0_i32 = arith.constant 0 : i32
    %0 = arith.cmpi eq, %arg2, %c0_i32 : i32
    %1 = arith.extui %0 : i1 to i32
    %c0_i32_0 = arith.constant 0 : i32
    %2 = arith.cmpi ne, %1, %c0_i32_0 : i32
    scf.if %2 {
      %cst_9 = arith.constant 0.000000e+00 : f32
      %15 = vector.broadcast %cst_9 : f32 to vector<256x128xf32>
      %c0_10 = arith.constant 0 : index
      %c0_11 = arith.constant 0 : index
      %16 = vector.load %arg7[%c0_10, %c0_11] : memref<256x128xf32, #tpu.memory_space<vmem>>, vector<256x128xf32>
      tpu.vector_store %arg7[%c0_10, %c0_11], %15 {strides = array<i32>} : memref<256x128xf32, #tpu.memory_space<vmem>>, vector<256x128xf32>,
    } else {
    }
    %c512_i32 = arith.constant 512 : i32
    %3 = arith.muli %arg2, %c512_i32 : i32
    %4 = tpu.assume_multiple %3, 128 : i32
    %c0 = arith.constant 0 : index
    %c0_1 = arith.constant 0 : index
    %5 = vector.load %arg7[%c0, %c0_1] : memref<256x128xf32, #tpu.memory_space<vmem>>, vector<256x128xf32>
    %c0_2 = arith.constant 0 : index
    %c0_3 = arith.constant 0 : index
    %6 = vector.load %arg3[%c0_2, %c0_3] : memref<256x512xbf16, #tpu.memory_space<vmem>>, vector<256x512xbf16>
    %7 = arith.index_cast %4 : i32 to index
    %c0_4 = arith.constant 0 : index
    %8 = vector.load %arg4[%7, %c0_4] : memref<512x128xbf16, #tpu.memory_space<vmem>>, vector<512x128xbf16>
    %cst = arith.constant dense<0.000000e+00> : vector<256x128xf32>
    %9 = tpu.matmul %6, %8, %cst {dimension_numbers = #tpu.dot_dimension_numbers<[1], [0], [0], [1], [0, 0, 1, 1], [], []>} : vector<256x512xbf16>, vector<512x128xbf16>, vector<256x128xf32> -> vector<256x128xf32>
    %10 = arith.addf %5, %9 : vector<256x128xf32>
    %c0_5 = arith.constant 0 : index
    %c0_6 = arith.constant 0 : index
    %11 = vector.load %arg7[%c0_5, %c0_6] : memref<256x128xf32, #tpu.memory_space<vmem>>, vector<256x128xf32>
    tpu.vector_store %arg7[%c0_5, %c0_6], %10 {strides = array<i32>} : memref<256x128xf32, #tpu.memory_space<vmem>>, vector<256x128xf32>,
    %c0_i32_7 = arith.constant 0 : i32
    %12 = arith.cmpi eq, %arg2, %c0_i32_7 : i32
    %13 = arith.extui %12 : i1 to i32
    %c0_i32_8 = arith.constant 0 : i32
    %14 = arith.cmpi ne, %13, %c0_i32_8 : i32
    scf.if %14 {
      %c0_9 = arith.constant 0 : index
      %c0_10 = arith.constant 0 : index
      %15 = vector.load %arg7[%c0_9, %c0_10] : memref<256x128xf32, #tpu.memory_space<vmem>>, vector<256x128xf32>
      %16 = arith.truncf %15 : vector<256x128xf32> to vector<256x128xbf16>
      %c0_11 = arith.constant 0 : index
      %c0_12 = arith.constant 0 : index
      %17 = vector.load %arg5[%c0_11, %c0_12] : memref<256x128xbf16, #tpu.memory_space<vmem>>, vector<256x128xbf16>
      tpu.vector_store %arg5[%c0_11, %c0_12], %16 {strides = array<i32>} : memref<256x128xbf16, #tpu.memory_space<vmem>>, vector<256x128xbf16>,
      %cst_13 = arith.constant dense<0.000000e+00> : vector<128xf32>
      %18 = vector.multi_reduction <add>, %15, %cst_13 [0] : vector<256x128xf32> to vector<128xf32>
      %19 = vector.shape_cast %18 : vector<128xf32> to vector<1x128xf32>
      %20 = arith.mulf %15, %15 : vector<256x128xf32>
      %cst_14 = arith.constant dense<0.000000e+00> : vector<128xf32>
      %21 = vector.multi_reduction <add>, %20, %cst_14 [0] : vector<256x128xf32> to vector<128xf32>
      %22 = vector.shape_cast %21 : vector<128xf32> to vector<1x128xf32>
      %23 = tpu.iota {dimensions = array<i32: 0>} : vector<8x128xi32>
      %c0_i32_15 = arith.constant 0 : i32
      %24 = vector.broadcast %c0_i32_15 : i32 to vector<8x128xi32>
      %25 = arith.cmpi eq, %23, %24 : vector<8x128xi32>
      %c1_i32 = arith.constant 1 : i32
      %26 = vector.broadcast %c1_i32 : i32 to vector<8x128xi32>
      %27 = arith.cmpi eq, %23, %26 : vector<8x128xi32>
      %cst_16 = arith.constant 0.000000e+00 : f32
      %28 = vector.shape_cast %22 : vector<1x128xf32> to vector<1x128xf32>
      %29 = vector.broadcast %28 : vector<1x128xf32> to vector<8x128xf32>
      %30 = vector.broadcast %cst_16 : f32 to vector<8x128xf32>
      %31 = arith.select %27, %29, %30 : vector<8x128xi1>, vector<8x128xf32>
      %32 = vector.shape_cast %19 : vector<1x128xf32> to vector<1x128xf32>
      %33 = vector.broadcast %32 : vector<1x128xf32> to vector<8x128xf32>
      %34 = arith.select %25, %33, %31 : vector<8x128xi1>, vector<8x128xf32>
      %c0_17 = arith.constant 0 : index
      %c0_18 = arith.constant 0 : index
      %35 = vector.load %arg6[%c0_17, %c0_18] : memref<8x128xf32, #tpu.memory_space<vmem>>, vector<8x128xf32>
      tpu.vector_store %arg6[%c0_17, %c0_18], %34 {strides = array<i32>} : memref<8x128xf32, #tpu.memory_space<vmem>>, vector<8x128xf32>,
    } else {
    }
    return
  }
  func.func @transform_0(%arg0: i32, %arg1: i32, %arg2: i32) -> (i32, i32) {
    %c0_i32 = arith.constant 0 : i32
    return %arg0, %arg2 : i32, i32
  }
  func.func @transform_1(%arg0: i32, %arg1: i32, %arg2: i32) -> (i32, i32) {
    %c0_i32 = arith.constant 0 : i32
    %c0_i32_0 = arith.constant 0 : i32
    return %c0_i32, %arg1 : i32, i32
  }
  func.func @transform_2(%arg0: i32, %arg1: i32, %arg2: i32) -> (i32, i32) {
    %c0_i32 = arith.constant 0 : i32
    return %arg0, %arg1 : i32, i32
  }
  func.func @transform_3(%arg0: i32, %arg1: i32, %arg2: i32) -> (i32, i32) {
    %c0_i32 = arith.constant 0 : i32
    return %arg0, %arg1 : i32, i32
  }
}

module attributes {stable_mosaic.version = 11 : i64} {
  func.func @_conv_stats_kernel(%arg0: i32, %arg1: i32, %arg2: i32, %arg3: memref<256x1024xbf16, #tpu.memory_space<vmem>>, %arg4: memref<1024x128xbf16, #tpu.memory_space<vmem>>, %arg5: memref<256x128xbf16, #tpu.memory_space<vmem>>, %arg6: memref<8x128xf32, #tpu.memory_space<vmem>>, %arg7: memref<256x128xf32, #tpu.memory_space<vmem>>) attributes {dimension_semantics = [#tpu.dimension_semantics<parallel>, #tpu.dimension_semantics<parallel>, #tpu.dimension_semantics<arbitrary>], iteration_bounds = array<i64: 1, 1, 1>, scalar_prefetch = 0 : i64, scratch_operands = 1 : i64, tpu.core_type = #tpu.core_type<tc>, window_params = [{transform_indices = @transform_0, window_bounds = array<i64: 256, 1024>}, {transform_indices = @transform_1, window_bounds = array<i64: 1024, 128>}, {transform_indices = @transform_2, window_bounds = array<i64: 256, 128>}, {transform_indices = @transform_3, window_bounds = array<i64: 8, 128>}]} {
    %c0_i32 = arith.constant 0 : i32
    %0 = arith.cmpi eq, %arg2, %c0_i32 : i32
    %1 = arith.extui %0 : i1 to i32
    %c0_i32_0 = arith.constant 0 : i32
    %2 = arith.cmpi ne, %1, %c0_i32_0 : i32
    scf.if %2 {
      %cst_9 = arith.constant 0.000000e+00 : f32
      %15 = vector.broadcast %cst_9 : f32 to vector<256x128xf32>
      %c0_10 = arith.constant 0 : index
      %c0_11 = arith.constant 0 : index
      %16 = vector.load %arg7[%c0_10, %c0_11] : memref<256x128xf32, #tpu.memory_space<vmem>>, vector<256x128xf32>
      tpu.vector_store %arg7[%c0_10, %c0_11], %15 {strides = array<i32>} : memref<256x128xf32, #tpu.memory_space<vmem>>, vector<256x128xf32>,
    } else {
    }
    %c1024_i32 = arith.constant 1024 : i32
    %3 = arith.muli %arg2, %c1024_i32 : i32
    %4 = tpu.assume_multiple %3, 128 : i32
    %c0 = arith.constant 0 : index
    %c0_1 = arith.constant 0 : index
    %5 = vector.load %arg7[%c0, %c0_1] : memref<256x128xf32, #tpu.memory_space<vmem>>, vector<256x128xf32>
    %c0_2 = arith.constant 0 : index
    %c0_3 = arith.constant 0 : index
    %6 = vector.load %arg3[%c0_2, %c0_3] : memref<256x1024xbf16, #tpu.memory_space<vmem>>, vector<256x1024xbf16>
    %7 = arith.index_cast %4 : i32 to index
    %c0_4 = arith.constant 0 : index
    %8 = vector.load %arg4[%7, %c0_4] : memref<1024x128xbf16, #tpu.memory_space<vmem>>, vector<1024x128xbf16>
    %cst = arith.constant dense<0.000000e+00> : vector<256x128xf32>
    %9 = tpu.matmul %6, %8, %cst {dimension_numbers = #tpu.dot_dimension_numbers<[1], [0], [0], [1], [0, 0, 1, 1], [], []>} : vector<256x1024xbf16>, vector<1024x128xbf16>, vector<256x128xf32> -> vector<256x128xf32>
    %10 = arith.addf %5, %9 : vector<256x128xf32>
    %c0_5 = arith.constant 0 : index
    %c0_6 = arith.constant 0 : index
    %11 = vector.load %arg7[%c0_5, %c0_6] : memref<256x128xf32, #tpu.memory_space<vmem>>, vector<256x128xf32>
    tpu.vector_store %arg7[%c0_5, %c0_6], %10 {strides = array<i32>} : memref<256x128xf32, #tpu.memory_space<vmem>>, vector<256x128xf32>,
    %c0_i32_7 = arith.constant 0 : i32
    %12 = arith.cmpi eq, %arg2, %c0_i32_7 : i32
    %13 = arith.extui %12 : i1 to i32
    %c0_i32_8 = arith.constant 0 : i32
    %14 = arith.cmpi ne, %13, %c0_i32_8 : i32
    scf.if %14 {
      %c0_9 = arith.constant 0 : index
      %c0_10 = arith.constant 0 : index
      %15 = vector.load %arg7[%c0_9, %c0_10] : memref<256x128xf32, #tpu.memory_space<vmem>>, vector<256x128xf32>
      %16 = arith.truncf %15 : vector<256x128xf32> to vector<256x128xbf16>
      %c0_11 = arith.constant 0 : index
      %c0_12 = arith.constant 0 : index
      %17 = vector.load %arg5[%c0_11, %c0_12] : memref<256x128xbf16, #tpu.memory_space<vmem>>, vector<256x128xbf16>
      tpu.vector_store %arg5[%c0_11, %c0_12], %16 {strides = array<i32>} : memref<256x128xbf16, #tpu.memory_space<vmem>>, vector<256x128xbf16>,
      %cst_13 = arith.constant dense<0.000000e+00> : vector<128xf32>
      %18 = vector.multi_reduction <add>, %15, %cst_13 [0] : vector<256x128xf32> to vector<128xf32>
      %19 = vector.shape_cast %18 : vector<128xf32> to vector<1x128xf32>
      %20 = arith.mulf %15, %15 : vector<256x128xf32>
      %cst_14 = arith.constant dense<0.000000e+00> : vector<128xf32>
      %21 = vector.multi_reduction <add>, %20, %cst_14 [0] : vector<256x128xf32> to vector<128xf32>
      %22 = vector.shape_cast %21 : vector<128xf32> to vector<1x128xf32>
      %23 = tpu.iota {dimensions = array<i32: 0>} : vector<8x128xi32>
      %c0_i32_15 = arith.constant 0 : i32
      %24 = vector.broadcast %c0_i32_15 : i32 to vector<8x128xi32>
      %25 = arith.cmpi eq, %23, %24 : vector<8x128xi32>
      %c1_i32 = arith.constant 1 : i32
      %26 = vector.broadcast %c1_i32 : i32 to vector<8x128xi32>
      %27 = arith.cmpi eq, %23, %26 : vector<8x128xi32>
      %cst_16 = arith.constant 0.000000e+00 : f32
      %28 = vector.shape_cast %22 : vector<1x128xf32> to vector<1x128xf32>
      %29 = vector.broadcast %28 : vector<1x128xf32> to vector<8x128xf32>
      %30 = vector.broadcast %cst_16 : f32 to vector<8x128xf32>
      %31 = arith.select %27, %29, %30 : vector<8x128xi1>, vector<8x128xf32>
      %32 = vector.shape_cast %19 : vector<1x128xf32> to vector<1x128xf32>
      %33 = vector.broadcast %32 : vector<1x128xf32> to vector<8x128xf32>
      %34 = arith.select %25, %33, %31 : vector<8x128xi1>, vector<8x128xf32>
      %c0_17 = arith.constant 0 : index
      %c0_18 = arith.constant 0 : index
      %35 = vector.load %arg6[%c0_17, %c0_18] : memref<8x128xf32, #tpu.memory_space<vmem>>, vector<8x128xf32>
      tpu.vector_store %arg6[%c0_17, %c0_18], %34 {strides = array<i32>} : memref<8x128xf32, #tpu.memory_space<vmem>>, vector<8x128xf32>,
    } else {
    }
    return
  }
  func.func @transform_0(%arg0: i32, %arg1: i32, %arg2: i32) -> (i32, i32) {
    %c0_i32 = arith.constant 0 : i32
    return %arg0, %arg2 : i32, i32
  }
  func.func @transform_1(%arg0: i32, %arg1: i32, %arg2: i32) -> (i32, i32) {
    %c0_i32 = arith.constant 0 : i32
    %c0_i32_0 = arith.constant 0 : i32
    return %c0_i32, %arg1 : i32, i32
  }
  func.func @transform_2(%arg0: i32, %arg1: i32, %arg2: i32) -> (i32, i32) {
    %c0_i32 = arith.constant 0 : i32
    return %arg0, %arg1 : i32, i32
  }
  func.func @transform_3(%arg0: i32, %arg1: i32, %arg2: i32) -> (i32, i32) {
    %c0_i32 = arith.constant 0 : i32
    return %arg0, %arg1 : i32, i32
  }
}

module attributes {stable_mosaic.version = 11 : i64} {
  func.func @_conv_bias_kernel(%arg0: i32, %arg1: i32, %arg2: i32, %arg3: memref<256x1024xbf16, #tpu.memory_space<vmem>>, %arg4: memref<2048x128xbf16, #tpu.memory_space<vmem>>, %arg5: memref<1x128xf32, #tpu.memory_space<vmem>>, %arg6: memref<256x128xf32, #tpu.memory_space<vmem>>, %arg7: memref<256x128xf32, #tpu.memory_space<vmem>>) attributes {dimension_semantics = [#tpu.dimension_semantics<parallel>, #tpu.dimension_semantics<parallel>, #tpu.dimension_semantics<arbitrary>], iteration_bounds = array<i64: 1, 1, 2>, scalar_prefetch = 0 : i64, scratch_operands = 1 : i64, tpu.core_type = #tpu.core_type<tc>, window_params = [{transform_indices = @transform_0, window_bounds = array<i64: 256, 1024>}, {transform_indices = @transform_1, window_bounds = array<i64: 2048, 128>}, {transform_indices = @transform_2, window_bounds = array<i64: 1, 128>}, {transform_indices = @transform_3, window_bounds = array<i64: 256, 128>}]} {
    %c0_i32 = arith.constant 0 : i32
    %0 = arith.cmpi eq, %arg2, %c0_i32 : i32
    %1 = arith.extui %0 : i1 to i32
    %c0_i32_0 = arith.constant 0 : i32
    %2 = arith.cmpi ne, %1, %c0_i32_0 : i32
    scf.if %2 {
      %cst_8 = arith.constant 0.000000e+00 : f32
      %15 = vector.broadcast %cst_8 : f32 to vector<256x128xf32>
      %c0_9 = arith.constant 0 : index
      %c0_10 = arith.constant 0 : index
      %16 = vector.load %arg7[%c0_9, %c0_10] : memref<256x128xf32, #tpu.memory_space<vmem>>, vector<256x128xf32>
      tpu.vector_store %arg7[%c0_9, %c0_10], %15 {strides = array<i32>} : memref<256x128xf32, #tpu.memory_space<vmem>>, vector<256x128xf32>,
    } else {
    }
    %c1024_i32 = arith.constant 1024 : i32
    %3 = arith.muli %arg2, %c1024_i32 : i32
    %4 = tpu.assume_multiple %3, 128 : i32
    %c0 = arith.constant 0 : index
    %c0_1 = arith.constant 0 : index
    %5 = vector.load %arg7[%c0, %c0_1] : memref<256x128xf32, #tpu.memory_space<vmem>>, vector<256x128xf32>
    %c0_2 = arith.constant 0 : index
    %c0_3 = arith.constant 0 : index
    %6 = vector.load %arg3[%c0_2, %c0_3] : memref<256x1024xbf16, #tpu.memory_space<vmem>>, vector<256x1024xbf16>
    %7 = arith.index_cast %4 : i32 to index
    %c0_4 = arith.constant 0 : index
    %8 = vector.load %arg4[%7, %c0_4] : memref<2048x128xbf16, #tpu.memory_space<vmem>>, vector<1024x128xbf16>
    %cst = arith.constant dense<0.000000e+00> : vector<256x128xf32>
    %9 = tpu.matmul %6, %8, %cst {dimension_numbers = #tpu.dot_dimension_numbers<[1], [0], [0], [1], [0, 0, 1, 1], [], []>} : vector<256x1024xbf16>, vector<1024x128xbf16>, vector<256x128xf32> -> vector<256x128xf32>
    %10 = arith.addf %5, %9 : vector<256x128xf32>
    %c0_5 = arith.constant 0 : index
    %c0_6 = arith.constant 0 : index
    %11 = vector.load %arg7[%c0_5, %c0_6] : memref<256x128xf32, #tpu.memory_space<vmem>>, vector<256x128xf32>
    tpu.vector_store %arg7[%c0_5, %c0_6], %10 {strides = array<i32>} : memref<256x128xf32, #tpu.memory_space<vmem>>, vector<256x128xf32>,
    %c1_i32 = arith.constant 1 : i32
    %12 = arith.cmpi eq, %arg2, %c1_i32 : i32
    %13 = arith.extui %12 : i1 to i32
    %c0_i32_7 = arith.constant 0 : i32
    %14 = arith.cmpi ne, %13, %c0_i32_7 : i32
    scf.if %14 {
      %c0_8 = arith.constant 0 : index
      %c0_9 = arith.constant 0 : index
      %15 = vector.load %arg7[%c0_8, %c0_9] : memref<256x128xf32, #tpu.memory_space<vmem>>, vector<256x128xf32>
      %c0_10 = arith.constant 0 : index
      %c0_11 = arith.constant 0 : index
      %16 = vector.load %arg5[%c0_10, %c0_11] : memref<1x128xf32, #tpu.memory_space<vmem>>, vector<1x128xf32>
      %17 = vector.broadcast %16 : vector<1x128xf32> to vector<256x128xf32>
      %18 = arith.addf %15, %17 : vector<256x128xf32>
      %c0_12 = arith.constant 0 : index
      %c0_13 = arith.constant 0 : index
      %19 = vector.load %arg6[%c0_12, %c0_13] : memref<256x128xf32, #tpu.memory_space<vmem>>, vector<256x128xf32>
      tpu.vector_store %arg6[%c0_12, %c0_13], %18 {strides = array<i32>} : memref<256x128xf32, #tpu.memory_space<vmem>>, vector<256x128xf32>,
    } else {
    }
    return
  }
  func.func @transform_0(%arg0: i32, %arg1: i32, %arg2: i32) -> (i32, i32) {
    %c0_i32 = arith.constant 0 : i32
    return %arg0, %arg2 : i32, i32
  }
  func.func @transform_1(%arg0: i32, %arg1: i32, %arg2: i32) -> (i32, i32) {
    %c0_i32 = arith.constant 0 : i32
    %c0_i32_0 = arith.constant 0 : i32
    return %c0_i32, %arg1 : i32, i32
  }
  func.func @transform_2(%arg0: i32, %arg1: i32, %arg2: i32) -> (i32, i32) {
    %c0_i32 = arith.constant 0 : i32
    %c0_i32_0 = arith.constant 0 : i32
    return %c0_i32, %arg1 : i32, i32
  }
  func.func @transform_3(%arg0: i32, %arg1: i32, %arg2: i32) -> (i32, i32) {
    %c0_i32 = arith.constant 0 : i32
    return %arg0, %arg1 : i32, i32
  }
}

</mosaic_0001>

<bundles_post_ra>
// kernel: _lambda_.8
= control target key start
LH: loop header
LB: loop body
LE: loop exit
PB: predicated region body
PF: predicated region fallthrough
CT: control target
= control target key end

     0   :  { %s1318_s1 = inlined_call_operand.vmem [shape: bf16[128,128], index: 1, kind: input, shape index: {}]   ;;  %s1319_s0 = inlined_call_operand.vmem [shape: bf16[256,128], index: 0, kind: input, shape index: {}]   ;;  %s1320_s2 = inlined_call_operand.vmem [shape: f32[1,128], index: 2, kind: input, shape index: {}]   ;;  %s1321_s3 = inlined_call_operand.vmem [shape: bf16[256,128], index: 3, kind: output, shape index: {}]  }
   0x1   :  { %v1113_v0 = vld [vmem:[%s1318_s1 + $0x38] sm:$0xff]   ;;  %v1114_v1 = vld [vmem:[%s1318_s1 + $0x30] sm:$0xff]   ;;  %v1115_v2 = vld [vmem:[%s1318_s1 + $0x28] sm:$0xff]  }
   0x2   :  { %1049 = vmatprep.subr.bf16.mxu0 %v1113_v0  ;;  %1097 = vmatprep.subr.bf16.mxu1 %v1113_v0  ;;  %v1116_v3 = vld [vmem:[%s1318_s1 + $0x20] sm:$0xff]   ;;  %v1117_v6 = vld [vmem:[%s1318_s1 + $0x18] sm:$0xff]   ;;  %v1118_v7 = vld [vmem:[%s1318_s1 + $0x10] sm:$0xff]  }
   0x3   :  { %1050 = vmatpush3.bf16.msra.mxu0 %v1113_v0  ;;  %1105 = vmatpush3.bf16.msra.mxu1 %v1113_v0  ;;  %v1121_v4 = vld [vmem:[%s1319_s0] sm:$0xff]   ;;  %v1119_v8 = vld [vmem:[%s1318_s1 + $0x8] sm:$0xff]   ;;  %v1125_v12 = vld [vmem:[%s1319_s0 + $0x10] sm:$0xff]  }
   0x4   :  { %1051 = vmatprep.subr.bf16.mxu0 %v1114_v1  ;;  %1098 = vmatprep.subr.bf16.mxu1 %v1114_v1  ;;  %v1122_v5 = vld [vmem:[%s1319_s0 + $0x40] sm:$0xff]   ;;  %v1123_v10 = vld [vmem:[%s1319_s0 + $0x8] sm:$0xff]   ;;  %v1126_v13 = vld [vmem:[%s1319_s0 + $0x50] sm:$0xff]  }
   0x5   :  { %1065 = vmatprep.mubr.bf16.mxu0 %v1121_v4  ;;  %1081 = vmatprep.mubr.bf16.mxu1 %v1122_v5  ;;  %v1120_v9 = vld [vmem:[%s1318_s1] sm:$0xff]   ;;  %v1124_v11 = vld [vmem:[%s1319_s0 + $0x48] sm:$0xff]   ;;  %v1127_v14 = vld [vmem:[%s1319_s0 + $0x18] sm:$0xff]  }
   0x6   :  { %v1128_v15 = vld [vmem:[%s1319_s0 + $0x58] sm:$0xff]   ;;  %v1129_v16 = vld [vmem:[%s1319_s0 + $0x20] sm:$0xff]   ;;  %v1131_v18 = vld [vmem:[%s1319_s0 + $0x28] sm:$0xff]  }
   0x7   :  { %1052 = vmatpush3.bf16.msra.mxu0 %v1114_v1  ;;  %1106 = vmatpush3.bf16.msra.mxu1 %v1114_v1  ;;  %v1130_v17 = vld [vmem:[%s1319_s0 + $0x60] sm:$0xff]   ;;  %v1132_v19 = vld [vmem:[%s1319_s0 + $0x68] sm:$0xff]   ;;  %v1133_v20 = vld [vmem:[%s1319_s0 + $0x30] sm:$0xff]  }
   0x8   :  { %1053 = vmatprep.subr.bf16.mxu0 %v1115_v2  ;;  %1099 = vmatprep.subr.bf16.mxu1 %v1115_v2  ;;  %v1134_v21 = vld [vmem:[%s1319_s0 + $0x70] sm:$0xff]   ;;  %v1135_v22 = vld [vmem:[%s1319_s0 + $0x38] sm:$0xff]   ;;  %v1232_v24 = vld [vmem:[%s1320_s2] ss:$0 sm:$0xff] }
   0x9   :  { %v1136_v23 = vld [vmem:[%s1319_s0 + $0x78] sm:$0xff]  }
   0xb   :  { %1054 = vmatpush3.bf16.msra.mxu0 %v1115_v2  ;;  %1107 = vmatpush3.bf16.msra.mxu1 %v1115_v2 }
   0xc   :  { %1055 = vmatprep.subr.bf16.mxu0 %v1116_v3  ;;  %1100 = vmatprep.subr.bf16.mxu1 %v1116_v3 }
   0xf   :  { %1056 = vmatpush3.bf16.msra.mxu0 %v1116_v3  ;;  %1108 = vmatpush3.bf16.msra.mxu1 %v1116_v3 }
  0x10   :  { %1057 = vmatprep.subr.bf16.mxu0 %v1117_v6  ;;  %1101 = vmatprep.subr.bf16.mxu1 %v1117_v6 }
  0x13   :  { %1058 = vmatpush3.bf16.msra.mxu0 %v1117_v6  ;;  %1109 = vmatpush3.bf16.msra.mxu1 %v1117_v6 }
  0x14   :  { %1059 = vmatprep.subr.bf16.mxu0 %v1118_v7  ;;  %1102 = vmatprep.subr.bf16.mxu1 %v1118_v7 }
  0x17   :  { %1060 = vmatpush3.bf16.msra.mxu0 %v1118_v7  ;;  %1110 = vmatpush3.bf16.msra.mxu1 %v1118_v7 }
  0x18   :  { %1061 = vmatprep.subr.bf16.mxu0 %v1119_v8  ;;  %1103 = vmatprep.subr.bf16.mxu1 %v1119_v8 }
  0x1b   :  { %1062 = vmatpush3.bf16.msra.mxu0 %v1119_v8  ;;  %1111 = vmatpush3.bf16.msra.mxu1 %v1119_v8 }
  0x1c   :  { %1063 = vmatprep.subr.bf16.mxu0 %v1120_v9  ;;  %1104 = vmatprep.subr.bf16.mxu1 %v1120_v9 }
  0x1f   :  { %1064 = vmatpush3.bf16.msra.mxu0 %v1120_v9  ;;  %1112 = vmatpush3.bf16.msra.mxu1 %v1120_v9 }
  0x22   :  { %1066 = vmatmul.mubr.bf16.vlgmr.msra.gmra.mxu0 %v1123_v10  ;;  %1082 = vmatmul.mubr.bf16.vlgmr.msra.gmra.mxu1 %v1124_v11 }
  0x23   :  { %1069 = vmatprep.mubr.bf16.mxu0 %v1125_v12  ;;  %1085 = vmatprep.mubr.bf16.mxu1 %v1126_v13 }
  0x2a   :  { %1070 = vmatmul.mubr.bf16.gmra.mxu0 %v1127_v14  ;;  %1086 = vmatmul.mubr.bf16.gmra.mxu1 %v1128_v15 }
  0x2b   :  { %1073 = vmatprep.mubr.bf16.mxu0 %v1129_v16  ;;  %1089 = vmatprep.mubr.bf16.mxu1 %v1130_v17 }
  0x32   :  { %1074 = vmatmul.mubr.bf16.gmra.mxu0 %v1131_v18  ;;  %1090 = vmatmul.mubr.bf16.gmra.mxu1 %v1132_v19 }
  0x33   :  { %1077 = vmatprep.mubr.bf16.mxu0 %v1133_v20  ;;  %1093 = vmatprep.mubr.bf16.mxu1 %v1134_v21 }
  0x3a   :  { %1078 = vmatmul.mubr.bf16.gmra.mxu0 %v1135_v22  ;;  %1094 = vmatmul.mubr.bf16.gmra.mxu1 %v1136_v23 }
  0xe2   :  { %v1067_v25 = vpop.f32.mrf.mxu0  ;;  %v1083_v26 = vpop.f32.mrf.mxu1 }
  0xe3   :  { %v549_v27 = vadd.f32 %v1067_v25, %v1232_v24  ;;  %v565_v28 = vadd.f32 %v1083_v26, %v1232_v24 }
  0xe4   :  { %v314_v29 = vpop.f32.mrf.mxu0  ;;  %v378_v30 = vpop.f32.mrf.mxu1 }
  0xe5   :  { %vm581_vm0 = vcmp.ge.f32.partialorder %v549_v27, 0.0  ;;  %v613_v31 = vmul.f32 0.2, %v549_v27  ;;  %vm597_vm1 = vcmp.ge.f32.partialorder %v565_v28, 0.0  ;;  %v629_v32 = vmul.f32 0.2, %v565_v28 }
  0xe6   :  { %v547_v33 = vadd.f32 %v1232_v24, %v314_v29  ;;  %v563_v34 = vadd.f32 %v1232_v24, %v378_v30  ;;  %v1068_v35 = vpop.f32.mrf.mxu0  ;;  %v1084_v36 = vpop.f32.mrf.mxu1 }
  0xe7   :  { %v645_v37 = vsel %vm581_vm0, %v549_v27, %v613_v31  ;;  %v550_v38 = vadd.f32 %v1068_v35, %v1232_v24  ;;  %v566_v39 = vadd.f32 %v1084_v36, %v1232_v24  ;;  %v661_v40 = vsel %vm597_vm1, %v565_v28, %v629_v32 }
  0xe8   :  { %vm579_vm2 = vcmp.ge.f32.partialorder %v547_v33, 0.0  ;;  %v611_v41 = vmul.f32 0.2, %v547_v33  ;;  %vm595_vm3 = vcmp.ge.f32.partialorder %v563_v34, 0.0  ;;  %v317_v42 = vpop.f32.mrf.mxu0  ;;  %v381_v43 = vpop.f32.mrf.mxu1  ;;  %v627_v47 = vmul.f32 0.2, %v563_v34 }
  0xe9   :  { %vm582_vm4 = vcmp.ge.f32.partialorder %v550_v38, 0.0  ;;  %v614_v44 = vmul.f32 0.2, %v550_v38  ;;  %vm598_vm5 = vcmp.ge.f32.partialorder %v566_v39, 0.0  ;;  %v630_v45 = vmul.f32 0.2, %v566_v39 }
  0xea   :  { %v643_v46 = vsel %vm579_vm2, %v547_v33, %v611_v41  ;;  %v548_v48 = vadd.f32 %v1232_v24, %v317_v42  ;;  %v564_v49 = vadd.f32 %v1232_v24, %v381_v43  ;;  %v1071_v50 = vpop.f32.mrf.mxu0  ;;  %v1087_v51 = vpop.f32.mrf.mxu1  ;;  %v659_v63 = vsel %vm595_vm3, %v563_v34, %v627_v47 }
  0xeb   :  { %v646_v52 = vsel %vm582_vm4, %v550_v38, %v614_v44  ;;  %v662_v53 = vsel %vm598_vm5, %v566_v39, %v630_v45  ;;  %v553_v54 = vadd.f32 %v1071_v50, %v1232_v24  ;;  %v569_v55 = vadd.f32 %v1087_v51, %v1232_v24 }
  0xec   :  { %v938_v56 = vpack.c.bf16 %v646_v52, %v645_v37  ;;  %v978_v57 = vpack.c.bf16 %v662_v53, %v661_v40  ;;  %vm580_vm6 = vcmp.ge.f32.partialorder %v548_v48, 0.0  ;;  %v612_v58 = vmul.f32 0.2, %v548_v48  ;;  %v330_v59 = vpop.f32.mrf.mxu0  ;;  %v394_v60 = vpop.f32.mrf.mxu1 }
  0xed   :  { %vm596_vm7 = vcmp.ge.f32.partialorder %v564_v49, 0.0  ;;  %v628_v61 = vmul.f32 0.2, %v564_v49  ;;  %vm585_vm8 = vcmp.ge.f32.partialorder %v553_v54, 0.0  ;;  %v617_v62 = vmul.f32 0.2, %v553_v54 }
  0xee   :  { %1010 = vst [vmem:[%s1321_s3 + $0x8] sm:$0xff] %v938_v56   ;;  %1018 = vst [vmem:[%s1321_s3 + $0x48] sm:$0xff] %v978_v57   ;;  %v644_v0 = vsel %vm580_vm6, %v548_v48, %v612_v58  ;;  %v633_v1 = vmul.f32 0.2, %v569_v55  ;;  %v551_v2 = vadd.f32 %v1232_v24, %v330_v59  ;;  %v1072_v3 = vpop.f32.mrf.mxu0  ;;  %v1088_v4 = vpop.f32.mrf.mxu1  ;;  %vm601_vm9 = vcmp.ge.f32.partialorder %v569_v55, 0.0 }
  0xef   :  { %v933_v5 = vpack.c.bf16 %v644_v0, %v643_v46  ;;  %v660_v6 = vsel %vm596_vm7, %v564_v49, %v628_v61  ;;  %v567_v7 = vadd.f32 %v1232_v24, %v394_v60  ;;  %v649_v9 = vsel %vm585_vm8, %v553_v54, %v617_v62 }
  0xf0   :  { %v973_v8 = vpack.c.bf16 %v660_v6, %v659_v63  ;;  %vm583_vm10 = vcmp.ge.f32.partialorder %v551_v2, 0.0  ;;  %v615_v10 = vmul.f32 0.2, %v551_v2  ;;  %v333_v11 = vpop.f32.mrf.mxu0  ;;  %v397_v12 = vpop.f32.mrf.mxu1  ;;  %v554_v14 = vadd.f32 %v1072_v3, %v1232_v24 }
  0xf1   :  { %934 = vst [vmem:[%s1321_s3] sm:$0xff] %v933_v5   ;;  %vm599_vm11 = vcmp.ge.f32.partialorder %v567_v7, 0.0  ;;  %v631_v13 = vmul.f32 0.2, %v567_v7  ;;  %v570_v15 = vadd.f32 %v1088_v4, %v1232_v24  ;;  %v665_v16 = vsel %vm601_vm9, %v569_v55, %v633_v1 }
  0xf2   :  { %1017 = vst [vmem:[%s1321_s3 + $0x40] sm:$0xff] %v973_v8   ;;  %v647_v17 = vsel %vm583_vm10, %v551_v2, %v615_v10  ;;  %v552_v18 = vadd.f32 %v1232_v24, %v333_v11  ;;  %v568_v19 = vadd.f32 %v1232_v24, %v397_v12  ;;  %v1075_v20 = vpop.f32.mrf.mxu0  ;;  %v1091_v21 = vpop.f32.mrf.mxu1  ;;  %vm586_vm12 = vcmp.ge.f32.partialorder %v554_v14, 0.0 }
  0xf3   :  { %v663_v22 = vsel %vm599_vm11, %v567_v7, %v631_v13  ;;  %v618_v23 = vmul.f32 0.2, %v554_v14  ;;  %vm602_vm13 = vcmp.ge.f32.partialorder %v570_v15, 0.0  ;;  %v634_v25 = vmul.f32 0.2, %v570_v15 }
  0xf4   :  { %vm584_vm14 = vcmp.ge.f32.partialorder %v552_v18, 0.0  ;;  %v616_v26 = vmul.f32 0.2, %v552_v18  ;;  %vm600_vm15 = vcmp.ge.f32.partialorder %v568_v19, 0.0  ;;  %v346_v27 = vpop.f32.mrf.mxu0  ;;  %v410_v28 = vpop.f32.mrf.mxu1  ;;  %v632_v30 = vmul.f32 0.2, %v568_v19 }
  0xf5   :  { %v650_v29 = vsel %vm586_vm12, %v554_v14, %v618_v23  ;;  %v557_v31 = vadd.f32 %v1075_v20, %v1232_v24  ;;  %v573_v32 = vadd.f32 %v1091_v21, %v1232_v24  ;;  %v666_v34 = vsel %vm602_vm13, %v570_v15, %v634_v25 }
  0xf6   :  { %v948_v33 = vpack.c.bf16 %v650_v29, %v649_v9  ;;  %v648_v35 = vsel %vm584_vm14, %v552_v18, %v616_v26  ;;  %v555_v36 = vadd.f32 %v1232_v24, %v346_v27  ;;  %v1076_v37 = vpop.f32.mrf.mxu0  ;;  %v1092_v38 = vpop.f32.mrf.mxu1  ;;  %v988_v39 = vpack.c.bf16 %v666_v34, %v665_v16 }
  0xf7   :  { %v943_v40 = vpack.c.bf16 %v648_v35, %v647_v17  ;;  %v664_v41 = vsel %vm600_vm15, %v568_v19, %v632_v30  ;;  %vm589_vm0 = vcmp.ge.f32.partialorder %v557_v31, 0.0  ;;  %v621_v43 = vmul.f32 0.2, %v557_v31 }
  0xf8   :  { %1012 = vst [vmem:[%s1321_s3 + $0x18] sm:$0xff] %v948_v33   ;;  %v983_v42 = vpack.c.bf16 %v664_v41, %v663_v22  ;;  %vm605_vm1 = vcmp.ge.f32.partialorder %v573_v32, 0.0  ;;  %v637_v44 = vmul.f32 0.2, %v573_v32  ;;  %v349_v45 = vpop.f32.mrf.mxu0  ;;  %v413_v46 = vpop.f32.mrf.mxu1  ;;  %1020 = vst [vmem:[%s1321_s3 + $0x58] sm:$0xff] %v988_v39   ;;  %vm587_vm2 = vcmp.ge.f32.partialorder %v555_v36, 0.0 }
  0xf9   :  { %1011 = vst [vmem:[%s1321_s3 + $0x10] sm:$0xff] %v943_v40   ;;  %v619_v47 = vmul.f32 0.2, %v555_v36  ;;  %v571_v48 = vadd.f32 %v1232_v24, %v410_v28  ;;  %v558_v49 = vadd.f32 %v1076_v37, %v1232_v24  ;;  %v653_v50 = vsel %vm589_vm0, %v557_v31, %v621_v43 }
  0xfa   :  { %1019 = vst [vmem:[%s1321_s3 + $0x50] sm:$0xff] %v983_v42   ;;  %v574_v51 = vadd.f32 %v1092_v38, %v1232_v24  ;;  %v556_v52 = vadd.f32 %v1232_v24, %v349_v45  ;;  %v1079_v53 = vpop.f32.mrf.mxu0  ;;  %v1095_v54 = vpop.f32.mrf.mxu1  ;;  %v669_v55 = vsel %vm605_vm1, %v573_v32, %v637_v44  ;;  %v572_v63 = vadd.f32 %v1232_v24, %v413_v46 }
  0xfb   :  { %v651_v56 = vsel %vm587_vm2, %v555_v36, %v619_v47  ;;  %vm603_vm3 = vcmp.ge.f32.partialorder %v571_v48, 0.0  ;;  %vm590_vm4 = vcmp.ge.f32.partialorder %v558_v49, 0.0  ;;  %v622_v57 = vmul.f32 0.2, %v558_v49 }
  0xfc   :  { %vm606_vm5 = vcmp.ge.f32.partialorder %v574_v51, 0.0  ;;  %v638_v58 = vmul.f32 0.2, %v574_v51  ;;  %vm588_vm6 = vcmp.ge.f32.partialorder %v556_v52, 0.0  ;;  %v362_v59 = vpop.f32.mrf.mxu0  ;;  %v426_v60 = vpop.f32.mrf.mxu1  ;;  %v635_v61 = vmul.f32 0.2, %v571_v48 }
  0xfd   :  { %v620_v62 = vmul.f32 0.2, %v556_v52  ;;  %v561_v0 = vadd.f32 %v1079_v53, %v1232_v24  ;;  %v654_v1 = vsel %vm590_vm4, %v558_v49, %v622_v57  ;;  %v577_v3 = vadd.f32 %v1095_v54, %v1232_v24 }
  0xfe   :  { %v670_v2 = vsel %vm606_vm5, %v574_v51, %v638_v58  ;;  %v559_v4 = vadd.f32 %v1232_v24, %v362_v59  ;;  %v1080_v5 = vpop.f32.mrf.mxu0  ;;  %v1096_v6 = vpop.f32.mrf.mxu1  ;;  %v958_v7 = vpack.c.bf16 %v654_v1, %v653_v50  ;;  %vm604_vm7 = vcmp.ge.f32.partialorder %v572_v63, 0.0 }
  0xff   :  { %v998_v8 = vpack.c.bf16 %v670_v2, %v669_v55  ;;  %v652_v9 = vsel %vm588_vm6, %v556_v52, %v620_v62  ;;  %v636_v11 = vmul.f32 0.2, %v572_v63  ;;  %v625_v12 = vmul.f32 0.2, %v561_v0 }
 0x100   :  { %v953_v10 = vpack.c.bf16 %v652_v9, %v651_v56  ;;  %v667_v13 = vsel %vm603_vm3, %v571_v48, %v635_v61  ;;  %1014 = vst [vmem:[%s1321_s3 + $0x28] sm:$0xff] %v958_v7   ;;  %vm593_vm8 = vcmp.ge.f32.partialorder %v561_v0, 0.0  ;;  %v641_v15 = vmul.f32 0.2, %v577_v3  ;;  %v365_v18 = vpop.f32.mrf.mxu0  ;;  %v429_v19 = vpop.f32.mrf.mxu1 }
 0x101   :  { %1022 = vst [vmem:[%s1321_s3 + $0x68] sm:$0xff] %v998_v8   ;;  %v668_v14 = vsel %vm604_vm7, %v572_v63, %v636_v11  ;;  %v575_v16 = vadd.f32 %v1232_v24, %v426_v60  ;;  %v562_v17 = vadd.f32 %v1080_v5, %v1232_v24  ;;  %vm609_vm9 = vcmp.ge.f32.partialorder %v577_v3, 0.0 }
 0x102   :  { %1013 = vst [vmem:[%s1321_s3 + $0x20] sm:$0xff] %v953_v10   ;;  %v993_v20 = vpack.c.bf16 %v668_v14, %v667_v13  ;;  %vm591_vm10 = vcmp.ge.f32.partialorder %v559_v4, 0.0  ;;  %v578_v21 = vadd.f32 %v1096_v6, %v1232_v24  ;;  %v657_v22 = vsel %vm593_vm8, %v561_v0, %v625_v12 }
 0x103   :  { %v623_v23 = vmul.f32 0.2, %v559_v4  ;;  %vm594_vm11 = vcmp.ge.f32.partialorder %v562_v17, 0.0  ;;  %v626_v25 = vmul.f32 0.2, %v562_v17  ;;  %v560_v27 = vadd.f32 %v1232_v24, %v365_v18 }
 0x104   :  { %1021 = vst [vmem:[%s1321_s3 + $0x60] sm:$0xff] %v993_v20   ;;  %vm610_vm12 = vcmp.ge.f32.partialorder %v578_v21, 0.0  ;;  %v642_v26 = vmul.f32 0.2, %v578_v21  ;;  %v576_v28 = vadd.f32 %v1232_v24, %v429_v19  ;;  %v673_v29 = vsel %vm609_vm9, %v577_v3, %v641_v15 }
 0x105   :  { %vm607_vm13 = vcmp.ge.f32.partialorder %v575_v16, 0.0  ;;  %v639_v30 = vmul.f32 0.2, %v575_v16  ;;  %v658_v31 = vsel %vm594_vm11, %v562_v17, %v626_v25  ;;  %vm592_vm14 = vcmp.ge.f32.partialorder %v560_v27, 0.0 }
 0x106   :  { %v968_v32 = vpack.c.bf16 %v658_v31, %v657_v22  ;;  %v674_v33 = vsel %vm610_vm12, %v578_v21, %v642_v26  ;;  %v624_v34 = vmul.f32 0.2, %v560_v27  ;;  %vm608_vm15 = vcmp.ge.f32.partialorder %v576_v28, 0.0 }
 0x107   :  { %v1008_v35 = vpack.c.bf16 %v674_v33, %v673_v29  ;;  %v640_v36 = vmul.f32 0.2, %v576_v28  ;;  %v655_v37 = vsel %vm591_vm10, %v559_v4, %v623_v23  ;;  %v671_v39 = vsel %vm607_vm13, %v575_v16, %v639_v30 }
 0x108   :  { %1016 = vst [vmem:[%s1321_s3 + $0x38] sm:$0xff] %v968_v32   ;;  %v656_v38 = vsel %vm592_vm14, %v560_v27, %v624_v34 }
 0x109   :  { %1024 = vst [vmem:[%s1321_s3 + $0x78] sm:$0xff] %v1008_v35   ;;  %v963_v24 = vpack.c.bf16 %v656_v38, %v655_v37  ;;  %v672_v40 = vsel %vm608_vm15, %v576_v28, %v640_v36 }
 0x10a   :  { %v1003_v41 = vpack.c.bf16 %v672_v40, %v671_v39 }
 0x10b   :  { %1015 = vst [vmem:[%s1321_s3 + $0x30] sm:$0xff] %v963_v24  }
 0x10c   :  { %1023 = vst [vmem:[%s1321_s3 + $0x70] sm:$0xff] %v1003_v41  }

// kernel: _lambda_.10
= control target key start
LH: loop header
LB: loop body
LE: loop exit
PB: predicated region body
PF: predicated region fallthrough
CT: control target
= control target key end

     0   :  { %s847_s0 = inlined_call_operand.vmem [shape: bf16[256,128], index: 0, kind: input, shape index: {}]   ;;  %s848_s1 = inlined_call_operand.vmem [shape: f32[1,128], index: 1, kind: input, shape index: {}]   ;;  %s849_s2 = inlined_call_operand.vmem [shape: f32[1,128], index: 2, kind: input, shape index: {}]   ;;  %s850_s3 = inlined_call_operand.vmem [shape: bf16[256,128], index: 3, kind: output, shape index: {}]  }
   0x1   :  { %v483_v0 = vld [vmem:[%s847_s0] sm:$0xff]   ;;  %v626_v4 = vld [vmem:[%s847_s0 + $0x8] sm:$0xff]   ;;  %v627_v5 = vld [vmem:[%s847_s0 + $0x10] sm:$0xff]  }
   0x2   :  { %v682_v1 = vld [vmem:[%s848_s1] ss:$0 sm:$0xff]  ;;  %v484_v2 = vunpack.c.l.bf16 %v483_v0  ;;  %v485_v3 = vunpack.c.h.bf16 %v483_v0  ;;  %v628_v6 = vld [vmem:[%s847_s0 + $0x18] sm:$0xff]   ;;  %v488_v8 = vunpack.c.l.bf16 %v626_v4  ;;  %v489_v9 = vunpack.c.h.bf16 %v626_v4  ;;  %v630_v35 = vld [vmem:[%s847_s0 + $0x28] sm:$0xff]  }
   0x3   :  { %v696_v7 = vld [vmem:[%s849_s2] ss:$0 sm:$0xff]  ;;  %v492_v10 = vunpack.c.l.bf16 %v627_v5  ;;  %v493_v11 = vunpack.c.h.bf16 %v627_v5  ;;  %v496_v14 = vunpack.c.l.bf16 %v628_v6  ;;  %v497_v15 = vunpack.c.h.bf16 %v628_v6  ;;  %v631_v48 = vld [vmem:[%s847_s0 + $0x30] sm:$0xff]   ;;  %v632_v4 = vld [vmem:[%s847_s0 + $0x38] sm:$0xff]  }
   0x4   :  { %v85_v12 = vmul.f32 %v484_v2, %v682_v1  ;;  %v86_v13 = vmul.f32 %v485_v3, %v682_v1  ;;  %v87_v16 = vmul.f32 %v488_v8, %v682_v1  ;;  %v88_v17 = vmul.f32 %v489_v9, %v682_v1  ;;  %v629_v34 = vld [vmem:[%s847_s0 + $0x20] sm:$0xff]  }
   0x5   :  { %v89_v18 = vmul.f32 %v492_v10, %v682_v1  ;;  %v90_v19 = vmul.f32 %v493_v11, %v682_v1  ;;  %v91_v22 = vmul.f32 %v496_v14, %v682_v1  ;;  %v92_v23 = vmul.f32 %v497_v15, %v682_v1  ;;  %v633_v15 = vld [vmem:[%s847_s0 + $0x40] sm:$0xff]  }
   0x6   :  { %v124_v20 = vadd.f32 %v696_v7, %v85_v12  ;;  %v125_v21 = vadd.f32 %v696_v7, %v86_v13  ;;  %v126_v24 = vadd.f32 %v696_v7, %v87_v16  ;;  %v127_v25 = vadd.f32 %v696_v7, %v88_v17 }
   0x7   :  { %v128_v26 = vadd.f32 %v696_v7, %v89_v18  ;;  %v129_v27 = vadd.f32 %v696_v7, %v90_v19  ;;  %v130_v42 = vadd.f32 %v696_v7, %v91_v22  ;;  %v131_v43 = vadd.f32 %v696_v7, %v92_v23 }
   0x8   :  { %vm156_vm0 = vcmp.ge.f32.partialorder %v124_v20, 0.0  ;;  %vm157_vm1 = vcmp.ge.f32.partialorder %v125_v21, 0.0  ;;  %v188_v28 = vmul.f32 0.2, %v124_v20  ;;  %v189_v29 = vmul.f32 0.2, %v125_v21 }
   0x9   :  { %vm158_vm2 = vcmp.ge.f32.partialorder %v126_v24, 0.0  ;;  %vm159_vm3 = vcmp.ge.f32.partialorder %v127_v25, 0.0  ;;  %v190_v30 = vmul.f32 0.2, %v126_v24  ;;  %v191_v31 = vmul.f32 0.2, %v127_v25 }
   0xa   :  { %v220_v32 = vsel %vm156_vm0, %v124_v20, %v188_v28  ;;  %v221_v33 = vsel %vm157_vm1, %v125_v21, %v189_v29  ;;  %vm160_vm4 = vcmp.ge.f32.partialorder %v128_v26, 0.0  ;;  %vm161_vm5 = vcmp.ge.f32.partialorder %v129_v27, 0.0 }
   0xb   :  { %v549_v36 = vpack.c.bf16 %v221_v33, %v220_v32  ;;  %v222_v37 = vsel %vm158_vm2, %v126_v24, %v190_v30  ;;  %v223_v38 = vsel %vm159_vm3, %v127_v25, %v191_v31  ;;  %v192_v39 = vmul.f32 0.2, %v128_v26 }
   0xc   :  { %v554_v40 = vpack.c.bf16 %v223_v38, %v222_v37  ;;  %v193_v41 = vmul.f32 0.2, %v129_v27  ;;  %v500_v45 = vunpack.c.l.bf16 %v629_v34  ;;  %v501_v46 = vunpack.c.h.bf16 %v629_v34 }
   0xd   :  { %550 = vst [vmem:[%s850_s3] sm:$0xff] %v549_v36   ;;  %v224_v44 = vsel %vm160_vm4, %v128_v26, %v192_v39  ;;  %v504_v47 = vunpack.c.l.bf16 %v630_v35  ;;  %vm162_vm6 = vcmp.ge.f32.partialorder %v130_v42, 0.0  ;;  %vm163_vm7 = vcmp.ge.f32.partialorder %v131_v43, 0.0  ;;  %v634_v26 = vld [vmem:[%s847_s0 + $0x48] sm:$0xff]  }
   0xe   :  { %641 = vst [vmem:[%s850_s3 + $0x8] sm:$0xff] %v554_v40   ;;  %v225_v49 = vsel %vm161_vm5, %v129_v27, %v193_v41  ;;  %v194_v50 = vmul.f32 0.2, %v130_v42  ;;  %v195_v52 = vmul.f32 0.2, %v131_v43  ;;  %v93_v53 = vmul.f32 %v500_v45, %v682_v1  ;;  %v635_v27 = vld [vmem:[%s847_s0 + $0x50] sm:$0xff]  }
   0xf   :  { %v559_v51 = vpack.c.bf16 %v225_v49, %v224_v44  ;;  %v94_v54 = vmul.f32 %v501_v46, %v682_v1  ;;  %v505_v56 = vunpack.c.h.bf16 %v630_v35  ;;  %v95_v57 = vmul.f32 %v504_v47, %v682_v1 }
  0x10   :  { %v226_v55 = vsel %vm162_vm6, %v130_v42, %v194_v50  ;;  %v508_v58 = vunpack.c.l.bf16 %v631_v48  ;;  %v227_v59 = vsel %vm163_vm7, %v131_v43, %v195_v52  ;;  %v132_v60 = vadd.f32 %v696_v7, %v93_v53 }
  0x11   :  { %642 = vst [vmem:[%s850_s3 + $0x10] sm:$0xff] %v559_v51   ;;  %v133_v61 = vadd.f32 %v696_v7, %v94_v54  ;;  %v509_v62 = vunpack.c.h.bf16 %v631_v48  ;;  %v564_v63 = vpack.c.bf16 %v227_v59, %v226_v55  ;;  %v96_v0 = vmul.f32 %v505_v56, %v682_v1  ;;  %v636_v55 = vld [vmem:[%s847_s0 + $0x58] sm:$0xff]  }
  0x12   :  { %v134_v2 = vadd.f32 %v696_v7, %v95_v57  ;;  %v97_v3 = vmul.f32 %v508_v58, %v682_v1  ;;  %vm164_vm8 = vcmp.ge.f32.partialorder %v132_v60, 0.0  ;;  %v196_v5 = vmul.f32 0.2, %v132_v60 }
  0x13   :  { %vm165_vm9 = vcmp.ge.f32.partialorder %v133_v61, 0.0  ;;  %v197_v6 = vmul.f32 0.2, %v133_v61  ;;  %643 = vst [vmem:[%s850_s3 + $0x18] sm:$0xff] %v564_v63   ;;  %v135_v8 = vadd.f32 %v696_v7, %v96_v0  ;;  %v98_v10 = vmul.f32 %v509_v62, %v682_v1 }
  0x14   :  { %vm166_vm10 = vcmp.ge.f32.partialorder %v134_v2, 0.0  ;;  %v198_v9 = vmul.f32 0.2, %v134_v2  ;;  %v228_v11 = vsel %vm164_vm8, %v132_v60, %v196_v5  ;;  %v136_v13 = vadd.f32 %v696_v7, %v97_v3  ;;  %v637_v60 = vld [vmem:[%s847_s0 + $0x60] sm:$0xff]  }
  0x15   :  { %v229_v12 = vsel %vm165_vm9, %v133_v61, %v197_v6  ;;  %v512_v14 = vunpack.c.l.bf16 %v632_v4  ;;  %vm167_vm11 = vcmp.ge.f32.partialorder %v135_v8, 0.0  ;;  %v199_v17 = vmul.f32 0.2, %v135_v8 }
  0x16   :  { %v569_v16 = vpack.c.bf16 %v229_v12, %v228_v11  ;;  %v230_v18 = vsel %vm166_vm10, %v134_v2, %v198_v9  ;;  %v137_v19 = vadd.f32 %v696_v7, %v98_v10  ;;  %vm168_vm12 = vcmp.ge.f32.partialorder %v136_v13, 0.0  ;;  %v638_v9 = vld [vmem:[%s847_s0 + $0x68] sm:$0xff]  }
  0x17   :  { %v200_v20 = vmul.f32 0.2, %v136_v13  ;;  %v513_v21 = vunpack.c.h.bf16 %v632_v4  ;;  %v231_v22 = vsel %vm167_vm11, %v135_v8, %v199_v17  ;;  %v99_v23 = vmul.f32 %v512_v14, %v682_v1 }
  0x18   :  { %644 = vst [vmem:[%s850_s3 + $0x20] sm:$0xff] %v569_v16   ;;  %v516_v24 = vunpack.c.l.bf16 %v633_v15  ;;  %v517_v25 = vunpack.c.h.bf16 %v633_v15  ;;  %v574_v28 = vpack.c.bf16 %v231_v22, %v230_v18  ;;  %vm169_vm13 = vcmp.ge.f32.partialorder %v137_v19, 0.0 }
  0x19   :  { %v201_v29 = vmul.f32 0.2, %v137_v19  ;;  %v232_v30 = vsel %vm168_vm12, %v136_v13, %v200_v20  ;;  %v100_v31 = vmul.f32 %v513_v21, %v682_v1  ;;  %v138_v32 = vadd.f32 %v696_v7, %v99_v23 }
  0x1a   :  { %v101_v33 = vmul.f32 %v516_v24, %v682_v1  ;;  %v102_v34 = vmul.f32 %v517_v25, %v682_v1  ;;  %645 = vst [vmem:[%s850_s3 + $0x28] sm:$0xff] %v574_v28   ;;  %v520_v36 = vunpack.c.l.bf16 %v634_v26  ;;  %v521_v37 = vunpack.c.h.bf16 %v634_v26  ;;  %v639_v28 = vld [vmem:[%s847_s0 + $0x70] sm:$0xff]  }
  0x1b   :  { %v233_v35 = vsel %vm169_vm13, %v137_v19, %v201_v29  ;;  %v524_v38 = vunpack.c.l.bf16 %v635_v27  ;;  %v139_v40 = vadd.f32 %v696_v7, %v100_v31  ;;  %vm170_vm14 = vcmp.ge.f32.partialorder %v138_v32, 0.0 }
  0x1c   :  { %v579_v39 = vpack.c.bf16 %v233_v35, %v232_v30  ;;  %v202_v41 = vmul.f32 0.2, %v138_v32  ;;  %v140_v42 = vadd.f32 %v696_v7, %v101_v33  ;;  %v141_v43 = vadd.f32 %v696_v7, %v102_v34 }
  0x1d   :  { %v103_v44 = vmul.f32 %v520_v36, %v682_v1  ;;  %v104_v45 = vmul.f32 %v521_v37, %v682_v1  ;;  %vm171_vm15 = vcmp.ge.f32.partialorder %v139_v40, 0.0  ;;  %v203_v46 = vmul.f32 0.2, %v139_v40  ;;  %v640_v37 = vld [vmem:[%s847_s0 + $0x78] sm:$0xff]  }
  0x1e   :  { %646 = vst [vmem:[%s850_s3 + $0x30] sm:$0xff] %v579_v39   ;;  %v234_v47 = vsel %vm170_vm14, %v138_v32, %v202_v41  ;;  %v525_v48 = vunpack.c.h.bf16 %v635_v27  ;;  %vm172_vm0 = vcmp.ge.f32.partialorder %v140_v42, 0.0  ;;  %vm173_vm1 = vcmp.ge.f32.partialorder %v141_v43, 0.0 }
  0x1f   :  { %v204_v49 = vmul.f32 0.2, %v140_v42  ;;  %v205_v50 = vmul.f32 0.2, %v141_v43  ;;  %v235_v51 = vsel %vm171_vm15, %v139_v40, %v203_v46  ;;  %v142_v52 = vadd.f32 %v696_v7, %v103_v44 }
  0x20   :  { %v143_v53 = vadd.f32 %v696_v7, %v104_v45  ;;  %v105_v54 = vmul.f32 %v524_v38, %v682_v1  ;;  %v584_v56 = vpack.c.bf16 %v235_v51, %v234_v47  ;;  %v106_v59 = vmul.f32 %v525_v48, %v682_v1 }
  0x21   :  { %v236_v57 = vsel %vm172_vm0, %v140_v42, %v204_v49  ;;  %v237_v58 = vsel %vm173_vm1, %v141_v43, %v205_v50  ;;  %vm174_vm2 = vcmp.ge.f32.partialorder %v142_v52, 0.0  ;;  %v206_v62 = vmul.f32 0.2, %v142_v52 }
  0x22   :  { %v589_v61 = vpack.c.bf16 %v237_v58, %v236_v57  ;;  %vm175_vm3 = vcmp.ge.f32.partialorder %v143_v53, 0.0  ;;  %647 = vst [vmem:[%s850_s3 + $0x38] sm:$0xff] %v584_v56   ;;  %v207_v63 = vmul.f32 0.2, %v143_v53  ;;  %v144_v0 = vadd.f32 %v696_v7, %v105_v54 }
  0x23   :  { %v145_v2 = vadd.f32 %v696_v7, %v106_v59  ;;  %v528_v3 = vunpack.c.l.bf16 %v636_v55  ;;  %v238_v4 = vsel %vm174_vm2, %v142_v52, %v206_v62  ;;  %v529_v5 = vunpack.c.h.bf16 %v636_v55 }
  0x24   :  { %648 = vst [vmem:[%s850_s3 + $0x40] sm:$0xff] %v589_v61   ;;  %v532_v6 = vunpack.c.l.bf16 %v637_v60  ;;  %v533_v8 = vunpack.c.h.bf16 %v637_v60  ;;  %v239_v10 = vsel %vm175_vm3, %v143_v53, %v207_v63  ;;  %vm176_vm4 = vcmp.ge.f32.partialorder %v144_v0, 0.0 }
  0x25   :  { %vm177_vm5 = vcmp.ge.f32.partialorder %v145_v2, 0.0  ;;  %v208_v11 = vmul.f32 0.2, %v144_v0  ;;  %v594_v12 = vpack.c.bf16 %v239_v10, %v238_v4  ;;  %v209_v13 = vmul.f32 0.2, %v145_v2 }
  0x26   :  { %v107_v14 = vmul.f32 %v528_v3, %v682_v1  ;;  %v108_v15 = vmul.f32 %v529_v5, %v682_v1  ;;  %v109_v17 = vmul.f32 %v532_v6, %v682_v1  ;;  %v110_v18 = vmul.f32 %v533_v8, %v682_v1 }
  0x27   :  { %v240_v16 = vsel %vm176_vm4, %v144_v0, %v208_v11  ;;  %v536_v19 = vunpack.c.l.bf16 %v638_v9  ;;  %649 = vst [vmem:[%s850_s3 + $0x48] sm:$0xff] %v594_v12   ;;  %v241_v20 = vsel %vm177_vm5, %v145_v2, %v209_v13  ;;  %v537_v23 = vunpack.c.h.bf16 %v638_v9 }
  0x28   :  { %v146_v21 = vadd.f32 %v696_v7, %v107_v14  ;;  %v147_v22 = vadd.f32 %v696_v7, %v108_v15  ;;  %v599_v24 = vpack.c.bf16 %v241_v20, %v240_v16  ;;  %v148_v25 = vadd.f32 %v696_v7, %v109_v17 }
  0x29   :  { %v149_v26 = vadd.f32 %v696_v7, %v110_v18  ;;  %v111_v27 = vmul.f32 %v536_v19, %v682_v1  ;;  %v112_v35 = vmul.f32 %v537_v23, %v682_v1  ;;  %v540_v41 = vunpack.c.l.bf16 %v639_v28 }
  0x2a   :  { %vm178_vm6 = vcmp.ge.f32.partialorder %v146_v21, 0.0  ;;  %vm179_vm7 = vcmp.ge.f32.partialorder %v147_v22, 0.0  ;;  %v210_v29 = vmul.f32 0.2, %v146_v21  ;;  %v211_v30 = vmul.f32 0.2, %v147_v22 }
  0x2b   :  { %650 = vst [vmem:[%s850_s3 + $0x50] sm:$0xff] %v599_v24   ;;  %vm180_vm8 = vcmp.ge.f32.partialorder %v148_v25, 0.0  ;;  %vm181_vm9 = vcmp.ge.f32.partialorder %v149_v26, 0.0  ;;  %v212_v31 = vmul.f32 0.2, %v148_v25  ;;  %v150_v36 = vadd.f32 %v696_v7, %v111_v27 }
  0x2c   :  { %v213_v32 = vmul.f32 0.2, %v149_v26  ;;  %v242_v33 = vsel %vm178_vm6, %v146_v21, %v210_v29  ;;  %v243_v34 = vsel %vm179_vm7, %v147_v22, %v211_v30  ;;  %v151_v43 = vadd.f32 %v696_v7, %v112_v35 }
  0x2d   :  { %v604_v38 = vpack.c.bf16 %v243_v34, %v242_v33  ;;  %v244_v39 = vsel %vm180_vm8, %v148_v25, %v212_v31  ;;  %vm182_vm10 = vcmp.ge.f32.partialorder %v150_v36, 0.0  ;;  %v214_v44 = vmul.f32 0.2, %v150_v36 }
  0x2e   :  { %v245_v40 = vsel %vm181_vm9, %v149_v26, %v213_v32  ;;  %v541_v45 = vunpack.c.h.bf16 %v639_v28  ;;  %v113_v46 = vmul.f32 %v540_v41, %v682_v1  ;;  %v544_v47 = vunpack.c.l.bf16 %v640_v37 }
  0x2f   :  { %v609_v42 = vpack.c.bf16 %v245_v40, %v244_v39  ;;  %651 = vst [vmem:[%s850_s3 + $0x58] sm:$0xff] %v604_v38   ;;  %v545_v48 = vunpack.c.h.bf16 %v640_v37  ;;  %vm183_vm11 = vcmp.ge.f32.partialorder %v151_v43, 0.0  ;;  %v215_v49 = vmul.f32 0.2, %v151_v43 }
  0x30   :  { %v246_v50 = vsel %vm182_vm10, %v150_v36, %v214_v44  ;;  %v114_v51 = vmul.f32 %v541_v45, %v682_v1  ;;  %v152_v52 = vadd.f32 %v696_v7, %v113_v46  ;;  %v115_v53 = vmul.f32 %v544_v47, %v682_v1 }
  0x31   :  { %652 = vst [vmem:[%s850_s3 + $0x60] sm:$0xff] %v609_v42   ;;  %v116_v54 = vmul.f32 %v545_v48, %v682_v1  ;;  %v247_v55 = vsel %vm183_vm11, %v151_v43, %v215_v49 }
  0x32   :  { %v614_v56 = vpack.c.bf16 %v247_v55, %v246_v50  ;;  %v153_v57 = vadd.f32 %v696_v7, %v114_v51  ;;  %vm184_vm12 = vcmp.ge.f32.partialorder %v152_v52, 0.0  ;;  %v216_v58 = vmul.f32 0.2, %v152_v52 }
  0x33   :  { %v154_v59 = vadd.f32 %v696_v7, %v115_v53  ;;  %v155_v60 = vadd.f32 %v696_v7, %v116_v54 }
  0x34   :  { %653 = vst [vmem:[%s850_s3 + $0x68] sm:$0xff] %v614_v56   ;;  %vm185_vm13 = vcmp.ge.f32.partialorder %v153_v57, 0.0  ;;  %v217_v61 = vmul.f32 0.2, %v153_v57  ;;  %v248_v62 = vsel %vm184_vm12, %v152_v52, %v216_v58 }
  0x35   :  { %vm186_vm14 = vcmp.ge.f32.partialorder %v154_v59, 0.0  ;;  %vm187_vm15 = vcmp.ge.f32.partialorder %v155_v60, 0.0  ;;  %v218_v1 = vmul.f32 0.2, %v154_v59  ;;  %v219_v63 = vmul.f32 0.2, %v155_v60 }
  0x36   :  { %v249_v0 = vsel %vm185_vm13, %v153_v57, %v217_v61 }
  0x37   :  { %v619_v2 = vpack.c.bf16 %v249_v0, %v248_v62  ;;  %v250_v3 = vsel %vm186_vm14, %v154_v59, %v218_v1  ;;  %v251_v4 = vsel %vm187_vm15, %v155_v60, %v219_v63 }
  0x38   :  { %v624_v5 = vpack.c.bf16 %v251_v4, %v250_v3 }
  0x39   :  { %654 = vst [vmem:[%s850_s3 + $0x70] sm:$0xff] %v619_v2  }
  0x3a   :  { %655 = vst [vmem:[%s850_s3 + $0x78] sm:$0xff] %v624_v5  }

// kernel: _lambda_.9
= control target key start
LH: loop header
LB: loop body
LE: loop exit
PB: predicated region body
PF: predicated region fallthrough
CT: control target
= control target key end

     0   :  { %s1660_s1 = inlined_call_operand.vmem [shape: bf16[256,128], index: 1, kind: input, shape index: {}]   ;;  %s1661_s0 = inlined_call_operand.vmem [shape: bf16[256,256], index: 0, kind: input, shape index: {}]   ;;  %s1662_s2 = inlined_call_operand.vmem [shape: bf16[256,128], index: 2, kind: output, shape index: {0}]   ;;  %s1663_s3 = inlined_call_operand.vmem [shape: f32[8,128], index: 3, kind: output, shape index: {1}]  }
   0x1   :  { %v1285_v0 = vld [vmem:[%s1660_s1 + $0x78] sm:$0xff]   ;;  %v1287_v2 = vld [vmem:[%s1660_s1 + $0x70] sm:$0xff]   ;;  %v1289_v4 = vld [vmem:[%s1660_s1 + $0x68] sm:$0xff]  }
   0x2   :  { %v1286_v1 = vld [vmem:[%s1660_s1 + $0x38] sm:$0xff]   ;;  %1157 = vmatprep.subr.bf16.mxu0 %v1285_v0  ;;  %1269 = vmatprep.subr.bf16.mxu1 %v1285_v0  ;;  %v1288_v3 = vld [vmem:[%s1660_s1 + $0x30] sm:$0xff]   ;;  %v1290_v5 = vld [vmem:[%s1660_s1 + $0x28] sm:$0xff]  }
   0x3   :  { %1158 = vmatpush3.bf16.msra.mxu0 %v1286_v1  ;;  %1277 = vmatpush3.bf16.msra.mxu1 %v1286_v1  ;;  %v1291_v6 = vld [vmem:[%s1660_s1 + $0x60] sm:$0xff]   ;;  %v1293_v8 = vld [vmem:[%s1660_s1 + $0x58] sm:$0xff]   ;;  %v1295_v10 = vld [vmem:[%s1660_s1 + $0x50] sm:$0xff]  }
   0x4   :  { %1159 = vmatprep.subr.bf16.mxu0 %v1287_v2  ;;  %1270 = vmatprep.subr.bf16.mxu1 %v1287_v2  ;;  %v1292_v7 = vld [vmem:[%s1660_s1 + $0x20] sm:$0xff]   ;;  %v1294_v9 = vld [vmem:[%s1660_s1 + $0x18] sm:$0xff]   ;;  %v1296_v12 = vld [vmem:[%s1660_s1 + $0x10] sm:$0xff]  }
   0x5   :  { %v1303_v11 = vld [vmem:[%s1661_s0 + $0x4] ss:$8 sps:$4 sm:$0xff]   ;;  %v1301_v18 = vld [vmem:[%s1661_s0] ss:$8 sps:$4 sm:$0xff]   ;;  %v1304_v19 = vld [vmem:[%s1661_s0 + $0x14] ss:$8 sps:$4 sm:$0xff]  }
   0x6   :  { %439 = vmatprep.mubr.bf16.mxu0 %v1303_v11  ;;  %v1297_v13 = vld [vmem:[%s1660_s1 + $0x48] sm:$0xff]   ;;  %v1299_v16 = vld [vmem:[%s1660_s1 + $0x40] sm:$0xff]   ;;  %v1319_v21 = vld [vmem:[%s1661_s0 + $0x94] ss:$8 sps:$4 sm:$0xff]  }
   0x7   :  { %1160 = vmatpush3.bf16.msra.mxu0 %v1288_v3  ;;  %1278 = vmatpush3.bf16.msra.mxu1 %v1288_v3  ;;  %v1315_v14 = vld [vmem:[%s1661_s0 + $0x84] ss:$8 sps:$4 sm:$0xff]   ;;  %v1313_v20 = vld [vmem:[%s1661_s0 + $0x80] ss:$8 sps:$4 sm:$0xff]   ;;  %v1306_v22 = vld [vmem:[%s1661_s0 + $0x10] ss:$8 sps:$4 sm:$0xff]  }
   0x8   :  { %1161 = vmatprep.subr.bf16.mxu0 %v1289_v4  ;;  %1271 = vmatprep.subr.bf16.mxu1 %v1289_v4  ;;  %v1298_v15 = vld [vmem:[%s1660_s1 + $0x8] sm:$0xff]   ;;  %v1300_v17 = vld [vmem:[%s1660_s1] sm:$0xff]   ;;  %v1321_v24 = vld [vmem:[%s1661_s0 + $0x90] ss:$8 sps:$4 sm:$0xff]  }
   0x9   :  { %503 = vmatprep.mubr.bf16.mxu1 %v1315_v14  ;;  %v1307_v23 = vld [vmem:[%s1661_s0 + $0x24] ss:$8 sps:$4 sm:$0xff]   ;;  %v1309_v26 = vld [vmem:[%s1661_s0 + $0x20] ss:$8 sps:$4 sm:$0xff]   ;;  %v1310_v27 = vld [vmem:[%s1661_s0 + $0x34] ss:$8 sps:$4 sm:$0xff]  }
   0xa   :  { %v1325_v25 = vld [vmem:[%s1661_s0 + $0xa4] ss:$8 sps:$4 sm:$0xff]   ;;  %v1327_v28 = vld [vmem:[%s1661_s0 + $0xa0] ss:$8 sps:$4 sm:$0xff]   ;;  %v1331_v29 = vld [vmem:[%s1661_s0 + $0xb4] ss:$8 sps:$4 sm:$0xff]  }
   0xb   :  { %1162 = vmatpush3.bf16.msra.mxu0 %v1290_v5  ;;  %1279 = vmatpush3.bf16.msra.mxu1 %v1290_v5  ;;  %v1312_v30 = vld [vmem:[%s1661_s0 + $0x30] ss:$8 sps:$4 sm:$0xff]   ;;  %v1316_v31 = vld [vmem:[%s1661_s0 + $0x44] ss:$8 sps:$4 sm:$0xff]   ;;  %v1318_v34 = vld [vmem:[%s1661_s0 + $0x40] ss:$8 sps:$4 sm:$0xff]  }
   0xc   :  { %1163 = vmatprep.subr.bf16.mxu0 %v1291_v6  ;;  %1272 = vmatprep.subr.bf16.mxu1 %v1291_v6  ;;  %v1333_v32 = vld [vmem:[%s1661_s0 + $0xb0] ss:$8 sps:$4 sm:$0xff]   ;;  %v1337_v33 = vld [vmem:[%s1661_s0 + $0xc4] ss:$8 sps:$4 sm:$0xff]   ;;  %v1322_v35 = vld [vmem:[%s1661_s0 + $0x54] ss:$8 sps:$4 sm:$0xff]  }
   0xd   :  { %v1339_v36 = vld [vmem:[%s1661_s0 + $0xc0] ss:$8 sps:$4 sm:$0xff]   ;;  %v1340_v37 = vld [vmem:[%s1661_s0 + $0xd4] ss:$8 sps:$4 sm:$0xff]   ;;  %v1324_v38 = vld [vmem:[%s1661_s0 + $0x50] ss:$8 sps:$4 sm:$0xff]  }
   0xe   :  { %v1328_v39 = vld [vmem:[%s1661_s0 + $0x64] ss:$8 sps:$4 sm:$0xff]   ;;  %v1342_v40 = vld [vmem:[%s1661_s0 + $0xd0] ss:$8 sps:$4 sm:$0xff]   ;;  %v1330_v42 = vld [vmem:[%s1661_s0 + $0x60] ss:$8 sps:$4 sm:$0xff]  }
   0xf   :  { %1164 = vmatpush3.bf16.msra.mxu0 %v1292_v7  ;;  %1280 = vmatpush3.bf16.msra.mxu1 %v1292_v7  ;;  %v1343_v41 = vld [vmem:[%s1661_s0 + $0xe4] ss:$8 sps:$4 sm:$0xff]   ;;  %v1334_v43 = vld [vmem:[%s1661_s0 + $0x74] ss:$8 sps:$4 sm:$0xff]   ;;  %v1345_v44 = vld [vmem:[%s1661_s0 + $0xe0] ss:$8 sps:$4 sm:$0xff]  }
  0x10   :  { %1165 = vmatprep.subr.bf16.mxu0 %v1293_v8  ;;  %1273 = vmatprep.subr.bf16.mxu1 %v1293_v8  ;;  %v1346_v45 = vld [vmem:[%s1661_s0 + $0xf4] ss:$8 sps:$4 sm:$0xff]   ;;  %v1336_v46 = vld [vmem:[%s1661_s0 + $0x70] ss:$8 sps:$4 sm:$0xff]  }
  0x11   :  { %v1348_v47 = vld [vmem:[%s1661_s0 + $0xf0] ss:$8 sps:$4 sm:$0xff]  }
  0x13   :  { %1166 = vmatpush3.bf16.msra.mxu0 %v1294_v9  ;;  %1281 = vmatpush3.bf16.msra.mxu1 %v1294_v9 }
  0x14   :  { %1167 = vmatprep.subr.bf16.mxu0 %v1295_v10  ;;  %1274 = vmatprep.subr.bf16.mxu1 %v1295_v10 }
  0x17   :  { %1168 = vmatpush3.bf16.msra.mxu0 %v1296_v12  ;;  %1282 = vmatpush3.bf16.msra.mxu1 %v1296_v12 }
  0x18   :  { %1169 = vmatprep.subr.bf16.mxu0 %v1297_v13  ;;  %1275 = vmatprep.subr.bf16.mxu1 %v1297_v13 }
  0x1b   :  { %1170 = vmatpush3.bf16.msra.mxu0 %v1298_v15  ;;  %1283 = vmatpush3.bf16.msra.mxu1 %v1298_v15 }
  0x1c   :  { %1171 = vmatprep.subr.bf16.mxu0 %v1299_v16  ;;  %1276 = vmatprep.subr.bf16.mxu1 %v1299_v16 }
  0x1f   :  { %1172 = vmatpush3.bf16.msra.mxu0 %v1300_v17  ;;  %1284 = vmatpush3.bf16.msra.mxu1 %v1300_v17 }
  0x22   :  { %440 = vmatmul.mubr.bf16.vlgmr.msra.gmra.mxu0 %v1301_v18  ;;  %504 = vmatmul.mubr.bf16.vlgmr.msra.gmra.mxu1 %v1313_v20 }
  0x23   :  { %447 = vmatprep.mubr.bf16.mxu0 %v1304_v19  ;;  %511 = vmatprep.mubr.bf16.mxu1 %v1319_v21 }
  0x2a   :  { %448 = vmatmul.mubr.bf16.gmra.mxu0 %v1306_v22  ;;  %512 = vmatmul.mubr.bf16.gmra.mxu1 %v1321_v24 }
  0x2b   :  { %455 = vmatprep.mubr.bf16.mxu0 %v1307_v23  ;;  %519 = vmatprep.mubr.bf16.mxu1 %v1325_v25 }
  0x32   :  { %456 = vmatmul.mubr.bf16.gmra.mxu0 %v1309_v26  ;;  %520 = vmatmul.mubr.bf16.gmra.mxu1 %v1327_v28 }
  0x33   :  { %463 = vmatprep.mubr.bf16.mxu0 %v1310_v27  ;;  %527 = vmatprep.mubr.bf16.mxu1 %v1331_v29 }
  0x3a   :  { %464 = vmatmul.mubr.bf16.gmra.mxu0 %v1312_v30  ;;  %528 = vmatmul.mubr.bf16.gmra.mxu1 %v1333_v32 }
  0x3b   :  { %471 = vmatprep.mubr.bf16.mxu0 %v1316_v31  ;;  %535 = vmatprep.mubr.bf16.mxu1 %v1337_v33 }
  0x42   :  { %472 = vmatmul.mubr.bf16.gmra.mxu0 %v1318_v34  ;;  %536 = vmatmul.mubr.bf16.gmra.mxu1 %v1339_v36 }
  0x43   :  { %479 = vmatprep.mubr.bf16.mxu0 %v1322_v35  ;;  %543 = vmatprep.mubr.bf16.mxu1 %v1340_v37 }
  0x4a   :  { %480 = vmatmul.mubr.bf16.gmra.mxu0 %v1324_v38  ;;  %544 = vmatmul.mubr.bf16.gmra.mxu1 %v1342_v40 }
  0x4b   :  { %487 = vmatprep.mubr.bf16.mxu0 %v1328_v39  ;;  %551 = vmatprep.mubr.bf16.mxu1 %v1343_v41 }
  0x52   :  { %488 = vmatmul.mubr.bf16.gmra.mxu0 %v1330_v42  ;;  %552 = vmatmul.mubr.bf16.gmra.mxu1 %v1345_v44 }
  0x53   :  { %495 = vmatprep.mubr.bf16.mxu0 %v1334_v43  ;;  %559 = vmatprep.mubr.bf16.mxu1 %v1346_v45 }
  0x5a   :  { %496 = vmatmul.mubr.bf16.gmra.mxu0 %v1336_v46  ;;  %560 = vmatmul.mubr.bf16.gmra.mxu1 %v1348_v47 }
  0xe2   :  { %v1173_v48 = vpop.f32.mrf.mxu0  ;;  %v1221_v49 = vpop.f32.mrf.mxu1 }
  0xe4   :  { %v1174_v50 = vpop.f32.mrf.mxu0  ;;  %v1222_v51 = vpop.f32.mrf.mxu1 }
  0xe5   :  { %v1513_v55 = vadd.f32 %v1222_v51, %v1221_v49  ;;  %v1515_v56 = vadd.f32 %v1174_v50, %v1173_v48 }
  0xe6   :  { %v1176_v52 = vpop.f32.mrf.mxu0  ;;  %v1224_v53 = vpop.f32.mrf.mxu1 }
  0xe7   :  { %v864_v45 = vmul.f32 %v1515_v56, %v1515_v56 }
  0xe8   :  { %v1177_v54 = vpop.f32.mrf.mxu0  ;;  %v1225_v58 = vpop.f32.mrf.mxu1 }
  0xe9   :  { %v1517_v57 = vadd.f32 %v1177_v54, %v1176_v52  ;;  %v1519_v60 = vadd.f32 %v1225_v58, %v1224_v53 }
  0xea   :  { %v1179_v59 = vpop.f32.mrf.mxu0  ;;  %v1227_v62 = vpop.f32.mrf.mxu1 }
  0xeb   :  { %v1065_v61 = vpack.c.bf16 %v1517_v57, %v1515_v56  ;;  %v1105_v0 = vpack.c.bf16 %v1519_v60, %v1513_v55  ;;  %v865_v41 = vmul.f32 %v1517_v57, %v1517_v57  ;;  %v827_v48 = vadd.f32 %v1517_v57, %v1515_v56 }
  0xec   :  { %v1180_v63 = vpop.f32.mrf.mxu0  ;;  %v1228_v1 = vpop.f32.mrf.mxu1 }
  0xed   :  { %1066 = vst [vmem:[%s1662_s2] sm:$0xff] %v1065_v61   ;;  %1149 = vst [vmem:[%s1662_s2 + $0x40] sm:$0xff] %v1105_v0   ;;  %v1531_v5 = vadd.f32 %v1228_v1, %v1227_v62  ;;  %v1181_v6 = vadd.f32 %v1180_v63, %v1179_v59  ;;  %v896_v50 = vadd.f32 %v865_v41, %v864_v45 }
  0xee   :  { %v1182_v2 = vpop.f32.mrf.mxu0  ;;  %v1230_v3 = vpop.f32.mrf.mxu1 }
  0xef   :  { %v866_v46 = vmul.f32 %v1181_v6, %v1181_v6  ;;  %v828_v54 = vadd.f32 %v1181_v6, %v827_v48 }
  0xf0   :  { %v1183_v4 = vpop.f32.mrf.mxu0  ;;  %v1231_v8 = vpop.f32.mrf.mxu1 }
  0xf1   :  { %v1184_v7 = vadd.f32 %v1183_v4, %v1182_v2  ;;  %v1533_v10 = vadd.f32 %v1231_v8, %v1230_v3  ;;  %v897_v62 = vadd.f32 %v896_v50, %v866_v46 }
  0xf2   :  { %v1185_v9 = vpop.f32.mrf.mxu0  ;;  %v1233_v12 = vpop.f32.mrf.mxu1 }
  0xf3   :  { %v1070_v11 = vpack.c.bf16 %v1184_v7, %v1181_v6  ;;  %v1110_v14 = vpack.c.bf16 %v1533_v10, %v1531_v5  ;;  %v867_v51 = vmul.f32 %v1184_v7, %v1184_v7  ;;  %v829_v2 = vadd.f32 %v1184_v7, %v828_v54 }
  0xf4   :  { %v1186_v13 = vpop.f32.mrf.mxu0  ;;  %v1234_v15 = vpop.f32.mrf.mxu1 }
  0xf5   :  { %1142 = vst [vmem:[%s1662_s2 + $0x8] sm:$0xff] %v1070_v11   ;;  %1150 = vst [vmem:[%s1662_s2 + $0x48] sm:$0xff] %v1110_v14   ;;  %v1543_v19 = vadd.f32 %v1234_v15, %v1233_v12  ;;  %v1187_v20 = vadd.f32 %v1186_v13, %v1185_v9  ;;  %v898_v8 = vadd.f32 %v897_v62, %v867_v51 }
  0xf6   :  { %v1188_v16 = vpop.f32.mrf.mxu0  ;;  %v1236_v17 = vpop.f32.mrf.mxu1 }
  0xf7   :  { %v868_v63 = vmul.f32 %v1187_v20, %v1187_v20  ;;  %v830_v11 = vadd.f32 %v1187_v20, %v829_v2 }
  0xf8   :  { %v1189_v18 = vpop.f32.mrf.mxu0  ;;  %v1237_v22 = vpop.f32.mrf.mxu1 }
  0xf9   :  { %v1190_v21 = vadd.f32 %v1189_v18, %v1188_v16  ;;  %v1545_v24 = vadd.f32 %v1237_v22, %v1236_v17  ;;  %v899_v12 = vadd.f32 %v898_v8, %v868_v63 }
  0xfa   :  { %v1191_v23 = vpop.f32.mrf.mxu0  ;;  %v1239_v26 = vpop.f32.mrf.mxu1 }
  0xfb   :  { %v1075_v25 = vpack.c.bf16 %v1190_v21, %v1187_v20  ;;  %v1115_v28 = vpack.c.bf16 %v1545_v24, %v1543_v19  ;;  %v869_v56 = vmul.f32 %v1190_v21, %v1190_v21  ;;  %v831_v7 = vadd.f32 %v1190_v21, %v830_v11 }
  0xfc   :  { %v1192_v27 = vpop.f32.mrf.mxu0  ;;  %v1240_v29 = vpop.f32.mrf.mxu1 }
  0xfd   :  { %1143 = vst [vmem:[%s1662_s2 + $0x10] sm:$0xff] %v1075_v25   ;;  %1151 = vst [vmem:[%s1662_s2 + $0x50] sm:$0xff] %v1115_v28   ;;  %v1555_v33 = vadd.f32 %v1240_v29, %v1239_v26  ;;  %v1193_v34 = vadd.f32 %v1192_v27, %v1191_v23  ;;  %v900_v16 = vadd.f32 %v899_v12, %v869_v56 }
  0xfe   :  { %v1194_v30 = vpop.f32.mrf.mxu0  ;;  %v1242_v31 = vpop.f32.mrf.mxu1 }
  0xff   :  { %v870_v14 = vmul.f32 %v1193_v34, %v1193_v34  ;;  %v832_v22 = vadd.f32 %v1193_v34, %v831_v7 }
 0x100   :  { %v1195_v32 = vpop.f32.mrf.mxu0  ;;  %v1243_v36 = vpop.f32.mrf.mxu1 }
 0x101   :  { %v1196_v35 = vadd.f32 %v1195_v32, %v1194_v30  ;;  %v1557_v38 = vadd.f32 %v1243_v36, %v1242_v31  ;;  %v901_v29 = vadd.f32 %v900_v16, %v870_v14 }
 0x102   :  { %v1197_v37 = vpop.f32.mrf.mxu0  ;;  %v1245_v40 = vpop.f32.mrf.mxu1 }
 0x103   :  { %v1080_v39 = vpack.c.bf16 %v1196_v35, %v1193_v34  ;;  %v1120_v43 = vpack.c.bf16 %v1557_v38, %v1555_v33  ;;  %v871_v20 = vmul.f32 %v1196_v35, %v1196_v35  ;;  %v833_v30 = vadd.f32 %v1196_v35, %v832_v22 }
 0x104   :  { %v1198_v42 = vpop.f32.mrf.mxu0  ;;  %v1246_v44 = vpop.f32.mrf.mxu1 }
 0x105   :  { %1144 = vst [vmem:[%s1662_s2 + $0x18] sm:$0xff] %v1080_v39   ;;  %1152 = vst [vmem:[%s1662_s2 + $0x58] sm:$0xff] %v1120_v43   ;;  %v1573_v53 = vadd.f32 %v1246_v44, %v1245_v40  ;;  %v1199_v58 = vadd.f32 %v1198_v42, %v1197_v37  ;;  %v902_v39 = vadd.f32 %v901_v29, %v871_v20 }
 0x106   :  { %v1200_v47 = vpop.f32.mrf.mxu0  ;;  %v1248_v49 = vpop.f32.mrf.mxu1 }
 0x107   :  { %v872_v31 = vmul.f32 %v1199_v58, %v1199_v58  ;;  %v834_v40 = vadd.f32 %v1199_v58, %v833_v30 }
 0x108   :  { %v1201_v52 = vpop.f32.mrf.mxu0  ;;  %v1249_v61 = vpop.f32.mrf.mxu1 }
 0x109   :  { %v1202_v59 = vadd.f32 %v1201_v52, %v1200_v47  ;;  %v1575_v1 = vadd.f32 %v1249_v61, %v1248_v49  ;;  %v903_v35 = vadd.f32 %v902_v39, %v872_v31 }
 0x10a   :  { %v1203_v0 = vpop.f32.mrf.mxu0  ;;  %v1251_v4 = vpop.f32.mrf.mxu1 }
 0x10b   :  { %v1085_v3 = vpack.c.bf16 %v1202_v59, %v1199_v58  ;;  %v1125_v9 = vpack.c.bf16 %v1575_v1, %v1573_v53  ;;  %v873_v41 = vmul.f32 %v1202_v59, %v1202_v59  ;;  %v835_v43 = vadd.f32 %v1202_v59, %v834_v40 }
 0x10c   :  { %v1204_v57 = vpop.f32.mrf.mxu0  ;;  %v1252_v6 = vpop.f32.mrf.mxu1 }
 0x10d   :  { %1145 = vst [vmem:[%s1662_s2 + $0x20] sm:$0xff] %v1085_v3   ;;  %1153 = vst [vmem:[%s1662_s2 + $0x60] sm:$0xff] %v1125_v9   ;;  %v1585_v18 = vadd.f32 %v1252_v6, %v1251_v4  ;;  %v1205_v23 = vadd.f32 %v1204_v57, %v1203_v0  ;;  %v904_v49 = vadd.f32 %v903_v35, %v873_v41 }
 0x10e   :  { %v1206_v13 = vpop.f32.mrf.mxu0  ;;  %v1254_v15 = vpop.f32.mrf.mxu1  ;;  %v882_v41 = vmul.f32 %v1531_v5, %v1531_v5 }
 0x10f   :  { %v874_v44 = vmul.f32 %v1205_v23, %v1205_v23  ;;  %v836_v50 = vadd.f32 %v1205_v23, %v835_v43 }
 0x110   :  { %v1207_v17 = vpop.f32.mrf.mxu0  ;;  %v1255_v26 = vpop.f32.mrf.mxu1 }
 0x111   :  { %v1208_v25 = vadd.f32 %v1207_v17, %v1206_v13  ;;  %v1587_v28 = vadd.f32 %v1255_v26, %v1254_v15  ;;  %v905_v62 = vadd.f32 %v904_v49, %v874_v44  ;;  %v884_v44 = vmul.f32 %v1543_v19, %v1543_v19 }
 0x112   :  { %v1209_v27 = vpop.f32.mrf.mxu0  ;;  %v1257_v36 = vpop.f32.mrf.mxu1 }
 0x113   :  { %v1090_v32 = vpack.c.bf16 %v1208_v25, %v1205_v23  ;;  %v1130_v37 = vpack.c.bf16 %v1587_v28, %v1585_v18  ;;  %v875_v51 = vmul.f32 %v1208_v25, %v1208_v25  ;;  %v837_v63 = vadd.f32 %v1208_v25, %v836_v50 }
 0x114   :  { %v1210_v21 = vpop.f32.mrf.mxu0  ;;  %v1258_v34 = vpop.f32.mrf.mxu1 }
 0x115   :  { %1146 = vst [vmem:[%s1662_s2 + $0x28] sm:$0xff] %v1090_v32   ;;  %1154 = vst [vmem:[%s1662_s2 + $0x68] sm:$0xff] %v1130_v37   ;;  %v1211_v45 = vadd.f32 %v1210_v21, %v1209_v27  ;;  %v1597_v48 = vadd.f32 %v1258_v34, %v1257_v36  ;;  %v906_v8 = vadd.f32 %v905_v62, %v875_v51 }
 0x116   :  { %v1212_v42 = vpop.f32.mrf.mxu0  ;;  %v1260_v46 = vpop.f32.mrf.mxu1  ;;  %v880_v32 = vmul.f32 %v1513_v55, %v1513_v55  ;;  %v881_v37 = vmul.f32 %v1519_v60, %v1519_v60 }
 0x117   :  { %v876_v0 = vmul.f32 %v1211_v45, %v1211_v45  ;;  %v838_v56 = vadd.f32 %v1211_v45, %v837_v63  ;;  %v889_v63 = vmul.f32 %v1575_v1, %v1575_v1 }
 0x118   :  { %v1213_v47 = vpop.f32.mrf.mxu0  ;;  %v1261_v54 = vpop.f32.mrf.mxu1 }
 0x119   :  { %v1214_v52 = vadd.f32 %v1213_v47, %v1212_v42  ;;  %v1599_v61 = vadd.f32 %v1261_v54, %v1260_v46  ;;  %v907_v12 = vadd.f32 %v906_v8, %v876_v0 }
 0x11a   :  { %v1215_v58 = vpop.f32.mrf.mxu0  ;;  %v1263_v3 = vpop.f32.mrf.mxu1 }
 0x11b   :  { %v1095_v2 = vpack.c.bf16 %v1214_v52, %v1211_v45  ;;  %v1135_v4 = vpack.c.bf16 %v1599_v61, %v1597_v48  ;;  %v877_v57 = vmul.f32 %v1214_v52, %v1214_v52  ;;  %v839_v13 = vadd.f32 %v1214_v52, %v838_v56 }
 0x11c   :  { %v1216_v59 = vpop.f32.mrf.mxu0  ;;  %v1264_v11 = vpop.f32.mrf.mxu1  ;;  %v892_v56 = vmul.f32 %v1597_v48, %v1597_v48 }
 0x11d   :  { %1147 = vst [vmem:[%s1662_s2 + $0x30] sm:$0xff] %v1095_v2   ;;  %v1217_v9 = vadd.f32 %v1216_v59, %v1215_v58  ;;  %1155 = vst [vmem:[%s1662_s2 + $0x70] sm:$0xff] %v1135_v4   ;;  %v1265_v16 = vadd.f32 %v1264_v11, %v1263_v3  ;;  %v908_v17 = vadd.f32 %v907_v12, %v877_v57 }
 0x11e   :  { %v1218_v6 = vpop.f32.mrf.mxu0  ;;  %v1266_v14 = vpop.f32.mrf.mxu1  ;;  %v890_v3 = vmul.f32 %v1585_v18, %v1585_v18  ;;  %v891_v4 = vmul.f32 %v1587_v28, %v1587_v28 }
 0x11f   :  { %v878_v7 = vmul.f32 %v1217_v9, %v1217_v9  ;;  %v840_v22 = vadd.f32 %v1217_v9, %v839_v13 }
 0x120   :  { %v1219_v15 = vpop.f32.mrf.mxu0  ;;  %v1267_v23 = vpop.f32.mrf.mxu1 }
 0x121   :  { %v1220_v20 = vadd.f32 %v1219_v15, %v1218_v6  ;;  %v1268_v25 = vadd.f32 %v1267_v23, %v1266_v14  ;;  %v909_v26 = vadd.f32 %v908_v17, %v878_v7  ;;  %v894_v6 = vmul.f32 %v1265_v16, %v1265_v16 }
 0x123   :  { %v1100_v27 = vpack.c.bf16 %v1220_v20, %v1217_v9  ;;  %v841_v29 = vadd.f32 %v1220_v20, %v840_v22  ;;  %v879_v30 = vmul.f32 %v1220_v20, %v1220_v20  ;;  %v1140_v31 = vpack.c.bf16 %v1268_v25, %v1265_v16 }
 0x124   :  { %v893_v9 = vmul.f32 %v1599_v61, %v1599_v61  ;;  %v895_v7 = vmul.f32 %v1268_v25, %v1268_v25  ;;  %v933_v22 = vlaneseq }
 0x125   :  { %1148 = vst [vmem:[%s1662_s2 + $0x38] sm:$0xff] %v1100_v27   ;;  %v842_v36 = vadd.f32 %v1513_v55, %v841_v29  ;;  %v910_v21 = vadd.f32 %v909_v26, %v879_v30  ;;  %1156 = vst [vmem:[%s1662_s2 + $0x78] sm:$0xff] %v1140_v31   ;;  %v883_v55 = vmul.f32 %v1533_v10, %v1533_v10 }
 0x126   :  { %v934_v27 = vshrl.u32 %v933_v22, 7 }
 0x127   :  { %v843_v39 = vadd.f32 %v1519_v60, %v842_v36  ;;  %v911_v40 = vadd.f32 %v910_v21, %v880_v32  ;;  %v885_v60 = vmul.f32 %v1545_v24, %v1545_v24 }
 0x128   :  { %vm936_vm0 = vcmp.eq.s32.totalorder %v934_v27, 1  ;;  %vm935_vm1 = vcmp.eq.s32.totalorder %v934_v27, 0 }
 0x129   :  { %v844_v34 = vadd.f32 %v1531_v5, %v843_v39  ;;  %v912_v42 = vadd.f32 %v911_v40, %v881_v37  ;;  %v886_v5 = vmul.f32 %v1555_v33, %v1555_v33 }
 0x12b   :  { %v845_v35 = vadd.f32 %v1533_v10, %v844_v34  ;;  %v913_v43 = vadd.f32 %v912_v42, %v882_v41  ;;  %v887_v10 = vmul.f32 %v1557_v38, %v1557_v38 }
 0x12d   :  { %v914_v45 = vadd.f32 %v913_v43, %v883_v55  ;;  %v846_v46 = vadd.f32 %v1543_v19, %v845_v35  ;;  %v888_v19 = vmul.f32 %v1573_v53, %v1573_v53 }
 0x12f   :  { %v847_v47 = vadd.f32 %v1545_v24, %v846_v46  ;;  %v915_v49 = vadd.f32 %v914_v45, %v884_v44 }
 0x131   :  { %v848_v50 = vadd.f32 %v1555_v33, %v847_v47  ;;  %v916_v51 = vadd.f32 %v915_v49, %v885_v60 }
 0x133   :  { %v849_v52 = vadd.f32 %v1557_v38, %v848_v50  ;;  %v917_v54 = vadd.f32 %v916_v51, %v886_v5 }
 0x135   :  { %v850_v58 = vadd.f32 %v1573_v53, %v849_v52  ;;  %v918_v62 = vadd.f32 %v917_v54, %v887_v10 }
 0x137   :  { %v851_v24 = vadd.f32 %v1575_v1, %v850_v58  ;;  %v919_v0 = vadd.f32 %v918_v62, %v888_v19 }
 0x139   :  { %v920_v33 = vadd.f32 %v919_v0, %v889_v63  ;;  %v852_v2 = vadd.f32 %v1585_v18, %v851_v24 }
 0x13b   :  { %v921_v38 = vadd.f32 %v920_v33, %v890_v3  ;;  %v853_v59 = vadd.f32 %v1587_v28, %v852_v2 }
 0x13d   :  { %v922_v53 = vadd.f32 %v921_v38, %v891_v4  ;;  %v854_v8 = vadd.f32 %v1597_v48, %v853_v59 }
 0x13f   :  { %v923_v1 = vadd.f32 %v922_v53, %v892_v56  ;;  %v855_v57 = vadd.f32 %v1599_v61, %v854_v8 }
 0x141   :  { %v924_v11 = vadd.f32 %v923_v1, %v893_v9  ;;  %v856_v18 = vadd.f32 %v1265_v16, %v855_v57 }
 0x143   :  { %v925_v12 = vadd.f32 %v924_v11, %v894_v6  ;;  %v857_v13 = vadd.f32 %v1268_v25, %v856_v18 }
 0x145   :  { %v858_v14 = vrot.slane %v857_v13, 4  ;;  %v926_v28 = vadd.f32 %v925_v12, %v895_v7 }
 0x147   :  { %v859_v15 = vadd.f32 %v858_v14, %v857_v13  ;;  %v927_v17 = vrot.slane %v926_v28, 4 }
 0x149   :  { %v860_v20 = vrot.slane %v859_v15, 2  ;;  %v928_v23 = vadd.f32 %v927_v17, %v926_v28 }
 0x14b   :  { %v861_v48 = vadd.f32 %v860_v20, %v859_v15  ;;  %v929_v26 = vrot.slane %v928_v23, 2 }
 0x14d   :  { %v930_v29 = vadd.f32 %v929_v26, %v928_v23  ;;  %v862_v30 = vrot.slane %v861_v48, 1 }
 0x14f   :  { %v931_v31 = vrot.slane %v930_v29, 1  ;;  %v863_v16 = vadd.f32 %v862_v30, %v861_v48 }
 0x151   :  { %v932_v61 = vadd.f32 %v931_v31, %v930_v29 }
 0x153   :  { %v937_v32 = vsel %vm936_vm0, %v932_v61, 0.0 }
 0x154   :  { %v938_v36 = vsel %vm935_vm1, %v863_v16, %v937_v32 }
 0x155   :  { %939 = vst [vmem:[%s1663_s3] sm:$0xff] %v938_v36 }

// kernel: _lambda_.11
= control target key start
LH: loop header
LB: loop body
LE: loop exit
PB: predicated region body
PF: predicated region fallthrough
CT: control target
= control target key end

     0   :  { %s2532_s1 = inlined_call_operand.vmem [shape: bf16[512,128], index: 1, kind: input, shape index: {}]   ;;  %s2533_s0 = inlined_call_operand.vmem [shape: bf16[256,512], index: 0, kind: input, shape index: {}]   ;;  %s2534_s2 = inlined_call_operand.vmem [shape: bf16[256,128], index: 2, kind: output, shape index: {0}]   ;;  %s2535_s3 = inlined_call_operand.vmem [shape: f32[8,128], index: 3, kind: output, shape index: {1}]  }
   0x1   :  { %v1910_v0 = vld [vmem:[%s2532_s1 + $0x78] sm:$0xff]   ;;  %v1914_v4 = vld [vmem:[%s2532_s1 + $0x70] sm:$0xff]   ;;  %v1918_v8 = vld [vmem:[%s2532_s1 + $0x68] sm:$0xff]  }
   0x2   :  { %v1911_v1 = vld [vmem:[%s2532_s1 + $0xf8] sm:$0xff]   ;;  %1686 = vmatprep.subr.bf16.mxu0 %v1910_v0  ;;  %v1915_v5 = vld [vmem:[%s2532_s1 + $0xf0] sm:$0xff]   ;;  %v1919_v9 = vld [vmem:[%s2532_s1 + $0xe8] sm:$0xff]  }
   0x3   :  { %v1912_v2 = vld [vmem:[%s2532_s1 + $0x38] sm:$0xff]   ;;  %1798 = vmatprep.subr.bf16.mxu1 %v1911_v1  ;;  %v1916_v6 = vld [vmem:[%s2532_s1 + $0x30] sm:$0xff]   ;;  %v1920_v10 = vld [vmem:[%s2532_s1 + $0x28] sm:$0xff]  }
   0x4   :  { %v1913_v3 = vld [vmem:[%s2532_s1 + $0xb8] sm:$0xff]   ;;  %1687 = vmatpush3.bf16.msra.mxu0 %v1912_v2  ;;  %v1917_v7 = vld [vmem:[%s2532_s1 + $0xb0] sm:$0xff]   ;;  %v1921_v11 = vld [vmem:[%s2532_s1 + $0xa8] sm:$0xff]  }
   0x5   :  { %1799 = vmatpush3.bf16.msra.mxu1 %v1913_v3  ;;  %1688 = vmatprep.subr.bf16.mxu0 %v1914_v4  ;;  %v1922_v12 = vld [vmem:[%s2532_s1 + $0x60] sm:$0xff]   ;;  %v1926_v16 = vld [vmem:[%s2532_s1 + $0x58] sm:$0xff]   ;;  %v1930_v20 = vld [vmem:[%s2532_s1 + $0x50] sm:$0xff]  }
   0x6   :  { %1800 = vmatprep.subr.bf16.mxu1 %v1915_v5  ;;  %v1923_v13 = vld [vmem:[%s2532_s1 + $0xe0] sm:$0xff]   ;;  %v1927_v17 = vld [vmem:[%s2532_s1 + $0xd8] sm:$0xff]   ;;  %v1931_v21 = vld [vmem:[%s2532_s1 + $0xd0] sm:$0xff]  }
   0x7   :  { %v1924_v14 = vld [vmem:[%s2532_s1 + $0x20] sm:$0xff]   ;;  %v1928_v18 = vld [vmem:[%s2532_s1 + $0x18] sm:$0xff]   ;;  %v1932_v22 = vld [vmem:[%s2532_s1 + $0x10] sm:$0xff]  }
   0x8   :  { %1689 = vmatpush3.bf16.msra.mxu0 %v1916_v6  ;;  %v1925_v15 = vld [vmem:[%s2532_s1 + $0xa0] sm:$0xff]   ;;  %v1929_v19 = vld [vmem:[%s2532_s1 + $0x98] sm:$0xff]   ;;  %v1933_v23 = vld [vmem:[%s2532_s1 + $0x90] sm:$0xff]  }
   0x9   :  { %1801 = vmatpush3.bf16.msra.mxu1 %v1917_v7  ;;  %1690 = vmatprep.subr.bf16.mxu0 %v1918_v8  ;;  %v1934_v24 = vld [vmem:[%s2532_s1 + $0x48] sm:$0xff]   ;;  %v1938_v28 = vld [vmem:[%s2532_s1 + $0x40] sm:$0xff]  }
   0xa   :  { %1802 = vmatprep.subr.bf16.mxu1 %v1919_v9  ;;  %v1935_v25 = vld [vmem:[%s2532_s1 + $0xc8] sm:$0xff]   ;;  %v1939_v29 = vld [vmem:[%s2532_s1 + $0xc0] sm:$0xff]  }
   0xb   :  { %v1936_v26 = vld [vmem:[%s2532_s1 + $0x8] sm:$0xff]   ;;  %v1940_v30 = vld [vmem:[%s2532_s1] sm:$0xff]  }
   0xc   :  { %1691 = vmatpush3.bf16.msra.mxu0 %v1920_v10  ;;  %v1937_v27 = vld [vmem:[%s2532_s1 + $0x88] sm:$0xff]   ;;  %v1941_v31 = vld [vmem:[%s2532_s1 + $0x80] sm:$0xff]  }
   0xd   :  { %1803 = vmatpush3.bf16.msra.mxu1 %v1921_v11  ;;  %1692 = vmatprep.subr.bf16.mxu0 %v1922_v12  ;;  %v1942_v32 = vld [vmem:[%s2533_s0] ss:$16 sps:$4 sm:$0xff]   ;;  %v1944_v33 = vld [vmem:[%s2533_s0 + $0x4] ss:$16 sps:$4 sm:$0xff]   ;;  %v1945_v34 = vld [vmem:[%s2533_s0 + $0x8] ss:$16 sps:$4 sm:$0xff]  }
   0xe   :  { %1804 = vmatprep.subr.bf16.mxu1 %v1923_v13  ;;  %v1947_v35 = vld [vmem:[%s2533_s0 + $0xc] ss:$16 sps:$4 sm:$0xff]   ;;  %759 = vmatprep.mubr.bf16.mxu0 %v1944_v33  ;;  %v1948_v36 = vld [vmem:[%s2533_s0 + $0x24] ss:$16 sps:$4 sm:$0xff]   ;;  %v1952_v38 = vld [vmem:[%s2533_s0 + $0x20] ss:$16 sps:$4 sm:$0xff]  }
   0xf   :  { %920 = vmatprep.mubr.bf16.mxu1 %v1947_v35  ;;  %v1950_v37 = vld [vmem:[%s2533_s0 + $0x2c] ss:$16 sps:$4 sm:$0xff]   ;;  %v1953_v39 = vld [vmem:[%s2533_s0 + $0x28] ss:$16 sps:$4 sm:$0xff]   ;;  %v1954_v40 = vld [vmem:[%s2533_s0 + $0x44] ss:$16 sps:$4 sm:$0xff]  }
  0x10   :  { %1693 = vmatpush3.bf16.msra.mxu0 %v1924_v14  ;;  %v1956_v41 = vld [vmem:[%s2533_s0 + $0x4c] ss:$16 sps:$4 sm:$0xff]   ;;  %v1958_v42 = vld [vmem:[%s2533_s0 + $0x40] ss:$16 sps:$4 sm:$0xff]   ;;  %v1959_v43 = vld [vmem:[%s2533_s0 + $0x48] ss:$16 sps:$4 sm:$0xff]  }
  0x11   :  { %1805 = vmatpush3.bf16.msra.mxu1 %v1925_v15  ;;  %1694 = vmatprep.subr.bf16.mxu0 %v1926_v16  ;;  %v1960_v44 = vld [vmem:[%s2533_s0 + $0x64] ss:$16 sps:$4 sm:$0xff]   ;;  %v1962_v45 = vld [vmem:[%s2533_s0 + $0x6c] ss:$16 sps:$4 sm:$0xff]   ;;  %v1964_v46 = vld [vmem:[%s2533_s0 + $0x60] ss:$16 sps:$4 sm:$0xff]  }
  0x12   :  { %1806 = vmatprep.subr.bf16.mxu1 %v1927_v17  ;;  %v1965_v47 = vld [vmem:[%s2533_s0 + $0x68] ss:$16 sps:$4 sm:$0xff]   ;;  %v1966_v48 = vld [vmem:[%s2533_s0 + $0x84] ss:$16 sps:$4 sm:$0xff]   ;;  %v1968_v49 = vld [vmem:[%s2533_s0 + $0x8c] ss:$16 sps:$4 sm:$0xff]  }
  0x13   :  { %v1970_v50 = vld [vmem:[%s2533_s0 + $0x80] ss:$16 sps:$4 sm:$0xff]   ;;  %v1971_v51 = vld [vmem:[%s2533_s0 + $0x88] ss:$16 sps:$4 sm:$0xff]   ;;  %v1972_v52 = vld [vmem:[%s2533_s0 + $0xa4] ss:$16 sps:$4 sm:$0xff]  }
  0x14   :  { %1695 = vmatpush3.bf16.msra.mxu0 %v1928_v18  ;;  %v1974_v53 = vld [vmem:[%s2533_s0 + $0xac] ss:$16 sps:$4 sm:$0xff]   ;;  %v1976_v54 = vld [vmem:[%s2533_s0 + $0xa0] ss:$16 sps:$4 sm:$0xff]   ;;  %v1977_v55 = vld [vmem:[%s2533_s0 + $0xa8] ss:$16 sps:$4 sm:$0xff]  }
  0x15   :  { %1807 = vmatpush3.bf16.msra.mxu1 %v1929_v19  ;;  %1696 = vmatprep.subr.bf16.mxu0 %v1930_v20  ;;  %v1978_v56 = vld [vmem:[%s2533_s0 + $0xc4] ss:$16 sps:$4 sm:$0xff]   ;;  %v1980_v57 = vld [vmem:[%s2533_s0 + $0xcc] ss:$16 sps:$4 sm:$0xff]   ;;  %v1982_v58 = vld [vmem:[%s2533_s0 + $0xc0] ss:$16 sps:$4 sm:$0xff]  }
  0x16   :  { %1808 = vmatprep.subr.bf16.mxu1 %v1931_v21  ;;  %v1983_v59 = vld [vmem:[%s2533_s0 + $0xc8] ss:$16 sps:$4 sm:$0xff]   ;;  %v1984_v60 = vld [vmem:[%s2533_s0 + $0xe4] ss:$16 sps:$4 sm:$0xff]   ;;  %v1986_v61 = vld [vmem:[%s2533_s0 + $0xec] ss:$16 sps:$4 sm:$0xff]  }
  0x17   :  { %v1988_v62 = vld [vmem:[%s2533_s0 + $0xe0] ss:$16 sps:$4 sm:$0xff]   ;;  %v1989_v63 = vld [vmem:[%s2533_s0 + $0xe8] ss:$16 sps:$4 sm:$0xff]   ;;  %v1990_v0 = vld [vmem:[%s2533_s0 + $0x104] ss:$16 sps:$4 sm:$0xff]  }
  0x18   :  { %1697 = vmatpush3.bf16.msra.mxu0 %v1932_v22  ;;  %v1992_v1 = vld [vmem:[%s2533_s0 + $0x10c] ss:$16 sps:$4 sm:$0xff]   ;;  %v1994_v2 = vld [vmem:[%s2533_s0 + $0x100] ss:$16 sps:$4 sm:$0xff]   ;;  %v1995_v3 = vld [vmem:[%s2533_s0 + $0x108] ss:$16 sps:$4 sm:$0xff]  }
  0x19   :  { %1809 = vmatpush3.bf16.msra.mxu1 %v1933_v23  ;;  %1698 = vmatprep.subr.bf16.mxu0 %v1934_v24  ;;  %v1996_v4 = vld [vmem:[%s2533_s0 + $0x124] ss:$16 sps:$4 sm:$0xff]   ;;  %v1998_v5 = vld [vmem:[%s2533_s0 + $0x12c] ss:$16 sps:$4 sm:$0xff]   ;;  %v2000_v6 = vld [vmem:[%s2533_s0 + $0x120] ss:$16 sps:$4 sm:$0xff]  }
  0x1a   :  { %1810 = vmatprep.subr.bf16.mxu1 %v1935_v25  ;;  %v2001_v7 = vld [vmem:[%s2533_s0 + $0x128] ss:$16 sps:$4 sm:$0xff]   ;;  %v2002_v8 = vld [vmem:[%s2533_s0 + $0x144] ss:$16 sps:$4 sm:$0xff]   ;;  %v2004_v9 = vld [vmem:[%s2533_s0 + $0x14c] ss:$16 sps:$4 sm:$0xff]  }
  0x1b   :  { %v2006_v10 = vld [vmem:[%s2533_s0 + $0x140] ss:$16 sps:$4 sm:$0xff]   ;;  %v2007_v11 = vld [vmem:[%s2533_s0 + $0x148] ss:$16 sps:$4 sm:$0xff]   ;;  %v2008_v12 = vld [vmem:[%s2533_s0 + $0x164] ss:$16 sps:$4 sm:$0xff]  }
  0x1c   :  { %1699 = vmatpush3.bf16.msra.mxu0 %v1936_v26  ;;  %v2010_v13 = vld [vmem:[%s2533_s0 + $0x16c] ss:$16 sps:$4 sm:$0xff]   ;;  %v2012_v14 = vld [vmem:[%s2533_s0 + $0x160] ss:$16 sps:$4 sm:$0xff]   ;;  %v2013_v15 = vld [vmem:[%s2533_s0 + $0x168] ss:$16 sps:$4 sm:$0xff]  }
  0x1d   :  { %1811 = vmatpush3.bf16.msra.mxu1 %v1937_v27  ;;  %1700 = vmatprep.subr.bf16.mxu0 %v1938_v28  ;;  %v2014_v16 = vld [vmem:[%s2533_s0 + $0x184] ss:$16 sps:$4 sm:$0xff]   ;;  %v2016_v17 = vld [vmem:[%s2533_s0 + $0x18c] ss:$16 sps:$4 sm:$0xff]   ;;  %v2018_v18 = vld [vmem:[%s2533_s0 + $0x180] ss:$16 sps:$4 sm:$0xff]  }
  0x1e   :  { %1812 = vmatprep.subr.bf16.mxu1 %v1939_v29  ;;  %v2019_v19 = vld [vmem:[%s2533_s0 + $0x188] ss:$16 sps:$4 sm:$0xff]   ;;  %v2020_v20 = vld [vmem:[%s2533_s0 + $0x1a4] ss:$16 sps:$4 sm:$0xff]   ;;  %v2022_v21 = vld [vmem:[%s2533_s0 + $0x1ac] ss:$16 sps:$4 sm:$0xff]  }
  0x1f   :  { %v2024_v22 = vld [vmem:[%s2533_s0 + $0x1a0] ss:$16 sps:$4 sm:$0xff]   ;;  %v2025_v23 = vld [vmem:[%s2533_s0 + $0x1a8] ss:$16 sps:$4 sm:$0xff]   ;;  %v2026_v24 = vld [vmem:[%s2533_s0 + $0x1c4] ss:$16 sps:$4 sm:$0xff]  }
  0x20   :  { %1701 = vmatpush3.bf16.msra.mxu0 %v1940_v30  ;;  %v2028_v25 = vld [vmem:[%s2533_s0 + $0x1cc] ss:$16 sps:$4 sm:$0xff]   ;;  %v2030_v26 = vld [vmem:[%s2533_s0 + $0x1c0] ss:$16 sps:$4 sm:$0xff]   ;;  %v2031_v27 = vld [vmem:[%s2533_s0 + $0x1c8] ss:$16 sps:$4 sm:$0xff]  }
  0x21   :  { %1813 = vmatpush3.bf16.msra.mxu1 %v1941_v31  ;;  %v2032_v28 = vld [vmem:[%s2533_s0 + $0x1e4] ss:$16 sps:$4 sm:$0xff]   ;;  %v2034_v29 = vld [vmem:[%s2533_s0 + $0x1ec] ss:$16 sps:$4 sm:$0xff]   ;;  %v2036_v30 = vld [vmem:[%s2533_s0 + $0x1e0] ss:$16 sps:$4 sm:$0xff]  }
  0x22   :  { %v2037_v31 = vld [vmem:[%s2533_s0 + $0x1e8] ss:$16 sps:$4 sm:$0xff]  }
  0x23   :  { %760 = vmatmul.mubr.bf16.vlgmr.msra.gmra.mxu0 %v1942_v32 }
  0x24   :  { %921 = vmatmul.mubr.bf16.vlgmr.msra.gmra.mxu1 %v1945_v34  ;;  %767 = vmatprep.mubr.bf16.mxu0 %v1948_v36 }
  0x25   :  { %928 = vmatprep.mubr.bf16.mxu1 %v1950_v37 }
  0x2b   :  { %768 = vmatmul.mubr.bf16.gmra.mxu0 %v1952_v38 }
  0x2c   :  { %929 = vmatmul.mubr.bf16.gmra.mxu1 %v1953_v39  ;;  %775 = vmatprep.mubr.bf16.mxu0 %v1954_v40 }
  0x2d   :  { %936 = vmatprep.mubr.bf16.mxu1 %v1956_v41 }
  0x33   :  { %776 = vmatmul.mubr.bf16.gmra.mxu0 %v1958_v42 }
  0x34   :  { %937 = vmatmul.mubr.bf16.gmra.mxu1 %v1959_v43  ;;  %783 = vmatprep.mubr.bf16.mxu0 %v1960_v44 }
  0x35   :  { %944 = vmatprep.mubr.bf16.mxu1 %v1962_v45 }
  0x3b   :  { %784 = vmatmul.mubr.bf16.gmra.mxu0 %v1964_v46 }
  0x3c   :  { %945 = vmatmul.mubr.bf16.gmra.mxu1 %v1965_v47  ;;  %791 = vmatprep.mubr.bf16.mxu0 %v1966_v48 }
  0x3d   :  { %952 = vmatprep.mubr.bf16.mxu1 %v1968_v49 }
  0x43   :  { %792 = vmatmul.mubr.bf16.gmra.mxu0 %v1970_v50 }
  0x44   :  { %953 = vmatmul.mubr.bf16.gmra.mxu1 %v1971_v51  ;;  %799 = vmatprep.mubr.bf16.mxu0 %v1972_v52 }
  0x45   :  { %960 = vmatprep.mubr.bf16.mxu1 %v1974_v53 }
  0x4b   :  { %800 = vmatmul.mubr.bf16.gmra.mxu0 %v1976_v54 }
  0x4c   :  { %961 = vmatmul.mubr.bf16.gmra.mxu1 %v1977_v55  ;;  %807 = vmatprep.mubr.bf16.mxu0 %v1978_v56 }
  0x4d   :  { %968 = vmatprep.mubr.bf16.mxu1 %v1980_v57 }
  0x53   :  { %808 = vmatmul.mubr.bf16.gmra.mxu0 %v1982_v58 }
  0x54   :  { %969 = vmatmul.mubr.bf16.gmra.mxu1 %v1983_v59  ;;  %815 = vmatprep.mubr.bf16.mxu0 %v1984_v60 }
  0x55   :  { %976 = vmatprep.mubr.bf16.mxu1 %v1986_v61 }
  0x5b   :  { %816 = vmatmul.mubr.bf16.gmra.mxu0 %v1988_v62 }
  0x5c   :  { %977 = vmatmul.mubr.bf16.gmra.mxu1 %v1989_v63  ;;  %823 = vmatprep.mubr.bf16.mxu0 %v1990_v0 }
  0x5d   :  { %984 = vmatprep.mubr.bf16.mxu1 %v1992_v1 }
  0x63   :  { %824 = vmatmul.mubr.bf16.gmra.mxu0 %v1994_v2 }
  0x64   :  { %985 = vmatmul.mubr.bf16.gmra.mxu1 %v1995_v3  ;;  %831 = vmatprep.mubr.bf16.mxu0 %v1996_v4 }
  0x65   :  { %992 = vmatprep.mubr.bf16.mxu1 %v1998_v5 }
  0x6b   :  { %832 = vmatmul.mubr.bf16.gmra.mxu0 %v2000_v6 }
  0x6c   :  { %993 = vmatmul.mubr.bf16.gmra.mxu1 %v2001_v7  ;;  %839 = vmatprep.mubr.bf16.mxu0 %v2002_v8 }
  0x6d   :  { %1000 = vmatprep.mubr.bf16.mxu1 %v2004_v9 }
  0x73   :  { %840 = vmatmul.mubr.bf16.gmra.mxu0 %v2006_v10 }
  0x74   :  { %1001 = vmatmul.mubr.bf16.gmra.mxu1 %v2007_v11  ;;  %847 = vmatprep.mubr.bf16.mxu0 %v2008_v12 }
  0x75   :  { %1008 = vmatprep.mubr.bf16.mxu1 %v2010_v13 }
  0x7b   :  { %848 = vmatmul.mubr.bf16.gmra.mxu0 %v2012_v14 }
  0x7c   :  { %1009 = vmatmul.mubr.bf16.gmra.mxu1 %v2013_v15  ;;  %855 = vmatprep.mubr.bf16.mxu0 %v2014_v16 }
  0x7d   :  { %1016 = vmatprep.mubr.bf16.mxu1 %v2016_v17 }
  0x83   :  { %856 = vmatmul.mubr.bf16.gmra.mxu0 %v2018_v18 }
  0x84   :  { %1017 = vmatmul.mubr.bf16.gmra.mxu1 %v2019_v19  ;;  %863 = vmatprep.mubr.bf16.mxu0 %v2020_v20 }
  0x85   :  { %1024 = vmatprep.mubr.bf16.mxu1 %v2022_v21 }
  0x8b   :  { %864 = vmatmul.mubr.bf16.gmra.mxu0 %v2024_v22 }
  0x8c   :  { %1025 = vmatmul.mubr.bf16.gmra.mxu1 %v2025_v23  ;;  %871 = vmatprep.mubr.bf16.mxu0 %v2026_v24 }
  0x8d   :  { %1032 = vmatprep.mubr.bf16.mxu1 %v2028_v25 }
  0x93   :  { %872 = vmatmul.mubr.bf16.gmra.mxu0 %v2030_v26 }
  0x94   :  { %1033 = vmatmul.mubr.bf16.gmra.mxu1 %v2031_v27  ;;  %879 = vmatprep.mubr.bf16.mxu0 %v2032_v28 }
  0x95   :  { %1040 = vmatprep.mubr.bf16.mxu1 %v2034_v29 }
  0x9b   :  { %880 = vmatmul.mubr.bf16.gmra.mxu0 %v2036_v30 }
  0x9c   :  { %1041 = vmatmul.mubr.bf16.gmra.mxu1 %v2037_v31 }
  0xe3   :  { %v1702_v32 = vpop.f32.mrf.mxu0 }
  0xe4   :  { %v1814_v33 = vpop.f32.mrf.mxu1 }
  0xe5   :  { %v1703_v34 = vpop.f32.mrf.mxu0 }
  0xe6   :  { %v1815_v35 = vpop.f32.mrf.mxu1  ;;  %v1704_v38 = vadd.f32 %v1703_v34, %v1702_v32 }
  0xe7   :  { %v1705_v36 = vpop.f32.mrf.mxu0  ;;  %v1816_v39 = vadd.f32 %v1815_v35, %v1814_v33 }
  0xe8   :  { %v1817_v37 = vpop.f32.mrf.mxu1 }
  0xe9   :  { %v1706_v40 = vpop.f32.mrf.mxu0  ;;  %v2346_v46 = vadd.f32 %v1816_v39, %v1704_v38 }
  0xea   :  { %v1707_v41 = vadd.f32 %v1706_v40, %v1705_v36  ;;  %v1818_v42 = vpop.f32.mrf.mxu1 }
  0xeb   :  { %v1819_v43 = vadd.f32 %v1818_v42, %v1817_v37  ;;  %v1708_v44 = vpop.f32.mrf.mxu0 }
  0xec   :  { %v1820_v45 = vpop.f32.mrf.mxu1 }
  0xed   :  { %v2348_v47 = vadd.f32 %v1819_v43, %v1707_v41  ;;  %v1709_v48 = vpop.f32.mrf.mxu0 }
  0xee   :  { %v1821_v49 = vpop.f32.mrf.mxu1  ;;  %v1710_v54 = vadd.f32 %v1709_v48, %v1708_v44 }
  0xef   :  { %v1594_v50 = vpack.c.bf16 %v2348_v47, %v2346_v46  ;;  %v2354_v51 = vadd.f32 %v2348_v47, %v2346_v46  ;;  %v1711_v52 = vpop.f32.mrf.mxu0  ;;  %v1822_v55 = vadd.f32 %v1821_v49, %v1820_v45 }
  0xf0   :  { %v1823_v53 = vpop.f32.mrf.mxu1 }
  0xf1   :  { %1595 = vst [vmem:[%s2534_s2] sm:$0xff] %v1594_v50   ;;  %v1712_v56 = vpop.f32.mrf.mxu0  ;;  %v2359_v62 = vadd.f32 %v1822_v55, %v1710_v54 }
  0xf2   :  { %v1713_v57 = vadd.f32 %v1712_v56, %v1711_v52  ;;  %v1824_v58 = vpop.f32.mrf.mxu1 }
  0xf3   :  { %v1825_v59 = vadd.f32 %v1824_v58, %v1823_v53  ;;  %v1714_v60 = vpop.f32.mrf.mxu0 }
  0xf4   :  { %v1826_v61 = vpop.f32.mrf.mxu1 }
  0xf5   :  { %v2361_v63 = vadd.f32 %v1825_v59, %v1713_v57  ;;  %v1715_v0 = vpop.f32.mrf.mxu0 }
  0xf6   :  { %v1827_v1 = vpop.f32.mrf.mxu1  ;;  %v1716_v5 = vadd.f32 %v1715_v0, %v1714_v60 }
  0xf7   :  { %v1599_v2 = vpack.c.bf16 %v2361_v63, %v2359_v62  ;;  %v1717_v3 = vpop.f32.mrf.mxu0  ;;  %v1828_v6 = vadd.f32 %v1827_v1, %v1826_v61 }
  0xf8   :  { %v1829_v4 = vpop.f32.mrf.mxu1 }
  0xf9   :  { %1671 = vst [vmem:[%s2534_s2 + $0x8] sm:$0xff] %v1599_v2   ;;  %v1718_v7 = vpop.f32.mrf.mxu0  ;;  %v2368_v13 = vadd.f32 %v1828_v6, %v1716_v5 }
  0xfa   :  { %v1719_v8 = vadd.f32 %v1718_v7, %v1717_v3  ;;  %v1830_v9 = vpop.f32.mrf.mxu1 }
  0xfb   :  { %v1831_v10 = vadd.f32 %v1830_v9, %v1829_v4  ;;  %v1720_v11 = vpop.f32.mrf.mxu0 }
  0xfc   :  { %v1832_v12 = vpop.f32.mrf.mxu1 }
  0xfd   :  { %v2370_v14 = vadd.f32 %v1831_v10, %v1719_v8  ;;  %v1721_v15 = vpop.f32.mrf.mxu0 }
  0xfe   :  { %v1833_v16 = vpop.f32.mrf.mxu1  ;;  %v1722_v20 = vadd.f32 %v1721_v15, %v1720_v11 }
  0xff   :  { %v1604_v17 = vpack.c.bf16 %v2370_v14, %v2368_v13  ;;  %v1723_v18 = vpop.f32.mrf.mxu0  ;;  %v1834_v21 = vadd.f32 %v1833_v16, %v1832_v12 }
 0x100   :  { %v1835_v19 = vpop.f32.mrf.mxu1 }
 0x101   :  { %1672 = vst [vmem:[%s2534_s2 + $0x10] sm:$0xff] %v1604_v17   ;;  %v1724_v22 = vpop.f32.mrf.mxu0  ;;  %v2377_v28 = vadd.f32 %v1834_v21, %v1722_v20 }
 0x102   :  { %v1725_v23 = vadd.f32 %v1724_v22, %v1723_v18  ;;  %v1836_v24 = vpop.f32.mrf.mxu1 }
 0x103   :  { %v1837_v25 = vadd.f32 %v1836_v24, %v1835_v19  ;;  %v1726_v26 = vpop.f32.mrf.mxu0 }
 0x104   :  { %v1838_v27 = vpop.f32.mrf.mxu1 }
 0x105   :  { %v2379_v29 = vadd.f32 %v1837_v25, %v1725_v23  ;;  %v1727_v30 = vpop.f32.mrf.mxu0 }
 0x106   :  { %v1839_v31 = vpop.f32.mrf.mxu1  ;;  %v1728_v35 = vadd.f32 %v1727_v30, %v1726_v26 }
 0x107   :  { %v1609_v32 = vpack.c.bf16 %v2379_v29, %v2377_v28  ;;  %v1729_v33 = vpop.f32.mrf.mxu0  ;;  %v1840_v36 = vadd.f32 %v1839_v31, %v1838_v27 }
 0x108   :  { %v1841_v34 = vpop.f32.mrf.mxu1 }
 0x109   :  { %1673 = vst [vmem:[%s2534_s2 + $0x18] sm:$0xff] %v1609_v32   ;;  %v1730_v37 = vpop.f32.mrf.mxu0  ;;  %v2386_v43 = vadd.f32 %v1840_v36, %v1728_v35 }
 0x10a   :  { %v1731_v38 = vadd.f32 %v1730_v37, %v1729_v33  ;;  %v1842_v39 = vpop.f32.mrf.mxu1 }
 0x10b   :  { %v1843_v40 = vadd.f32 %v1842_v39, %v1841_v34  ;;  %v1732_v41 = vpop.f32.mrf.mxu0  ;;  %v1346_v39 = vmul.f32 %v2348_v47, %v2348_v47  ;;  %v1348_v47 = vmul.f32 %v2361_v63, %v2361_v63 }
 0x10c   :  { %v1844_v42 = vpop.f32.mrf.mxu1 }
 0x10d   :  { %v2388_v44 = vadd.f32 %v1843_v40, %v1731_v38  ;;  %v1733_v45 = vpop.f32.mrf.mxu0 }
 0x10e   :  { %v1845_v48 = vpop.f32.mrf.mxu1  ;;  %v1734_v53 = vadd.f32 %v1733_v45, %v1732_v41 }
 0x10f   :  { %v1614_v49 = vpack.c.bf16 %v2388_v44, %v2386_v43  ;;  %v1735_v50 = vpop.f32.mrf.mxu0  ;;  %v1846_v54 = vadd.f32 %v1845_v48, %v1844_v42  ;;  %v1345_v48 = vmul.f32 %v2346_v46, %v2346_v46 }
 0x110   :  { %v1847_v52 = vpop.f32.mrf.mxu1 }
 0x111   :  { %1674 = vst [vmem:[%s2534_s2 + $0x20] sm:$0xff] %v1614_v49   ;;  %v1736_v55 = vpop.f32.mrf.mxu0  ;;  %v2395_v61 = vadd.f32 %v1846_v54, %v1734_v53  ;;  %v1347_v49 = vmul.f32 %v2359_v62, %v2359_v62 }
 0x112   :  { %v1737_v56 = vadd.f32 %v1736_v55, %v1735_v50  ;;  %v1848_v57 = vpop.f32.mrf.mxu1  ;;  %v1377_v55 = vadd.f32 %v1346_v39, %v1345_v48 }
 0x113   :  { %v1849_v58 = vadd.f32 %v1848_v57, %v1847_v52  ;;  %v1738_v59 = vpop.f32.mrf.mxu0  ;;  %v1309_v57 = vadd.f32 %v2354_v51, %v2359_v62  ;;  %v1350_v51 = vmul.f32 %v2370_v14, %v2370_v14 }
 0x114   :  { %v1850_v60 = vpop.f32.mrf.mxu1 }
 0x115   :  { %v2397_v0 = vadd.f32 %v1849_v58, %v1737_v56  ;;  %v1739_v1 = vpop.f32.mrf.mxu0 }
 0x116   :  { %v1851_v2 = vpop.f32.mrf.mxu1  ;;  %v1740_v6 = vadd.f32 %v1739_v1, %v1738_v59  ;;  %v1349_v1 = vmul.f32 %v2368_v13, %v2368_v13 }
 0x117   :  { %v1619_v3 = vpack.c.bf16 %v2397_v0, %v2395_v61  ;;  %v1741_v4 = vpop.f32.mrf.mxu0  ;;  %v1852_v7 = vadd.f32 %v1851_v2, %v1850_v60  ;;  %v1378_v60 = vadd.f32 %v1377_v55, %v1347_v49 }
 0x118   :  { %v1853_v5 = vpop.f32.mrf.mxu1 }
 0x119   :  { %1675 = vst [vmem:[%s2534_s2 + $0x28] sm:$0xff] %v1619_v3   ;;  %v1742_v8 = vpop.f32.mrf.mxu0  ;;  %v2404_v16 = vadd.f32 %v1852_v7, %v1740_v6  ;;  %v1310_v3 = vadd.f32 %v1309_v57, %v2361_v63  ;;  %v1379_v6 = vadd.f32 %v1378_v60, %v1348_v47  ;;  %v1351_v63 = vmul.f32 %v2377_v28, %v2377_v28 }
 0x11a   :  { %v1743_v9 = vadd.f32 %v1742_v8, %v1741_v4  ;;  %v1854_v10 = vpop.f32.mrf.mxu1 }
 0x11b   :  { %v1855_v11 = vadd.f32 %v1854_v10, %v1853_v5  ;;  %v1744_v12 = vpop.f32.mrf.mxu0  ;;  %v1311_v7 = vadd.f32 %v1310_v3, %v2368_v13  ;;  %v1352_v13 = vmul.f32 %v2379_v29, %v2379_v29  ;;  %v1357_v60 = vmul.f32 %v2404_v16, %v2404_v16 }
 0x11c   :  { %v1856_v15 = vpop.f32.mrf.mxu1 }
 0x11d   :  { %v2406_v17 = vadd.f32 %v1855_v11, %v1743_v9  ;;  %v1745_v18 = vpop.f32.mrf.mxu0  ;;  %v1380_v11 = vadd.f32 %v1379_v6, %v1349_v1 }
 0x11e   :  { %v1857_v19 = vpop.f32.mrf.mxu1  ;;  %v1746_v23 = vadd.f32 %v1745_v18, %v1744_v12  ;;  %v1312_v18 = vadd.f32 %v1311_v7, %v2370_v14 }
 0x11f   :  { %v1624_v20 = vpack.c.bf16 %v2406_v17, %v2404_v16  ;;  %v1747_v21 = vpop.f32.mrf.mxu0  ;;  %v1858_v24 = vadd.f32 %v1857_v19, %v1856_v15 }
 0x120   :  { %v1859_v22 = vpop.f32.mrf.mxu1 }
 0x121   :  { %1676 = vst [vmem:[%s2534_s2 + $0x30] sm:$0xff] %v1624_v20   ;;  %v1748_v25 = vpop.f32.mrf.mxu0  ;;  %v2413_v33 = vadd.f32 %v1858_v24, %v1746_v23  ;;  %v1313_v23 = vadd.f32 %v1312_v18, %v2377_v28  ;;  %v1354_v28 = vmul.f32 %v2388_v44, %v2388_v44 }
 0x122   :  { %v1749_v26 = vadd.f32 %v1748_v25, %v1747_v21  ;;  %v1860_v27 = vpop.f32.mrf.mxu1  ;;  %v1381_v21 = vadd.f32 %v1380_v11, %v1350_v51 }
 0x123   :  { %v1861_v30 = vadd.f32 %v1860_v27, %v1859_v22  ;;  %v1750_v31 = vpop.f32.mrf.mxu0  ;;  %v1314_v14 = vadd.f32 %v1313_v23, %v2379_v29  ;;  %v1355_v29 = vmul.f32 %v2395_v61, %v2395_v61 }
 0x124   :  { %v1862_v32 = vpop.f32.mrf.mxu1  ;;  %v1382_v27 = vadd.f32 %v1381_v21, %v1351_v63 }
 0x125   :  { %v2415_v34 = vadd.f32 %v1861_v30, %v1749_v26  ;;  %v1751_v35 = vpop.f32.mrf.mxu0  ;;  %v1353_v30 = vmul.f32 %v2386_v43, %v2386_v43 }
 0x126   :  { %v1863_v36 = vpop.f32.mrf.mxu1  ;;  %v1752_v41 = vadd.f32 %v1751_v35, %v1750_v31 }
 0x127   :  { %v1629_v37 = vpack.c.bf16 %v2415_v34, %v2413_v33  ;;  %v1753_v38 = vpop.f32.mrf.mxu0  ;;  %v1864_v42 = vadd.f32 %v1863_v36, %v1862_v32  ;;  %v1383_v36 = vadd.f32 %v1382_v27, %v1352_v13 }
 0x128   :  { %v1865_v40 = vpop.f32.mrf.mxu1 }
 0x129   :  { %1677 = vst [vmem:[%s2534_s2 + $0x38] sm:$0xff] %v1629_v37   ;;  %v1754_v45 = vpop.f32.mrf.mxu0  ;;  %v2432_v58 = vadd.f32 %v1864_v42, %v1752_v41  ;;  %v1384_v42 = vadd.f32 %v1383_v36, %v1353_v30 }
 0x12a   :  { %v1755_v50 = vadd.f32 %v1754_v45, %v1753_v38  ;;  %v1866_v52 = vpop.f32.mrf.mxu1  ;;  %v1315_v38 = vadd.f32 %v1314_v14, %v2386_v43  ;;  %v1356_v43 = vmul.f32 %v2397_v0, %v2397_v0 }
 0x12b   :  { %v1867_v53 = vadd.f32 %v1866_v52, %v1865_v40  ;;  %v1756_v54 = vpop.f32.mrf.mxu0  ;;  %v1361_v23 = vmul.f32 %v2432_v58, %v2432_v58 }
 0x12c   :  { %v1868_v56 = vpop.f32.mrf.mxu1  ;;  %v1316_v49 = vadd.f32 %v1315_v38, %v2388_v44 }
 0x12d   :  { %v2434_v59 = vadd.f32 %v1867_v53, %v1755_v50  ;;  %v1757_v46 = vpop.f32.mrf.mxu0  ;;  %v1385_v53 = vadd.f32 %v1384_v42, %v1354_v28 }
 0x12e   :  { %v1869_v2 = vpop.f32.mrf.mxu1  ;;  %v1758_v8 = vadd.f32 %v1757_v46, %v1756_v54  ;;  %v1317_v55 = vadd.f32 %v1316_v49, %v2395_v61  ;;  %v1358_v61 = vmul.f32 %v2406_v17, %v2406_v17 }
 0x12f   :  { %v1634_v4 = vpack.c.bf16 %v2434_v59, %v2432_v58  ;;  %v1759_v5 = vpop.f32.mrf.mxu0  ;;  %v1870_v9 = vadd.f32 %v1869_v2, %v1868_v56  ;;  %v1386_v46 = vadd.f32 %v1385_v53, %v1355_v29  ;;  %v1362_v14 = vmul.f32 %v2434_v59, %v2434_v59 }
 0x130   :  { %v1871_v62 = vpop.f32.mrf.mxu1  ;;  %v1318_v44 = vadd.f32 %v1317_v55, %v2397_v0  ;;  %v1359_v0 = vmul.f32 %v2413_v33, %v2413_v33 }
 0x131   :  { %1678 = vst [vmem:[%s2534_s2 + $0x40] sm:$0xff] %v1634_v4   ;;  %v1760_v10 = vpop.f32.mrf.mxu0  ;;  %v2453_v24 = vadd.f32 %v1870_v9, %v1758_v8  ;;  %v1387_v4 = vadd.f32 %v1386_v46, %v1356_v43 }
 0x132   :  { %v1761_v12 = vadd.f32 %v1760_v10, %v1759_v5  ;;  %v1872_v15 = vpop.f32.mrf.mxu1  ;;  %v1319_v6 = vadd.f32 %v1318_v44, %v2404_v16  ;;  %v1360_v16 = vmul.f32 %v2415_v34, %v2415_v34 }
 0x133   :  { %v1873_v19 = vadd.f32 %v1872_v15, %v1871_v62  ;;  %v1762_v20 = vpop.f32.mrf.mxu0  ;;  %v1388_v8 = vadd.f32 %v1387_v4, %v1357_v60 }
 0x134   :  { %v1874_v22 = vpop.f32.mrf.mxu1  ;;  %v1320_v11 = vadd.f32 %v1319_v6, %v2406_v17 }
 0x135   :  { %v2455_v25 = vadd.f32 %v1873_v19, %v1761_v12  ;;  %v1763_v26 = vpop.f32.mrf.mxu0  ;;  %v1389_v15 = vadd.f32 %v1388_v8, %v1358_v61 }
 0x136   :  { %v1875_v31 = vpop.f32.mrf.mxu1  ;;  %v1764_v39 = vadd.f32 %v1763_v26, %v1762_v20  ;;  %v1321_v19 = vadd.f32 %v1320_v11, %v2413_v33 }
 0x137   :  { %v1639_v32 = vpack.c.bf16 %v2455_v25, %v2453_v24  ;;  %v1765_v35 = vpop.f32.mrf.mxu0  ;;  %v1876_v40 = vadd.f32 %v1875_v31, %v1874_v22  ;;  %v1390_v22 = vadd.f32 %v1389_v15, %v1359_v0 }
 0x138   :  { %v1877_v37 = vpop.f32.mrf.mxu1  ;;  %v1322_v27 = vadd.f32 %v1321_v19, %v2415_v34  ;;  %v1363_v34 = vmul.f32 %v2453_v24, %v2453_v24 }
 0x139   :  { %1679 = vst [vmem:[%s2534_s2 + $0x48] sm:$0xff] %v1639_v32   ;;  %v1766_v41 = vpop.f32.mrf.mxu0  ;;  %v2474_v47 = vadd.f32 %v1876_v40, %v1764_v39  ;;  %v1391_v31 = vadd.f32 %v1390_v22, %v1360_v16 }
 0x13a   :  { %v1767_v45 = vadd.f32 %v1766_v41, %v1765_v35  ;;  %v1878_v48 = vpop.f32.mrf.mxu1  ;;  %v1323_v35 = vadd.f32 %v1322_v27, %v2432_v58  ;;  %v1364_v58 = vmul.f32 %v2455_v25, %v2455_v25 }
 0x13b   :  { %v1879_v50 = vadd.f32 %v1878_v48, %v1877_v37  ;;  %v1768_v52 = vpop.f32.mrf.mxu0  ;;  %v1392_v37 = vadd.f32 %v1391_v31, %v1361_v23  ;;  %v1365_v43 = vmul.f32 %v2474_v47, %v2474_v47 }
 0x13c   :  { %v1880_v54 = vpop.f32.mrf.mxu1  ;;  %v1324_v40 = vadd.f32 %v1323_v35, %v2434_v59 }
 0x13d   :  { %v2476_v56 = vadd.f32 %v1879_v50, %v1767_v45  ;;  %v1769_v57 = vpop.f32.mrf.mxu0  ;;  %v1393_v29 = vadd.f32 %v1392_v37, %v1362_v14 }
 0x13e   :  { %v1881_v1 = vpop.f32.mrf.mxu1  ;;  %v1770_v51 = vadd.f32 %v1769_v57, %v1768_v52  ;;  %v1325_v48 = vadd.f32 %v1324_v40, %v2453_v24 }
 0x13f   :  { %v1644_v2 = vpack.c.bf16 %v2476_v56, %v2474_v47  ;;  %v1771_v3 = vpop.f32.mrf.mxu0  ;;  %v1882_v62 = vadd.f32 %v1881_v1, %v1880_v54  ;;  %v1394_v53 = vadd.f32 %v1393_v29, %v1363_v34  ;;  %v1366_v60 = vmul.f32 %v2476_v56, %v2476_v56 }
 0x140   :  { %v1883_v5 = vpop.f32.mrf.mxu1  ;;  %v1326_v55 = vadd.f32 %v1325_v48, %v2455_v25 }
 0x141   :  { %1680 = vst [vmem:[%s2534_s2 + $0x50] sm:$0xff] %v1644_v2   ;;  %v1772_v7 = vpop.f32.mrf.mxu0  ;;  %v1011_v20 = vadd.f32 %v1882_v62, %v1770_v51  ;;  %v1395_v46 = vadd.f32 %v1394_v53, %v1364_v58 }
 0x142   :  { %v1773_v9 = vadd.f32 %v1772_v7, %v1771_v3  ;;  %v1884_v10 = vpop.f32.mrf.mxu1  ;;  %v1327_v44 = vadd.f32 %v1326_v55, %v2474_v47 }
 0x143   :  { %v1885_v63 = vadd.f32 %v1884_v10, %v1883_v5  ;;  %v1774_v12 = vpop.f32.mrf.mxu0  ;;  %v1396_v4 = vadd.f32 %v1395_v46, %v1365_v43  ;;  %v1367_v61 = vmul.f32 %v1011_v20, %v1011_v20 }
 0x144   :  { %v1886_v18 = vpop.f32.mrf.mxu1  ;;  %v1328_v6 = vadd.f32 %v1327_v44, %v2476_v56 }
 0x145   :  { %v1014_v21 = vadd.f32 %v1885_v63, %v1773_v9  ;;  %v1775_v13 = vpop.f32.mrf.mxu0  ;;  %v1397_v7 = vadd.f32 %v1396_v4, %v1366_v60 }
 0x146   :  { %v1887_v26 = vpop.f32.mrf.mxu1  ;;  %v1776_v33 = vadd.f32 %v1775_v13, %v1774_v12  ;;  %v1329_v9 = vadd.f32 %v1328_v6, %v1011_v20 }
 0x147   :  { %v1649_v17 = vpack.c.bf16 %v1014_v21, %v1011_v20  ;;  %v1777_v30 = vpop.f32.mrf.mxu0  ;;  %v1888_v36 = vadd.f32 %v1887_v26, %v1886_v18  ;;  %v1368_v8 = vmul.f32 %v1014_v21, %v1014_v21  ;;  %v1398_v63 = vadd.f32 %v1397_v7, %v1367_v61 }
 0x148   :  { %v1889_v32 = vpop.f32.mrf.mxu1  ;;  %v1330_v16 = vadd.f32 %v1329_v9, %v1014_v21 }
 0x149   :  { %1681 = vst [vmem:[%s2534_s2 + $0x58] sm:$0xff] %v1649_v17   ;;  %v1778_v28 = vpop.f32.mrf.mxu0  ;;  %v1019_v49 = vadd.f32 %v1888_v36, %v1776_v33  ;;  %v1399_v23 = vadd.f32 %v1398_v63, %v1368_v8  ;;  %v1414_v8 = vlaneseq }
 0x14a   :  { %v1779_v38 = vadd.f32 %v1778_v28, %v1777_v30  ;;  %v1890_v39 = vpop.f32.mrf.mxu1 }
 0x14b   :  { %v1891_v41 = vadd.f32 %v1890_v39, %v1889_v32  ;;  %v1780_v42 = vpop.f32.mrf.mxu0  ;;  %v1369_v12 = vmul.f32 %v1019_v49, %v1019_v49  ;;  %v1331_v27 = vadd.f32 %v1330_v16, %v1019_v49 }
 0x14c   :  { %v1892_v45 = vpop.f32.mrf.mxu1 }
 0x14d   :  { %v1022_v50 = vadd.f32 %v1891_v41, %v1779_v38  ;;  %v1781_v52 = vpop.f32.mrf.mxu0  ;;  %v1400_v17 = vadd.f32 %v1399_v23, %v1369_v12 }
 0x14e   :  { %v1893_v54 = vpop.f32.mrf.mxu1  ;;  %v1782_v24 = vadd.f32 %v1781_v52, %v1780_v42 }
 0x14f   :  { %v1654_v59 = vpack.c.bf16 %v1022_v50, %v1019_v49  ;;  %v1783_v57 = vpop.f32.mrf.mxu0  ;;  %v1894_v2 = vadd.f32 %v1893_v54, %v1892_v45  ;;  %v1370_v26 = vmul.f32 %v1022_v50, %v1022_v50  ;;  %v1332_v32 = vadd.f32 %v1331_v27, %v1022_v50 }
 0x150   :  { %v1895_v1 = vpop.f32.mrf.mxu1 }
 0x151   :  { %1682 = vst [vmem:[%s2534_s2 + $0x60] sm:$0xff] %v1654_v59   ;;  %v1784_v3 = vpop.f32.mrf.mxu0  ;;  %v1027_v47 = vadd.f32 %v1894_v2, %v1782_v24  ;;  %v1401_v36 = vadd.f32 %v1400_v17, %v1370_v26 }
 0x152   :  { %v1785_v5 = vadd.f32 %v1784_v3, %v1783_v57  ;;  %v1896_v25 = vpop.f32.mrf.mxu1 }
 0x153   :  { %v1897_v51 = vadd.f32 %v1896_v25, %v1895_v1  ;;  %v1786_v62 = vpop.f32.mrf.mxu0  ;;  %v1371_v30 = vmul.f32 %v1027_v47, %v1027_v47  ;;  %v1333_v37 = vadd.f32 %v1332_v32, %v1027_v47 }
 0x154   :  { %v1898_v0 = vpop.f32.mrf.mxu1 }
 0x155   :  { %v1030_v10 = vadd.f32 %v1897_v51, %v1785_v5  ;;  %v1787_v11 = vpop.f32.mrf.mxu0  ;;  %v1402_v40 = vadd.f32 %v1401_v36, %v1371_v30 }
 0x156   :  { %v1899_v15 = vpop.f32.mrf.mxu1  ;;  %v1788_v19 = vadd.f32 %v1787_v11, %v1786_v62  ;;  %v1415_v11 = vshrl.u32 %v1414_v8, 7 }
 0x157   :  { %v1659_v18 = vpack.c.bf16 %v1030_v10, %v1027_v47  ;;  %v1900_v13 = vadd.f32 %v1899_v15, %v1898_v0  ;;  %v1789_v22 = vpop.f32.mrf.mxu0  ;;  %v1372_v34 = vmul.f32 %v1030_v10, %v1030_v10  ;;  %v1334_v29 = vadd.f32 %v1333_v37, %v1030_v10 }
 0x158   :  { %v1901_v56 = vpop.f32.mrf.mxu1  ;;  %vm1417_vm0 = vcmp.eq.s32.totalorder %v1415_v11, 1  ;;  %vm1416_vm1 = vcmp.eq.s32.totalorder %v1415_v11, 0 }
 0x159   :  { %1683 = vst [vmem:[%s2534_s2 + $0x68] sm:$0xff] %v1659_v18   ;;  %v1790_v20 = vpop.f32.mrf.mxu0  ;;  %v1035_v35 = vadd.f32 %v1900_v13, %v1788_v19  ;;  %v1403_v53 = vadd.f32 %v1402_v40, %v1372_v34 }
 0x15a   :  { %v1791_v31 = vadd.f32 %v1790_v20, %v1789_v22  ;;  %v1902_v14 = vpop.f32.mrf.mxu1 }
 0x15b   :  { %v1903_v21 = vadd.f32 %v1902_v14, %v1901_v56  ;;  %v1792_v33 = vpop.f32.mrf.mxu0  ;;  %v1373_v58 = vmul.f32 %v1035_v35, %v1035_v35  ;;  %v1335_v50 = vadd.f32 %v1334_v29, %v1035_v35 }
 0x15c   :  { %v1904_v28 = vpop.f32.mrf.mxu1 }
 0x15d   :  { %v1038_v38 = vadd.f32 %v1903_v21, %v1791_v31  ;;  %v1793_v39 = vpop.f32.mrf.mxu0  ;;  %v1404_v46 = vadd.f32 %v1403_v53, %v1373_v58 }
 0x15e   :  { %v1794_v41 = vadd.f32 %v1793_v39, %v1792_v33  ;;  %v1905_v42 = vpop.f32.mrf.mxu1 }
 0x15f   :  { %v1664_v45 = vpack.c.bf16 %v1038_v38, %v1035_v35  ;;  %v1906_v48 = vadd.f32 %v1905_v42, %v1904_v28  ;;  %v1795_v49 = vpop.f32.mrf.mxu0  ;;  %v1374_v43 = vmul.f32 %v1038_v38, %v1038_v38  ;;  %v1336_v60 = vadd.f32 %v1335_v50, %v1038_v38 }
 0x160   :  { %v1907_v52 = vpop.f32.mrf.mxu1 }
 0x161   :  { %1684 = vst [vmem:[%s2534_s2 + $0x70] sm:$0xff] %v1664_v45   ;;  %v1043_v54 = vadd.f32 %v1906_v48, %v1794_v41  ;;  %v1796_v55 = vpop.f32.mrf.mxu0  ;;  %v1405_v24 = vadd.f32 %v1404_v46, %v1374_v43 }
 0x162   :  { %v1797_v59 = vadd.f32 %v1796_v55, %v1795_v49  ;;  %v1908_v57 = vpop.f32.mrf.mxu1 }
 0x163   :  { %v1375_v1 = vmul.f32 %v1043_v54, %v1043_v54  ;;  %v1909_v44 = vadd.f32 %v1908_v57, %v1907_v52  ;;  %v1337_v2 = vadd.f32 %v1336_v60, %v1043_v54 }
 0x165   :  { %v1046_v3 = vadd.f32 %v1909_v44, %v1797_v59  ;;  %v1406_v4 = vadd.f32 %v1405_v24, %v1375_v1 }
 0x167   :  { %v1669_v61 = vpack.c.bf16 %v1046_v3, %v1043_v54  ;;  %v1338_v5 = vadd.f32 %v1337_v2, %v1046_v3  ;;  %v1376_v25 = vmul.f32 %v1046_v3, %v1046_v3 }
 0x169   :  { %1685 = vst [vmem:[%s2534_s2 + $0x78] sm:$0xff] %v1669_v61   ;;  %v1339_v6 = vrot.slane %v1338_v5, 4  ;;  %v1407_v51 = vadd.f32 %v1406_v4, %v1376_v25 }
 0x16b   :  { %v1340_v62 = vadd.f32 %v1339_v6, %v1338_v5  ;;  %v1408_v7 = vrot.slane %v1407_v51, 4 }
 0x16d   :  { %v1341_v0 = vrot.slane %v1340_v62, 2  ;;  %v1409_v9 = vadd.f32 %v1408_v7, %v1407_v51 }
 0x16f   :  { %v1342_v47 = vadd.f32 %v1341_v0, %v1340_v62  ;;  %v1410_v10 = vrot.slane %v1409_v9, 2 }
 0x171   :  { %v1411_v63 = vadd.f32 %v1410_v10, %v1409_v9  ;;  %v1343_v12 = vrot.slane %v1342_v47, 1 }
 0x173   :  { %v1412_v15 = vrot.slane %v1411_v63, 1  ;;  %v1344_v18 = vadd.f32 %v1343_v12, %v1342_v47 }
 0x175   :  { %v1413_v16 = vadd.f32 %v1412_v15, %v1411_v63 }
 0x177   :  { %v1418_v19 = vsel %vm1417_vm0, %v1413_v16, 0.0 }
 0x178   :  { %v1419_v13 = vsel %vm1416_vm1, %v1344_v18, %v1418_v19 }
 0x179   :  { %1420 = vst [vmem:[%s2535_s3] sm:$0xff] %v1419_v13 }

// kernel: _lambda_.13
= control target key start
LH: loop header
LB: loop body
LE: loop exit
PB: predicated region body
PF: predicated region fallthrough
CT: control target
= control target key end

     0   :  { %s3999_s1 = inlined_call_operand.vmem [shape: bf16[1024,128], index: 1, kind: input, shape index: {}]   ;;  %s4000_s0 = inlined_call_operand.vmem [shape: bf16[256,1024], index: 0, kind: input, shape index: {}]   ;;  %s4001_s2 = inlined_call_operand.vmem [shape: bf16[256,128], index: 2, kind: output, shape index: {0}]   ;;  %s4002_s3 = inlined_call_operand.vmem [shape: f32[8,128], index: 3, kind: output, shape index: {1}]  }
   0x1   :  { %v3192_v0 = vld [vmem:[%s3999_s1 + $0x78] sm:$0xff]   ;;  %v3196_v4 = vld [vmem:[%s3999_s1 + $0x70] sm:$0xff]   ;;  %v3200_v8 = vld [vmem:[%s3999_s1 + $0x68] sm:$0xff]  }
   0x2   :  { %v3193_v1 = vld [vmem:[%s3999_s1 + $0xf8] sm:$0xff]   ;;  %2744 = vmatprep.subr.bf16.mxu0 %v3192_v0  ;;  %v3197_v5 = vld [vmem:[%s3999_s1 + $0xf0] sm:$0xff]   ;;  %v3201_v9 = vld [vmem:[%s3999_s1 + $0xe8] sm:$0xff]  }
   0x3   :  { %v3194_v2 = vld [vmem:[%s3999_s1 + $0x38] sm:$0xff]   ;;  %2856 = vmatprep.subr.bf16.mxu1 %v3193_v1  ;;  %v3198_v6 = vld [vmem:[%s3999_s1 + $0x30] sm:$0xff]   ;;  %v3202_v10 = vld [vmem:[%s3999_s1 + $0x28] sm:$0xff]  }
   0x4   :  { %v3195_v3 = vld [vmem:[%s3999_s1 + $0xb8] sm:$0xff]   ;;  %2745 = vmatpush3.bf16.msra.mxu0 %v3194_v2  ;;  %v3199_v7 = vld [vmem:[%s3999_s1 + $0xb0] sm:$0xff]   ;;  %v3203_v11 = vld [vmem:[%s3999_s1 + $0xa8] sm:$0xff]  }
   0x5   :  { %2857 = vmatpush3.bf16.msra.mxu1 %v3195_v3  ;;  %2746 = vmatprep.subr.bf16.mxu0 %v3196_v4  ;;  %v3204_v12 = vld [vmem:[%s3999_s1 + $0x60] sm:$0xff]   ;;  %v3208_v16 = vld [vmem:[%s3999_s1 + $0x58] sm:$0xff]   ;;  %v3212_v20 = vld [vmem:[%s3999_s1 + $0x50] sm:$0xff]  }
   0x6   :  { %2858 = vmatprep.subr.bf16.mxu1 %v3197_v5  ;;  %v3205_v13 = vld [vmem:[%s3999_s1 + $0xe0] sm:$0xff]   ;;  %v3209_v17 = vld [vmem:[%s3999_s1 + $0xd8] sm:$0xff]   ;;  %v3213_v21 = vld [vmem:[%s3999_s1 + $0xd0] sm:$0xff]  }
   0x7   :  { %v3206_v14 = vld [vmem:[%s3999_s1 + $0x20] sm:$0xff]   ;;  %v3210_v18 = vld [vmem:[%s3999_s1 + $0x18] sm:$0xff]   ;;  %v3214_v22 = vld [vmem:[%s3999_s1 + $0x10] sm:$0xff]  }
   0x8   :  { %2747 = vmatpush3.bf16.msra.mxu0 %v3198_v6  ;;  %v3207_v15 = vld [vmem:[%s3999_s1 + $0xa0] sm:$0xff]   ;;  %v3211_v19 = vld [vmem:[%s3999_s1 + $0x98] sm:$0xff]   ;;  %v3215_v23 = vld [vmem:[%s3999_s1 + $0x90] sm:$0xff]  }
   0x9   :  { %2859 = vmatpush3.bf16.msra.mxu1 %v3199_v7  ;;  %2748 = vmatprep.subr.bf16.mxu0 %v3200_v8  ;;  %v3216_v24 = vld [vmem:[%s3999_s1 + $0x48] sm:$0xff]   ;;  %v3220_v28 = vld [vmem:[%s3999_s1 + $0x40] sm:$0xff]   ;;  %v3224_v40 = vld [vmem:[%s3999_s1 + $0x178] sm:$0xff]  }
   0xa   :  { %2860 = vmatprep.subr.bf16.mxu1 %v3201_v9  ;;  %v3217_v25 = vld [vmem:[%s3999_s1 + $0xc8] sm:$0xff]   ;;  %v3221_v29 = vld [vmem:[%s3999_s1 + $0xc0] sm:$0xff]   ;;  %v3225_v41 = vld [vmem:[%s3999_s1 + $0x138] sm:$0xff]  }
   0xb   :  { %v3218_v26 = vld [vmem:[%s3999_s1 + $0x8] sm:$0xff]   ;;  %v3222_v30 = vld [vmem:[%s3999_s1] sm:$0xff]   ;;  %v3226_v42 = vld [vmem:[%s3999_s1 + $0x1f8] sm:$0xff]  }
   0xc   :  { %2749 = vmatpush3.bf16.msra.mxu0 %v3202_v10  ;;  %v3219_v27 = vld [vmem:[%s3999_s1 + $0x88] sm:$0xff]   ;;  %v3223_v31 = vld [vmem:[%s3999_s1 + $0x80] sm:$0xff]   ;;  %v3227_v43 = vld [vmem:[%s3999_s1 + $0x1b8] sm:$0xff]  }
   0xd   :  { %2861 = vmatpush3.bf16.msra.mxu1 %v3203_v11  ;;  %2750 = vmatprep.subr.bf16.mxu0 %v3204_v12  ;;  %v83_v32 = vld [vmem:[%s4000_s0] sm:$0xff]  ;;  %v84_v34 = vld [vmem:[%s4000_s0 + $0x8] sm:$0xff]  ;;  %v3228_v55 = vld [vmem:[%s3999_s1 + $0x170] sm:$0xff]  }
   0xe   :  { %2862 = vmatprep.subr.bf16.mxu1 %v3205_v13  ;;  %v87_v33 = vld [vmem:[%s4000_s0 + $0x20] sm:$0xff]  ;;  %v88_v37 = vld [vmem:[%s4000_s0 + $0x28] sm:$0xff]  ;;  %v3229_v58 = vld [vmem:[%s3999_s1 + $0x130] sm:$0xff]  }
   0xf   :  { %v2393_v35 = vcombine.low %v83_v32, %v87_v33  ;;  %v2394_v36 = vcombine.high %v83_v32, %v87_v33  ;;  %v2395_v38 = vcombine.low %v84_v34, %v88_v37  ;;  %v2396_v39 = vcombine.high %v84_v34, %v88_v37  ;;  %v91_v44 = vld [vmem:[%s4000_s0 + $0x40] sm:$0xff]  ;;  %v92_v47 = vld [vmem:[%s4000_s0 + $0x48] sm:$0xff]  ;;  %v3230_v60 = vld [vmem:[%s3999_s1 + $0x1f0] sm:$0xff]  }
  0x10   :  { %2751 = vmatpush3.bf16.msra.mxu0 %v3206_v14  ;;  %v95_v45 = vld [vmem:[%s4000_s0 + $0x60] sm:$0xff]  ;;  %v96_v48 = vld [vmem:[%s4000_s0 + $0x68] sm:$0xff]  ;;  %v3231_v61 = vld [vmem:[%s3999_s1 + $0x1b0] sm:$0xff]  }
  0x11   :  { %2863 = vmatpush3.bf16.msra.mxu1 %v3207_v15  ;;  %2752 = vmatprep.subr.bf16.mxu0 %v3208_v16  ;;  %v2402_v46 = vcombine.high %v91_v44, %v95_v45  ;;  %v99_v49 = vld [vmem:[%s4000_s0 + $0x80] sm:$0xff]  ;;  %v2404_v50 = vcombine.high %v92_v47, %v96_v48  ;;  %v100_v52 = vld [vmem:[%s4000_s0 + $0x88] sm:$0xff]  ;;  %v2401_v54 = vcombine.low %v91_v44, %v95_v45  ;;  %v3244_v34 = vld [vmem:[%s3999_s1 + $0x150] sm:$0xff]  }
  0x12   :  { %2864 = vmatprep.subr.bf16.mxu1 %v3209_v17  ;;  %1399 = vmatprep.mubr.bf16.mxu0 %v2394_v36  ;;  %v103_v51 = vld [vmem:[%s4000_s0 + $0xa0] sm:$0xff]  ;;  %v104_v53 = vld [vmem:[%s4000_s0 + $0xa8] sm:$0xff]  ;;  %v2403_v56 = vcombine.low %v92_v47, %v96_v48  ;;  %v3245_v36 = vld [vmem:[%s3999_s1 + $0x110] sm:$0xff]  }
  0x13   :  { %1560 = vmatprep.mubr.bf16.mxu1 %v2396_v39  ;;  %v2410_v57 = vcombine.high %v99_v49, %v103_v51  ;;  %v2412_v59 = vcombine.high %v100_v52, %v104_v53  ;;  %v107_v62 = vld [vmem:[%s4000_s0 + $0xc0] sm:$0xff]  ;;  %v108_v0 = vld [vmem:[%s4000_s0 + $0xc8] sm:$0xff]  ;;  %v2409_v3 = vcombine.low %v99_v49, %v103_v51  ;;  %v2411_v5 = vcombine.low %v100_v52, %v104_v53  ;;  %v3246_v37 = vld [vmem:[%s3999_s1 + $0x1d0] sm:$0xff]  }
  0x14   :  { %2753 = vmatpush3.bf16.msra.mxu0 %v3210_v18  ;;  %v111_v63 = vld [vmem:[%s4000_s0 + $0xe0] sm:$0xff]  ;;  %v112_v1 = vld [vmem:[%s4000_s0 + $0xe8] sm:$0xff]  ;;  %v3247_v39 = vld [vmem:[%s3999_s1 + $0x190] sm:$0xff]  }
  0x15   :  { %2865 = vmatpush3.bf16.msra.mxu1 %v3211_v19  ;;  %2754 = vmatprep.subr.bf16.mxu0 %v3212_v20  ;;  %v3232_v2 = vld [vmem:[%s3999_s1 + $0x168] sm:$0xff]   ;;  %v2418_v6 = vcombine.high %v107_v62, %v111_v63  ;;  %v2420_v8 = vcombine.high %v108_v0, %v112_v1  ;;  %v115_v10 = vld [vmem:[%s4000_s0 + $0x100] sm:$0xff]  ;;  %v2417_v16 = vcombine.low %v107_v62, %v111_v63 }
  0x16   :  { %2866 = vmatprep.subr.bf16.mxu1 %v3213_v21  ;;  %v3233_v4 = vld [vmem:[%s3999_s1 + $0x128] sm:$0xff]   ;;  %v119_v11 = vld [vmem:[%s4000_s0 + $0x120] sm:$0xff]  ;;  %v2419_v18 = vcombine.low %v108_v0, %v112_v1 }
  0x17   :  { %v3234_v7 = vld [vmem:[%s3999_s1 + $0x1e8] sm:$0xff]   ;;  %v3236_v14 = vld [vmem:[%s3999_s1 + $0x160] sm:$0xff]   ;;  %v2426_v19 = vcombine.high %v115_v10, %v119_v11 }
  0x18   :  { %2755 = vmatpush3.bf16.msra.mxu0 %v3214_v22  ;;  %v3235_v9 = vld [vmem:[%s3999_s1 + $0x1a8] sm:$0xff]   ;;  %v3237_v15 = vld [vmem:[%s3999_s1 + $0x120] sm:$0xff]  }
  0x19   :  { %2867 = vmatpush3.bf16.msra.mxu1 %v3215_v23  ;;  %2756 = vmatprep.subr.bf16.mxu0 %v3216_v24  ;;  %v116_v12 = vld [vmem:[%s4000_s0 + $0x108] sm:$0xff]  ;;  %v3238_v17 = vld [vmem:[%s3999_s1 + $0x1e0] sm:$0xff]   ;;  %v3240_v24 = vld [vmem:[%s3999_s1 + $0x158] sm:$0xff]  }
  0x1a   :  { %2868 = vmatprep.subr.bf16.mxu1 %v3217_v25  ;;  %v120_v13 = vld [vmem:[%s4000_s0 + $0x128] sm:$0xff]  ;;  %v3239_v20 = vld [vmem:[%s3999_s1 + $0x1a0] sm:$0xff]  }
  0x1b   :  { %v2428_v21 = vcombine.high %v116_v12, %v120_v13  ;;  %v123_v22 = vld [vmem:[%s4000_s0 + $0x140] sm:$0xff]  ;;  %v124_v25 = vld [vmem:[%s4000_s0 + $0x148] sm:$0xff] }
  0x1c   :  { %2757 = vmatpush3.bf16.msra.mxu0 %v3218_v26  ;;  %v127_v23 = vld [vmem:[%s4000_s0 + $0x160] sm:$0xff]  ;;  %v128_v26 = vld [vmem:[%s4000_s0 + $0x168] sm:$0xff] }
  0x1d   :  { %2869 = vmatpush3.bf16.msra.mxu1 %v3219_v27  ;;  %2758 = vmatprep.subr.bf16.mxu0 %v3220_v28  ;;  %v3241_v27 = vld [vmem:[%s3999_s1 + $0x118] sm:$0xff]   ;;  %v2434_v32 = vcombine.high %v123_v22, %v127_v23  ;;  %v2436_v33 = vcombine.high %v124_v25, %v128_v26  ;;  %v3249_v47 = vld [vmem:[%s3999_s1 + $0x108] sm:$0xff]   ;;  %v143_v51 = vld [vmem:[%s4000_s0 + $0x1e0] sm:$0xff] }
  0x1e   :  { %2870 = vmatprep.subr.bf16.mxu1 %v3221_v29  ;;  %v3242_v28 = vld [vmem:[%s3999_s1 + $0x1d8] sm:$0xff]   ;;  %v3250_v48 = vld [vmem:[%s3999_s1 + $0x1c8] sm:$0xff]   ;;  %v147_v62 = vld [vmem:[%s4000_s0 + $0x200] sm:$0xff] }
  0x1f   :  { %v3243_v29 = vld [vmem:[%s3999_s1 + $0x198] sm:$0xff]   ;;  %v3251_v49 = vld [vmem:[%s3999_s1 + $0x188] sm:$0xff]   ;;  %v151_v63 = vld [vmem:[%s4000_s0 + $0x220] sm:$0xff] }
  0x20   :  { %2759 = vmatpush3.bf16.msra.mxu0 %v3222_v30  ;;  %v2425_v30 = vcombine.low %v115_v10, %v119_v11  ;;  %v140_v52 = vld [vmem:[%s4000_s0 + $0x1c8] sm:$0xff]  ;;  %v2457_v10 = vcombine.low %v147_v62, %v151_v63 }
  0x21   :  { %2871 = vmatpush3.bf16.msra.mxu1 %v3223_v31  ;;  %2968 = vmatprep.subr.bf16.mxu0 %v3224_v40  ;;  %v2427_v31 = vcombine.low %v116_v12, %v120_v13  ;;  %v132_v40 = vld [vmem:[%s4000_s0 + $0x188] sm:$0xff] }
  0x22   :  { %3080 = vmatprep.subr.bf16.mxu1 %v3226_v42  ;;  %v2433_v42 = vcombine.low %v123_v22, %v127_v23  ;;  %v144_v53 = vld [vmem:[%s4000_s0 + $0x1e8] sm:$0xff]  ;;  %v171_v22 = vld [vmem:[%s4000_s0 + $0x2c0] sm:$0xff] }
  0x23   :  { %1400 = vmatmul.mubr.bf16.vlgmr.msra.gmra.mxu0 %v2393_v35  ;;  %v131_v35 = vld [vmem:[%s4000_s0 + $0x180] sm:$0xff]  ;;  %v148_v0 = vld [vmem:[%s4000_s0 + $0x208] sm:$0xff] }
  0x24   :  { %1561 = vmatmul.mubr.bf16.vlgmr.msra.gmra.mxu1 %v2395_v38  ;;  %2969 = vmatpush3.bf16.msra.mxu0 %v3225_v41  ;;  %v135_v38 = vld [vmem:[%s4000_s0 + $0x1a0] sm:$0xff]  ;;  %v136_v41 = vld [vmem:[%s4000_s0 + $0x1a8] sm:$0xff] }
  0x25   :  { %3081 = vmatpush3.bf16.msra.mxu1 %v3227_v43  ;;  %1407 = vmatprep.mubr.bf16.mxu0 %v2402_v46  ;;  %v2435_v43 = vcombine.low %v124_v25, %v128_v26  ;;  %v2442_v44 = vcombine.high %v131_v35, %v135_v38  ;;  %v2444_v45 = vcombine.high %v132_v40, %v136_v41  ;;  %v3248_v46 = vld [vmem:[%s3999_s1 + $0x148] sm:$0xff]   ;;  %v175_v23 = vld [vmem:[%s4000_s0 + $0x2e0] sm:$0xff] }
  0x26   :  { %1568 = vmatprep.mubr.bf16.mxu1 %v2404_v50  ;;  %2970 = vmatprep.subr.bf16.mxu0 %v3228_v55  ;;  %v139_v50 = vld [vmem:[%s4000_s0 + $0x1c0] sm:$0xff]  ;;  %v152_v1 = vld [vmem:[%s4000_s0 + $0x228] sm:$0xff] }
  0x27   :  { %3082 = vmatprep.subr.bf16.mxu1 %v3230_v60  ;;  %v3252_v55 = vld [vmem:[%s3999_s1 + $0x140] sm:$0xff]   ;;  %v2459_v11 = vcombine.low %v148_v0, %v152_v1  ;;  %v176_v25 = vld [vmem:[%s4000_s0 + $0x2e8] sm:$0xff] }
  0x28   :  { %2971 = vmatpush3.bf16.msra.mxu0 %v3229_v58  ;;  %v3253_v58 = vld [vmem:[%s3999_s1 + $0x100] sm:$0xff]  }
  0x29   :  { %3083 = vmatpush3.bf16.msra.mxu1 %v3231_v61  ;;  %2972 = vmatprep.subr.bf16.mxu0 %v3232_v2  ;;  %v3254_v60 = vld [vmem:[%s3999_s1 + $0x1c0] sm:$0xff]   ;;  %v2449_v2 = vcombine.low %v139_v50, %v143_v51 }
  0x2a   :  { %3084 = vmatprep.subr.bf16.mxu1 %v3234_v7  ;;  %v3255_v61 = vld [vmem:[%s3999_s1 + $0x180] sm:$0xff]  }
  0x2b   :  { %1408 = vmatmul.mubr.bf16.gmra.mxu0 %v2401_v54  ;;  %v2441_v54 = vcombine.low %v131_v35, %v135_v38  ;;  %v159_v7 = vld [vmem:[%s4000_s0 + $0x260] sm:$0xff] }
  0x2c   :  { %1569 = vmatmul.mubr.bf16.gmra.mxu1 %v2403_v56  ;;  %1415 = vmatprep.mubr.bf16.mxu0 %v2410_v57  ;;  %v2443_v56 = vcombine.low %v132_v40, %v136_v41  ;;  %v2450_v57 = vcombine.high %v139_v50, %v143_v51  ;;  %v187_v38 = vld [vmem:[%s4000_s0 + $0x340] sm:$0xff]  ;;  %v188_v40 = vld [vmem:[%s4000_s0 + $0x348] sm:$0xff] }
  0x2d   :  { %1576 = vmatprep.mubr.bf16.mxu1 %v2412_v59  ;;  %2973 = vmatpush3.bf16.msra.mxu0 %v3233_v4  ;;  %v2452_v59 = vcombine.high %v140_v52, %v144_v53  ;;  %v2458_v4 = vcombine.high %v147_v62, %v151_v63  ;;  %v192_v41 = vld [vmem:[%s4000_s0 + $0x368] sm:$0xff]  ;;  %v85_v62 = vld [vmem:[%s4000_s0 + $0x10] sm:$0xff] }
  0x2e   :  { %3085 = vmatpush3.bf16.msra.mxu1 %v3235_v9  ;;  %2974 = vmatprep.subr.bf16.mxu0 %v3236_v14  ;;  %v160_v9 = vld [vmem:[%s4000_s0 + $0x268] sm:$0xff]  ;;  %v163_v14 = vld [vmem:[%s4000_s0 + $0x280] sm:$0xff]  ;;  %v2499_v51 = vcombine.low %v188_v40, %v192_v41  ;;  %v89_v63 = vld [vmem:[%s4000_s0 + $0x30] sm:$0xff] }
  0x2f   :  { %3086 = vmatprep.subr.bf16.mxu1 %v3238_v17  ;;  %v168_v17 = vld [vmem:[%s4000_s0 + $0x2a8] sm:$0xff] }
  0x31   :  { %2975 = vmatpush3.bf16.msra.mxu0 %v3237_v15  ;;  %v167_v15 = vld [vmem:[%s4000_s0 + $0x2a0] sm:$0xff] }
  0x32   :  { %3087 = vmatpush3.bf16.msra.mxu1 %v3239_v20  ;;  %2976 = vmatprep.subr.bf16.mxu0 %v3240_v24  ;;  %v2474_v20 = vcombine.high %v163_v14, %v167_v15  ;;  %v172_v24 = vld [vmem:[%s4000_s0 + $0x2c8] sm:$0xff]  ;;  %v2473_v26 = vcombine.low %v163_v14, %v167_v15  ;;  %v101_v14 = vld [vmem:[%s4000_s0 + $0x90] sm:$0xff] }
  0x33   :  { %1416 = vmatmul.mubr.bf16.gmra.mxu0 %v2409_v3  ;;  %3088 = vmatprep.subr.bf16.mxu1 %v3242_v28  ;;  %v2451_v3 = vcombine.low %v140_v52, %v144_v53  ;;  %v2482_v28 = vcombine.high %v171_v22, %v175_v23  ;;  %v2483_v35 = vcombine.low %v172_v24, %v176_v25  ;;  %v105_v15 = vld [vmem:[%s4000_s0 + $0xb0] sm:$0xff] }
  0x34   :  { %1577 = vmatmul.mubr.bf16.gmra.mxu1 %v2411_v5  ;;  %1423 = vmatprep.mubr.bf16.mxu0 %v2418_v6  ;;  %v2460_v5 = vcombine.high %v148_v0, %v152_v1  ;;  %v155_v6 = vld [vmem:[%s4000_s0 + $0x240] sm:$0xff]  ;;  %v86_v0 = vld [vmem:[%s4000_s0 + $0x18] sm:$0xff] }
  0x35   :  { %1584 = vmatprep.mubr.bf16.mxu1 %v2420_v8  ;;  %2977 = vmatpush3.bf16.msra.mxu0 %v3241_v27  ;;  %v156_v8 = vld [vmem:[%s4000_s0 + $0x248] sm:$0xff]  ;;  %v2466_v12 = vcombine.high %v155_v6, %v159_v7  ;;  %v90_v1 = vld [vmem:[%s4000_s0 + $0x38] sm:$0xff] }
  0x36   :  { %3089 = vmatpush3.bf16.msra.mxu1 %v3243_v29  ;;  %2978 = vmatprep.subr.bf16.mxu0 %v3244_v34  ;;  %v2468_v13 = vcombine.high %v156_v8, %v160_v9  ;;  %v2484_v29 = vcombine.high %v172_v24, %v176_v25  ;;  %v2481_v34 = vcombine.low %v171_v22, %v175_v23  ;;  %v109_v22 = vld [vmem:[%s4000_s0 + $0xd0] sm:$0xff]  ;;  %v110_v24 = vld [vmem:[%s4000_s0 + $0xd8] sm:$0xff] }
  0x37   :  { %3090 = vmatprep.subr.bf16.mxu1 %v3246_v37  ;;  %v113_v23 = vld [vmem:[%s4000_s0 + $0xf0] sm:$0xff]  ;;  %v114_v25 = vld [vmem:[%s4000_s0 + $0xf8] sm:$0xff] }
  0x39   :  { %2979 = vmatpush3.bf16.msra.mxu0 %v3245_v36 }
  0x3a   :  { %3091 = vmatpush3.bf16.msra.mxu1 %v3247_v39  ;;  %2980 = vmatprep.subr.bf16.mxu0 %v3248_v46  ;;  %v191_v39 = vld [vmem:[%s4000_s0 + $0x360] sm:$0xff] }
  0x3b   :  { %1424 = vmatmul.mubr.bf16.gmra.mxu0 %v2417_v16  ;;  %3092 = vmatprep.subr.bf16.mxu1 %v3250_v48  ;;  %v164_v16 = vld [vmem:[%s4000_s0 + $0x288] sm:$0xff]  ;;  %v195_v46 = vld [vmem:[%s4000_s0 + $0x380] sm:$0xff]  ;;  %v2497_v50 = vcombine.low %v187_v38, %v191_v39 }
  0x3c   :  { %1585 = vmatmul.mubr.bf16.gmra.mxu1 %v2419_v18  ;;  %1431 = vmatprep.mubr.bf16.mxu0 %v2426_v19  ;;  %v2465_v18 = vcombine.low %v155_v6, %v159_v7  ;;  %v2467_v19 = vcombine.low %v156_v8, %v160_v9  ;;  %v2475_v27 = vcombine.low %v164_v16, %v168_v17  ;;  %v196_v48 = vld [vmem:[%s4000_s0 + $0x388] sm:$0xff]  ;;  %v93_v6 = vld [vmem:[%s4000_s0 + $0x50] sm:$0xff]  ;;  %v94_v8 = vld [vmem:[%s4000_s0 + $0x58] sm:$0xff] }
  0x3d   :  { %1592 = vmatprep.mubr.bf16.mxu1 %v2428_v21  ;;  %2981 = vmatpush3.bf16.msra.mxu0 %v3249_v47  ;;  %v2476_v21 = vcombine.high %v164_v16, %v168_v17  ;;  %v199_v47 = vld [vmem:[%s4000_s0 + $0x3a0] sm:$0xff]  ;;  %v97_v7 = vld [vmem:[%s4000_s0 + $0x70] sm:$0xff]  ;;  %v98_v9 = vld [vmem:[%s4000_s0 + $0x78] sm:$0xff] }
  0x3e   :  { %3093 = vmatpush3.bf16.msra.mxu1 %v3251_v49  ;;  %2982 = vmatprep.subr.bf16.mxu0 %v3252_v55  ;;  %v200_v49 = vld [vmem:[%s4000_s0 + $0x3a8] sm:$0xff]  ;;  %v2506_v52 = vcombine.high %v195_v46, %v199_v47  ;;  %v207_v55 = vld [vmem:[%s4000_s0 + $0x3e0] sm:$0xff]  ;;  %v102_v16 = vld [vmem:[%s4000_s0 + $0x98] sm:$0xff] }
  0x3f   :  { %3094 = vmatprep.subr.bf16.mxu1 %v3254_v60  ;;  %v2508_v53 = vcombine.high %v196_v48, %v200_v49  ;;  %v106_v17 = vld [vmem:[%s4000_s0 + $0xb8] sm:$0xff] }
  0x41   :  { %2983 = vmatpush3.bf16.msra.mxu0 %v3253_v58  ;;  %v2505_v58 = vcombine.low %v195_v46, %v199_v47  ;;  %v133_v46 = vld [vmem:[%s4000_s0 + $0x190] sm:$0xff] }
  0x42   :  { %3095 = vmatpush3.bf16.msra.mxu1 %v3255_v61  ;;  %v137_v47 = vld [vmem:[%s4000_s0 + $0x1b0] sm:$0xff] }
  0x43   :  { %1432 = vmatmul.mubr.bf16.gmra.mxu0 %v2425_v30  ;;  %v179_v30 = vld [vmem:[%s4000_s0 + $0x300] sm:$0xff] }
  0x44   :  { %1593 = vmatmul.mubr.bf16.gmra.mxu1 %v2427_v31  ;;  %1439 = vmatprep.mubr.bf16.mxu0 %v2434_v32  ;;  %v183_v31 = vld [vmem:[%s4000_s0 + $0x320] sm:$0xff]  ;;  %v180_v32 = vld [vmem:[%s4000_s0 + $0x308] sm:$0xff] }
  0x45   :  { %1600 = vmatprep.mubr.bf16.mxu1 %v2436_v33  ;;  %v184_v33 = vld [vmem:[%s4000_s0 + $0x328] sm:$0xff]  ;;  %v2490_v36 = vcombine.high %v179_v30, %v183_v31 }
  0x46   :  { %v2492_v37 = vcombine.high %v180_v32, %v184_v33 }
  0x4b   :  { %1440 = vmatmul.mubr.bf16.gmra.mxu0 %v2433_v42  ;;  %v2489_v42 = vcombine.low %v179_v30, %v183_v31  ;;  %v117_v30 = vld [vmem:[%s4000_s0 + $0x110] sm:$0xff] }
  0x4c   :  { %1601 = vmatmul.mubr.bf16.gmra.mxu1 %v2435_v43  ;;  %1447 = vmatprep.mubr.bf16.mxu0 %v2442_v44  ;;  %v2491_v43 = vcombine.low %v180_v32, %v184_v33  ;;  %v2498_v44 = vcombine.high %v187_v38, %v191_v39  ;;  %v121_v31 = vld [vmem:[%s4000_s0 + $0x130] sm:$0xff]  ;;  %v118_v32 = vld [vmem:[%s4000_s0 + $0x118] sm:$0xff] }
  0x4d   :  { %1608 = vmatprep.mubr.bf16.mxu1 %v2444_v45  ;;  %v2500_v45 = vcombine.high %v188_v40, %v192_v41  ;;  %v122_v33 = vld [vmem:[%s4000_s0 + $0x138] sm:$0xff]  ;;  %v125_v38 = vld [vmem:[%s4000_s0 + $0x150] sm:$0xff] }
  0x4e   :  { %v129_v39 = vld [vmem:[%s4000_s0 + $0x170] sm:$0xff]  ;;  %v126_v40 = vld [vmem:[%s4000_s0 + $0x158] sm:$0xff] }
  0x4f   :  { %v130_v41 = vld [vmem:[%s4000_s0 + $0x178] sm:$0xff] }
  0x53   :  { %1448 = vmatmul.mubr.bf16.gmra.mxu0 %v2441_v54  ;;  %v203_v54 = vld [vmem:[%s4000_s0 + $0x3c0] sm:$0xff] }
  0x54   :  { %1609 = vmatmul.mubr.bf16.gmra.mxu1 %v2443_v56  ;;  %1455 = vmatprep.mubr.bf16.mxu0 %v2450_v57  ;;  %v204_v56 = vld [vmem:[%s4000_s0 + $0x3c8] sm:$0xff]  ;;  %v2514_v60 = vcombine.high %v203_v54, %v207_v55 }
  0x55   :  { %1616 = vmatprep.mubr.bf16.mxu1 %v2452_v59  ;;  %v208_v57 = vld [vmem:[%s4000_s0 + $0x3e8] sm:$0xff]  ;;  %v2507_v59 = vcombine.low %v196_v48, %v200_v49  ;;  %v134_v48 = vld [vmem:[%s4000_s0 + $0x198] sm:$0xff] }
  0x56   :  { %v2516_v61 = vcombine.high %v204_v56, %v208_v57  ;;  %v138_v49 = vld [vmem:[%s4000_s0 + $0x1b8] sm:$0xff] }
  0x5b   :  { %1456 = vmatmul.mubr.bf16.gmra.mxu0 %v2449_v2  ;;  %v2513_v2 = vcombine.low %v203_v54, %v207_v55  ;;  %v141_v54 = vld [vmem:[%s4000_s0 + $0x1d0] sm:$0xff] }
  0x5c   :  { %1617 = vmatmul.mubr.bf16.gmra.mxu1 %v2451_v3  ;;  %1463 = vmatprep.mubr.bf16.mxu0 %v2458_v4  ;;  %v2515_v3 = vcombine.low %v204_v56, %v208_v57  ;;  %v2398_v4 = vcombine.high %v85_v62, %v89_v63  ;;  %v145_v55 = vld [vmem:[%s4000_s0 + $0x1f0] sm:$0xff]  ;;  %v142_v56 = vld [vmem:[%s4000_s0 + $0x1d8] sm:$0xff] }
  0x5d   :  { %1624 = vmatprep.mubr.bf16.mxu1 %v2460_v5  ;;  %v2400_v5 = vcombine.high %v86_v0, %v90_v1  ;;  %v146_v57 = vld [vmem:[%s4000_s0 + $0x1f8] sm:$0xff] }
  0x63   :  { %1464 = vmatmul.mubr.bf16.gmra.mxu0 %v2457_v10  ;;  %v2397_v10 = vcombine.low %v85_v62, %v89_v63  ;;  %v149_v62 = vld [vmem:[%s4000_s0 + $0x210] sm:$0xff] }
  0x64   :  { %1625 = vmatmul.mubr.bf16.gmra.mxu1 %v2459_v11  ;;  %1471 = vmatprep.mubr.bf16.mxu0 %v2466_v12  ;;  %v2399_v11 = vcombine.low %v86_v0, %v90_v1  ;;  %v2406_v12 = vcombine.high %v93_v6, %v97_v7  ;;  %v153_v63 = vld [vmem:[%s4000_s0 + $0x230] sm:$0xff]  ;;  %v150_v0 = vld [vmem:[%s4000_s0 + $0x218] sm:$0xff] }
  0x65   :  { %1632 = vmatprep.mubr.bf16.mxu1 %v2468_v13  ;;  %v2408_v13 = vcombine.high %v94_v8, %v98_v9  ;;  %v154_v1 = vld [vmem:[%s4000_s0 + $0x238] sm:$0xff] }
  0x6b   :  { %1472 = vmatmul.mubr.bf16.gmra.mxu0 %v2465_v18  ;;  %v2405_v18 = vcombine.low %v93_v6, %v97_v7  ;;  %v157_v6 = vld [vmem:[%s4000_s0 + $0x250] sm:$0xff] }
  0x6c   :  { %1633 = vmatmul.mubr.bf16.gmra.mxu1 %v2467_v19  ;;  %1479 = vmatprep.mubr.bf16.mxu0 %v2474_v20  ;;  %v2407_v19 = vcombine.low %v94_v8, %v98_v9  ;;  %v2414_v20 = vcombine.high %v101_v14, %v105_v15  ;;  %v161_v7 = vld [vmem:[%s4000_s0 + $0x270] sm:$0xff]  ;;  %v158_v8 = vld [vmem:[%s4000_s0 + $0x258] sm:$0xff] }
  0x6d   :  { %1640 = vmatprep.mubr.bf16.mxu1 %v2476_v21  ;;  %v2416_v21 = vcombine.high %v102_v16, %v106_v17  ;;  %v162_v9 = vld [vmem:[%s4000_s0 + $0x278] sm:$0xff] }
  0x73   :  { %1480 = vmatmul.mubr.bf16.gmra.mxu0 %v2473_v26  ;;  %v2413_v26 = vcombine.low %v101_v14, %v105_v15 }
  0x74   :  { %1641 = vmatmul.mubr.bf16.gmra.mxu1 %v2475_v27  ;;  %1487 = vmatprep.mubr.bf16.mxu0 %v2482_v28  ;;  %v2415_v27 = vcombine.low %v102_v16, %v106_v17  ;;  %v2422_v28 = vcombine.high %v109_v22, %v113_v23  ;;  %v165_v17 = vld [vmem:[%s4000_s0 + $0x290] sm:$0xff] }
  0x75   :  { %1648 = vmatprep.mubr.bf16.mxu1 %v2484_v29  ;;  %v2424_v29 = vcombine.high %v110_v24, %v114_v25 }
  0x7b   :  { %1488 = vmatmul.mubr.bf16.gmra.mxu0 %v2481_v34  ;;  %v2421_v34 = vcombine.low %v109_v22, %v113_v23  ;;  %v170_v22 = vld [vmem:[%s4000_s0 + $0x2b8] sm:$0xff] }
  0x7c   :  { %1649 = vmatmul.mubr.bf16.gmra.mxu1 %v2483_v35  ;;  %1495 = vmatprep.mubr.bf16.mxu0 %v2490_v36  ;;  %v2423_v35 = vcombine.low %v110_v24, %v114_v25  ;;  %v2430_v36 = vcombine.high %v117_v30, %v121_v31  ;;  %v2469_v25 = vcombine.low %v157_v6, %v161_v7 }
  0x7d   :  { %1656 = vmatprep.mubr.bf16.mxu1 %v2492_v37  ;;  %v2432_v37 = vcombine.high %v118_v32, %v122_v33 }
  0x83   :  { %1496 = vmatmul.mubr.bf16.gmra.mxu0 %v2489_v42  ;;  %v2429_v42 = vcombine.low %v117_v30, %v121_v31 }
  0x84   :  { %1657 = vmatmul.mubr.bf16.gmra.mxu1 %v2491_v43  ;;  %1503 = vmatprep.mubr.bf16.mxu0 %v2498_v44  ;;  %v2431_v43 = vcombine.low %v118_v32, %v122_v33  ;;  %v2438_v44 = vcombine.high %v125_v38, %v129_v39 }
  0x85   :  { %1664 = vmatprep.mubr.bf16.mxu1 %v2500_v45  ;;  %v2440_v45 = vcombine.high %v126_v40, %v130_v41 }
  0x8b   :  { %1504 = vmatmul.mubr.bf16.gmra.mxu0 %v2497_v50  ;;  %v2437_v50 = vcombine.low %v125_v38, %v129_v39  ;;  %v173_v39 = vld [vmem:[%s4000_s0 + $0x2d0] sm:$0xff] }
  0x8c   :  { %1665 = vmatmul.mubr.bf16.gmra.mxu1 %v2499_v51  ;;  %1511 = vmatprep.mubr.bf16.mxu0 %v2506_v52  ;;  %v2439_v51 = vcombine.low %v126_v40, %v130_v41  ;;  %v2446_v52 = vcombine.high %v133_v46, %v137_v47  ;;  %v177_v40 = vld [vmem:[%s4000_s0 + $0x2f0] sm:$0xff] }
  0x8d   :  { %1672 = vmatprep.mubr.bf16.mxu1 %v2508_v53  ;;  %v2448_v53 = vcombine.high %v134_v48, %v138_v49 }
  0x93   :  { %1512 = vmatmul.mubr.bf16.gmra.mxu0 %v2505_v58  ;;  %v2445_v58 = vcombine.low %v133_v46, %v137_v47 }
  0x94   :  { %1673 = vmatmul.mubr.bf16.gmra.mxu1 %v2507_v59  ;;  %1519 = vmatprep.mubr.bf16.mxu0 %v2514_v60  ;;  %v2447_v59 = vcombine.low %v134_v48, %v138_v49  ;;  %v2454_v60 = vcombine.high %v141_v54, %v145_v55 }
  0x95   :  { %1680 = vmatprep.mubr.bf16.mxu1 %v2516_v61  ;;  %v2456_v61 = vcombine.high %v142_v56, %v146_v57 }
  0x9b   :  { %1520 = vmatmul.mubr.bf16.gmra.mxu0 %v2513_v2  ;;  %v2453_v2 = vcombine.low %v141_v54, %v145_v55 }
  0x9c   :  { %1681 = vmatmul.mubr.bf16.gmra.mxu1 %v2515_v3  ;;  %1721 = vmatprep.mubr.bf16.mxu0 %v2398_v4  ;;  %v2455_v3 = vcombine.low %v142_v56, %v146_v57  ;;  %v2462_v4 = vcombine.high %v149_v62, %v153_v63 }
  0x9d   :  { %1882 = vmatprep.mubr.bf16.mxu1 %v2400_v5  ;;  %v2464_v5 = vcombine.high %v150_v0, %v154_v1 }
  0xa3   :  { %1722 = vmatmul.mubr.bf16.vlgmr.msra.gmra.mxu0 %v2397_v10  ;;  %v2461_v10 = vcombine.low %v149_v62, %v153_v63  ;;  %v185_v62 = vld [vmem:[%s4000_s0 + $0x330] sm:$0xff] }
  0xa4   :  { %1883 = vmatmul.mubr.bf16.vlgmr.msra.gmra.mxu1 %v2399_v11  ;;  %1729 = vmatprep.mubr.bf16.mxu0 %v2406_v12  ;;  %v2463_v11 = vcombine.low %v150_v0, %v154_v1  ;;  %v2470_v12 = vcombine.high %v157_v6, %v161_v7  ;;  %v182_v1 = vld [vmem:[%s4000_s0 + $0x318] sm:$0xff] }
  0xa5   :  { %1890 = vmatprep.mubr.bf16.mxu1 %v2408_v13  ;;  %v2472_v13 = vcombine.high %v158_v8, %v162_v9 }
  0xab   :  { %1730 = vmatmul.mubr.bf16.gmra.mxu0 %v2405_v18  ;;  %v169_v18 = vld [vmem:[%s4000_s0 + $0x2b0] sm:$0xff] }
  0xac   :  { %1891 = vmatmul.mubr.bf16.gmra.mxu1 %v2407_v19  ;;  %1737 = vmatprep.mubr.bf16.mxu0 %v2414_v20  ;;  %v2477_v47 = vcombine.low %v165_v17, %v169_v18 }
  0xad   :  { %1898 = vmatprep.mubr.bf16.mxu1 %v2416_v21  ;;  %v166_v21 = vld [vmem:[%s4000_s0 + $0x298] sm:$0xff] }
  0xae   :  { %v2480_v31 = vcombine.high %v166_v21, %v170_v22  ;;  %v2479_v49 = vcombine.low %v166_v21, %v170_v22 }
  0xb3   :  { %1738 = vmatmul.mubr.bf16.gmra.mxu0 %v2413_v26 }
  0xb4   :  { %1899 = vmatmul.mubr.bf16.gmra.mxu1 %v2415_v27  ;;  %1745 = vmatprep.mubr.bf16.mxu0 %v2422_v28  ;;  %v2471_v27 = vcombine.low %v158_v8, %v162_v9  ;;  %v2478_v28 = vcombine.high %v165_v17, %v169_v18 }
  0xb5   :  { %1906 = vmatprep.mubr.bf16.mxu1 %v2424_v29 }
  0xbb   :  { %1746 = vmatmul.mubr.bf16.gmra.mxu0 %v2421_v34 }
  0xbc   :  { %1907 = vmatmul.mubr.bf16.gmra.mxu1 %v2423_v35  ;;  %1753 = vmatprep.mubr.bf16.mxu0 %v2430_v36 }
  0xbd   :  { %1914 = vmatprep.mubr.bf16.mxu1 %v2432_v37 }
  0xc3   :  { %1754 = vmatmul.mubr.bf16.gmra.mxu0 %v2429_v42 }
  0xc4   :  { %1915 = vmatmul.mubr.bf16.gmra.mxu1 %v2431_v43  ;;  %1761 = vmatprep.mubr.bf16.mxu0 %v2438_v44  ;;  %v174_v43 = vld [vmem:[%s4000_s0 + $0x2d8] sm:$0xff] }
  0xc5   :  { %1922 = vmatprep.mubr.bf16.mxu1 %v2440_v45  ;;  %v178_v44 = vld [vmem:[%s4000_s0 + $0x2f8] sm:$0xff] }
  0xc6   :  { %v2487_v7 = vcombine.low %v174_v43, %v178_v44 }
  0xcb   :  { %1762 = vmatmul.mubr.bf16.gmra.mxu0 %v2437_v50  ;;  %v2486_v50 = vcombine.high %v173_v39, %v177_v40 }
  0xcc   :  { %1923 = vmatmul.mubr.bf16.gmra.mxu1 %v2439_v51  ;;  %1769 = vmatprep.mubr.bf16.mxu0 %v2446_v52 }
  0xcd   :  { %1930 = vmatprep.mubr.bf16.mxu1 %v2448_v53  ;;  %v2488_v53 = vcombine.high %v174_v43, %v178_v44  ;;  %v197_v43 = vld [vmem:[%s4000_s0 + $0x390] sm:$0xff] }
  0xce   :  { %v201_v44 = vld [vmem:[%s4000_s0 + $0x3b0] sm:$0xff] }
  0xd3   :  { %1770 = vmatmul.mubr.bf16.gmra.mxu0 %v2445_v58 }
  0xd4   :  { %1931 = vmatmul.mubr.bf16.gmra.mxu1 %v2447_v59  ;;  %1777 = vmatprep.mubr.bf16.mxu0 %v2454_v60 }
  0xd5   :  { %1938 = vmatprep.mubr.bf16.mxu1 %v2456_v61  ;;  %v181_v61 = vld [vmem:[%s4000_s0 + $0x310] sm:$0xff] }
  0xd6   :  { %v2494_v8 = vcombine.high %v181_v61, %v185_v62 }
  0xdb   :  { %1778 = vmatmul.mubr.bf16.gmra.mxu0 %v2453_v2  ;;  %v186_v2 = vld [vmem:[%s4000_s0 + $0x338] sm:$0xff] }
  0xdc   :  { %1939 = vmatmul.mubr.bf16.gmra.mxu1 %v2455_v3  ;;  %1785 = vmatprep.mubr.bf16.mxu0 %v2462_v4 }
  0xdd   :  { %1946 = vmatprep.mubr.bf16.mxu1 %v2464_v5  ;;  %v2485_v5 = vcombine.low %v173_v39, %v177_v40 }
  0xe3   :  { %v2760_v14 = vpop.f32.mrf.mxu0  ;;  %1786 = vmatmul.mubr.bf16.gmra.mxu0 %v2461_v10 }
  0xe4   :  { %v2872_v15 = vpop.f32.mrf.mxu1  ;;  %1947 = vmatmul.mubr.bf16.gmra.mxu1 %v2463_v11  ;;  %1793 = vmatprep.mubr.bf16.mxu0 %v2470_v12  ;;  %v2496_v11 = vcombine.high %v182_v1, %v186_v2 }
  0xe5   :  { %v2761_v16 = vpop.f32.mrf.mxu0  ;;  %1954 = vmatprep.mubr.bf16.mxu1 %v2472_v13 }
  0xe6   :  { %v2762_v19 = vadd.f32 %v2761_v16, %v2760_v14  ;;  %v2873_v20 = vpop.f32.mrf.mxu1 }
  0xe7   :  { %v2874_v23 = vadd.f32 %v2873_v20, %v2872_v15  ;;  %v2763_v24 = vpop.f32.mrf.mxu0  ;;  %v193_v20 = vld [vmem:[%s4000_s0 + $0x370] sm:$0xff] }
  0xe8   :  { %v2875_v26 = vpop.f32.mrf.mxu1 }
  0xe9   :  { %v3792_v29 = vadd.f32 %v2874_v23, %v2762_v19  ;;  %v2764_v30 = vpop.f32.mrf.mxu0  ;;  %v189_v19 = vld [vmem:[%s4000_s0 + $0x350] sm:$0xff]  ;;  %v190_v23 = vld [vmem:[%s4000_s0 + $0x358] sm:$0xff] }
  0xea   :  { %v2765_v32 = vadd.f32 %v2764_v30, %v2763_v24  ;;  %v2876_v33 = vpop.f32.mrf.mxu1  ;;  %v194_v24 = vld [vmem:[%s4000_s0 + $0x378] sm:$0xff]  ;;  %v2495_v30 = vcombine.low %v182_v1, %v186_v2 }
  0xeb   :  { %v2877_v34 = vadd.f32 %v2876_v33, %v2875_v26  ;;  %v2766_v35 = vpop.f32.mrf.mxu0  ;;  %1794 = vmatmul.mubr.bf16.gmra.mxu0 %v2469_v25 }
  0xec   :  { %v2878_v36 = vpop.f32.mrf.mxu1  ;;  %1955 = vmatmul.mubr.bf16.gmra.mxu1 %v2471_v27  ;;  %1801 = vmatprep.mubr.bf16.mxu0 %v2478_v28  ;;  %v2493_v27 = vcombine.low %v181_v61, %v185_v62 }
  0xed   :  { %v3794_v37 = vadd.f32 %v2877_v34, %v2765_v32  ;;  %v2767_v38 = vpop.f32.mrf.mxu0  ;;  %1962 = vmatprep.mubr.bf16.mxu1 %v2480_v31  ;;  %v2502_v31 = vcombine.high %v189_v19, %v193_v20  ;;  %v2504_v34 = vcombine.high %v190_v23, %v194_v24 }
  0xee   :  { %v2768_v41 = vadd.f32 %v2767_v38, %v2766_v35  ;;  %v2879_v42 = vpop.f32.mrf.mxu1 }
  0xef   :  { %v2880_v45 = vadd.f32 %v2879_v42, %v2878_v36  ;;  %v2769_v46 = vpop.f32.mrf.mxu0 }
  0xf0   :  { %v2881_v48 = vpop.f32.mrf.mxu1 }
  0xf1   :  { %v3808_v51 = vadd.f32 %v2880_v45, %v2768_v41  ;;  %v2770_v52 = vpop.f32.mrf.mxu0 }
  0xf2   :  { %v2771_v54 = vadd.f32 %v2770_v52, %v2769_v46  ;;  %v2882_v55 = vpop.f32.mrf.mxu1  ;;  %v2501_v52 = vcombine.low %v189_v19, %v193_v20 }
  0xf3   :  { %v2883_v56 = vadd.f32 %v2882_v55, %v2881_v48  ;;  %v2772_v57 = vpop.f32.mrf.mxu0  ;;  %1802 = vmatmul.mubr.bf16.gmra.mxu0 %v2477_v47  ;;  %v198_v47 = vld [vmem:[%s4000_s0 + $0x398] sm:$0xff]  ;;  %v2510_v55 = vcombine.high %v197_v43, %v201_v44 }
  0xf4   :  { %v2884_v58 = vpop.f32.mrf.mxu1  ;;  %1963 = vmatmul.mubr.bf16.gmra.mxu1 %v2479_v49  ;;  %1809 = vmatprep.mubr.bf16.mxu0 %v2486_v50  ;;  %v202_v48 = vld [vmem:[%s4000_s0 + $0x3b8] sm:$0xff] }
  0xf5   :  { %v3810_v59 = vadd.f32 %v2883_v56, %v2771_v54  ;;  %v2773_v60 = vpop.f32.mrf.mxu0  ;;  %1970 = vmatprep.mubr.bf16.mxu1 %v2488_v53  ;;  %v2503_v54 = vcombine.low %v190_v23, %v194_v24 }
  0xf6   :  { %v2774_v63 = vadd.f32 %v2773_v60, %v2772_v57  ;;  %v2885_v0 = vpop.f32.mrf.mxu1 }
  0xf7   :  { %v2886_v3 = vadd.f32 %v2885_v0, %v2884_v58  ;;  %v2775_v4 = vpop.f32.mrf.mxu0  ;;  %v2512_v58 = vcombine.high %v198_v47, %v202_v48 }
  0xf8   :  { %v2887_v6 = vpop.f32.mrf.mxu1 }
  0xf9   :  { %v3824_v9 = vadd.f32 %v2886_v3, %v2774_v63  ;;  %v2776_v10 = vpop.f32.mrf.mxu0  ;;  %v205_v3 = vld [vmem:[%s4000_s0 + $0x3d0] sm:$0xff] }
  0xfa   :  { %v2777_v12 = vadd.f32 %v2776_v10, %v2775_v4  ;;  %v2888_v13 = vpop.f32.mrf.mxu1  ;;  %v209_v4 = vld [vmem:[%s4000_s0 + $0x3f0] sm:$0xff] }
  0xfb   :  { %v2889_v14 = vadd.f32 %v2888_v13, %v2887_v6  ;;  %v2778_v15 = vpop.f32.mrf.mxu0  ;;  %1810 = vmatmul.mubr.bf16.gmra.mxu0 %v2485_v5 }
  0xfc   :  { %v2890_v16 = vpop.f32.mrf.mxu1  ;;  %1971 = vmatmul.mubr.bf16.gmra.mxu1 %v2487_v7  ;;  %1817 = vmatprep.mubr.bf16.mxu0 %v2494_v8  ;;  %v206_v7 = vld [vmem:[%s4000_s0 + $0x3d8] sm:$0xff] }
  0xfd   :  { %v3826_v17 = vadd.f32 %v2889_v14, %v2777_v12  ;;  %v2779_v18 = vpop.f32.mrf.mxu0  ;;  %1978 = vmatprep.mubr.bf16.mxu1 %v2496_v11  ;;  %v210_v8 = vld [vmem:[%s4000_s0 + $0x3f8] sm:$0xff]  ;;  %v2509_v12 = vcombine.low %v197_v43, %v201_v44  ;;  %v2511_v14 = vcombine.low %v198_v47, %v202_v48 }
  0xfe   :  { %v2780_v21 = vadd.f32 %v2779_v18, %v2778_v15  ;;  %v2891_v22 = vpop.f32.mrf.mxu1  ;;  %v2518_v15 = vcombine.high %v205_v3, %v209_v4  ;;  %v2520_v19 = vcombine.high %v206_v7, %v210_v8 }
  0xff   :  { %v2892_v25 = vadd.f32 %v2891_v22, %v2890_v16  ;;  %v2781_v26 = vpop.f32.mrf.mxu0 }
 0x100   :  { %v2893_v28 = vpop.f32.mrf.mxu1 }
 0x101   :  { %v3840_v32 = vadd.f32 %v2892_v25, %v2780_v21  ;;  %v2782_v33 = vpop.f32.mrf.mxu0 }
 0x102   :  { %v2783_v35 = vadd.f32 %v2782_v33, %v2781_v26  ;;  %v2894_v36 = vpop.f32.mrf.mxu1  ;;  %v2517_v33 = vcombine.low %v205_v3, %v209_v4 }
 0x103   :  { %v2895_v38 = vadd.f32 %v2894_v36, %v2893_v28  ;;  %v2784_v39 = vpop.f32.mrf.mxu0  ;;  %1818 = vmatmul.mubr.bf16.gmra.mxu0 %v2493_v27 }
 0x104   :  { %v2896_v40 = vpop.f32.mrf.mxu1  ;;  %1979 = vmatmul.mubr.bf16.gmra.mxu1 %v2495_v30  ;;  %1825 = vmatprep.mubr.bf16.mxu0 %v2502_v31 }
 0x105   :  { %v3842_v41 = vadd.f32 %v2895_v38, %v2783_v35  ;;  %v2785_v42 = vpop.f32.mrf.mxu0  ;;  %1986 = vmatprep.mubr.bf16.mxu1 %v2504_v34  ;;  %v2519_v35 = vcombine.low %v206_v7, %v210_v8 }
 0x106   :  { %v2786_v45 = vadd.f32 %v2785_v42, %v2784_v39  ;;  %v2897_v46 = vpop.f32.mrf.mxu1 }
 0x107   :  { %v2898_v49 = vadd.f32 %v2897_v46, %v2896_v40  ;;  %v2787_v50 = vpop.f32.mrf.mxu0 }
 0x108   :  { %v2899_v53 = vpop.f32.mrf.mxu1 }
 0x109   :  { %v3856_v56 = vadd.f32 %v2898_v49, %v2786_v45  ;;  %v2788_v57 = vpop.f32.mrf.mxu0 }
 0x10a   :  { %v2789_v60 = vadd.f32 %v2788_v57, %v2787_v50  ;;  %v2900_v61 = vpop.f32.mrf.mxu1 }
 0x10b   :  { %v2901_v62 = vadd.f32 %v2900_v61, %v2899_v53  ;;  %v2790_v63 = vpop.f32.mrf.mxu0  ;;  %1826 = vmatmul.mubr.bf16.gmra.mxu0 %v2501_v52 }
 0x10c   :  { %v2902_v0 = vpop.f32.mrf.mxu1  ;;  %1987 = vmatmul.mubr.bf16.gmra.mxu1 %v2503_v54  ;;  %1833 = vmatprep.mubr.bf16.mxu0 %v2510_v55 }
 0x10d   :  { %v3858_v1 = vadd.f32 %v2901_v62, %v2789_v60  ;;  %v2791_v2 = vpop.f32.mrf.mxu0  ;;  %1994 = vmatprep.mubr.bf16.mxu1 %v2512_v58 }
 0x10e   :  { %v2792_v5 = vadd.f32 %v2791_v2, %v2790_v63  ;;  %v2903_v6 = vpop.f32.mrf.mxu1 }
 0x10f   :  { %v2904_v10 = vadd.f32 %v2903_v6, %v2902_v0  ;;  %v2793_v11 = vpop.f32.mrf.mxu0 }
 0x110   :  { %v2905_v13 = vpop.f32.mrf.mxu1 }
 0x111   :  { %v3872_v16 = vadd.f32 %v2904_v10, %v2792_v5  ;;  %v2794_v18 = vpop.f32.mrf.mxu0 }
 0x112   :  { %v2795_v20 = vadd.f32 %v2794_v18, %v2793_v11  ;;  %v2906_v21 = vpop.f32.mrf.mxu1 }
 0x113   :  { %v2907_v22 = vadd.f32 %v2906_v21, %v2905_v13  ;;  %v2796_v23 = vpop.f32.mrf.mxu0  ;;  %1834 = vmatmul.mubr.bf16.gmra.mxu0 %v2509_v12 }
 0x114   :  { %v2908_v24 = vpop.f32.mrf.mxu1  ;;  %1995 = vmatmul.mubr.bf16.gmra.mxu1 %v2511_v14  ;;  %1841 = vmatprep.mubr.bf16.mxu0 %v2518_v15 }
 0x115   :  { %v3874_v25 = vadd.f32 %v2907_v22, %v2795_v20  ;;  %v2797_v26 = vpop.f32.mrf.mxu0  ;;  %2002 = vmatprep.mubr.bf16.mxu1 %v2520_v19 }
 0x116   :  { %v2798_v27 = vadd.f32 %v2797_v26, %v2796_v23  ;;  %v2909_v28 = vpop.f32.mrf.mxu1 }
 0x117   :  { %v2910_v30 = vadd.f32 %v2909_v28, %v2908_v24  ;;  %v2799_v31 = vpop.f32.mrf.mxu0 }
 0x118   :  { %v2911_v34 = vpop.f32.mrf.mxu1 }
 0x119   :  { %v3876_v36 = vadd.f32 %v2910_v30, %v2798_v27  ;;  %v2800_v38 = vpop.f32.mrf.mxu0 }
 0x11a   :  { %v2801_v39 = vadd.f32 %v2800_v38, %v2799_v31  ;;  %v2912_v40 = vpop.f32.mrf.mxu1 }
 0x11b   :  { %v2913_v42 = vadd.f32 %v2912_v40, %v2911_v34  ;;  %v2802_v43 = vpop.f32.mrf.mxu0  ;;  %1842 = vmatmul.mubr.bf16.gmra.mxu0 %v2517_v33 }
 0x11c   :  { %v2914_v44 = vpop.f32.mrf.mxu1  ;;  %2003 = vmatmul.mubr.bf16.gmra.mxu1 %v2519_v35 }
 0x11d   :  { %v3878_v45 = vadd.f32 %v2913_v42, %v2801_v39  ;;  %v2803_v46 = vpop.f32.mrf.mxu0 }
 0x11e   :  { %v2804_v47 = vadd.f32 %v2803_v46, %v2802_v43  ;;  %v2915_v48 = vpop.f32.mrf.mxu1 }
 0x11f   :  { %v2916_v49 = vadd.f32 %v2915_v48, %v2914_v44  ;;  %v2805_v50 = vpop.f32.mrf.mxu0 }
 0x120   :  { %v2917_v52 = vpop.f32.mrf.mxu1 }
 0x121   :  { %v3880_v53 = vadd.f32 %v2916_v49, %v2804_v47  ;;  %v2806_v54 = vpop.f32.mrf.mxu0 }
 0x122   :  { %v2807_v55 = vadd.f32 %v2806_v54, %v2805_v50  ;;  %v2918_v57 = vpop.f32.mrf.mxu1 }
 0x123   :  { %v2919_v58 = vadd.f32 %v2918_v57, %v2917_v52  ;;  %v2808_v60 = vpop.f32.mrf.mxu0 }
 0x124   :  { %v2920_v61 = vpop.f32.mrf.mxu1 }
 0x125   :  { %v3882_v62 = vadd.f32 %v2919_v58, %v2807_v55  ;;  %v2809_v63 = vpop.f32.mrf.mxu0 }
 0x126   :  { %v2810_v0 = vadd.f32 %v2809_v63, %v2808_v60  ;;  %v2921_v2 = vpop.f32.mrf.mxu1 }
 0x127   :  { %v2922_v3 = vadd.f32 %v2921_v2, %v2920_v61  ;;  %v2811_v4 = vpop.f32.mrf.mxu0 }
 0x128   :  { %v2923_v5 = vpop.f32.mrf.mxu1 }
 0x129   :  { %v3884_v6 = vadd.f32 %v2922_v3, %v2810_v0  ;;  %v2812_v7 = vpop.f32.mrf.mxu0 }
 0x12a   :  { %v2813_v8 = vadd.f32 %v2812_v7, %v2811_v4  ;;  %v2924_v10 = vpop.f32.mrf.mxu1 }
 0x12b   :  { %v2925_v11 = vadd.f32 %v2924_v10, %v2923_v5  ;;  %v2814_v12 = vpop.f32.mrf.mxu0 }
 0x12c   :  { %v2926_v13 = vpop.f32.mrf.mxu1 }
 0x12d   :  { %v3886_v14 = vadd.f32 %v2925_v11, %v2813_v8  ;;  %v2815_v15 = vpop.f32.mrf.mxu0 }
 0x12e   :  { %v2816_v18 = vadd.f32 %v2815_v15, %v2814_v12  ;;  %v2927_v19 = vpop.f32.mrf.mxu1 }
 0x12f   :  { %v2928_v20 = vadd.f32 %v2927_v19, %v2926_v13  ;;  %v2817_v21 = vpop.f32.mrf.mxu0 }
 0x130   :  { %v2929_v22 = vpop.f32.mrf.mxu1 }
 0x131   :  { %v3888_v23 = vadd.f32 %v2928_v20, %v2816_v18  ;;  %v2818_v24 = vpop.f32.mrf.mxu0 }
 0x132   :  { %v2819_v26 = vadd.f32 %v2818_v24, %v2817_v21  ;;  %v2930_v27 = vpop.f32.mrf.mxu1 }
 0x133   :  { %v2931_v28 = vadd.f32 %v2930_v27, %v2929_v22  ;;  %v2820_v30 = vpop.f32.mrf.mxu0 }
 0x134   :  { %v2932_v31 = vpop.f32.mrf.mxu1 }
 0x135   :  { %v3890_v33 = vadd.f32 %v2931_v28, %v2819_v26  ;;  %v2821_v34 = vpop.f32.mrf.mxu0 }
 0x136   :  { %v2822_v35 = vadd.f32 %v2821_v34, %v2820_v30  ;;  %v2933_v38 = vpop.f32.mrf.mxu1 }
 0x137   :  { %v2934_v39 = vadd.f32 %v2933_v38, %v2932_v31  ;;  %v2823_v40 = vpop.f32.mrf.mxu0 }
 0x138   :  { %v2935_v42 = vpop.f32.mrf.mxu1 }
 0x139   :  { %v3892_v43 = vadd.f32 %v2934_v39, %v2822_v35  ;;  %v2824_v44 = vpop.f32.mrf.mxu0 }
 0x13a   :  { %v2825_v46 = vadd.f32 %v2824_v44, %v2823_v40  ;;  %v2936_v47 = vpop.f32.mrf.mxu1 }
 0x13b   :  { %v2937_v48 = vadd.f32 %v2936_v47, %v2935_v42  ;;  %v2826_v49 = vpop.f32.mrf.mxu0 }
 0x13c   :  { %v2938_v50 = vpop.f32.mrf.mxu1 }
 0x13d   :  { %v3894_v52 = vadd.f32 %v2937_v48, %v2825_v46  ;;  %v2827_v54 = vpop.f32.mrf.mxu0 }
 0x13e   :  { %v2828_v55 = vadd.f32 %v2827_v54, %v2826_v49  ;;  %v2939_v57 = vpop.f32.mrf.mxu1 }
 0x13f   :  { %v2940_v58 = vadd.f32 %v2939_v57, %v2938_v50  ;;  %v2829_v60 = vpop.f32.mrf.mxu0 }
 0x140   :  { %v2941_v61 = vpop.f32.mrf.mxu1 }
 0x141   :  { %v3896_v63 = vadd.f32 %v2940_v58, %v2828_v55  ;;  %v2830_v0 = vpop.f32.mrf.mxu0 }
 0x142   :  { %v2831_v2 = vadd.f32 %v2830_v0, %v2829_v60  ;;  %v2942_v3 = vpop.f32.mrf.mxu1 }
 0x143   :  { %v2943_v4 = vadd.f32 %v2942_v3, %v2941_v61  ;;  %v2832_v5 = vpop.f32.mrf.mxu0 }
 0x144   :  { %v2944_v7 = vpop.f32.mrf.mxu1 }
 0x145   :  { %v3898_v8 = vadd.f32 %v2943_v4, %v2831_v2  ;;  %v2833_v10 = vpop.f32.mrf.mxu0 }
 0x146   :  { %v2834_v11 = vadd.f32 %v2833_v10, %v2832_v5  ;;  %v2945_v12 = vpop.f32.mrf.mxu1 }
 0x147   :  { %v2946_v13 = vadd.f32 %v2945_v12, %v2944_v7  ;;  %v2835_v15 = vpop.f32.mrf.mxu0 }
 0x148   :  { %v2947_v18 = vpop.f32.mrf.mxu1 }
 0x149   :  { %v3900_v19 = vadd.f32 %v2946_v13, %v2834_v11  ;;  %v2836_v20 = vpop.f32.mrf.mxu0 }
 0x14a   :  { %v2837_v21 = vadd.f32 %v2836_v20, %v2835_v15  ;;  %v2948_v22 = vpop.f32.mrf.mxu1 }
 0x14b   :  { %v2949_v24 = vadd.f32 %v2948_v22, %v2947_v18  ;;  %v2838_v26 = vpop.f32.mrf.mxu0 }
 0x14c   :  { %v2950_v27 = vpop.f32.mrf.mxu1 }
 0x14d   :  { %v3902_v28 = vadd.f32 %v2949_v24, %v2837_v21  ;;  %v2839_v30 = vpop.f32.mrf.mxu0 }
 0x14e   :  { %v2840_v31 = vadd.f32 %v2839_v30, %v2838_v26  ;;  %v2951_v34 = vpop.f32.mrf.mxu1 }
 0x14f   :  { %v2952_v35 = vadd.f32 %v2951_v34, %v2950_v27  ;;  %v2841_v38 = vpop.f32.mrf.mxu0 }
 0x150   :  { %v2953_v39 = vpop.f32.mrf.mxu1 }
 0x151   :  { %v3904_v40 = vadd.f32 %v2952_v35, %v2840_v31  ;;  %v2842_v42 = vpop.f32.mrf.mxu0 }
 0x152   :  { %v2843_v44 = vadd.f32 %v2842_v42, %v2841_v38  ;;  %v2954_v46 = vpop.f32.mrf.mxu1 }
 0x153   :  { %v2955_v47 = vadd.f32 %v2954_v46, %v2953_v39  ;;  %v2844_v48 = vpop.f32.mrf.mxu0 }
 0x154   :  { %v2956_v49 = vpop.f32.mrf.mxu1 }
 0x155   :  { %v3906_v50 = vadd.f32 %v2955_v47, %v2843_v44  ;;  %v2845_v54 = vpop.f32.mrf.mxu0 }
 0x156   :  { %v2846_v55 = vadd.f32 %v2845_v54, %v2844_v48  ;;  %v2957_v57 = vpop.f32.mrf.mxu1 }
 0x157   :  { %v2958_v58 = vadd.f32 %v2957_v57, %v2956_v49  ;;  %v2847_v60 = vpop.f32.mrf.mxu0 }
 0x158   :  { %v2959_v61 = vpop.f32.mrf.mxu1 }
 0x159   :  { %v3908_v0 = vadd.f32 %v2958_v58, %v2846_v55  ;;  %v2848_v2 = vpop.f32.mrf.mxu0 }
 0x15a   :  { %v2849_v3 = vadd.f32 %v2848_v2, %v2847_v60  ;;  %v2960_v4 = vpop.f32.mrf.mxu1 }
 0x15b   :  { %v2961_v5 = vadd.f32 %v2960_v4, %v2959_v61  ;;  %v2850_v7 = vpop.f32.mrf.mxu0 }
 0x15c   :  { %v2962_v10 = vpop.f32.mrf.mxu1 }
 0x15d   :  { %v3910_v11 = vadd.f32 %v2961_v5, %v2849_v3  ;;  %v2851_v12 = vpop.f32.mrf.mxu0 }
 0x15e   :  { %v2852_v13 = vadd.f32 %v2851_v12, %v2850_v7  ;;  %v2963_v15 = vpop.f32.mrf.mxu1 }
 0x15f   :  { %v2964_v18 = vadd.f32 %v2963_v15, %v2962_v10  ;;  %v2853_v20 = vpop.f32.mrf.mxu0 }
 0x160   :  { %v2965_v21 = vpop.f32.mrf.mxu1 }
 0x161   :  { %v3912_v22 = vadd.f32 %v2964_v18, %v2852_v13  ;;  %v2854_v24 = vpop.f32.mrf.mxu0 }
 0x162   :  { %v2855_v26 = vadd.f32 %v2854_v24, %v2853_v20  ;;  %v2966_v27 = vpop.f32.mrf.mxu1 }
 0x163   :  { %v2967_v30 = vadd.f32 %v2966_v27, %v2965_v21  ;;  %v2984_v31 = vpop.f32.mrf.mxu0 }
 0x164   :  { %v3096_v34 = vpop.f32.mrf.mxu1 }
 0x165   :  { %v3914_v35 = vadd.f32 %v2967_v30, %v2855_v26  ;;  %v2985_v38 = vpop.f32.mrf.mxu0 }
 0x166   :  { %v2986_v39 = vadd.f32 %v2985_v38, %v2984_v31  ;;  %v3097_v42 = vpop.f32.mrf.mxu1 }
 0x167   :  { %v2987_v44 = vpop.f32.mrf.mxu0  ;;  %v3098_v48 = vadd.f32 %v3097_v42, %v3096_v34 }
 0x168   :  { %v1724_v46 = vadd.f32 %v2986_v39, %v3792_v29  ;;  %v3099_v47 = vpop.f32.mrf.mxu1 }
 0x169   :  { %v2988_v49 = vpop.f32.mrf.mxu0 }
 0x16a   :  { %v2989_v54 = vadd.f32 %v2988_v49, %v2987_v44  ;;  %v3100_v55 = vpop.f32.mrf.mxu1  ;;  %v1885_v57 = vadd.f32 %v3098_v48, %v1724_v46 }
 0x16b   :  { %v2990_v58 = vpop.f32.mrf.mxu0  ;;  %v3101_v61 = vadd.f32 %v3100_v55, %v3099_v47 }
 0x16c   :  { %v1727_v60 = vadd.f32 %v2989_v54, %v3794_v37  ;;  %v3102_v2 = vpop.f32.mrf.mxu1  ;;  %v2307_v10 = vmul.f32 %v1885_v57, %v1885_v57 }
 0x16d   :  { %v2991_v3 = vpop.f32.mrf.mxu0 }
 0x16e   :  { %v1888_v4 = vadd.f32 %v3101_v61, %v1727_v60  ;;  %v2992_v5 = vadd.f32 %v2991_v3, %v2990_v58  ;;  %v3103_v7 = vpop.f32.mrf.mxu1 }
 0x16f   :  { %v3104_v12 = vadd.f32 %v3103_v7, %v3102_v2  ;;  %v2993_v13 = vpop.f32.mrf.mxu0 }
 0x170   :  { %v2652_v15 = vpack.c.bf16 %v1888_v4, %v1885_v57  ;;  %v2270_v29 = vadd.f32 %v1888_v4, %v1885_v57  ;;  %v2308_v18 = vmul.f32 %v1888_v4, %v1888_v4  ;;  %v1732_v20 = vadd.f32 %v2992_v5, %v3808_v51  ;;  %v3105_v21 = vpop.f32.mrf.mxu1 }
 0x171   :  { %v2994_v24 = vpop.f32.mrf.mxu0 }
 0x172   :  { %2653 = vst [vmem:[%s4001_s2] sm:$0xff] %v2652_v15   ;;  %v2339_v37 = vadd.f32 %v2308_v18, %v2307_v10  ;;  %v1893_v26 = vadd.f32 %v3104_v12, %v1732_v20  ;;  %v2995_v27 = vadd.f32 %v2994_v24, %v2993_v13  ;;  %v3106_v30 = vpop.f32.mrf.mxu1 }
 0x173   :  { %v2996_v31 = vpop.f32.mrf.mxu0  ;;  %v3107_v42 = vadd.f32 %v3106_v30, %v3105_v21 }
 0x174   :  { %v2271_v34 = vadd.f32 %v2270_v29, %v1893_v26  ;;  %v2309_v38 = vmul.f32 %v1893_v26, %v1893_v26  ;;  %v1735_v39 = vadd.f32 %v2995_v27, %v3810_v59  ;;  %v3108_v44 = vpop.f32.mrf.mxu1 }
 0x175   :  { %v2997_v46 = vpop.f32.mrf.mxu0 }
 0x176   :  { %v2340_v47 = vadd.f32 %v2339_v37, %v2309_v38  ;;  %v1896_v51 = vadd.f32 %v3107_v42, %v1735_v39  ;;  %v2998_v48 = vadd.f32 %v2997_v46, %v2996_v31  ;;  %v3109_v49 = vpop.f32.mrf.mxu1 }
 0x177   :  { %v3110_v54 = vadd.f32 %v3109_v49, %v3108_v44  ;;  %v2999_v55 = vpop.f32.mrf.mxu0 }
 0x178   :  { %v2657_v57 = vpack.c.bf16 %v1896_v51, %v1893_v26  ;;  %v2272_v58 = vadd.f32 %v2271_v34, %v1896_v51  ;;  %v2310_v60 = vmul.f32 %v1896_v51, %v1896_v51  ;;  %v1740_v61 = vadd.f32 %v2998_v48, %v3824_v9  ;;  %v3111_v2 = vpop.f32.mrf.mxu1 }
 0x179   :  { %v3000_v3 = vpop.f32.mrf.mxu0 }
 0x17a   :  { %2729 = vst [vmem:[%s4001_s2 + $0x8] sm:$0xff] %v2657_v57   ;;  %v2341_v59 = vadd.f32 %v2340_v47, %v2310_v60  ;;  %v1901_v4 = vadd.f32 %v3110_v54, %v1740_v61  ;;  %v3001_v5 = vadd.f32 %v3000_v3, %v2999_v55  ;;  %v3112_v7 = vpop.f32.mrf.mxu1 }
 0x17b   :  { %v3002_v10 = vpop.f32.mrf.mxu0  ;;  %v3113_v29 = vadd.f32 %v3112_v7, %v3111_v2 }
 0x17c   :  { %v2273_v12 = vadd.f32 %v2272_v58, %v1901_v4  ;;  %v2311_v13 = vmul.f32 %v1901_v4, %v1901_v4  ;;  %v1743_v15 = vadd.f32 %v3001_v5, %v3826_v17  ;;  %v3114_v18 = vpop.f32.mrf.mxu1 }
 0x17d   :  { %v3003_v20 = vpop.f32.mrf.mxu0 }
 0x17e   :  { %v2342_v21 = vadd.f32 %v2341_v59, %v2311_v13  ;;  %v1904_v9 = vadd.f32 %v3113_v29, %v1743_v15  ;;  %v3004_v24 = vadd.f32 %v3003_v20, %v3002_v10  ;;  %v3115_v37 = vpop.f32.mrf.mxu1 }
 0x17f   :  { %v3116_v26 = vadd.f32 %v3115_v37, %v3114_v18  ;;  %v3005_v27 = vpop.f32.mrf.mxu0 }
 0x180   :  { %v2662_v30 = vpack.c.bf16 %v1904_v9, %v1901_v4  ;;  %v2274_v31 = vadd.f32 %v2273_v12, %v1904_v9  ;;  %v2312_v34 = vmul.f32 %v1904_v9, %v1904_v9  ;;  %v1748_v38 = vadd.f32 %v3004_v24, %v3840_v32  ;;  %v3117_v39 = vpop.f32.mrf.mxu1 }
 0x181   :  { %v3006_v42 = vpop.f32.mrf.mxu0 }
 0x182   :  { %2730 = vst [vmem:[%s4001_s2 + $0x10] sm:$0xff] %v2662_v30   ;;  %v2343_v17 = vadd.f32 %v2342_v21, %v2312_v34  ;;  %v1909_v44 = vadd.f32 %v3116_v26, %v1748_v38  ;;  %v3007_v46 = vadd.f32 %v3006_v42, %v3005_v27  ;;  %v3118_v47 = vpop.f32.mrf.mxu1 }
 0x183   :  { %v3008_v51 = vpop.f32.mrf.mxu0  ;;  %v3119_v55 = vadd.f32 %v3118_v47, %v3117_v39 }
 0x184   :  { %v2275_v48 = vadd.f32 %v2274_v31, %v1909_v44  ;;  %v2313_v49 = vmul.f32 %v1909_v44, %v1909_v44  ;;  %v1751_v54 = vadd.f32 %v3007_v46, %v3842_v41  ;;  %v3120_v57 = vpop.f32.mrf.mxu1 }
 0x185   :  { %v3009_v58 = vpop.f32.mrf.mxu0 }
 0x186   :  { %v2344_v60 = vadd.f32 %v2343_v17, %v2313_v49  ;;  %v1912_v32 = vadd.f32 %v3119_v55, %v1751_v54  ;;  %v3010_v61 = vadd.f32 %v3009_v58, %v3008_v51  ;;  %v3121_v2 = vpop.f32.mrf.mxu1 }
 0x187   :  { %v3122_v3 = vadd.f32 %v3121_v2, %v3120_v57  ;;  %v3011_v59 = vpop.f32.mrf.mxu0 }
 0x188   :  { %v2667_v4 = vpack.c.bf16 %v1912_v32, %v1909_v44  ;;  %v2276_v5 = vadd.f32 %v2275_v48, %v1912_v32  ;;  %v2314_v7 = vmul.f32 %v1912_v32, %v1912_v32  ;;  %v1756_v10 = vadd.f32 %v3010_v61, %v3856_v56  ;;  %v3123_v12 = vpop.f32.mrf.mxu1 }
 0x189   :  { %v3012_v13 = vpop.f32.mrf.mxu0 }
 0x18a   :  { %2731 = vst [vmem:[%s4001_s2 + $0x18] sm:$0xff] %v2667_v4   ;;  %v2345_v41 = vadd.f32 %v2344_v60, %v2314_v7  ;;  %v1917_v15 = vadd.f32 %v3122_v3, %v1756_v10  ;;  %v3013_v29 = vadd.f32 %v3012_v13, %v3011_v59  ;;  %v3124_v18 = vpop.f32.mrf.mxu1 }
 0x18b   :  { %v3014_v20 = vpop.f32.mrf.mxu0  ;;  %v3125_v37 = vadd.f32 %v3124_v18, %v3123_v12 }
 0x18c   :  { %v2277_v21 = vadd.f32 %v2276_v5, %v1917_v15  ;;  %v2315_v9 = vmul.f32 %v1917_v15, %v1917_v15  ;;  %v1759_v24 = vadd.f32 %v3013_v29, %v3858_v1  ;;  %v3126_v26 = vpop.f32.mrf.mxu1 }
 0x18d   :  { %v3015_v27 = vpop.f32.mrf.mxu0 }
 0x18e   :  { %v2346_v30 = vadd.f32 %v2345_v41, %v2315_v9  ;;  %v1920_v56 = vadd.f32 %v3125_v37, %v1759_v24  ;;  %v3016_v31 = vadd.f32 %v3015_v27, %v3014_v20  ;;  %v3127_v34 = vpop.f32.mrf.mxu1 }
 0x18f   :  { %v3128_v38 = vadd.f32 %v3127_v34, %v3126_v26  ;;  %v3017_v39 = vpop.f32.mrf.mxu0 }
 0x190   :  { %v2672_v42 = vpack.c.bf16 %v1920_v56, %v1917_v15  ;;  %v2278_v17 = vadd.f32 %v2277_v21, %v1920_v56  ;;  %v2316_v44 = vmul.f32 %v1920_v56, %v1920_v56  ;;  %v1764_v46 = vadd.f32 %v3016_v31, %v3872_v16  ;;  %v3129_v47 = vpop.f32.mrf.mxu1 }
 0x191   :  { %v3018_v51 = vpop.f32.mrf.mxu0 }
 0x192   :  { %2732 = vst [vmem:[%s4001_s2 + $0x20] sm:$0xff] %v2672_v42   ;;  %v2347_v1 = vadd.f32 %v2346_v30, %v2316_v44  ;;  %v1925_v48 = vadd.f32 %v3128_v38, %v1764_v46  ;;  %v3019_v49 = vadd.f32 %v3018_v51, %v3017_v39  ;;  %v3130_v54 = vpop.f32.mrf.mxu1 }
 0x193   :  { %v3020_v55 = vpop.f32.mrf.mxu0  ;;  %v3131_v32 = vadd.f32 %v3130_v54, %v3129_v47 }
 0x194   :  { %v2279_v57 = vadd.f32 %v2278_v17, %v1925_v48  ;;  %v2317_v58 = vmul.f32 %v1925_v48, %v1925_v48  ;;  %v1767_v60 = vadd.f32 %v3019_v49, %v3874_v25  ;;  %v3132_v61 = vpop.f32.mrf.mxu1 }
 0x195   :  { %v3021_v2 = vpop.f32.mrf.mxu0 }
 0x196   :  { %v2348_v3 = vadd.f32 %v2347_v1, %v2317_v58  ;;  %v1928_v16 = vadd.f32 %v3131_v32, %v1767_v60  ;;  %v3022_v59 = vadd.f32 %v3021_v2, %v3020_v55  ;;  %v3133_v4 = vpop.f32.mrf.mxu1 }
 0x197   :  { %v3134_v5 = vadd.f32 %v3133_v4, %v3132_v61  ;;  %v3023_v7 = vpop.f32.mrf.mxu0 }
 0x198   :  { %v2677_v10 = vpack.c.bf16 %v1928_v16, %v1925_v48  ;;  %v2280_v12 = vadd.f32 %v2279_v57, %v1928_v16  ;;  %v2318_v13 = vmul.f32 %v1928_v16, %v1928_v16  ;;  %v1772_v41 = vadd.f32 %v3022_v59, %v3876_v36  ;;  %v3135_v15 = vpop.f32.mrf.mxu1 }
 0x199   :  { %v3024_v29 = vpop.f32.mrf.mxu0 }
 0x19a   :  { %2733 = vst [vmem:[%s4001_s2 + $0x28] sm:$0xff] %v2677_v10   ;;  %v2349_v25 = vadd.f32 %v2348_v3, %v2318_v13  ;;  %v1933_v18 = vadd.f32 %v3134_v5, %v1772_v41  ;;  %v3025_v20 = vadd.f32 %v3024_v29, %v3023_v7  ;;  %v3136_v21 = vpop.f32.mrf.mxu1 }
 0x19b   :  { %v3026_v9 = vpop.f32.mrf.mxu0  ;;  %v3137_v27 = vadd.f32 %v3136_v21, %v3135_v15 }
 0x19c   :  { %v2281_v24 = vadd.f32 %v2280_v12, %v1933_v18  ;;  %v2319_v37 = vmul.f32 %v1933_v18, %v1933_v18  ;;  %v1775_v26 = vadd.f32 %v3025_v20, %v3878_v45  ;;  %v3138_v30 = vpop.f32.mrf.mxu1 }
 0x19d   :  { %v3027_v56 = vpop.f32.mrf.mxu0 }
 0x19e   :  { %v2350_v31 = vadd.f32 %v2349_v25, %v2319_v37  ;;  %v1936_v36 = vadd.f32 %v3137_v27, %v1775_v26  ;;  %v3028_v34 = vadd.f32 %v3027_v56, %v3026_v9  ;;  %v3139_v38 = vpop.f32.mrf.mxu1 }
 0x19f   :  { %v3140_v39 = vadd.f32 %v3139_v38, %v3138_v30  ;;  %v3029_v42 = vpop.f32.mrf.mxu0 }
 0x1a0   :  { %v2682_v17 = vpack.c.bf16 %v1936_v36, %v1933_v18  ;;  %v2282_v44 = vadd.f32 %v2281_v24, %v1936_v36  ;;  %v2320_v46 = vmul.f32 %v1936_v36, %v1936_v36  ;;  %v1780_v47 = vadd.f32 %v3028_v34, %v3880_v53  ;;  %v3141_v51 = vpop.f32.mrf.mxu1 }
 0x1a1   :  { %v3030_v1 = vpop.f32.mrf.mxu0 }
 0x1a2   :  { %2734 = vst [vmem:[%s4001_s2 + $0x30] sm:$0xff] %v2682_v17   ;;  %v2351_v45 = vadd.f32 %v2350_v31, %v2320_v46  ;;  %v1941_v48 = vadd.f32 %v3140_v39, %v1780_v47  ;;  %v3031_v49 = vadd.f32 %v3030_v1, %v3029_v42  ;;  %v3142_v54 = vpop.f32.mrf.mxu1 }
 0x1a3   :  { %v3032_v55 = vpop.f32.mrf.mxu0  ;;  %v3143_v32 = vadd.f32 %v3142_v54, %v3141_v51 }
 0x1a4   :  { %v2283_v57 = vadd.f32 %v2282_v44, %v1941_v48  ;;  %v2321_v58 = vmul.f32 %v1941_v48, %v1941_v48  ;;  %v1783_v60 = vadd.f32 %v3031_v49, %v3882_v62  ;;  %v3144_v61 = vpop.f32.mrf.mxu1 }
 0x1a5   :  { %v3033_v2 = vpop.f32.mrf.mxu0 }
 0x1a6   :  { %v2352_v3 = vadd.f32 %v2351_v45, %v2321_v58  ;;  %v1944_v53 = vadd.f32 %v3143_v32, %v1783_v60  ;;  %v3034_v16 = vadd.f32 %v3033_v2, %v3032_v55  ;;  %v3145_v59 = vpop.f32.mrf.mxu1 }
 0x1a7   :  { %v3146_v4 = vadd.f32 %v3145_v59, %v3144_v61  ;;  %v3035_v5 = vpop.f32.mrf.mxu0 }
 0x1a8   :  { %v2687_v7 = vpack.c.bf16 %v1944_v53, %v1941_v48  ;;  %v2284_v10 = vadd.f32 %v2283_v57, %v1944_v53  ;;  %v2322_v12 = vmul.f32 %v1944_v53, %v1944_v53  ;;  %v1788_v13 = vadd.f32 %v3034_v16, %v3884_v6  ;;  %v3147_v41 = vpop.f32.mrf.mxu1 }
 0x1a9   :  { %v3036_v15 = vpop.f32.mrf.mxu0 }
 0x1aa   :  { %2735 = vst [vmem:[%s4001_s2 + $0x38] sm:$0xff] %v2687_v7   ;;  %v2353_v62 = vadd.f32 %v2352_v3, %v2322_v12  ;;  %v1949_v29 = vadd.f32 %v3146_v4, %v1788_v13  ;;  %v3037_v25 = vadd.f32 %v3036_v15, %v3035_v5  ;;  %v3148_v18 = vpop.f32.mrf.mxu1 }
 0x1ab   :  { %v3038_v20 = vpop.f32.mrf.mxu0  ;;  %v3149_v37 = vadd.f32 %v3148_v18, %v3147_v41 }
 0x1ac   :  { %v2285_v21 = vadd.f32 %v2284_v10, %v1949_v29  ;;  %v2323_v9 = vmul.f32 %v1949_v29, %v1949_v29  ;;  %v1791_v24 = vadd.f32 %v3037_v25, %v3886_v14  ;;  %v3150_v26 = vpop.f32.mrf.mxu1 }
 0x1ad   :  { %v3039_v27 = vpop.f32.mrf.mxu0 }
 0x1ae   :  { %v2354_v30 = vadd.f32 %v2353_v62, %v2323_v9  ;;  %v1952_v6 = vadd.f32 %v3149_v37, %v1791_v24  ;;  %v3040_v56 = vadd.f32 %v3039_v27, %v3038_v20  ;;  %v3151_v31 = vpop.f32.mrf.mxu1 }
 0x1af   :  { %v3152_v36 = vadd.f32 %v3151_v31, %v3150_v26  ;;  %v3041_v34 = vpop.f32.mrf.mxu0 }
 0x1b0   :  { %v2692_v38 = vpack.c.bf16 %v1952_v6, %v1949_v29  ;;  %v2286_v39 = vadd.f32 %v2285_v21, %v1952_v6  ;;  %v2324_v42 = vmul.f32 %v1952_v6, %v1952_v6  ;;  %v1796_v17 = vadd.f32 %v3040_v56, %v3888_v23  ;;  %v3153_v44 = vpop.f32.mrf.mxu1 }
 0x1b1   :  { %v3042_v46 = vpop.f32.mrf.mxu0 }
 0x1b2   :  { %2736 = vst [vmem:[%s4001_s2 + $0x40] sm:$0xff] %v2692_v38   ;;  %v2355_v14 = vadd.f32 %v2354_v30, %v2324_v42  ;;  %v1957_v47 = vadd.f32 %v3152_v36, %v1796_v17  ;;  %v3043_v51 = vadd.f32 %v3042_v46, %v3041_v34  ;;  %v3154_v1 = vpop.f32.mrf.mxu1 }
 0x1b3   :  { %v3044_v45 = vpop.f32.mrf.mxu0  ;;  %v3155_v55 = vadd.f32 %v3154_v1, %v3153_v44 }
 0x1b4   :  { %v2287_v48 = vadd.f32 %v2286_v39, %v1957_v47  ;;  %v2325_v49 = vmul.f32 %v1957_v47, %v1957_v47  ;;  %v1799_v54 = vadd.f32 %v3043_v51, %v3890_v33  ;;  %v3156_v57 = vpop.f32.mrf.mxu1 }
 0x1b5   :  { %v3045_v58 = vpop.f32.mrf.mxu0 }
 0x1b6   :  { %v2356_v60 = vadd.f32 %v2355_v14, %v2325_v49  ;;  %v1960_v23 = vadd.f32 %v3155_v55, %v1799_v54  ;;  %v3046_v32 = vadd.f32 %v3045_v58, %v3044_v45  ;;  %v3157_v61 = vpop.f32.mrf.mxu1 }
 0x1b7   :  { %v3158_v2 = vadd.f32 %v3157_v61, %v3156_v57  ;;  %v3047_v3 = vpop.f32.mrf.mxu0 }
 0x1b8   :  { %v2697_v53 = vpack.c.bf16 %v1960_v23, %v1957_v47  ;;  %v2288_v16 = vadd.f32 %v2287_v48, %v1960_v23  ;;  %v2326_v59 = vmul.f32 %v1960_v23, %v1960_v23  ;;  %v1804_v4 = vadd.f32 %v3046_v32, %v3892_v43  ;;  %v3159_v5 = vpop.f32.mrf.mxu1 }
 0x1b9   :  { %v3048_v7 = vpop.f32.mrf.mxu0 }
 0x1ba   :  { %2737 = vst [vmem:[%s4001_s2 + $0x48] sm:$0xff] %v2697_v53   ;;  %v2357_v33 = vadd.f32 %v2356_v60, %v2326_v59  ;;  %v1965_v10 = vadd.f32 %v3158_v2, %v1804_v4  ;;  %v3049_v12 = vadd.f32 %v3048_v7, %v3047_v3  ;;  %v3160_v13 = vpop.f32.mrf.mxu1 }
 0x1bb   :  { %v3050_v41 = vpop.f32.mrf.mxu0  ;;  %v3161_v25 = vadd.f32 %v3160_v13, %v3159_v5 }
 0x1bc   :  { %v2289_v15 = vadd.f32 %v2288_v16, %v1965_v10  ;;  %v2327_v62 = vmul.f32 %v1965_v10, %v1965_v10  ;;  %v1807_v29 = vadd.f32 %v3049_v12, %v3894_v52  ;;  %v3162_v18 = vpop.f32.mrf.mxu1 }
 0x1bd   :  { %v3051_v20 = vpop.f32.mrf.mxu0 }
 0x1be   :  { %v2358_v21 = vadd.f32 %v2357_v33, %v2327_v62  ;;  %v1968_v43 = vadd.f32 %v3161_v25, %v1807_v29  ;;  %v3052_v9 = vadd.f32 %v3051_v20, %v3050_v41  ;;  %v3163_v24 = vpop.f32.mrf.mxu1 }
 0x1bf   :  { %v3164_v37 = vadd.f32 %v3163_v24, %v3162_v18  ;;  %v3053_v26 = vpop.f32.mrf.mxu0 }
 0x1c0   :  { %v2702_v27 = vpack.c.bf16 %v1968_v43, %v1965_v10  ;;  %v2290_v30 = vadd.f32 %v2289_v15, %v1968_v43  ;;  %v2328_v6 = vmul.f32 %v1968_v43, %v1968_v43  ;;  %v1812_v56 = vadd.f32 %v3052_v9, %v3896_v63  ;;  %v3165_v31 = vpop.f32.mrf.mxu1 }
 0x1c1   :  { %v3054_v36 = vpop.f32.mrf.mxu0 }
 0x1c2   :  { %2738 = vst [vmem:[%s4001_s2 + $0x50] sm:$0xff] %v2702_v27   ;;  %v2359_v52 = vadd.f32 %v2358_v21, %v2328_v6  ;;  %v1973_v34 = vadd.f32 %v3164_v37, %v1812_v56  ;;  %v3055_v38 = vadd.f32 %v3054_v36, %v3053_v26  ;;  %v3166_v39 = vpop.f32.mrf.mxu1 }
 0x1c3   :  { %v3056_v42 = vpop.f32.mrf.mxu0  ;;  %v3167_v14 = vadd.f32 %v3166_v39, %v3165_v31 }
 0x1c4   :  { %v2291_v17 = vadd.f32 %v2290_v30, %v1973_v34  ;;  %v2329_v44 = vmul.f32 %v1973_v34, %v1973_v34  ;;  %v1815_v46 = vadd.f32 %v3055_v38, %v3898_v8  ;;  %v3168_v47 = vpop.f32.mrf.mxu1 }
 0x1c5   :  { %v3057_v51 = vpop.f32.mrf.mxu0 }
 0x1c6   :  { %v2360_v1 = vadd.f32 %v2359_v52, %v2329_v44  ;;  %v1976_v63 = vadd.f32 %v3167_v14, %v1815_v46  ;;  %v3058_v45 = vadd.f32 %v3057_v51, %v3056_v42  ;;  %v3169_v48 = vpop.f32.mrf.mxu1 }
 0x1c7   :  { %v3170_v49 = vadd.f32 %v3169_v48, %v3168_v47  ;;  %v3059_v54 = vpop.f32.mrf.mxu0 }
 0x1c8   :  { %v2707_v55 = vpack.c.bf16 %v1976_v63, %v1973_v34  ;;  %v2292_v57 = vadd.f32 %v2291_v17, %v1976_v63  ;;  %v2330_v58 = vmul.f32 %v1976_v63, %v1976_v63  ;;  %v1820_v60 = vadd.f32 %v3058_v45, %v3900_v19  ;;  %v3171_v23 = vpop.f32.mrf.mxu1 }
 0x1c9   :  { %v3060_v32 = vpop.f32.mrf.mxu0 }
 0x1ca   :  { %2739 = vst [vmem:[%s4001_s2 + $0x58] sm:$0xff] %v2707_v55   ;;  %v2361_v8 = vadd.f32 %v2360_v1, %v2330_v58  ;;  %v1981_v61 = vadd.f32 %v3170_v49, %v1820_v60  ;;  %v3061_v2 = vadd.f32 %v3060_v32, %v3059_v54  ;;  %v3172_v3 = vpop.f32.mrf.mxu1 }
 0x1cb   :  { %v3062_v53 = vpop.f32.mrf.mxu0  ;;  %v3173_v5 = vadd.f32 %v3172_v3, %v3171_v23 }
 0x1cc   :  { %v2293_v16 = vadd.f32 %v2292_v57, %v1981_v61  ;;  %v2331_v59 = vmul.f32 %v1981_v61, %v1981_v61  ;;  %v1823_v4 = vadd.f32 %v3061_v2, %v3902_v28  ;;  %v3174_v7 = vpop.f32.mrf.mxu1 }
 0x1cd   :  { %v3063_v33 = vpop.f32.mrf.mxu0 }
 0x1ce   :  { %v2362_v10 = vadd.f32 %v2361_v8, %v2331_v59  ;;  %v1984_v19 = vadd.f32 %v3173_v5, %v1823_v4  ;;  %v3064_v12 = vadd.f32 %v3063_v33, %v3062_v53  ;;  %v3175_v13 = vpop.f32.mrf.mxu1 }
 0x1cf   :  { %v3176_v41 = vadd.f32 %v3175_v13, %v3174_v7  ;;  %v3065_v15 = vpop.f32.mrf.mxu0 }
 0x1d0   :  { %v2712_v62 = vpack.c.bf16 %v1984_v19, %v1981_v61  ;;  %v2294_v29 = vadd.f32 %v2293_v16, %v1984_v19  ;;  %v2332_v25 = vmul.f32 %v1984_v19, %v1984_v19  ;;  %v1828_v18 = vadd.f32 %v3064_v12, %v3904_v40  ;;  %v3177_v20 = vpop.f32.mrf.mxu1 }
 0x1d1   :  { %v3066_v21 = vpop.f32.mrf.mxu0 }
 0x1d2   :  { %2740 = vst [vmem:[%s4001_s2 + $0x60] sm:$0xff] %v2712_v62   ;;  %v2363_v28 = vadd.f32 %v2362_v10, %v2332_v25  ;;  %v1989_v43 = vadd.f32 %v3176_v41, %v1828_v18  ;;  %v3067_v9 = vadd.f32 %v3066_v21, %v3065_v15  ;;  %v3178_v24 = vpop.f32.mrf.mxu1 }
 0x1d3   :  { %v3068_v37 = vpop.f32.mrf.mxu0  ;;  %v3179_v6 = vadd.f32 %v3178_v24, %v3177_v20 }
 0x1d4   :  { %v2295_v26 = vadd.f32 %v2294_v29, %v1989_v43  ;;  %v2333_v27 = vmul.f32 %v1989_v43, %v1989_v43  ;;  %v1831_v30 = vadd.f32 %v3067_v9, %v3906_v50  ;;  %v3180_v56 = vpop.f32.mrf.mxu1 }
 0x1d5   :  { %v3069_v31 = vpop.f32.mrf.mxu0 }
 0x1d6   :  { %v2364_v36 = vadd.f32 %v2363_v28, %v2333_v27  ;;  %v1992_v40 = vadd.f32 %v3179_v6, %v1831_v30  ;;  %v3070_v52 = vadd.f32 %v3069_v31, %v3068_v37  ;;  %v3181_v34 = vpop.f32.mrf.mxu1  ;;  %v2376_v28 = vlaneseq }
 0x1d7   :  { %v3182_v38 = vadd.f32 %v3181_v34, %v3180_v56  ;;  %v3071_v39 = vpop.f32.mrf.mxu0 }
 0x1d8   :  { %v2717_v42 = vpack.c.bf16 %v1992_v40, %v1989_v43  ;;  %v2296_v17 = vadd.f32 %v2295_v26, %v1992_v40  ;;  %v2334_v44 = vmul.f32 %v1992_v40, %v1992_v40  ;;  %v1836_v46 = vadd.f32 %v3070_v52, %v3908_v0  ;;  %v3183_v14 = vpop.f32.mrf.mxu1 }
 0x1d9   :  { %v3072_v47 = vpop.f32.mrf.mxu0 }
 0x1da   :  { %2741 = vst [vmem:[%s4001_s2 + $0x68] sm:$0xff] %v2717_v42   ;;  %v2365_v50 = vadd.f32 %v2364_v36, %v2334_v44  ;;  %v1997_v51 = vadd.f32 %v3182_v38, %v1836_v46  ;;  %v3073_v1 = vadd.f32 %v3072_v47, %v3071_v39  ;;  %v3184_v63 = vpop.f32.mrf.mxu1 }
 0x1db   :  { %v3074_v45 = vpop.f32.mrf.mxu0  ;;  %v3185_v55 = vadd.f32 %v3184_v63, %v3183_v14 }
 0x1dc   :  { %v2297_v48 = vadd.f32 %v2296_v17, %v1997_v51  ;;  %v2335_v49 = vmul.f32 %v1997_v51, %v1997_v51  ;;  %v1839_v54 = vadd.f32 %v3073_v1, %v3910_v11  ;;  %v3186_v57 = vpop.f32.mrf.mxu1 }
 0x1dd   :  { %v3075_v58 = vpop.f32.mrf.mxu0 }
 0x1de   :  { %v2366_v60 = vadd.f32 %v2365_v50, %v2335_v49  ;;  %v2000_v0 = vadd.f32 %v3185_v55, %v1839_v54  ;;  %v3076_v23 = vadd.f32 %v3075_v58, %v3074_v45  ;;  %v3187_v32 = vpop.f32.mrf.mxu1 }
 0x1df   :  { %v3188_v8 = vadd.f32 %v3187_v32, %v3186_v57  ;;  %v3077_v61 = vpop.f32.mrf.mxu0 }
 0x1e0   :  { %v2722_v2 = vpack.c.bf16 %v2000_v0, %v1997_v51  ;;  %v2298_v3 = vadd.f32 %v2297_v48, %v2000_v0  ;;  %v2336_v53 = vmul.f32 %v2000_v0, %v2000_v0  ;;  %v1844_v16 = vadd.f32 %v3076_v23, %v3912_v22  ;;  %v3189_v59 = vpop.f32.mrf.mxu1 }
 0x1e1   :  { %v3078_v4 = vpop.f32.mrf.mxu0 }
 0x1e2   :  { %2742 = vst [vmem:[%s4001_s2 + $0x70] sm:$0xff] %v2722_v2   ;;  %v2367_v11 = vadd.f32 %v2366_v60, %v2336_v53  ;;  %v2005_v5 = vadd.f32 %v3188_v8, %v1844_v16  ;;  %v3079_v7 = vadd.f32 %v3078_v4, %v3077_v61  ;;  %v3190_v33 = vpop.f32.mrf.mxu1 }
 0x1e3   :  { %v3191_v13 = vadd.f32 %v3190_v33, %v3189_v59 }
 0x1e4   :  { %v2299_v10 = vadd.f32 %v2298_v3, %v2005_v5  ;;  %v2337_v19 = vmul.f32 %v2005_v5, %v2005_v5  ;;  %v1847_v12 = vadd.f32 %v3079_v7, %v3914_v35  ;;  %v2377_v35 = vshrl.u32 %v2376_v28, 7 }
 0x1e6   :  { %v2368_v41 = vadd.f32 %v2367_v11, %v2337_v19  ;;  %v2008_v15 = vadd.f32 %v3191_v13, %v1847_v12  ;;  %vm2379_vm0 = vcmp.eq.s32.totalorder %v2377_v35, 1  ;;  %vm2378_vm1 = vcmp.eq.s32.totalorder %v2377_v35, 0 }
 0x1e8   :  { %v2727_v62 = vpack.c.bf16 %v2008_v15, %v2005_v5  ;;  %v2300_v29 = vadd.f32 %v2299_v10, %v2008_v15  ;;  %v2338_v22 = vmul.f32 %v2008_v15, %v2008_v15 }
 0x1ea   :  { %2743 = vst [vmem:[%s4001_s2 + $0x78] sm:$0xff] %v2727_v62   ;;  %v2301_v25 = vrot.slane %v2300_v29, 4  ;;  %v2369_v18 = vadd.f32 %v2368_v41, %v2338_v22 }
 0x1ec   :  { %v2302_v20 = vadd.f32 %v2301_v25, %v2300_v29  ;;  %v2370_v21 = vrot.slane %v2369_v18, 4 }
 0x1ee   :  { %v2303_v43 = vrot.slane %v2302_v20, 2  ;;  %v2371_v9 = vadd.f32 %v2370_v21, %v2369_v18 }
 0x1f0   :  { %v2304_v24 = vadd.f32 %v2303_v43, %v2302_v20  ;;  %v2372_v37 = vrot.slane %v2371_v9, 2 }
 0x1f2   :  { %v2373_v26 = vadd.f32 %v2372_v37, %v2371_v9  ;;  %v2305_v27 = vrot.slane %v2304_v24, 1 }
 0x1f4   :  { %v2374_v30 = vrot.slane %v2373_v26, 1  ;;  %v2306_v56 = vadd.f32 %v2305_v27, %v2304_v24 }
 0x1f6   :  { %v2375_v6 = vadd.f32 %v2374_v30, %v2373_v26 }
 0x1f8   :  { %v2380_v31 = vsel %vm2379_vm0, %v2375_v6, 0.0 }
 0x1f9   :  { %v2381_v36 = vsel %vm2378_vm1, %v2306_v56, %v2380_v31 }
 0x1fa   :  { %2382 = vst [vmem:[%s4002_s3] sm:$0xff] %v2381_v36 }

// kernel: _lambda_.15
= control target key start
LH: loop header
LB: loop body
LE: loop exit
PB: predicated region body
PF: predicated region fallthrough
CT: control target
= control target key end

     0   :  { %s3619_s12 = smov 0   ;;  %s3621_s13 = smov 0   ;;  %s4387_s0 = inlined_call_operand.vmem [shape: bf16[256,2048], index: 0, kind: input, shape index: {}]   ;;  %s4388_s1 = inlined_call_operand.vmem [shape: bf16[2048,128], index: 1, kind: input, shape index: {}]   ;;  %s4389_s2 = inlined_call_operand.vmem [shape: f32[1,128], index: 2, kind: input, shape index: {}]   ;;  %s4390_s3 = inlined_call_operand.vmem [shape: f32[256,128], index: 3, kind: output, shape index: {}]  }
   0x1   :  { %s3623_s14 = smov 0   ;;  %s3625_s15 = smov 0  }
   0x2   :  { %s3627_s16 = smov 0  }
   0x3 LB: > { %s25_s17 = sadd.s32 1, %s3592_s15  ;;  %p48_p1 = scmp.ne.s32.totalorder %s3584_s13, %s3580_s12  ;;  %s3596_s16 = sphi %s3627_s16, %s13_s16   ;;  %s3592_s15 = sphi %s3625_s15, %s4394_s15   ;;  %s3588_s14 = sphi %s3623_s14, %s4393_s14   ;;  %s3584_s13 = sphi %s3621_s13, %s4392_s13   ;;  %s3580_s12 = sphi %s3619_s12, %s4391_s12  }
   0x4   : > { %p26_p0 = scmp.ge.s32.totalorder %s25_s17, 2  ;;  %p49_p2 = scmp.eq.s32.totalorder %s3596_s16, 0 }
   0x5   : > { %s41_s19 = sadd.s32 1, %s3584_s13  ;;  %p2797_p5 = scmp.ge.s32.totalorder %s3596_s16, 2 }
   0x6   : > { %s4396_s17 = smov (%p26_p0, %s25_s17), 0  ;;  %p50_p3 = por %p49_p2, %p48_p1 }
   0x7   : > { %s37_s18 = ssub.s32 %s3592_s15, %s4396_s17  ;;  %167 = sbr.rel (%p2797_p5) target bundleno = 80 (0x50), region = 24 }
   0x8   : > { %p39_p4 = scmp.eq.s32.totalorder %s37_s18, 0 }
   0xa   : > { %s3654_s20 = scalar_select %p39_p4, %s3584_s13, %s41_s19  }
   0xc   : > { %170 = sbr.rel (!%p50_p3) target bundleno = 80 (0x50), region = 28  ;;  %s172_s21 = sand.u32 (%p50_p3), 1, %s3584_s13  }
   0xd   : > { %s3004_s22 = sshll.u32 (%p50_p3), %s3592_s15, 5  ;;  %s2798_s23 = sshll.u32 (%p50_p3), %s172_s21, 10 }
   0xe   : > { %s3662_s26 = scalar_lea.vmem (%p50_p3), %s4387_s0, %s3004_s22  ;;  %s3667_s27 = scalar_lea.vmem (%p50_p3), [#allocation3], %s2798_s23 }
   0xf   : > { %v193_v0 = vld [vmem:[%s3662_s26] sm:$0xff] (%p50_p3)  ;;  %v195_v1 = vld [vmem:[%s3662_s26 + $0x8] sm:$0xff] (%p50_p3)  ;;  %v197_v2 = vld [vmem:[%s3662_s26 + $0x10] sm:$0xff] (%p50_p3) }
  0x10   : > { %194 = vst [vmem:[%s3667_s27] sm:$0xff] (%p50_p3), %v193_v0  ;;  %196 = vst [vmem:[%s3667_s27 + $0x8] sm:$0xff] (%p50_p3), %v195_v1  ;;  %v199_v3 = vld [vmem:[%s3662_s26 + $0x18] sm:$0xff] (%p50_p3)  ;;  %v201_v4 = vld [vmem:[%s3662_s26 + $0x40] sm:$0xff] (%p50_p3) }
  0x11   : > { %198 = vst [vmem:[%s3667_s27 + $0x10] sm:$0xff] %v197_v2  ;;  %v203_v5 = vld [vmem:[%s3662_s26 + $0x48] sm:$0xff]  ;;  %200 = vst [vmem:[%s3667_s27 + $0x18] sm:$0xff] %v199_v3  ;;  %v205_v6 = vld [vmem:[%s3662_s26 + $0x50] sm:$0xff] }
  0x12   : > { %202 = vst [vmem:[%s3667_s27 + $0x20] sm:$0xff] %v201_v4  ;;  %204 = vst [vmem:[%s3667_s27 + $0x28] sm:$0xff] %v203_v5  ;;  %v207_v7 = vld [vmem:[%s3662_s26 + $0x58] sm:$0xff]  ;;  %v209_v8 = vld [vmem:[%s3662_s26 + $0x80] sm:$0xff] }
  0x13   : > { %206 = vst [vmem:[%s3667_s27 + $0x30] sm:$0xff] %v205_v6  ;;  %208 = vst [vmem:[%s3667_s27 + $0x38] sm:$0xff] %v207_v7  ;;  %v211_v9 = vld [vmem:[%s3662_s26 + $0x88] sm:$0xff]  ;;  %v213_v10 = vld [vmem:[%s3662_s26 + $0x90] sm:$0xff] }
  0x14   : > { %210 = vst [vmem:[%s3667_s27 + $0x40] sm:$0xff] %v209_v8  ;;  %v215_v11 = vld [vmem:[%s3662_s26 + $0x98] sm:$0xff]  ;;  %212 = vst [vmem:[%s3667_s27 + $0x48] sm:$0xff] %v211_v9  ;;  %v217_v12 = vld [vmem:[%s3662_s26 + $0xc0] sm:$0xff] }
  0x15   : > { %214 = vst [vmem:[%s3667_s27 + $0x50] sm:$0xff] %v213_v10  ;;  %216 = vst [vmem:[%s3667_s27 + $0x58] sm:$0xff] %v215_v11  ;;  %v219_v13 = vld [vmem:[%s3662_s26 + $0xc8] sm:$0xff]  ;;  %v221_v14 = vld [vmem:[%s3662_s26 + $0xd0] sm:$0xff] }
  0x16   : > { %218 = vst [vmem:[%s3667_s27 + $0x60] sm:$0xff] %v217_v12  ;;  %220 = vst [vmem:[%s3667_s27 + $0x68] sm:$0xff] %v219_v13  ;;  %v223_v15 = vld [vmem:[%s3662_s26 + $0xd8] sm:$0xff]  ;;  %v225_v16 = vld [vmem:[%s3662_s26 + $0x100] sm:$0xff] }
  0x17   : > { %222 = vst [vmem:[%s3667_s27 + $0x70] sm:$0xff] %v221_v14  ;;  %v227_v17 = vld [vmem:[%s3662_s26 + $0x108] sm:$0xff]  ;;  %224 = vst [vmem:[%s3667_s27 + $0x78] sm:$0xff] %v223_v15  ;;  %v229_v18 = vld [vmem:[%s3662_s26 + $0x110] sm:$0xff] }
  0x18   : > { %226 = vst [vmem:[%s3667_s27 + $0x80] sm:$0xff] %v225_v16  ;;  %228 = vst [vmem:[%s3667_s27 + $0x88] sm:$0xff] %v227_v17  ;;  %v231_v19 = vld [vmem:[%s3662_s26 + $0x118] sm:$0xff]  ;;  %v233_v20 = vld [vmem:[%s3662_s26 + $0x140] sm:$0xff] }
  0x19   : > { %230 = vst [vmem:[%s3667_s27 + $0x90] sm:$0xff] %v229_v18  ;;  %232 = vst [vmem:[%s3667_s27 + $0x98] sm:$0xff] %v231_v19  ;;  %v235_v21 = vld [vmem:[%s3662_s26 + $0x148] sm:$0xff]  ;;  %v237_v22 = vld [vmem:[%s3662_s26 + $0x150] sm:$0xff] }
  0x1a   : > { %234 = vst [vmem:[%s3667_s27 + $0xa0] sm:$0xff] %v233_v20  ;;  %v239_v23 = vld [vmem:[%s3662_s26 + $0x158] sm:$0xff]  ;;  %236 = vst [vmem:[%s3667_s27 + $0xa8] sm:$0xff] %v235_v21  ;;  %v241_v24 = vld [vmem:[%s3662_s26 + $0x180] sm:$0xff] }
  0x1b   : > { %238 = vst [vmem:[%s3667_s27 + $0xb0] sm:$0xff] %v237_v22  ;;  %240 = vst [vmem:[%s3667_s27 + $0xb8] sm:$0xff] %v239_v23  ;;  %v243_v25 = vld [vmem:[%s3662_s26 + $0x188] sm:$0xff]  ;;  %v245_v26 = vld [vmem:[%s3662_s26 + $0x190] sm:$0xff] }
  0x1c   : > { %242 = vst [vmem:[%s3667_s27 + $0xc0] sm:$0xff] %v241_v24  ;;  %244 = vst [vmem:[%s3667_s27 + $0xc8] sm:$0xff] %v243_v25  ;;  %v247_v27 = vld [vmem:[%s3662_s26 + $0x198] sm:$0xff]  ;;  %v249_v28 = vld [vmem:[%s3662_s26 + $0x1c0] sm:$0xff] }
  0x1d   : > { %246 = vst [vmem:[%s3667_s27 + $0xd0] sm:$0xff] %v245_v26  ;;  %v251_v29 = vld [vmem:[%s3662_s26 + $0x1c8] sm:$0xff]  ;;  %248 = vst [vmem:[%s3667_s27 + $0xd8] sm:$0xff] %v247_v27  ;;  %v253_v30 = vld [vmem:[%s3662_s26 + $0x1d0] sm:$0xff] }
  0x1e   : > { %250 = vst [vmem:[%s3667_s27 + $0xe0] sm:$0xff] %v249_v28  ;;  %252 = vst [vmem:[%s3667_s27 + $0xe8] sm:$0xff] %v251_v29  ;;  %v255_v31 = vld [vmem:[%s3662_s26 + $0x1d8] sm:$0xff]  ;;  %v257_v32 = vld [vmem:[%s3662_s26 + $0x200] sm:$0xff] }
  0x1f   : > { %254 = vst [vmem:[%s3667_s27 + $0xf0] sm:$0xff] %v253_v30  ;;  %256 = vst [vmem:[%s3667_s27 + $0xf8] sm:$0xff] %v255_v31  ;;  %v259_v33 = vld [vmem:[%s3662_s26 + $0x208] sm:$0xff]  ;;  %v261_v34 = vld [vmem:[%s3662_s26 + $0x210] sm:$0xff] }
  0x20   : > { %258 = vst [vmem:[%s3667_s27 + $0x100] sm:$0xff] %v257_v32  ;;  %v263_v35 = vld [vmem:[%s3662_s26 + $0x218] sm:$0xff]  ;;  %260 = vst [vmem:[%s3667_s27 + $0x108] sm:$0xff] %v259_v33  ;;  %v265_v36 = vld [vmem:[%s3662_s26 + $0x240] sm:$0xff] }
  0x21   : > { %262 = vst [vmem:[%s3667_s27 + $0x110] sm:$0xff] %v261_v34  ;;  %264 = vst [vmem:[%s3667_s27 + $0x118] sm:$0xff] %v263_v35  ;;  %v267_v37 = vld [vmem:[%s3662_s26 + $0x248] sm:$0xff]  ;;  %v269_v38 = vld [vmem:[%s3662_s26 + $0x250] sm:$0xff] }
  0x22   : > { %266 = vst [vmem:[%s3667_s27 + $0x120] sm:$0xff] %v265_v36  ;;  %268 = vst [vmem:[%s3667_s27 + $0x128] sm:$0xff] %v267_v37  ;;  %v271_v39 = vld [vmem:[%s3662_s26 + $0x258] sm:$0xff]  ;;  %v273_v40 = vld [vmem:[%s3662_s26 + $0x280] sm:$0xff] }
  0x23   : > { %270 = vst [vmem:[%s3667_s27 + $0x130] sm:$0xff] %v269_v38  ;;  %v275_v41 = vld [vmem:[%s3662_s26 + $0x288] sm:$0xff]  ;;  %272 = vst [vmem:[%s3667_s27 + $0x138] sm:$0xff] %v271_v39  ;;  %v277_v42 = vld [vmem:[%s3662_s26 + $0x290] sm:$0xff] }
  0x24   : > { %274 = vst [vmem:[%s3667_s27 + $0x140] sm:$0xff] %v273_v40  ;;  %276 = vst [vmem:[%s3667_s27 + $0x148] sm:$0xff] %v275_v41  ;;  %v279_v43 = vld [vmem:[%s3662_s26 + $0x298] sm:$0xff]  ;;  %v281_v44 = vld [vmem:[%s3662_s26 + $0x2c0] sm:$0xff] }
  0x25   : > { %278 = vst [vmem:[%s3667_s27 + $0x150] sm:$0xff] %v277_v42  ;;  %280 = vst [vmem:[%s3667_s27 + $0x158] sm:$0xff] %v279_v43  ;;  %v283_v45 = vld [vmem:[%s3662_s26 + $0x2c8] sm:$0xff]  ;;  %v285_v46 = vld [vmem:[%s3662_s26 + $0x2d0] sm:$0xff] }
  0x26   : > { %282 = vst [vmem:[%s3667_s27 + $0x160] sm:$0xff] %v281_v44  ;;  %v287_v47 = vld [vmem:[%s3662_s26 + $0x2d8] sm:$0xff]  ;;  %284 = vst [vmem:[%s3667_s27 + $0x168] sm:$0xff] %v283_v45  ;;  %v289_v48 = vld [vmem:[%s3662_s26 + $0x300] sm:$0xff] }
  0x27   : > { %286 = vst [vmem:[%s3667_s27 + $0x170] sm:$0xff] %v285_v46  ;;  %288 = vst [vmem:[%s3667_s27 + $0x178] sm:$0xff] %v287_v47  ;;  %v291_v49 = vld [vmem:[%s3662_s26 + $0x308] sm:$0xff]  ;;  %v293_v50 = vld [vmem:[%s3662_s26 + $0x310] sm:$0xff] }
  0x28   : > { %290 = vst [vmem:[%s3667_s27 + $0x180] sm:$0xff] %v289_v48  ;;  %292 = vst [vmem:[%s3667_s27 + $0x188] sm:$0xff] %v291_v49  ;;  %v295_v51 = vld [vmem:[%s3662_s26 + $0x318] sm:$0xff]  ;;  %v297_v52 = vld [vmem:[%s3662_s26 + $0x340] sm:$0xff] }
  0x29   : > { %294 = vst [vmem:[%s3667_s27 + $0x190] sm:$0xff] %v293_v50  ;;  %v299_v53 = vld [vmem:[%s3662_s26 + $0x348] sm:$0xff]  ;;  %296 = vst [vmem:[%s3667_s27 + $0x198] sm:$0xff] %v295_v51  ;;  %v301_v54 = vld [vmem:[%s3662_s26 + $0x350] sm:$0xff] }
  0x2a   : > { %298 = vst [vmem:[%s3667_s27 + $0x1a0] sm:$0xff] %v297_v52  ;;  %300 = vst [vmem:[%s3667_s27 + $0x1a8] sm:$0xff] %v299_v53  ;;  %v303_v55 = vld [vmem:[%s3662_s26 + $0x358] sm:$0xff]  ;;  %v305_v56 = vld [vmem:[%s3662_s26 + $0x380] sm:$0xff] }
  0x2b   : > { %302 = vst [vmem:[%s3667_s27 + $0x1b0] sm:$0xff] %v301_v54  ;;  %304 = vst [vmem:[%s3667_s27 + $0x1b8] sm:$0xff] %v303_v55  ;;  %v307_v57 = vld [vmem:[%s3662_s26 + $0x388] sm:$0xff]  ;;  %v309_v58 = vld [vmem:[%s3662_s26 + $0x390] sm:$0xff] }
  0x2c   : > { %306 = vst [vmem:[%s3667_s27 + $0x1c0] sm:$0xff] %v305_v56  ;;  %v311_v59 = vld [vmem:[%s3662_s26 + $0x398] sm:$0xff]  ;;  %308 = vst [vmem:[%s3667_s27 + $0x1c8] sm:$0xff] %v307_v57  ;;  %v313_v60 = vld [vmem:[%s3662_s26 + $0x3c0] sm:$0xff] }
  0x2d   : > { %310 = vst [vmem:[%s3667_s27 + $0x1d0] sm:$0xff] %v309_v58  ;;  %312 = vst [vmem:[%s3667_s27 + $0x1d8] sm:$0xff] %v311_v59  ;;  %v315_v61 = vld [vmem:[%s3662_s26 + $0x3c8] sm:$0xff]  ;;  %v317_v62 = vld [vmem:[%s3662_s26 + $0x3d0] sm:$0xff] }
  0x2e   : > { %314 = vst [vmem:[%s3667_s27 + $0x1e0] sm:$0xff] %v313_v60  ;;  %316 = vst [vmem:[%s3667_s27 + $0x1e8] sm:$0xff] %v315_v61  ;;  %v319_v63 = vld [vmem:[%s3662_s26 + $0x3d8] sm:$0xff]  ;;  %v321_v0 = vld [vmem:[%s3662_s26 + $0x400] sm:$0xff] }
  0x2f   : > { %318 = vst [vmem:[%s3667_s27 + $0x1f0] sm:$0xff] %v317_v62  ;;  %v323_v1 = vld [vmem:[%s3662_s26 + $0x408] sm:$0xff]  ;;  %320 = vst [vmem:[%s3667_s27 + $0x1f8] sm:$0xff] %v319_v63  ;;  %v325_v2 = vld [vmem:[%s3662_s26 + $0x410] sm:$0xff] }
  0x30   : > { %322 = vst [vmem:[%s3667_s27 + $0x200] sm:$0xff] %v321_v0  ;;  %324 = vst [vmem:[%s3667_s27 + $0x208] sm:$0xff] %v323_v1  ;;  %v327_v3 = vld [vmem:[%s3662_s26 + $0x418] sm:$0xff]  ;;  %v329_v4 = vld [vmem:[%s3662_s26 + $0x440] sm:$0xff] }
  0x31   : > { %326 = vst [vmem:[%s3667_s27 + $0x210] sm:$0xff] %v325_v2  ;;  %328 = vst [vmem:[%s3667_s27 + $0x218] sm:$0xff] %v327_v3  ;;  %v331_v5 = vld [vmem:[%s3662_s26 + $0x448] sm:$0xff]  ;;  %v333_v6 = vld [vmem:[%s3662_s26 + $0x450] sm:$0xff] }
  0x32   : > { %330 = vst [vmem:[%s3667_s27 + $0x220] sm:$0xff] %v329_v4  ;;  %v335_v7 = vld [vmem:[%s3662_s26 + $0x458] sm:$0xff]  ;;  %332 = vst [vmem:[%s3667_s27 + $0x228] sm:$0xff] %v331_v5  ;;  %v337_v8 = vld [vmem:[%s3662_s26 + $0x480] sm:$0xff] }
  0x33   : > { %334 = vst [vmem:[%s3667_s27 + $0x230] sm:$0xff] %v333_v6  ;;  %336 = vst [vmem:[%s3667_s27 + $0x238] sm:$0xff] %v335_v7  ;;  %v339_v9 = vld [vmem:[%s3662_s26 + $0x488] sm:$0xff]  ;;  %v341_v10 = vld [vmem:[%s3662_s26 + $0x490] sm:$0xff] }
  0x34   : > { %338 = vst [vmem:[%s3667_s27 + $0x240] sm:$0xff] %v337_v8  ;;  %340 = vst [vmem:[%s3667_s27 + $0x248] sm:$0xff] %v339_v9  ;;  %v343_v11 = vld [vmem:[%s3662_s26 + $0x498] sm:$0xff]  ;;  %v345_v12 = vld [vmem:[%s3662_s26 + $0x4c0] sm:$0xff] }
  0x35   : > { %342 = vst [vmem:[%s3667_s27 + $0x250] sm:$0xff] %v341_v10  ;;  %v347_v13 = vld [vmem:[%s3662_s26 + $0x4c8] sm:$0xff]  ;;  %344 = vst [vmem:[%s3667_s27 + $0x258] sm:$0xff] %v343_v11  ;;  %v349_v14 = vld [vmem:[%s3662_s26 + $0x4d0] sm:$0xff] }
  0x36   : > { %346 = vst [vmem:[%s3667_s27 + $0x260] sm:$0xff] %v345_v12  ;;  %348 = vst [vmem:[%s3667_s27 + $0x268] sm:$0xff] %v347_v13  ;;  %v351_v15 = vld [vmem:[%s3662_s26 + $0x4d8] sm:$0xff]  ;;  %v353_v16 = vld [vmem:[%s3662_s26 + $0x500] sm:$0xff] }
  0x37   : > { %350 = vst [vmem:[%s3667_s27 + $0x270] sm:$0xff] %v349_v14  ;;  %352 = vst [vmem:[%s3667_s27 + $0x278] sm:$0xff] %v351_v15  ;;  %v355_v17 = vld [vmem:[%s3662_s26 + $0x508] sm:$0xff]  ;;  %v357_v18 = vld [vmem:[%s3662_s26 + $0x510] sm:$0xff] }
  0x38   : > { %354 = vst [vmem:[%s3667_s27 + $0x280] sm:$0xff] %v353_v16  ;;  %v359_v19 = vld [vmem:[%s3662_s26 + $0x518] sm:$0xff]  ;;  %356 = vst [vmem:[%s3667_s27 + $0x288] sm:$0xff] %v355_v17  ;;  %v361_v20 = vld [vmem:[%s3662_s26 + $0x540] sm:$0xff] }
  0x39   : > { %358 = vst [vmem:[%s3667_s27 + $0x290] sm:$0xff] %v357_v18  ;;  %360 = vst [vmem:[%s3667_s27 + $0x298] sm:$0xff] %v359_v19  ;;  %v363_v21 = vld [vmem:[%s3662_s26 + $0x548] sm:$0xff]  ;;  %v365_v22 = vld [vmem:[%s3662_s26 + $0x550] sm:$0xff] }
  0x3a   : > { %362 = vst [vmem:[%s3667_s27 + $0x2a0] sm:$0xff] %v361_v20  ;;  %364 = vst [vmem:[%s3667_s27 + $0x2a8] sm:$0xff] %v363_v21  ;;  %v367_v23 = vld [vmem:[%s3662_s26 + $0x558] sm:$0xff]  ;;  %v369_v24 = vld [vmem:[%s3662_s26 + $0x580] sm:$0xff] }
  0x3b   : > { %366 = vst [vmem:[%s3667_s27 + $0x2b0] sm:$0xff] %v365_v22  ;;  %v371_v25 = vld [vmem:[%s3662_s26 + $0x588] sm:$0xff]  ;;  %368 = vst [vmem:[%s3667_s27 + $0x2b8] sm:$0xff] %v367_v23  ;;  %v373_v26 = vld [vmem:[%s3662_s26 + $0x590] sm:$0xff] }
  0x3c   : > { %370 = vst [vmem:[%s3667_s27 + $0x2c0] sm:$0xff] %v369_v24  ;;  %372 = vst [vmem:[%s3667_s27 + $0x2c8] sm:$0xff] %v371_v25  ;;  %v375_v27 = vld [vmem:[%s3662_s26 + $0x598] sm:$0xff]  ;;  %v377_v28 = vld [vmem:[%s3662_s26 + $0x5c0] sm:$0xff] }
  0x3d   : > { %374 = vst [vmem:[%s3667_s27 + $0x2d0] sm:$0xff] %v373_v26  ;;  %376 = vst [vmem:[%s3667_s27 + $0x2d8] sm:$0xff] %v375_v27  ;;  %v379_v29 = vld [vmem:[%s3662_s26 + $0x5c8] sm:$0xff]  ;;  %v381_v30 = vld [vmem:[%s3662_s26 + $0x5d0] sm:$0xff] }
  0x3e   : > { %378 = vst [vmem:[%s3667_s27 + $0x2e0] sm:$0xff] %v377_v28  ;;  %v383_v31 = vld [vmem:[%s3662_s26 + $0x5d8] sm:$0xff]  ;;  %380 = vst [vmem:[%s3667_s27 + $0x2e8] sm:$0xff] %v379_v29  ;;  %v385_v32 = vld [vmem:[%s3662_s26 + $0x600] sm:$0xff] }
  0x3f   : > { %382 = vst [vmem:[%s3667_s27 + $0x2f0] sm:$0xff] %v381_v30  ;;  %384 = vst [vmem:[%s3667_s27 + $0x2f8] sm:$0xff] %v383_v31  ;;  %v387_v33 = vld [vmem:[%s3662_s26 + $0x608] sm:$0xff]  ;;  %v389_v34 = vld [vmem:[%s3662_s26 + $0x610] sm:$0xff] }
  0x40   : > { %386 = vst [vmem:[%s3667_s27 + $0x300] sm:$0xff] %v385_v32  ;;  %388 = vst [vmem:[%s3667_s27 + $0x308] sm:$0xff] %v387_v33  ;;  %v391_v35 = vld [vmem:[%s3662_s26 + $0x618] sm:$0xff]  ;;  %v393_v36 = vld [vmem:[%s3662_s26 + $0x640] sm:$0xff] }
  0x41   : > { %390 = vst [vmem:[%s3667_s27 + $0x310] sm:$0xff] %v389_v34  ;;  %v395_v37 = vld [vmem:[%s3662_s26 + $0x648] sm:$0xff]  ;;  %392 = vst [vmem:[%s3667_s27 + $0x318] sm:$0xff] %v391_v35  ;;  %v397_v38 = vld [vmem:[%s3662_s26 + $0x650] sm:$0xff] }
  0x42   : > { %394 = vst [vmem:[%s3667_s27 + $0x320] sm:$0xff] %v393_v36  ;;  %396 = vst [vmem:[%s3667_s27 + $0x328] sm:$0xff] %v395_v37  ;;  %v399_v39 = vld [vmem:[%s3662_s26 + $0x658] sm:$0xff]  ;;  %v401_v40 = vld [vmem:[%s3662_s26 + $0x680] sm:$0xff] }
  0x43   : > { %398 = vst [vmem:[%s3667_s27 + $0x330] sm:$0xff] %v397_v38  ;;  %400 = vst [vmem:[%s3667_s27 + $0x338] sm:$0xff] %v399_v39  ;;  %v403_v41 = vld [vmem:[%s3662_s26 + $0x688] sm:$0xff]  ;;  %v405_v42 = vld [vmem:[%s3662_s26 + $0x690] sm:$0xff] }
  0x44   : > { %402 = vst [vmem:[%s3667_s27 + $0x340] sm:$0xff] %v401_v40  ;;  %v407_v43 = vld [vmem:[%s3662_s26 + $0x698] sm:$0xff]  ;;  %404 = vst [vmem:[%s3667_s27 + $0x348] sm:$0xff] %v403_v41  ;;  %v409_v44 = vld [vmem:[%s3662_s26 + $0x6c0] sm:$0xff] }
  0x45   : > { %406 = vst [vmem:[%s3667_s27 + $0x350] sm:$0xff] %v405_v42  ;;  %408 = vst [vmem:[%s3667_s27 + $0x358] sm:$0xff] %v407_v43  ;;  %v411_v45 = vld [vmem:[%s3662_s26 + $0x6c8] sm:$0xff]  ;;  %v413_v46 = vld [vmem:[%s3662_s26 + $0x6d0] sm:$0xff] }
  0x46   : > { %410 = vst [vmem:[%s3667_s27 + $0x360] sm:$0xff] %v409_v44  ;;  %412 = vst [vmem:[%s3667_s27 + $0x368] sm:$0xff] %v411_v45  ;;  %v415_v47 = vld [vmem:[%s3662_s26 + $0x6d8] sm:$0xff]  ;;  %v417_v48 = vld [vmem:[%s3662_s26 + $0x700] sm:$0xff] }
  0x47   : > { %414 = vst [vmem:[%s3667_s27 + $0x370] sm:$0xff] %v413_v46  ;;  %v419_v49 = vld [vmem:[%s3662_s26 + $0x708] sm:$0xff]  ;;  %416 = vst [vmem:[%s3667_s27 + $0x378] sm:$0xff] %v415_v47  ;;  %v421_v50 = vld [vmem:[%s3662_s26 + $0x710] sm:$0xff] }
  0x48   : > { %418 = vst [vmem:[%s3667_s27 + $0x380] sm:$0xff] %v417_v48  ;;  %420 = vst [vmem:[%s3667_s27 + $0x388] sm:$0xff] %v419_v49  ;;  %v423_v51 = vld [vmem:[%s3662_s26 + $0x718] sm:$0xff]  ;;  %v425_v52 = vld [vmem:[%s3662_s26 + $0x740] sm:$0xff] }
  0x49   : > { %422 = vst [vmem:[%s3667_s27 + $0x390] sm:$0xff] %v421_v50  ;;  %424 = vst [vmem:[%s3667_s27 + $0x398] sm:$0xff] %v423_v51  ;;  %v427_v53 = vld [vmem:[%s3662_s26 + $0x748] sm:$0xff]  ;;  %v429_v54 = vld [vmem:[%s3662_s26 + $0x750] sm:$0xff] }
  0x4a   : > { %426 = vst [vmem:[%s3667_s27 + $0x3a0] sm:$0xff] %v425_v52  ;;  %v431_v55 = vld [vmem:[%s3662_s26 + $0x758] sm:$0xff]  ;;  %428 = vst [vmem:[%s3667_s27 + $0x3a8] sm:$0xff] %v427_v53  ;;  %v433_v56 = vld [vmem:[%s3662_s26 + $0x780] sm:$0xff] }
  0x4b   : > { %430 = vst [vmem:[%s3667_s27 + $0x3b0] sm:$0xff] %v429_v54  ;;  %432 = vst [vmem:[%s3667_s27 + $0x3b8] sm:$0xff] %v431_v55  ;;  %v435_v57 = vld [vmem:[%s3662_s26 + $0x788] sm:$0xff]  ;;  %v437_v58 = vld [vmem:[%s3662_s26 + $0x790] sm:$0xff] }
  0x4c   : > { %434 = vst [vmem:[%s3667_s27 + $0x3c0] sm:$0xff] %v433_v56  ;;  %436 = vst [vmem:[%s3667_s27 + $0x3c8] sm:$0xff] %v435_v57  ;;  %v439_v59 = vld [vmem:[%s3662_s26 + $0x798] sm:$0xff]  ;;  %v441_v60 = vld [vmem:[%s3662_s26 + $0x7c0] sm:$0xff] }
  0x4d   : > { %438 = vst [vmem:[%s3667_s27 + $0x3d0] sm:$0xff] %v437_v58  ;;  %v443_v61 = vld [vmem:[%s3662_s26 + $0x7c8] sm:$0xff]  ;;  %440 = vst [vmem:[%s3667_s27 + $0x3d8] sm:$0xff] %v439_v59  ;;  %v445_v62 = vld [vmem:[%s3662_s26 + $0x7d0] sm:$0xff] }
  0x4e   : > { %442 = vst [vmem:[%s3667_s27 + $0x3e0] sm:$0xff] %v441_v60  ;;  %444 = vst [vmem:[%s3667_s27 + $0x3e8] sm:$0xff] %v443_v61  ;;  %v447_v63 = vld [vmem:[%s3662_s26 + $0x7d8] sm:$0xff] }
  0x4f   : > { %446 = vst [vmem:[%s3667_s27 + $0x3f0] sm:$0xff] %v445_v62  ;;  %448 = vst [vmem:[%s3667_s27 + $0x3f8] sm:$0xff] %v447_v63 }
  0x50 PF: > { %p2801_p6 = scmp.ge.s32.totalorder %s3596_s16, 1  ;;  %p453_p7 = scmp.lt.s32.totalorder %s3596_s16, 3 }
  0x52   : > { %p454_p8 = pnand %p2801_p6, %p453_p7 }
  0x53   : > { %s460_s28 = sand.u32 (!%p454_p8), 1, %s3580_s12   ;;  %p2803_p9 = scmp.ne.s32.totalorder (!%p454_p8), %s3588_s14, 0 }
  0x54   : > { %457 = sbr.rel (%p454_p8) target bundleno = 624 (0x270), region = 51  ;;  %s2802_s29 = sshll.u32 (!%p454_p8), %s460_s28, 10 }
  0x55   : > { %s3925_s30 = scalar_lea.vmem (!%p454_p8), [#allocation3], %s2802_s29 }
  0x59   : > { %515 = sbr.rel (%p2803_p9) target bundleno = 111 (0x6f), region = 59 }
  0x5e   : > { %v3598_v0 = vmov 0.0  }
  0x5f   : > { %516 = vst [vmem:[#allocation2 + $0xb0] sm:$0xff] %v3598_v0  ;;  %517 = vst [vmem:[#allocation2] sm:$0xff] %v3598_v0 }
  0x60   : > { %518 = vst [vmem:[#allocation2 + $0xd8] sm:$0xff] %v3598_v0  ;;  %519 = vst [vmem:[#allocation2 + $0x18] sm:$0xff] %v3598_v0 }
  0x61   : > { %520 = vst [vmem:[#allocation2 + $0x50] sm:$0xff] %v3598_v0  ;;  %521 = vst [vmem:[#allocation2 + $0x68] sm:$0xff] %v3598_v0 }
  0x62   : > { %522 = vst [vmem:[#allocation2 + $0x30] sm:$0xff] %v3598_v0  ;;  %523 = vst [vmem:[#allocation2 + $0x48] sm:$0xff] %v3598_v0 }
  0x63   : > { %524 = vst [vmem:[#allocation2 + $0x80] sm:$0xff] %v3598_v0  ;;  %525 = vst [vmem:[#allocation2 + $0x88] sm:$0xff] %v3598_v0 }
  0x64   : > { %526 = vst [vmem:[#allocation2 + $0xe8] sm:$0xff] %v3598_v0  ;;  %527 = vst [vmem:[#allocation2 + $0xb8] sm:$0xff] %v3598_v0 }
  0x65   : > { %528 = vst [vmem:[#allocation2 + $0x60] sm:$0xff] %v3598_v0  ;;  %529 = vst [vmem:[#allocation2 + $0xf0] sm:$0xff] %v3598_v0 }
  0x66   : > { %530 = vst [vmem:[#allocation2 + $0x8] sm:$0xff] %v3598_v0  ;;  %531 = vst [vmem:[#allocation2 + $0x78] sm:$0xff] %v3598_v0 }
  0x67   : > { %532 = vst [vmem:[#allocation2 + $0x38] sm:$0xff] %v3598_v0  ;;  %533 = vst [vmem:[#allocation2 + $0x58] sm:$0xff] %v3598_v0 }
  0x68   : > { %534 = vst [vmem:[#allocation2 + $0x40] sm:$0xff] %v3598_v0  ;;  %535 = vst [vmem:[#allocation2 + $0xc8] sm:$0xff] %v3598_v0 }
  0x69   : > { %536 = vst [vmem:[#allocation2 + $0xe0] sm:$0xff] %v3598_v0  ;;  %537 = vst [vmem:[#allocation2 + $0x90] sm:$0xff] %v3598_v0 }
  0x6a   : > { %538 = vst [vmem:[#allocation2 + $0x70] sm:$0xff] %v3598_v0  ;;  %539 = vst [vmem:[#allocation2 + $0xc0] sm:$0xff] %v3598_v0 }
  0x6b   : > { %540 = vst [vmem:[#allocation2 + $0xa8] sm:$0xff] %v3598_v0  ;;  %541 = vst [vmem:[#allocation2 + $0xd0] sm:$0xff] %v3598_v0 }
  0x6c   : > { %542 = vst [vmem:[#allocation2 + $0x10] sm:$0xff] %v3598_v0  ;;  %543 = vst [vmem:[#allocation2 + $0x28] sm:$0xff] %v3598_v0 }
  0x6d   : > { %544 = vst [vmem:[#allocation2 + $0xa0] sm:$0xff] %v3598_v0  ;;  %545 = vst [vmem:[#allocation2 + $0xf8] sm:$0xff] %v3598_v0 }
  0x6e   : > { %546 = vst [vmem:[#allocation2 + $0x20] sm:$0xff] %v3598_v0  ;;  %547 = vst [vmem:[#allocation2 + $0x98] sm:$0xff] %v3598_v0 }
  0x6f PF: > { %s2804_s4 = sshll.u32 %s3588_s14, 10  ;;  %v3930_v1 = vld [vmem:[%s3925_s30] sm:$0xff]  ;;  %v3936_v3 = vld [vmem:[%s3925_s30 + $0x8] sm:$0xff]  ;;  %p2998_p10 = scmp.ne.s32.totalorder %s3588_s14, 1 }
  0x70   : > { %v3933_v2 = vld [vmem:[%s3925_s30 + $0x20] sm:$0xff]  ;;  %s709_s5 = sshra.s32 %s2804_s4, 3  ;;  %v3941_v5 = vld [vmem:[%s3925_s30 + $0x28] sm:$0xff] }
  0x71   : > { %v2807_v4 = vcombine.high %v3930_v1, %v3933_v2  ;;  %s2805_s6 = sshll.u32 %s709_s5, 2  ;;  %v2809_v6 = vcombine.high %v3936_v3, %v3941_v5  ;;  %v589_v36 = vld [vmem:[%s3925_s30 + $0x40] sm:$0xff]  ;;  %v590_v39 = vld [vmem:[%s3925_s30 + $0x48] sm:$0xff]  ;;  %v2806_v43 = vcombine.low %v3930_v1, %v3933_v2  ;;  %v2808_v44 = vcombine.low %v3936_v3, %v3941_v5 }
  0x72   : > { %s3948_s9 = scalar_lea.vmem %s4388_s1, %s2805_s6  ;;  %v593_v37 = vld [vmem:[%s3925_s30 + $0x60] sm:$0xff]  ;;  %v594_v40 = vld [vmem:[%s3925_s30 + $0x68] sm:$0xff] }
  0x73   : > { %1897 = vmatprep.mubr.bf16.mxu0 %v2807_v4  ;;  %v3494_v7 = vld [vmem:[%s3948_s9 + $0x78] sm:$0xff]   ;;  %2058 = vmatprep.mubr.bf16.mxu1 %v2809_v6  ;;  %v3498_v11 = vld [vmem:[%s3948_s9 + $0x70] sm:$0xff]   ;;  %v3502_v15 = vld [vmem:[%s3948_s9 + $0x68] sm:$0xff]   ;;  %v2815_v47 = vcombine.high %v589_v36, %v593_v37  ;;  %v2817_v49 = vcombine.high %v590_v39, %v594_v40  ;;  %v2814_v58 = vcombine.low %v589_v36, %v593_v37 }
  0x74   : > { %v3495_v8 = vld [vmem:[%s3948_s9 + $0xf8] sm:$0xff]   ;;  %3005 = vmatprep.subr.bf16.mxu0 %v3494_v7  ;;  %v3499_v12 = vld [vmem:[%s3948_s9 + $0xf0] sm:$0xff]   ;;  %v3503_v16 = vld [vmem:[%s3948_s9 + $0xe8] sm:$0xff]   ;;  %v2816_v60 = vcombine.low %v590_v39, %v594_v40 }
  0x75   : > { %v3496_v9 = vld [vmem:[%s3948_s9 + $0x38] sm:$0xff]   ;;  %3117 = vmatprep.subr.bf16.mxu1 %v3495_v8  ;;  %v3500_v13 = vld [vmem:[%s3948_s9 + $0x30] sm:$0xff]   ;;  %v3504_v17 = vld [vmem:[%s3948_s9 + $0x28] sm:$0xff]  }
  0x76   : > { %v3497_v10 = vld [vmem:[%s3948_s9 + $0xb8] sm:$0xff]   ;;  %3006 = vmatpush3.bf16.msra.mxu0 %v3496_v9  ;;  %v3501_v14 = vld [vmem:[%s3948_s9 + $0xb0] sm:$0xff]   ;;  %v3505_v18 = vld [vmem:[%s3948_s9 + $0xa8] sm:$0xff]  }
  0x77   : > { %3118 = vmatpush3.bf16.msra.mxu1 %v3497_v10  ;;  %3007 = vmatprep.subr.bf16.mxu0 %v3498_v11  ;;  %v3506_v19 = vld [vmem:[%s3948_s9 + $0x60] sm:$0xff]   ;;  %v3510_v23 = vld [vmem:[%s3948_s9 + $0x58] sm:$0xff]   ;;  %v3514_v27 = vld [vmem:[%s3948_s9 + $0x50] sm:$0xff]  }
  0x78   : > { %3119 = vmatprep.subr.bf16.mxu1 %v3499_v12  ;;  %v3507_v20 = vld [vmem:[%s3948_s9 + $0xe0] sm:$0xff]   ;;  %v3511_v24 = vld [vmem:[%s3948_s9 + $0xd8] sm:$0xff]   ;;  %v3515_v28 = vld [vmem:[%s3948_s9 + $0xd0] sm:$0xff]  }
  0x79   : > { %v3508_v21 = vld [vmem:[%s3948_s9 + $0x20] sm:$0xff]   ;;  %v3512_v25 = vld [vmem:[%s3948_s9 + $0x18] sm:$0xff]   ;;  %v3516_v29 = vld [vmem:[%s3948_s9 + $0x10] sm:$0xff]  }
  0x7a   : > { %3008 = vmatpush3.bf16.msra.mxu0 %v3500_v13  ;;  %v3509_v22 = vld [vmem:[%s3948_s9 + $0xa0] sm:$0xff]   ;;  %v3513_v26 = vld [vmem:[%s3948_s9 + $0x98] sm:$0xff]   ;;  %v3517_v30 = vld [vmem:[%s3948_s9 + $0x90] sm:$0xff]  }
  0x7b   : > { %3120 = vmatpush3.bf16.msra.mxu1 %v3501_v14  ;;  %3009 = vmatprep.subr.bf16.mxu0 %v3502_v15  ;;  %v3518_v31 = vld [vmem:[%s3948_s9 + $0x48] sm:$0xff]   ;;  %v3522_v35 = vld [vmem:[%s3948_s9 + $0x40] sm:$0xff]   ;;  %v3526_v45 = vld [vmem:[%s3948_s9 + $0x178] sm:$0xff]  }
  0x7c   : > { %3121 = vmatprep.subr.bf16.mxu1 %v3503_v16  ;;  %v3519_v32 = vld [vmem:[%s3948_s9 + $0xc8] sm:$0xff]   ;;  %v3523_v38 = vld [vmem:[%s3948_s9 + $0xc0] sm:$0xff]   ;;  %v3527_v46 = vld [vmem:[%s3948_s9 + $0x138] sm:$0xff]  }
  0x7d   : > { %v3520_v33 = vld [vmem:[%s3948_s9 + $0x8] sm:$0xff]   ;;  %v3524_v41 = vld [vmem:[%s3948_s9] sm:$0xff]   ;;  %v3528_v48 = vld [vmem:[%s3948_s9 + $0x1f8] sm:$0xff]  }
  0x7e   : > { %3010 = vmatpush3.bf16.msra.mxu0 %v3504_v17  ;;  %v3521_v34 = vld [vmem:[%s3948_s9 + $0x88] sm:$0xff]   ;;  %v3525_v42 = vld [vmem:[%s3948_s9 + $0x80] sm:$0xff]   ;;  %v3529_v50 = vld [vmem:[%s3948_s9 + $0x1b8] sm:$0xff]  }
  0x7f   : > { %3122 = vmatpush3.bf16.msra.mxu1 %v3505_v18  ;;  %3011 = vmatprep.subr.bf16.mxu0 %v3506_v19  ;;  %v597_v51 = vld [vmem:[%s3925_s30 + $0x80] sm:$0xff]  ;;  %v598_v53 = vld [vmem:[%s3925_s30 + $0x88] sm:$0xff]  ;;  %v3530_v55 = vld [vmem:[%s3948_s9 + $0x170] sm:$0xff]  }
  0x80   : > { %3123 = vmatprep.subr.bf16.mxu1 %v3507_v20  ;;  %v601_v52 = vld [vmem:[%s3925_s30 + $0xa0] sm:$0xff]  ;;  %v602_v54 = vld [vmem:[%s3925_s30 + $0xa8] sm:$0xff]  ;;  %v3531_v56 = vld [vmem:[%s3948_s9 + $0x130] sm:$0xff]  }
  0x81   : > { %v3532_v57 = vld [vmem:[%s3948_s9 + $0x1f0] sm:$0xff]   ;;  %v2823_v61 = vcombine.high %v597_v51, %v601_v52  ;;  %v2825_v62 = vcombine.high %v598_v53, %v602_v54  ;;  %v605_v63 = vld [vmem:[%s3925_s30 + $0xc0] sm:$0xff]  ;;  %v3534_v1 = vld [vmem:[%s3948_s9 + $0x168] sm:$0xff]   ;;  %v2822_v7 = vcombine.low %v597_v51, %v601_v52  ;;  %v2824_v8 = vcombine.low %v598_v53, %v602_v54 }
  0x82   : > { %3012 = vmatpush3.bf16.msra.mxu0 %v3508_v21  ;;  %v3533_v59 = vld [vmem:[%s3948_s9 + $0x1b0] sm:$0xff]   ;;  %v609_v0 = vld [vmem:[%s3925_s30 + $0xe0] sm:$0xff]  ;;  %v606_v2 = vld [vmem:[%s3925_s30 + $0xc8] sm:$0xff] }
  0x83   : > { %3124 = vmatpush3.bf16.msra.mxu1 %v3509_v22  ;;  %3013 = vmatprep.subr.bf16.mxu0 %v3510_v23  ;;  %v3535_v3 = vld [vmem:[%s3948_s9 + $0x128] sm:$0xff]   ;;  %v2831_v9 = vcombine.high %v605_v63, %v609_v0  ;;  %v3538_v11 = vld [vmem:[%s3948_s9 + $0x160] sm:$0xff]   ;;  %v2830_v19 = vcombine.low %v605_v63, %v609_v0  ;;  %v3542_v22 = vld [vmem:[%s3948_s9 + $0x158] sm:$0xff]  }
  0x84   : > { %3125 = vmatprep.subr.bf16.mxu1 %v3511_v24  ;;  %v3536_v4 = vld [vmem:[%s3948_s9 + $0x1e8] sm:$0xff]   ;;  %v3539_v12 = vld [vmem:[%s3948_s9 + $0x120] sm:$0xff]   ;;  %v3543_v24 = vld [vmem:[%s3948_s9 + $0x118] sm:$0xff]  }
  0x85   : > { %v610_v5 = vld [vmem:[%s3925_s30 + $0xe8] sm:$0xff]  ;;  %v3540_v13 = vld [vmem:[%s3948_s9 + $0x1e0] sm:$0xff]   ;;  %v3548_v37 = vld [vmem:[%s3948_s9 + $0x1d0] sm:$0xff]  }
  0x86   : > { %3014 = vmatpush3.bf16.msra.mxu0 %v3512_v25  ;;  %v3537_v6 = vld [vmem:[%s3948_s9 + $0x1a8] sm:$0xff]   ;;  %v2833_v10 = vcombine.high %v606_v2, %v610_v5  ;;  %v613_v14 = vld [vmem:[%s3925_s30 + $0x100] sm:$0xff]  ;;  %v2832_v20 = vcombine.low %v606_v2, %v610_v5  ;;  %v3544_v25 = vld [vmem:[%s3948_s9 + $0x1d8] sm:$0xff]  }
  0x87   : > { %3126 = vmatpush3.bf16.msra.mxu1 %v3513_v26  ;;  %3015 = vmatprep.subr.bf16.mxu0 %v3514_v27  ;;  %v617_v15 = vld [vmem:[%s3925_s30 + $0x120] sm:$0xff]  ;;  %v614_v17 = vld [vmem:[%s3925_s30 + $0x108] sm:$0xff]  ;;  %v3545_v26 = vld [vmem:[%s3948_s9 + $0x198] sm:$0xff]  }
  0x88   : > { %3127 = vmatprep.subr.bf16.mxu1 %v3515_v28  ;;  %v3541_v16 = vld [vmem:[%s3948_s9 + $0x1a0] sm:$0xff]   ;;  %v618_v18 = vld [vmem:[%s3925_s30 + $0x128] sm:$0xff]  ;;  %v2839_v21 = vcombine.high %v613_v14, %v617_v15 }
  0x89   : > { %v2841_v23 = vcombine.high %v614_v17, %v618_v18  ;;  %v621_v27 = vld [vmem:[%s3925_s30 + $0x140] sm:$0xff]  ;;  %v638_v53 = vld [vmem:[%s3925_s30 + $0x1c8] sm:$0xff] }
  0x8a   : > { %3016 = vmatpush3.bf16.msra.mxu0 %v3516_v29  ;;  %v625_v28 = vld [vmem:[%s3925_s30 + $0x160] sm:$0xff]  ;;  %v622_v29 = vld [vmem:[%s3925_s30 + $0x148] sm:$0xff] }
  0x8b   : > { %3128 = vmatpush3.bf16.msra.mxu1 %v3517_v30  ;;  %3017 = vmatprep.subr.bf16.mxu0 %v3518_v31  ;;  %v626_v30 = vld [vmem:[%s3925_s30 + $0x168] sm:$0xff]  ;;  %v2838_v31 = vcombine.low %v613_v14, %v617_v15  ;;  %v629_v39 = vld [vmem:[%s3925_s30 + $0x180] sm:$0xff] }
  0x8c   : > { %3129 = vmatprep.subr.bf16.mxu1 %v3519_v32  ;;  %v3546_v32 = vld [vmem:[%s3948_s9 + $0x150] sm:$0xff]   ;;  %v2849_v36 = vcombine.high %v622_v29, %v626_v30  ;;  %v633_v40 = vld [vmem:[%s3925_s30 + $0x1a0] sm:$0xff]  ;;  %v642_v54 = vld [vmem:[%s3925_s30 + $0x1e8] sm:$0xff] }
  0x8d   : > { %v637_v51 = vld [vmem:[%s3925_s30 + $0x1c0] sm:$0xff]  ;;  %v650_v2 = vld [vmem:[%s3925_s30 + $0x228] sm:$0xff] }
  0x8e   : > { %3018 = vmatpush3.bf16.msra.mxu0 %v3520_v33  ;;  %v2840_v33 = vcombine.low %v614_v17, %v618_v18  ;;  %v641_v52 = vld [vmem:[%s3925_s30 + $0x1e0] sm:$0xff]  ;;  %v662_v17 = vld [vmem:[%s3925_s30 + $0x288] sm:$0xff] }
  0x8f   : > { %3130 = vmatpush3.bf16.msra.mxu1 %v3521_v34  ;;  %3019 = vmatprep.subr.bf16.mxu0 %v3522_v35  ;;  %v2847_v34 = vcombine.high %v621_v27, %v625_v28  ;;  %v3547_v35 = vld [vmem:[%s3948_s9 + $0x110] sm:$0xff]   ;;  %v645_v63 = vld [vmem:[%s3925_s30 + $0x200] sm:$0xff]  ;;  %v666_v18 = vld [vmem:[%s3925_s30 + $0x2a8] sm:$0xff] }
  0x90   : > { %3131 = vmatprep.subr.bf16.mxu1 %v3523_v38  ;;  %v3549_v38 = vld [vmem:[%s3948_s9 + $0x190] sm:$0xff]   ;;  %v649_v0 = vld [vmem:[%s3925_s30 + $0x220] sm:$0xff] }
  0x91   : > { %v2871_v5 = vcombine.high %v645_v63, %v649_v0  ;;  %v661_v15 = vld [vmem:[%s3925_s30 + $0x280] sm:$0xff] }
  0x92   : > { %3020 = vmatpush3.bf16.msra.mxu0 %v3524_v41  ;;  %v630_v41 = vld [vmem:[%s3925_s30 + $0x188] sm:$0xff] }
  0x93   : > { %3132 = vmatpush3.bf16.msra.mxu1 %v3525_v42  ;;  %3229 = vmatprep.subr.bf16.mxu0 %v3526_v45  ;;  %v634_v42 = vld [vmem:[%s3925_s30 + $0x1a8] sm:$0xff] }
  0x94   : > { %3341 = vmatprep.subr.bf16.mxu1 %v3528_v48  ;;  %v3551_v45 = vld [vmem:[%s3948_s9 + $0x108] sm:$0xff]  }
  0x95   : > { %1898 = vmatmul.mubr.bf16.vlgmr.msra.gmra.mxu0 %v2806_v43  ;;  %v3550_v43 = vld [vmem:[%s3948_s9 + $0x148] sm:$0xff]  }
  0x96   : > { %2059 = vmatmul.mubr.bf16.vlgmr.msra.gmra.mxu1 %v2808_v44  ;;  %3230 = vmatpush3.bf16.msra.mxu0 %v3527_v46  ;;  %v2846_v44 = vcombine.low %v621_v27, %v625_v28  ;;  %v2848_v46 = vcombine.low %v622_v29, %v626_v30  ;;  %v3552_v48 = vld [vmem:[%s3948_s9 + $0x1c8] sm:$0xff]   ;;  %v2888_v28 = vcombine.low %v662_v17, %v666_v18 }
  0x97   : > { %1905 = vmatprep.mubr.bf16.mxu0 %v2815_v47  ;;  %3342 = vmatpush3.bf16.msra.mxu1 %v3529_v50  ;;  %v2855_v47 = vcombine.high %v629_v39, %v633_v40  ;;  %v3553_v50 = vld [vmem:[%s3948_s9 + $0x188] sm:$0xff]  }
  0x98   : > { %2066 = vmatprep.mubr.bf16.mxu1 %v2817_v49  ;;  %3231 = vmatprep.subr.bf16.mxu0 %v3530_v55  ;;  %v2857_v49 = vcombine.high %v630_v41, %v634_v42  ;;  %v3554_v55 = vld [vmem:[%s3948_s9 + $0x140] sm:$0xff]  }
  0x99   : > { %3343 = vmatprep.subr.bf16.mxu1 %v3532_v57  ;;  %v3556_v57 = vld [vmem:[%s3948_s9 + $0x1c0] sm:$0xff]  }
  0x9a   : > { %3232 = vmatpush3.bf16.msra.mxu0 %v3531_v56  ;;  %v3555_v56 = vld [vmem:[%s3948_s9 + $0x100] sm:$0xff]  }
  0x9b   : > { %3344 = vmatpush3.bf16.msra.mxu1 %v3533_v59  ;;  %3233 = vmatprep.subr.bf16.mxu0 %v3534_v1  ;;  %v3557_v59 = vld [vmem:[%s3948_s9 + $0x180] sm:$0xff]   ;;  %v646_v1 = vld [vmem:[%s3925_s30 + $0x208] sm:$0xff] }
  0x9c   : > { %3345 = vmatprep.subr.bf16.mxu1 %v3536_v4  ;;  %v2864_v4 = vcombine.low %v638_v53, %v642_v54 }
  0x9d   : > { %1906 = vmatmul.mubr.bf16.gmra.mxu0 %v2814_v58  ;;  %v2854_v58 = vcombine.low %v629_v39, %v633_v40  ;;  %v685_v39 = vld [vmem:[%s3925_s30 + $0x340] sm:$0xff] }
  0x9e   : > { %2067 = vmatmul.mubr.bf16.gmra.mxu1 %v2816_v60  ;;  %1913 = vmatprep.mubr.bf16.mxu0 %v2823_v61  ;;  %v2856_v60 = vcombine.low %v630_v41, %v634_v42  ;;  %v2863_v61 = vcombine.high %v637_v51, %v641_v52  ;;  %v689_v40 = vld [vmem:[%s3925_s30 + $0x360] sm:$0xff]  ;;  %v686_v41 = vld [vmem:[%s3925_s30 + $0x348] sm:$0xff] }
  0x9f   : > { %2074 = vmatprep.mubr.bf16.mxu1 %v2825_v62  ;;  %3234 = vmatpush3.bf16.msra.mxu0 %v3535_v3  ;;  %v2865_v62 = vcombine.high %v638_v53, %v642_v54  ;;  %v2862_v3 = vcombine.low %v637_v51, %v641_v52  ;;  %v690_v42 = vld [vmem:[%s3925_s30 + $0x368] sm:$0xff]  ;;  %v2910_v51 = vcombine.low %v685_v39, %v689_v40 }
  0xa0   : > { %3346 = vmatpush3.bf16.msra.mxu1 %v3537_v6  ;;  %3235 = vmatprep.subr.bf16.mxu0 %v3538_v11  ;;  %v2873_v6 = vcombine.high %v646_v1, %v650_v2  ;;  %v2870_v11 = vcombine.low %v645_v63, %v649_v0  ;;  %v2912_v52 = vcombine.low %v686_v41, %v690_v42  ;;  %v583_v63 = vld [vmem:[%s3925_s30 + $0x10] sm:$0xff] }
  0xa1   : > { %3347 = vmatprep.subr.bf16.mxu1 %v3540_v13  ;;  %v587_v0 = vld [vmem:[%s3925_s30 + $0x30] sm:$0xff] }
  0xa3   : > { %3236 = vmatpush3.bf16.msra.mxu0 %v3539_v12  ;;  %v2872_v12 = vcombine.low %v646_v1, %v650_v2  ;;  %v584_v1 = vld [vmem:[%s3925_s30 + $0x18] sm:$0xff] }
  0xa4   : > { %3348 = vmatpush3.bf16.msra.mxu1 %v3541_v16  ;;  %3237 = vmatprep.subr.bf16.mxu0 %v3542_v22  ;;  %v665_v16 = vld [vmem:[%s3925_s30 + $0x2a0] sm:$0xff]  ;;  %v2889_v22 = vcombine.high %v662_v17, %v666_v18  ;;  %v588_v2 = vld [vmem:[%s3925_s30 + $0x38] sm:$0xff] }
  0xa5   : > { %1914 = vmatmul.mubr.bf16.gmra.mxu0 %v2822_v7  ;;  %3349 = vmatprep.subr.bf16.mxu1 %v3544_v25  ;;  %v653_v7 = vld [vmem:[%s3925_s30 + $0x240] sm:$0xff]  ;;  %v670_v25 = vld [vmem:[%s3925_s30 + $0x2c8] sm:$0xff]  ;;  %v2886_v27 = vcombine.low %v661_v15, %v665_v16  ;;  %v600_v17 = vld [vmem:[%s3925_s30 + $0x98] sm:$0xff] }
  0xa6   : > { %2075 = vmatmul.mubr.bf16.gmra.mxu1 %v2824_v8  ;;  %1921 = vmatprep.mubr.bf16.mxu0 %v2831_v9  ;;  %v657_v8 = vld [vmem:[%s3925_s30 + $0x260] sm:$0xff]  ;;  %v654_v9 = vld [vmem:[%s3925_s30 + $0x248] sm:$0xff]  ;;  %v604_v18 = vld [vmem:[%s3925_s30 + $0xb8] sm:$0xff] }
  0xa7   : > { %2082 = vmatprep.mubr.bf16.mxu1 %v2833_v10  ;;  %3238 = vmatpush3.bf16.msra.mxu0 %v3543_v24  ;;  %v658_v10 = vld [vmem:[%s3925_s30 + $0x268] sm:$0xff]  ;;  %v2879_v13 = vcombine.high %v653_v7, %v657_v8  ;;  %v673_v24 = vld [vmem:[%s3925_s30 + $0x2e0] sm:$0xff] }
  0xa8   : > { %3350 = vmatpush3.bf16.msra.mxu1 %v3545_v26  ;;  %3239 = vmatprep.subr.bf16.mxu0 %v3546_v32  ;;  %v2881_v14 = vcombine.high %v654_v9, %v658_v10  ;;  %v674_v26 = vld [vmem:[%s3925_s30 + $0x2e8] sm:$0xff]  ;;  %v681_v32 = vld [vmem:[%s3925_s30 + $0x320] sm:$0xff] }
  0xa9   : > { %3351 = vmatprep.subr.bf16.mxu1 %v3548_v37  ;;  %v2897_v30 = vcombine.high %v670_v25, %v674_v26 }
  0xab   : > { %3240 = vmatpush3.bf16.msra.mxu0 %v3547_v35 }
  0xac   : > { %3352 = vmatpush3.bf16.msra.mxu1 %v3549_v38  ;;  %3241 = vmatprep.subr.bf16.mxu0 %v3550_v43 }
  0xad   : > { %1922 = vmatmul.mubr.bf16.gmra.mxu0 %v2830_v19  ;;  %3353 = vmatprep.subr.bf16.mxu1 %v3552_v48  ;;  %v2878_v19 = vcombine.low %v653_v7, %v657_v8  ;;  %v697_v48 = vld [vmem:[%s3925_s30 + $0x3a0] sm:$0xff]  ;;  %v591_v7 = vld [vmem:[%s3925_s30 + $0x50] sm:$0xff] }
  0xae   : > { %2083 = vmatmul.mubr.bf16.gmra.mxu1 %v2832_v20  ;;  %1929 = vmatprep.mubr.bf16.mxu0 %v2839_v21  ;;  %v2880_v20 = vcombine.low %v654_v9, %v658_v10  ;;  %v2887_v21 = vcombine.high %v661_v15, %v665_v16  ;;  %v595_v8 = vld [vmem:[%s3925_s30 + $0x70] sm:$0xff]  ;;  %v592_v9 = vld [vmem:[%s3925_s30 + $0x58] sm:$0xff] }
  0xaf   : > { %2090 = vmatprep.mubr.bf16.mxu1 %v2841_v23  ;;  %3242 = vmatpush3.bf16.msra.mxu0 %v3551_v45  ;;  %v669_v23 = vld [vmem:[%s3925_s30 + $0x2c0] sm:$0xff]  ;;  %v2911_v45 = vcombine.high %v685_v39, %v689_v40  ;;  %v596_v10 = vld [vmem:[%s3925_s30 + $0x78] sm:$0xff]  ;;  %v599_v15 = vld [vmem:[%s3925_s30 + $0x90] sm:$0xff] }
  0xb0   : > { %3354 = vmatpush3.bf16.msra.mxu1 %v3553_v50  ;;  %3243 = vmatprep.subr.bf16.mxu0 %v3554_v55  ;;  %v2895_v29 = vcombine.high %v669_v23, %v673_v24  ;;  %v2894_v35 = vcombine.low %v669_v23, %v673_v24  ;;  %v698_v50 = vld [vmem:[%s3925_s30 + $0x3a8] sm:$0xff]  ;;  %v701_v55 = vld [vmem:[%s3925_s30 + $0x3c0] sm:$0xff]  ;;  %v603_v16 = vld [vmem:[%s3925_s30 + $0xb0] sm:$0xff] }
  0xb1   : > { %3355 = vmatprep.subr.bf16.mxu1 %v3556_v57  ;;  %v702_v57 = vld [vmem:[%s3925_s30 + $0x3c8] sm:$0xff]  ;;  %v607_v23 = vld [vmem:[%s3925_s30 + $0xd0] sm:$0xff] }
  0xb2   : > { %v611_v24 = vld [vmem:[%s3925_s30 + $0xf0] sm:$0xff] }
  0xb3   : > { %3244 = vmatpush3.bf16.msra.mxu0 %v3555_v56  ;;  %v705_v56 = vld [vmem:[%s3925_s30 + $0x3e0] sm:$0xff]  ;;  %v623_v39 = vld [vmem:[%s3925_s30 + $0x150] sm:$0xff] }
  0xb4   : > { %3356 = vmatpush3.bf16.msra.mxu1 %v3557_v59  ;;  %v627_v40 = vld [vmem:[%s3925_s30 + $0x170] sm:$0xff] }
  0xb5   : > { %1930 = vmatmul.mubr.bf16.gmra.mxu0 %v2838_v31  ;;  %v677_v31 = vld [vmem:[%s3925_s30 + $0x300] sm:$0xff] }
  0xb6   : > { %2091 = vmatmul.mubr.bf16.gmra.mxu1 %v2840_v33  ;;  %1937 = vmatprep.mubr.bf16.mxu0 %v2847_v34  ;;  %v678_v33 = vld [vmem:[%s3925_s30 + $0x308] sm:$0xff]  ;;  %v2903_v37 = vcombine.high %v677_v31, %v681_v32  ;;  %v2902_v43 = vcombine.low %v677_v31, %v681_v32  ;;  %v615_v31 = vld [vmem:[%s3925_s30 + $0x110] sm:$0xff] }
  0xb7   : > { %2098 = vmatprep.mubr.bf16.mxu1 %v2849_v36  ;;  %v682_v34 = vld [vmem:[%s3925_s30 + $0x328] sm:$0xff]  ;;  %v2896_v36 = vcombine.low %v670_v25, %v674_v26  ;;  %v608_v25 = vld [vmem:[%s3925_s30 + $0xd8] sm:$0xff]  ;;  %v619_v32 = vld [vmem:[%s3925_s30 + $0x130] sm:$0xff] }
  0xb8   : > { %v2905_v38 = vcombine.high %v678_v33, %v682_v34  ;;  %v612_v26 = vld [vmem:[%s3925_s30 + $0xf8] sm:$0xff] }
  0xbd   : > { %1938 = vmatmul.mubr.bf16.gmra.mxu0 %v2846_v44  ;;  %v2904_v44 = vcombine.low %v678_v33, %v682_v34  ;;  %v616_v33 = vld [vmem:[%s3925_s30 + $0x118] sm:$0xff] }
  0xbe   : > { %2099 = vmatmul.mubr.bf16.gmra.mxu1 %v2848_v46  ;;  %1945 = vmatprep.mubr.bf16.mxu0 %v2855_v47  ;;  %v2913_v46 = vcombine.high %v686_v41, %v690_v42  ;;  %v693_v47 = vld [vmem:[%s3925_s30 + $0x380] sm:$0xff]  ;;  %v620_v34 = vld [vmem:[%s3925_s30 + $0x138] sm:$0xff] }
  0xbf   : > { %2106 = vmatprep.mubr.bf16.mxu1 %v2857_v49  ;;  %v694_v49 = vld [vmem:[%s3925_s30 + $0x388] sm:$0xff]  ;;  %v2919_v53 = vcombine.high %v693_v47, %v697_v48  ;;  %v2918_v59 = vcombine.low %v693_v47, %v697_v48  ;;  %v624_v41 = vld [vmem:[%s3925_s30 + $0x158] sm:$0xff]  ;;  %v631_v47 = vld [vmem:[%s3925_s30 + $0x190] sm:$0xff] }
  0xc0   : > { %v2921_v54 = vcombine.high %v694_v49, %v698_v50  ;;  %v628_v42 = vld [vmem:[%s3925_s30 + $0x178] sm:$0xff]  ;;  %v635_v48 = vld [vmem:[%s3925_s30 + $0x1b0] sm:$0xff] }
  0xc5   : > { %1946 = vmatmul.mubr.bf16.gmra.mxu0 %v2854_v58  ;;  %v706_v58 = vld [vmem:[%s3925_s30 + $0x3e8] sm:$0xff] }
  0xc6   : > { %2107 = vmatmul.mubr.bf16.gmra.mxu1 %v2856_v60  ;;  %1953 = vmatprep.mubr.bf16.mxu0 %v2863_v61  ;;  %v2920_v60 = vcombine.low %v694_v49, %v698_v50  ;;  %v2927_v61 = vcombine.high %v701_v55, %v705_v56  ;;  %v632_v49 = vld [vmem:[%s3925_s30 + $0x198] sm:$0xff] }
  0xc7   : > { %2114 = vmatprep.mubr.bf16.mxu1 %v2865_v62  ;;  %v2929_v62 = vcombine.high %v702_v57, %v706_v58  ;;  %v636_v50 = vld [vmem:[%s3925_s30 + $0x1b8] sm:$0xff] }
  0xcd   : > { %1954 = vmatmul.mubr.bf16.gmra.mxu0 %v2862_v3  ;;  %v2926_v3 = vcombine.low %v701_v55, %v705_v56  ;;  %v639_v55 = vld [vmem:[%s3925_s30 + $0x1d0] sm:$0xff] }
  0xce   : > { %2115 = vmatmul.mubr.bf16.gmra.mxu1 %v2864_v4  ;;  %1961 = vmatprep.mubr.bf16.mxu0 %v2871_v5  ;;  %v2928_v4 = vcombine.low %v702_v57, %v706_v58  ;;  %v2811_v5 = vcombine.high %v583_v63, %v587_v0  ;;  %v643_v56 = vld [vmem:[%s3925_s30 + $0x1f0] sm:$0xff]  ;;  %v640_v57 = vld [vmem:[%s3925_s30 + $0x1d8] sm:$0xff] }
  0xcf   : > { %2122 = vmatprep.mubr.bf16.mxu1 %v2873_v6  ;;  %v2813_v6 = vcombine.high %v584_v1, %v588_v2  ;;  %v644_v58 = vld [vmem:[%s3925_s30 + $0x1f8] sm:$0xff] }
  0xd5   : > { %1962 = vmatmul.mubr.bf16.gmra.mxu0 %v2870_v11  ;;  %v2810_v11 = vcombine.low %v583_v63, %v587_v0  ;;  %v647_v63 = vld [vmem:[%s3925_s30 + $0x210] sm:$0xff] }
  0xd6   : > { %2123 = vmatmul.mubr.bf16.gmra.mxu1 %v2872_v12  ;;  %1969 = vmatprep.mubr.bf16.mxu0 %v2879_v13  ;;  %v2812_v12 = vcombine.low %v584_v1, %v588_v2  ;;  %v2819_v13 = vcombine.high %v591_v7, %v595_v8  ;;  %v651_v0 = vld [vmem:[%s3925_s30 + $0x230] sm:$0xff]  ;;  %v648_v1 = vld [vmem:[%s3925_s30 + $0x218] sm:$0xff] }
  0xd7   : > { %2130 = vmatprep.mubr.bf16.mxu1 %v2881_v14  ;;  %v2821_v14 = vcombine.high %v592_v9, %v596_v10  ;;  %v652_v2 = vld [vmem:[%s3925_s30 + $0x238] sm:$0xff] }
  0xdd   : > { %1970 = vmatmul.mubr.bf16.gmra.mxu0 %v2878_v19  ;;  %v2818_v19 = vcombine.low %v591_v7, %v595_v8  ;;  %v655_v7 = vld [vmem:[%s3925_s30 + $0x250] sm:$0xff] }
  0xde   : > { %2131 = vmatmul.mubr.bf16.gmra.mxu1 %v2880_v20  ;;  %1977 = vmatprep.mubr.bf16.mxu0 %v2887_v21  ;;  %v2820_v20 = vcombine.low %v592_v9, %v596_v10  ;;  %v2827_v21 = vcombine.high %v599_v15, %v603_v16  ;;  %v659_v8 = vld [vmem:[%s3925_s30 + $0x270] sm:$0xff]  ;;  %v656_v9 = vld [vmem:[%s3925_s30 + $0x258] sm:$0xff] }
  0xdf   : > { %2138 = vmatprep.mubr.bf16.mxu1 %v2889_v22  ;;  %v2829_v22 = vcombine.high %v600_v17, %v604_v18  ;;  %v660_v10 = vld [vmem:[%s3925_s30 + $0x278] sm:$0xff] }
  0xe5   : > { %1978 = vmatmul.mubr.bf16.gmra.mxu0 %v2886_v27  ;;  %v2826_v27 = vcombine.low %v599_v15, %v603_v16 }
  0xe6   : > { %2139 = vmatmul.mubr.bf16.gmra.mxu1 %v2888_v28  ;;  %1985 = vmatprep.mubr.bf16.mxu0 %v2895_v29  ;;  %v2828_v28 = vcombine.low %v600_v17, %v604_v18  ;;  %v2835_v29 = vcombine.high %v607_v23, %v611_v24  ;;  %v663_v18 = vld [vmem:[%s3925_s30 + $0x290] sm:$0xff] }
  0xe7   : > { %2146 = vmatprep.mubr.bf16.mxu1 %v2897_v30  ;;  %v2837_v30 = vcombine.high %v608_v25, %v612_v26 }
  0xed   : > { %1986 = vmatmul.mubr.bf16.gmra.mxu0 %v2894_v35  ;;  %v2834_v35 = vcombine.low %v607_v23, %v611_v24  ;;  %v668_v23 = vld [vmem:[%s3925_s30 + $0x2b8] sm:$0xff] }
  0xee   : > { %2147 = vmatmul.mubr.bf16.gmra.mxu1 %v2896_v36  ;;  %1993 = vmatprep.mubr.bf16.mxu0 %v2903_v37  ;;  %v2836_v36 = vcombine.low %v608_v25, %v612_v26  ;;  %v2843_v37 = vcombine.high %v615_v31, %v619_v32  ;;  %v2882_v26 = vcombine.low %v655_v7, %v659_v8 }
  0xef   : > { %2154 = vmatprep.mubr.bf16.mxu1 %v2905_v38  ;;  %v2845_v38 = vcombine.high %v616_v33, %v620_v34 }
  0xf5   : > { %1994 = vmatmul.mubr.bf16.gmra.mxu0 %v2902_v43  ;;  %v2842_v43 = vcombine.low %v615_v31, %v619_v32 }
  0xf6   : > { %2155 = vmatmul.mubr.bf16.gmra.mxu1 %v2904_v44  ;;  %2001 = vmatprep.mubr.bf16.mxu0 %v2911_v45  ;;  %v2844_v44 = vcombine.low %v616_v33, %v620_v34  ;;  %v2851_v45 = vcombine.high %v623_v39, %v627_v40 }
  0xf7   : > { %2162 = vmatprep.mubr.bf16.mxu1 %v2913_v46  ;;  %v2853_v46 = vcombine.high %v624_v41, %v628_v42 }
  0xfd   : > { %2002 = vmatmul.mubr.bf16.gmra.mxu0 %v2910_v51  ;;  %v2850_v51 = vcombine.low %v623_v39, %v627_v40  ;;  %v671_v40 = vld [vmem:[%s3925_s30 + $0x2d0] sm:$0xff] }
  0xfe   : > { %2163 = vmatmul.mubr.bf16.gmra.mxu1 %v2912_v52  ;;  %2009 = vmatprep.mubr.bf16.mxu0 %v2919_v53  ;;  %v2852_v52 = vcombine.low %v624_v41, %v628_v42  ;;  %v2859_v53 = vcombine.high %v631_v47, %v635_v48  ;;  %v675_v41 = vld [vmem:[%s3925_s30 + $0x2f0] sm:$0xff] }
  0xff   : > { %2170 = vmatprep.mubr.bf16.mxu1 %v2921_v54  ;;  %v2861_v54 = vcombine.high %v632_v49, %v636_v50 }
 0x105   : > { %2010 = vmatmul.mubr.bf16.gmra.mxu0 %v2918_v59  ;;  %v2858_v59 = vcombine.low %v631_v47, %v635_v48 }
 0x106   : > { %2171 = vmatmul.mubr.bf16.gmra.mxu1 %v2920_v60  ;;  %2017 = vmatprep.mubr.bf16.mxu0 %v2927_v61  ;;  %v2860_v60 = vcombine.low %v632_v49, %v636_v50  ;;  %v2867_v61 = vcombine.high %v639_v55, %v643_v56 }
 0x107   : > { %2178 = vmatprep.mubr.bf16.mxu1 %v2929_v62  ;;  %v2869_v62 = vcombine.high %v640_v57, %v644_v58 }
 0x10d   : > { %2018 = vmatmul.mubr.bf16.gmra.mxu0 %v2926_v3  ;;  %v2866_v3 = vcombine.low %v639_v55, %v643_v56 }
 0x10e   : > { %2179 = vmatmul.mubr.bf16.gmra.mxu1 %v2928_v4  ;;  %2219 = vmatprep.mubr.bf16.mxu0 %v2811_v5  ;;  %v2868_v4 = vcombine.low %v640_v57, %v644_v58  ;;  %v2875_v5 = vcombine.high %v647_v63, %v651_v0 }
 0x10f   : > { %2380 = vmatprep.mubr.bf16.mxu1 %v2813_v6  ;;  %v2877_v6 = vcombine.high %v648_v1, %v652_v2 }
 0x115   : > { %2220 = vmatmul.mubr.bf16.vlgmr.msra.gmra.mxu0 %v2810_v11  ;;  %v2874_v11 = vcombine.low %v647_v63, %v651_v0  ;;  %v683_v63 = vld [vmem:[%s3925_s30 + $0x330] sm:$0xff] }
 0x116   : > { %2381 = vmatmul.mubr.bf16.vlgmr.msra.gmra.mxu1 %v2812_v12  ;;  %2227 = vmatprep.mubr.bf16.mxu0 %v2819_v13  ;;  %v2876_v12 = vcombine.low %v648_v1, %v652_v2  ;;  %v2883_v13 = vcombine.high %v655_v7, %v659_v8  ;;  %v680_v2 = vld [vmem:[%s3925_s30 + $0x318] sm:$0xff] }
 0x117   : > { %2388 = vmatprep.mubr.bf16.mxu1 %v2821_v14  ;;  %v2885_v14 = vcombine.high %v656_v9, %v660_v10 }
 0x11d   : > { %2228 = vmatmul.mubr.bf16.gmra.mxu0 %v2818_v19  ;;  %v667_v19 = vld [vmem:[%s3925_s30 + $0x2b0] sm:$0xff] }
 0x11e   : > { %2389 = vmatmul.mubr.bf16.gmra.mxu1 %v2820_v20  ;;  %2235 = vmatprep.mubr.bf16.mxu0 %v2827_v21  ;;  %v2890_v48 = vcombine.low %v663_v18, %v667_v19 }
 0x11f   : > { %2396 = vmatprep.mubr.bf16.mxu1 %v2829_v22  ;;  %v664_v22 = vld [vmem:[%s3925_s30 + $0x298] sm:$0xff] }
 0x120   : > { %v2893_v32 = vcombine.high %v664_v22, %v668_v23  ;;  %v2892_v50 = vcombine.low %v664_v22, %v668_v23 }
 0x125   : > { %2236 = vmatmul.mubr.bf16.gmra.mxu0 %v2826_v27 }
 0x126   : > { %2397 = vmatmul.mubr.bf16.gmra.mxu1 %v2828_v28  ;;  %2243 = vmatprep.mubr.bf16.mxu0 %v2835_v29  ;;  %v2884_v28 = vcombine.low %v656_v9, %v660_v10  ;;  %v2891_v29 = vcombine.high %v663_v18, %v667_v19 }
 0x127   : > { %2404 = vmatprep.mubr.bf16.mxu1 %v2837_v30 }
 0x12d   : > { %2244 = vmatmul.mubr.bf16.gmra.mxu0 %v2834_v35 }
 0x12e   : > { %2405 = vmatmul.mubr.bf16.gmra.mxu1 %v2836_v36  ;;  %2251 = vmatprep.mubr.bf16.mxu0 %v2843_v37 }
 0x12f   : > { %2412 = vmatprep.mubr.bf16.mxu1 %v2845_v38 }
 0x135   : > { %2252 = vmatmul.mubr.bf16.gmra.mxu0 %v2842_v43 }
 0x136   : > { %2413 = vmatmul.mubr.bf16.gmra.mxu1 %v2844_v44  ;;  %2259 = vmatprep.mubr.bf16.mxu0 %v2851_v45  ;;  %v672_v44 = vld [vmem:[%s3925_s30 + $0x2d8] sm:$0xff] }
 0x137   : > { %2420 = vmatprep.mubr.bf16.mxu1 %v2853_v46  ;;  %v676_v45 = vld [vmem:[%s3925_s30 + $0x2f8] sm:$0xff] }
 0x138   : > { %v2900_v8 = vcombine.low %v672_v44, %v676_v45 }
 0x13d   : > { %2260 = vmatmul.mubr.bf16.gmra.mxu0 %v2850_v51  ;;  %v2899_v51 = vcombine.high %v671_v40, %v675_v41 }
 0x13e   : > { %2421 = vmatmul.mubr.bf16.gmra.mxu1 %v2852_v52  ;;  %2267 = vmatprep.mubr.bf16.mxu0 %v2859_v53 }
 0x13f   : > { %2428 = vmatprep.mubr.bf16.mxu1 %v2861_v54  ;;  %v2901_v54 = vcombine.high %v672_v44, %v676_v45  ;;  %v695_v44 = vld [vmem:[%s3925_s30 + $0x390] sm:$0xff] }
 0x140   : > { %v699_v45 = vld [vmem:[%s3925_s30 + $0x3b0] sm:$0xff] }
 0x145   : > { %2268 = vmatmul.mubr.bf16.gmra.mxu0 %v2858_v59 }
 0x146   : > { %2429 = vmatmul.mubr.bf16.gmra.mxu1 %v2860_v60  ;;  %2275 = vmatprep.mubr.bf16.mxu0 %v2867_v61 }
 0x147   : > { %2436 = vmatprep.mubr.bf16.mxu1 %v2869_v62  ;;  %v679_v62 = vld [vmem:[%s3925_s30 + $0x310] sm:$0xff] }
 0x148   : > { %v2907_v9 = vcombine.high %v679_v62, %v683_v63 }
 0x14d   : > { %2276 = vmatmul.mubr.bf16.gmra.mxu0 %v2866_v3  ;;  %v684_v3 = vld [vmem:[%s3925_s30 + $0x338] sm:$0xff] }
 0x14e   : > { %2437 = vmatmul.mubr.bf16.gmra.mxu1 %v2868_v4  ;;  %2283 = vmatprep.mubr.bf16.mxu0 %v2875_v5 }
 0x14f   : > { %2444 = vmatprep.mubr.bf16.mxu1 %v2877_v6  ;;  %v2898_v6 = vcombine.low %v671_v40, %v675_v41 }
 0x155   : > { %v3021_v15 = vpop.f32.mrf.mxu0  ;;  %2284 = vmatmul.mubr.bf16.gmra.mxu0 %v2874_v11 }
 0x156   : > { %v3133_v16 = vpop.f32.mrf.mxu1  ;;  %2445 = vmatmul.mubr.bf16.gmra.mxu1 %v2876_v12  ;;  %2291 = vmatprep.mubr.bf16.mxu0 %v2883_v13  ;;  %v2909_v12 = vcombine.high %v680_v2, %v684_v3 }
 0x157   : > { %v3022_v17 = vpop.f32.mrf.mxu0  ;;  %2452 = vmatprep.mubr.bf16.mxu1 %v2885_v14 }
 0x158   : > { %v3023_v20 = vadd.f32 %v3022_v17, %v3021_v15  ;;  %v3134_v21 = vpop.f32.mrf.mxu1 }
 0x159   : > { %v3135_v24 = vadd.f32 %v3134_v21, %v3133_v16  ;;  %v3024_v25 = vpop.f32.mrf.mxu0  ;;  %v691_v21 = vld [vmem:[%s3925_s30 + $0x370] sm:$0xff] }
 0x15a   : > { %v3136_v27 = vpop.f32.mrf.mxu1 }
 0x15b   : > { %v4122_v30 = vadd.f32 %v3135_v24, %v3023_v20  ;;  %v3025_v31 = vpop.f32.mrf.mxu0  ;;  %v687_v20 = vld [vmem:[%s3925_s30 + $0x350] sm:$0xff]  ;;  %v688_v24 = vld [vmem:[%s3925_s30 + $0x358] sm:$0xff] }
 0x15c   : > { %v3026_v33 = vadd.f32 %v3025_v31, %v3024_v25  ;;  %v3137_v34 = vpop.f32.mrf.mxu1  ;;  %v692_v25 = vld [vmem:[%s3925_s30 + $0x378] sm:$0xff]  ;;  %v2908_v31 = vcombine.low %v680_v2, %v684_v3 }
 0x15d   : > { %v3138_v35 = vadd.f32 %v3137_v34, %v3136_v27  ;;  %v3027_v36 = vpop.f32.mrf.mxu0  ;;  %2292 = vmatmul.mubr.bf16.gmra.mxu0 %v2882_v26 }
 0x15e   : > { %v3139_v37 = vpop.f32.mrf.mxu1  ;;  %2453 = vmatmul.mubr.bf16.gmra.mxu1 %v2884_v28  ;;  %2299 = vmatprep.mubr.bf16.mxu0 %v2891_v29  ;;  %v2906_v28 = vcombine.low %v679_v62, %v683_v63 }
 0x15f   : > { %v4124_v38 = vadd.f32 %v3138_v35, %v3026_v33  ;;  %v3028_v39 = vpop.f32.mrf.mxu0  ;;  %2460 = vmatprep.mubr.bf16.mxu1 %v2893_v32  ;;  %v2915_v32 = vcombine.high %v687_v20, %v691_v21  ;;  %v2917_v35 = vcombine.high %v688_v24, %v692_v25 }
 0x160   : > { %v3029_v42 = vadd.f32 %v3028_v39, %v3027_v36  ;;  %v3140_v43 = vpop.f32.mrf.mxu1 }
 0x161   : > { %v3141_v46 = vadd.f32 %v3140_v43, %v3139_v37  ;;  %v3030_v47 = vpop.f32.mrf.mxu0 }
 0x162   : > { %v3142_v49 = vpop.f32.mrf.mxu1 }
 0x163   : > { %v4130_v52 = vadd.f32 %v3141_v46, %v3029_v42  ;;  %v3031_v53 = vpop.f32.mrf.mxu0 }
 0x164   : > { %v3032_v55 = vadd.f32 %v3031_v53, %v3030_v47  ;;  %v3143_v56 = vpop.f32.mrf.mxu1  ;;  %v2914_v53 = vcombine.low %v687_v20, %v691_v21 }
 0x165   : > { %v3144_v57 = vadd.f32 %v3143_v56, %v3142_v49  ;;  %v3033_v58 = vpop.f32.mrf.mxu0  ;;  %2300 = vmatmul.mubr.bf16.gmra.mxu0 %v2890_v48  ;;  %v696_v48 = vld [vmem:[%s3925_s30 + $0x398] sm:$0xff]  ;;  %v2923_v56 = vcombine.high %v695_v44, %v699_v45 }
 0x166   : > { %v3145_v59 = vpop.f32.mrf.mxu1  ;;  %2461 = vmatmul.mubr.bf16.gmra.mxu1 %v2892_v50  ;;  %2307 = vmatprep.mubr.bf16.mxu0 %v2899_v51  ;;  %v700_v49 = vld [vmem:[%s3925_s30 + $0x3b8] sm:$0xff] }
 0x167   : > { %v4132_v60 = vadd.f32 %v3144_v57, %v3032_v55  ;;  %v3034_v61 = vpop.f32.mrf.mxu0  ;;  %2468 = vmatprep.mubr.bf16.mxu1 %v2901_v54  ;;  %v2916_v55 = vcombine.low %v688_v24, %v692_v25 }
 0x168   : > { %v3035_v0 = vadd.f32 %v3034_v61, %v3033_v58  ;;  %v3146_v1 = vpop.f32.mrf.mxu1 }
 0x169   : > { %v3147_v4 = vadd.f32 %v3146_v1, %v3145_v59  ;;  %v3036_v5 = vpop.f32.mrf.mxu0  ;;  %v2925_v59 = vcombine.high %v696_v48, %v700_v49 }
 0x16a   : > { %v3148_v7 = vpop.f32.mrf.mxu1 }
 0x16b   : > { %v4138_v10 = vadd.f32 %v3147_v4, %v3035_v0  ;;  %v3037_v11 = vpop.f32.mrf.mxu0  ;;  %v703_v4 = vld [vmem:[%s3925_s30 + $0x3d0] sm:$0xff] }
 0x16c   : > { %v3038_v13 = vadd.f32 %v3037_v11, %v3036_v5  ;;  %v3149_v14 = vpop.f32.mrf.mxu1  ;;  %v707_v5 = vld [vmem:[%s3925_s30 + $0x3f0] sm:$0xff] }
 0x16d   : > { %v3150_v15 = vadd.f32 %v3149_v14, %v3148_v7  ;;  %v3039_v16 = vpop.f32.mrf.mxu0  ;;  %2308 = vmatmul.mubr.bf16.gmra.mxu0 %v2898_v6 }
 0x16e   : > { %v3151_v17 = vpop.f32.mrf.mxu1  ;;  %2469 = vmatmul.mubr.bf16.gmra.mxu1 %v2900_v8  ;;  %2315 = vmatprep.mubr.bf16.mxu0 %v2907_v9  ;;  %v704_v8 = vld [vmem:[%s3925_s30 + $0x3d8] sm:$0xff] }
 0x16f   : > { %v4140_v18 = vadd.f32 %v3150_v15, %v3038_v13  ;;  %v3040_v19 = vpop.f32.mrf.mxu0  ;;  %2476 = vmatprep.mubr.bf16.mxu1 %v2909_v12  ;;  %v708_v9 = vld [vmem:[%s3925_s30 + $0x3f8] sm:$0xff]  ;;  %v2922_v13 = vcombine.low %v695_v44, %v699_v45  ;;  %v2924_v15 = vcombine.low %v696_v48, %v700_v49 }
 0x170   : > { %v3041_v22 = vadd.f32 %v3040_v19, %v3039_v16  ;;  %v3152_v23 = vpop.f32.mrf.mxu1  ;;  %v2931_v16 = vcombine.high %v703_v4, %v707_v5  ;;  %v2933_v20 = vcombine.high %v704_v8, %v708_v9 }
 0x171   : > { %v3153_v26 = vadd.f32 %v3152_v23, %v3151_v17  ;;  %v3042_v27 = vpop.f32.mrf.mxu0 }
 0x172   : > { %v3154_v29 = vpop.f32.mrf.mxu1 }
 0x173   : > { %v4146_v33 = vadd.f32 %v3153_v26, %v3041_v22  ;;  %v3043_v34 = vpop.f32.mrf.mxu0 }
 0x174   : > { %v3044_v36 = vadd.f32 %v3043_v34, %v3042_v27  ;;  %v3155_v37 = vpop.f32.mrf.mxu1  ;;  %v2930_v34 = vcombine.low %v703_v4, %v707_v5 }
 0x175   : > { %v3156_v39 = vadd.f32 %v3155_v37, %v3154_v29  ;;  %v3045_v40 = vpop.f32.mrf.mxu0  ;;  %2316 = vmatmul.mubr.bf16.gmra.mxu0 %v2906_v28 }
 0x176   : > { %v3157_v41 = vpop.f32.mrf.mxu1  ;;  %2477 = vmatmul.mubr.bf16.gmra.mxu1 %v2908_v31  ;;  %2323 = vmatprep.mubr.bf16.mxu0 %v2915_v32 }
 0x177   : > { %v4148_v42 = vadd.f32 %v3156_v39, %v3044_v36  ;;  %v3046_v43 = vpop.f32.mrf.mxu0  ;;  %2484 = vmatprep.mubr.bf16.mxu1 %v2917_v35  ;;  %v2932_v36 = vcombine.low %v704_v8, %v708_v9 }
 0x178   : > { %v3047_v46 = vadd.f32 %v3046_v43, %v3045_v40  ;;  %v3158_v47 = vpop.f32.mrf.mxu1 }
 0x179   : > { %v3159_v50 = vadd.f32 %v3158_v47, %v3157_v41  ;;  %v3048_v51 = vpop.f32.mrf.mxu0 }
 0x17a   : > { %v3160_v54 = vpop.f32.mrf.mxu1 }
 0x17b   : > { %v4154_v57 = vadd.f32 %v3159_v50, %v3047_v46  ;;  %v3049_v58 = vpop.f32.mrf.mxu0 }
 0x17c   : > { %v3050_v61 = vadd.f32 %v3049_v58, %v3048_v51  ;;  %v3161_v62 = vpop.f32.mrf.mxu1 }
 0x17d   : > { %v3162_v63 = vadd.f32 %v3161_v62, %v3160_v54  ;;  %v3051_v0 = vpop.f32.mrf.mxu0  ;;  %2324 = vmatmul.mubr.bf16.gmra.mxu0 %v2914_v53 }
 0x17e   : > { %v3163_v1 = vpop.f32.mrf.mxu1  ;;  %2485 = vmatmul.mubr.bf16.gmra.mxu1 %v2916_v55  ;;  %2331 = vmatprep.mubr.bf16.mxu0 %v2923_v56 }
 0x17f   : > { %v4156_v2 = vadd.f32 %v3162_v63, %v3050_v61  ;;  %v3052_v3 = vpop.f32.mrf.mxu0  ;;  %2492 = vmatprep.mubr.bf16.mxu1 %v2925_v59 }
 0x180   : > { %v3053_v6 = vadd.f32 %v3052_v3, %v3051_v0  ;;  %v3164_v7 = vpop.f32.mrf.mxu1 }
 0x181   : > { %v3165_v11 = vadd.f32 %v3164_v7, %v3163_v1  ;;  %v3054_v12 = vpop.f32.mrf.mxu0 }
 0x182   : > { %v3166_v14 = vpop.f32.mrf.mxu1 }
 0x183   : > { %v4162_v17 = vadd.f32 %v3165_v11, %v3053_v6  ;;  %v3055_v19 = vpop.f32.mrf.mxu0 }
 0x184   : > { %v3056_v21 = vadd.f32 %v3055_v19, %v3054_v12  ;;  %v3167_v22 = vpop.f32.mrf.mxu1 }
 0x185   : > { %v3168_v23 = vadd.f32 %v3167_v22, %v3166_v14  ;;  %v3057_v24 = vpop.f32.mrf.mxu0  ;;  %2332 = vmatmul.mubr.bf16.gmra.mxu0 %v2922_v13 }
 0x186   : > { %v3169_v25 = vpop.f32.mrf.mxu1  ;;  %2493 = vmatmul.mubr.bf16.gmra.mxu1 %v2924_v15  ;;  %2339 = vmatprep.mubr.bf16.mxu0 %v2931_v16 }
 0x187   : > { %v4164_v26 = vadd.f32 %v3168_v23, %v3056_v21  ;;  %v3058_v27 = vpop.f32.mrf.mxu0  ;;  %2500 = vmatprep.mubr.bf16.mxu1 %v2933_v20 }
 0x188   : > { %v3059_v28 = vadd.f32 %v3058_v27, %v3057_v24  ;;  %v3170_v29 = vpop.f32.mrf.mxu1 }
 0x189   : > { %v3171_v31 = vadd.f32 %v3170_v29, %v3169_v25  ;;  %v3060_v32 = vpop.f32.mrf.mxu0 }
 0x18a   : > { %v3172_v35 = vpop.f32.mrf.mxu1 }
 0x18b   : > { %v4166_v37 = vadd.f32 %v3171_v31, %v3059_v28  ;;  %v3061_v39 = vpop.f32.mrf.mxu0 }
 0x18c   : > { %v3062_v40 = vadd.f32 %v3061_v39, %v3060_v32  ;;  %v3173_v41 = vpop.f32.mrf.mxu1 }
 0x18d   : > { %v3174_v43 = vadd.f32 %v3173_v41, %v3172_v35  ;;  %v3063_v44 = vpop.f32.mrf.mxu0  ;;  %2340 = vmatmul.mubr.bf16.gmra.mxu0 %v2930_v34 }
 0x18e   : > { %v3175_v45 = vpop.f32.mrf.mxu1  ;;  %2501 = vmatmul.mubr.bf16.gmra.mxu1 %v2932_v36 }
 0x18f   : > { %v4168_v46 = vadd.f32 %v3174_v43, %v3062_v40  ;;  %v3064_v47 = vpop.f32.mrf.mxu0 }
 0x190   : > { %v3065_v48 = vadd.f32 %v3064_v47, %v3063_v44  ;;  %v3176_v49 = vpop.f32.mrf.mxu1 }
 0x191   : > { %v3177_v50 = vadd.f32 %v3176_v49, %v3175_v45  ;;  %v3066_v51 = vpop.f32.mrf.mxu0 }
 0x192   : > { %v3178_v53 = vpop.f32.mrf.mxu1 }
 0x193   : > { %v4170_v54 = vadd.f32 %v3177_v50, %v3065_v48  ;;  %v3067_v55 = vpop.f32.mrf.mxu0 }
 0x194   : > { %v3068_v56 = vadd.f32 %v3067_v55, %v3066_v51  ;;  %v3179_v58 = vpop.f32.mrf.mxu1 }
 0x195   : > { %v3180_v59 = vadd.f32 %v3179_v58, %v3178_v53  ;;  %v3069_v61 = vpop.f32.mrf.mxu0 }
 0x196   : > { %v3181_v62 = vpop.f32.mrf.mxu1 }
 0x197   : > { %v4172_v63 = vadd.f32 %v3180_v59, %v3068_v56  ;;  %v3070_v0 = vpop.f32.mrf.mxu0 }
 0x198   : > { %v3071_v1 = vadd.f32 %v3070_v0, %v3069_v61  ;;  %v3182_v3 = vpop.f32.mrf.mxu1 }
 0x199   : > { %v3183_v4 = vadd.f32 %v3182_v3, %v3181_v62  ;;  %v3072_v5 = vpop.f32.mrf.mxu0 }
 0x19a   : > { %v3184_v6 = vpop.f32.mrf.mxu1 }
 0x19b   : > { %v4174_v7 = vadd.f32 %v3183_v4, %v3071_v1  ;;  %v3073_v8 = vpop.f32.mrf.mxu0 }
 0x19c   : > { %v3074_v9 = vadd.f32 %v3073_v8, %v3072_v5  ;;  %v3185_v11 = vpop.f32.mrf.mxu1 }
 0x19d   : > { %v3186_v12 = vadd.f32 %v3185_v11, %v3184_v6  ;;  %v3075_v13 = vpop.f32.mrf.mxu0 }
 0x19e   : > { %v3187_v14 = vpop.f32.mrf.mxu1 }
 0x19f   : > { %v4176_v15 = vadd.f32 %v3186_v12, %v3074_v9  ;;  %v3076_v16 = vpop.f32.mrf.mxu0 }
 0x1a0   : > { %v3077_v19 = vadd.f32 %v3076_v16, %v3075_v13  ;;  %v3188_v20 = vpop.f32.mrf.mxu1 }
 0x1a1   : > { %v3189_v21 = vadd.f32 %v3188_v20, %v3187_v14  ;;  %v3078_v22 = vpop.f32.mrf.mxu0 }
 0x1a2   : > { %v3190_v23 = vpop.f32.mrf.mxu1 }
 0x1a3   : > { %v4178_v24 = vadd.f32 %v3189_v21, %v3077_v19  ;;  %v3079_v25 = vpop.f32.mrf.mxu0 }
 0x1a4   : > { %v3080_v27 = vadd.f32 %v3079_v25, %v3078_v22  ;;  %v3191_v28 = vpop.f32.mrf.mxu1 }
 0x1a5   : > { %v3192_v29 = vadd.f32 %v3191_v28, %v3190_v23  ;;  %v3081_v31 = vpop.f32.mrf.mxu0 }
 0x1a6   : > { %v3193_v32 = vpop.f32.mrf.mxu1 }
 0x1a7   : > { %v4180_v34 = vadd.f32 %v3192_v29, %v3080_v27  ;;  %v3082_v35 = vpop.f32.mrf.mxu0 }
 0x1a8   : > { %v3083_v36 = vadd.f32 %v3082_v35, %v3081_v31  ;;  %v3194_v39 = vpop.f32.mrf.mxu1 }
 0x1a9   : > { %v3195_v40 = vadd.f32 %v3194_v39, %v3193_v32  ;;  %v3084_v41 = vpop.f32.mrf.mxu0 }
 0x1aa   : > { %v3196_v43 = vpop.f32.mrf.mxu1 }
 0x1ab   : > { %v4182_v44 = vadd.f32 %v3195_v40, %v3083_v36  ;;  %v3085_v45 = vpop.f32.mrf.mxu0 }
 0x1ac   : > { %v3086_v47 = vadd.f32 %v3085_v45, %v3084_v41  ;;  %v3197_v48 = vpop.f32.mrf.mxu1 }
 0x1ad   : > { %v3198_v49 = vadd.f32 %v3197_v48, %v3196_v43  ;;  %v3087_v50 = vpop.f32.mrf.mxu0 }
 0x1ae   : > { %v3199_v51 = vpop.f32.mrf.mxu1 }
 0x1af   : > { %v4184_v53 = vadd.f32 %v3198_v49, %v3086_v47  ;;  %v3088_v55 = vpop.f32.mrf.mxu0 }
 0x1b0   : > { %v3089_v56 = vadd.f32 %v3088_v55, %v3087_v50  ;;  %v3200_v58 = vpop.f32.mrf.mxu1 }
 0x1b1   : > { %v3201_v59 = vadd.f32 %v3200_v58, %v3199_v51  ;;  %v3090_v61 = vpop.f32.mrf.mxu0 }
 0x1b2   : > { %v3202_v62 = vpop.f32.mrf.mxu1 }
 0x1b3   : > { %v4186_v0 = vadd.f32 %v3201_v59, %v3089_v56  ;;  %v3091_v1 = vpop.f32.mrf.mxu0 }
 0x1b4   : > { %v3092_v3 = vadd.f32 %v3091_v1, %v3090_v61  ;;  %v3203_v4 = vpop.f32.mrf.mxu1 }
 0x1b5   : > { %v3204_v5 = vadd.f32 %v3203_v4, %v3202_v62  ;;  %v3093_v6 = vpop.f32.mrf.mxu0 }
 0x1b6   : > { %v3205_v8 = vpop.f32.mrf.mxu1 }
 0x1b7   : > { %v4188_v9 = vadd.f32 %v3204_v5, %v3092_v3  ;;  %v3094_v11 = vpop.f32.mrf.mxu0 }
 0x1b8   : > { %v3095_v12 = vadd.f32 %v3094_v11, %v3093_v6  ;;  %v3206_v13 = vpop.f32.mrf.mxu1 }
 0x1b9   : > { %v3207_v14 = vadd.f32 %v3206_v13, %v3205_v8  ;;  %v3096_v16 = vpop.f32.mrf.mxu0 }
 0x1ba   : > { %v3208_v19 = vpop.f32.mrf.mxu1 }
 0x1bb   : > { %v4190_v20 = vadd.f32 %v3207_v14, %v3095_v12  ;;  %v3097_v21 = vpop.f32.mrf.mxu0 }
 0x1bc   : > { %v3098_v22 = vadd.f32 %v3097_v21, %v3096_v16  ;;  %v3209_v23 = vpop.f32.mrf.mxu1 }
 0x1bd   : > { %v3210_v25 = vadd.f32 %v3209_v23, %v3208_v19  ;;  %v3099_v27 = vpop.f32.mrf.mxu0 }
 0x1be   : > { %v3211_v28 = vpop.f32.mrf.mxu1 }
 0x1bf   : > { %v4192_v29 = vadd.f32 %v3210_v25, %v3098_v22  ;;  %v3100_v31 = vpop.f32.mrf.mxu0 }
 0x1c0   : > { %v3101_v32 = vadd.f32 %v3100_v31, %v3099_v27  ;;  %v3212_v35 = vpop.f32.mrf.mxu1 }
 0x1c1   : > { %v3213_v36 = vadd.f32 %v3212_v35, %v3211_v28  ;;  %v3102_v39 = vpop.f32.mrf.mxu0 }
 0x1c2   : > { %v3214_v40 = vpop.f32.mrf.mxu1 }
 0x1c3   : > { %v4194_v41 = vadd.f32 %v3213_v36, %v3101_v32  ;;  %v3103_v43 = vpop.f32.mrf.mxu0 }
 0x1c4   : > { %v3104_v45 = vadd.f32 %v3103_v43, %v3102_v39  ;;  %v3215_v47 = vpop.f32.mrf.mxu1 }
 0x1c5   : > { %v3216_v48 = vadd.f32 %v3215_v47, %v3214_v40  ;;  %v3105_v49 = vpop.f32.mrf.mxu0 }
 0x1c6   : > { %v3217_v50 = vpop.f32.mrf.mxu1 }
 0x1c7   : > { %v4196_v51 = vadd.f32 %v3216_v48, %v3104_v45  ;;  %v3106_v55 = vpop.f32.mrf.mxu0 }
 0x1c8   : > { %v3107_v56 = vadd.f32 %v3106_v55, %v3105_v49  ;;  %v3218_v58 = vpop.f32.mrf.mxu1 }
 0x1c9   : > { %v3219_v59 = vadd.f32 %v3218_v58, %v3217_v50  ;;  %v3108_v61 = vpop.f32.mrf.mxu0  ;;  %v549_v50 = vld [vmem:[#allocation2 + $0xb0] sm:$0xff] }
 0x1ca   : > { %v3220_v62 = vpop.f32.mrf.mxu1 }
 0x1cb   : > { %v4198_v1 = vadd.f32 %v3219_v59, %v3107_v56  ;;  %v3109_v3 = vpop.f32.mrf.mxu0 }
 0x1cc   : > { %v3110_v4 = vadd.f32 %v3109_v3, %v3108_v61  ;;  %v3221_v5 = vpop.f32.mrf.mxu1 }
 0x1cd   : > { %v3222_v6 = vadd.f32 %v3221_v5, %v3220_v62  ;;  %v3111_v8 = vpop.f32.mrf.mxu0 }
 0x1ce   : > { %v3223_v11 = vpop.f32.mrf.mxu1 }
 0x1cf   : > { %v4200_v12 = vadd.f32 %v3222_v6, %v3110_v4  ;;  %v3112_v13 = vpop.f32.mrf.mxu0  ;;  %v550_v6 = vld [vmem:[#allocation2] sm:$0xff] }
 0x1d0   : > { %v3113_v14 = vadd.f32 %v3112_v13, %v3111_v8  ;;  %v3224_v16 = vpop.f32.mrf.mxu1 }
 0x1d1   : > { %v3225_v19 = vadd.f32 %v3224_v16, %v3223_v11  ;;  %v3114_v21 = vpop.f32.mrf.mxu0 }
 0x1d2   : > { %v3226_v22 = vpop.f32.mrf.mxu1 }
 0x1d3   : > { %v4202_v23 = vadd.f32 %v3225_v19, %v3113_v14  ;;  %v3115_v25 = vpop.f32.mrf.mxu0 }
 0x1d4   : > { %v3116_v27 = vadd.f32 %v3115_v25, %v3114_v21  ;;  %v3227_v28 = vpop.f32.mrf.mxu1  ;;  %v551_v25 = vld [vmem:[#allocation2 + $0xd8] sm:$0xff] }
 0x1d5   : > { %v3228_v31 = vadd.f32 %v3227_v28, %v3226_v22  ;;  %v3245_v32 = vpop.f32.mrf.mxu0 }
 0x1d6   : > { %v3357_v35 = vpop.f32.mrf.mxu1 }
 0x1d7   : > { %v4204_v36 = vadd.f32 %v3228_v31, %v3116_v27  ;;  %v3246_v39 = vpop.f32.mrf.mxu0 }
 0x1d8   : > { %v3247_v40 = vadd.f32 %v3246_v39, %v3245_v32  ;;  %v3358_v43 = vpop.f32.mrf.mxu1 }
 0x1d9   : > { %v3248_v45 = vpop.f32.mrf.mxu0  ;;  %v3359_v48 = vadd.f32 %v3358_v43, %v3357_v35 }
 0x1da   : > { %v2222_v47 = vadd.f32 %v3247_v40, %v4122_v30  ;;  %v3360_v49 = vpop.f32.mrf.mxu1 }
 0x1db   : > { %v3249_v55 = vpop.f32.mrf.mxu0 }
 0x1dc   : > { %v2383_v56 = vadd.f32 %v3359_v48, %v2222_v47  ;;  %v3250_v58 = vadd.f32 %v3249_v55, %v3248_v45  ;;  %v3361_v59 = vpop.f32.mrf.mxu1  ;;  %v552_v45 = vld [vmem:[#allocation2 + $0x18] sm:$0xff] }
 0x1dd   : > { %v3251_v61 = vpop.f32.mrf.mxu0  ;;  %v3362_v4 = vadd.f32 %v3361_v59, %v3360_v49 }
 0x1de   : > { %v2509_v62 = vadd.f32 %v2383_v56, %v549_v50  ;;  %v2225_v3 = vadd.f32 %v3250_v58, %v4124_v38  ;;  %v3363_v5 = vpop.f32.mrf.mxu1 }
 0x1df   : > { %v3252_v8 = vpop.f32.mrf.mxu0 }
 0x1e0   : > { %2541 = vst [vmem:[#allocation2 + $0xb0] sm:$0xff] %v2509_v62  ;;  %v2386_v11 = vadd.f32 %v3362_v4, %v2225_v3  ;;  %v3253_v13 = vadd.f32 %v3252_v8, %v3251_v61  ;;  %v3364_v14 = vpop.f32.mrf.mxu1  ;;  %v553_v61 = vld [vmem:[#allocation2 + $0x50] sm:$0xff] }
 0x1e1   : > { %v3254_v30 = vpop.f32.mrf.mxu0  ;;  %v3365_v21 = vadd.f32 %v3364_v14, %v3363_v5  ;;  %v554_v14 = vld [vmem:[#allocation2 + $0x68] sm:$0xff] }
 0x1e2   : > { %v2510_v16 = vadd.f32 %v2386_v11, %v550_v6  ;;  %v2230_v19 = vadd.f32 %v3253_v13, %v4130_v52  ;;  %v3366_v22 = vpop.f32.mrf.mxu1 }
 0x1e3   : > { %v3255_v27 = vpop.f32.mrf.mxu0 }
 0x1e4   : > { %2542 = vst [vmem:[#allocation2] sm:$0xff] %v2510_v16  ;;  %v2391_v28 = vadd.f32 %v3365_v21, %v2230_v19  ;;  %v3256_v31 = vadd.f32 %v3255_v27, %v3254_v30  ;;  %v3367_v38 = vpop.f32.mrf.mxu1 }
 0x1e5   : > { %v3257_v32 = vpop.f32.mrf.mxu0  ;;  %v3368_v40 = vadd.f32 %v3367_v38, %v3366_v22 }
 0x1e6   : > { %v2511_v35 = vadd.f32 %v2391_v28, %v551_v25  ;;  %v2233_v39 = vadd.f32 %v3256_v31, %v4132_v60  ;;  %v3369_v43 = vpop.f32.mrf.mxu1  ;;  %v555_v31 = vld [vmem:[#allocation2 + $0x30] sm:$0xff] }
 0x1e7   : > { %v3258_v47 = vpop.f32.mrf.mxu0 }
 0x1e8   : > { %2543 = vst [vmem:[#allocation2 + $0xd8] sm:$0xff] %v2511_v35  ;;  %v2394_v48 = vadd.f32 %v3368_v40, %v2233_v39  ;;  %v3259_v49 = vadd.f32 %v3258_v47, %v3257_v32  ;;  %v3370_v52 = vpop.f32.mrf.mxu1 }
 0x1e9   : > { %v3260_v50 = vpop.f32.mrf.mxu0  ;;  %v3371_v58 = vadd.f32 %v3370_v52, %v3369_v43 }
 0x1ea   : > { %v2512_v55 = vadd.f32 %v2394_v48, %v552_v45  ;;  %v2238_v56 = vadd.f32 %v3259_v49, %v4138_v10  ;;  %v3372_v59 = vpop.f32.mrf.mxu1  ;;  %v556_v48 = vld [vmem:[#allocation2 + $0x48] sm:$0xff] }
 0x1eb   : > { %v3261_v62 = vpop.f32.mrf.mxu0 }
 0x1ec   : > { %2544 = vst [vmem:[#allocation2 + $0x18] sm:$0xff] %v2512_v55  ;;  %v2399_v3 = vadd.f32 %v3371_v58, %v2238_v56  ;;  %v3262_v4 = vadd.f32 %v3261_v62, %v3260_v50  ;;  %v3373_v60 = vpop.f32.mrf.mxu1  ;;  %v557_v62 = vld [vmem:[#allocation2 + $0x80] sm:$0xff] }
 0x1ed   : > { %v3263_v5 = vpop.f32.mrf.mxu0  ;;  %v3374_v11 = vadd.f32 %v3373_v60, %v3372_v59 }
 0x1ee   : > { %v2513_v6 = vadd.f32 %v2399_v3, %v553_v61  ;;  %v2241_v8 = vadd.f32 %v3262_v4, %v4140_v18  ;;  %v3375_v13 = vpop.f32.mrf.mxu1 }
 0x1ef   : > { %v3264_v30 = vpop.f32.mrf.mxu0 }
 0x1f0   : > { %2545 = vst [vmem:[#allocation2 + $0x50] sm:$0xff] %v2513_v6  ;;  %v2402_v16 = vadd.f32 %v3374_v11, %v2241_v8  ;;  %v3265_v19 = vadd.f32 %v3264_v30, %v3263_v5  ;;  %v3376_v10 = vpop.f32.mrf.mxu1 }
 0x1f1   : > { %v3266_v21 = vpop.f32.mrf.mxu0  ;;  %v3377_v27 = vadd.f32 %v3376_v10, %v3375_v13 }
 0x1f2   : > { %v2514_v22 = vadd.f32 %v2402_v16, %v554_v14  ;;  %v2246_v25 = vadd.f32 %v3265_v19, %v4146_v33  ;;  %v3378_v28 = vpop.f32.mrf.mxu1  ;;  %v558_v14 = vld [vmem:[#allocation2 + $0x88] sm:$0xff] }
 0x1f3   : > { %v3267_v38 = vpop.f32.mrf.mxu0 }
 0x1f4   : > { %2546 = vst [vmem:[#allocation2 + $0x68] sm:$0xff] %v2514_v22  ;;  %v2407_v32 = vadd.f32 %v3377_v27, %v2246_v25  ;;  %v3268_v35 = vadd.f32 %v3267_v38, %v3266_v21  ;;  %v3379_v18 = vpop.f32.mrf.mxu1 }
 0x1f5   : > { %v3269_v39 = vpop.f32.mrf.mxu0  ;;  %v3380_v45 = vadd.f32 %v3379_v18, %v3378_v28  ;;  %v559_v28 = vld [vmem:[#allocation2 + $0xe8] sm:$0xff] }
 0x1f6   : > { %v2515_v40 = vadd.f32 %v2407_v32, %v555_v31  ;;  %v2249_v43 = vadd.f32 %v3268_v35, %v4148_v42  ;;  %v3381_v47 = vpop.f32.mrf.mxu1 }
 0x1f7   : > { %v3270_v49 = vpop.f32.mrf.mxu0 }
 0x1f8   : > { %2547 = vst [vmem:[#allocation2 + $0x30] sm:$0xff] %v2515_v40  ;;  %v2410_v52 = vadd.f32 %v3380_v45, %v2249_v43  ;;  %v3271_v50 = vadd.f32 %v3270_v49, %v3269_v39  ;;  %v3382_v33 = vpop.f32.mrf.mxu1  ;;  %v560_v45 = vld [vmem:[#allocation2 + $0xb8] sm:$0xff] }
 0x1f9   : > { %v3272_v55 = vpop.f32.mrf.mxu0  ;;  %v3383_v59 = vadd.f32 %v3382_v33, %v3381_v47 }
 0x1fa   : > { %v2516_v56 = vadd.f32 %v2410_v52, %v556_v48  ;;  %v2254_v58 = vadd.f32 %v3271_v50, %v4154_v57  ;;  %v3384_v61 = vpop.f32.mrf.mxu1 }
 0x1fb   : > { %v3273_v3 = vpop.f32.mrf.mxu0 }
 0x1fc   : > { %2548 = vst [vmem:[#allocation2 + $0x48] sm:$0xff] %v2516_v56  ;;  %v2415_v4 = vadd.f32 %v3383_v59, %v2254_v58  ;;  %v3274_v60 = vadd.f32 %v3273_v3, %v3272_v55  ;;  %v3385_v42 = vpop.f32.mrf.mxu1  ;;  %v561_v58 = vld [vmem:[#allocation2 + $0x60] sm:$0xff] }
 0x1fd   : > { %v3275_v5 = vpop.f32.mrf.mxu0  ;;  %v3386_v11 = vadd.f32 %v3385_v42, %v3384_v61 }
 0x1fe   : > { %v2517_v6 = vadd.f32 %v2415_v4, %v557_v62  ;;  %v2257_v8 = vadd.f32 %v3274_v60, %v4156_v2  ;;  %v3387_v13 = vpop.f32.mrf.mxu1 }
 0x1ff   : > { %v3276_v30 = vpop.f32.mrf.mxu0 }
 0x200   : > { %2549 = vst [vmem:[#allocation2 + $0x80] sm:$0xff] %v2517_v6  ;;  %v2418_v16 = vadd.f32 %v3386_v11, %v2257_v8  ;;  %v3277_v19 = vadd.f32 %v3276_v30, %v3275_v5  ;;  %v3388_v57 = vpop.f32.mrf.mxu1  ;;  %v562_v6 = vld [vmem:[#allocation2 + $0xf0] sm:$0xff] }
 0x201   : > { %v3278_v10 = vpop.f32.mrf.mxu0  ;;  %v3389_v25 = vadd.f32 %v3388_v57, %v3387_v13 }
 0x202   : > { %v2518_v21 = vadd.f32 %v2418_v16, %v558_v14  ;;  %v2262_v22 = vadd.f32 %v3277_v19, %v4162_v17  ;;  %v3390_v27 = vpop.f32.mrf.mxu1 }
 0x203   : > { %v3279_v31 = vpop.f32.mrf.mxu0 }
 0x204   : > { %2550 = vst [vmem:[#allocation2 + $0x88] sm:$0xff] %v2518_v21  ;;  %v2423_v38 = vadd.f32 %v3389_v25, %v2262_v22  ;;  %v3280_v32 = vadd.f32 %v3279_v31, %v3278_v10  ;;  %v3391_v2 = vpop.f32.mrf.mxu1  ;;  %v563_v10 = vld [vmem:[#allocation2 + $0x8] sm:$0xff] }
 0x205   : > { %v3281_v35 = vpop.f32.mrf.mxu0  ;;  %v3392_v40 = vadd.f32 %v3391_v2, %v3390_v27  ;;  %v564_v2 = vld [vmem:[#allocation2 + $0x78] sm:$0xff] }
 0x206   : > { %v2519_v18 = vadd.f32 %v2423_v38, %v559_v28  ;;  %v2265_v39 = vadd.f32 %v3280_v32, %v4164_v26  ;;  %v3393_v43 = vpop.f32.mrf.mxu1 }
 0x207   : > { %v3282_v47 = vpop.f32.mrf.mxu0 }
 0x208   : > { %2551 = vst [vmem:[#allocation2 + $0xe8] sm:$0xff] %v2519_v18  ;;  %v2426_v48 = vadd.f32 %v3392_v40, %v2265_v39  ;;  %v3283_v49 = vadd.f32 %v3282_v47, %v3281_v35  ;;  %v3394_v17 = vpop.f32.mrf.mxu1 }
 0x209   : > { %v3284_v52 = vpop.f32.mrf.mxu0  ;;  %v3395_v55 = vadd.f32 %v3394_v17, %v3393_v43 }
 0x20a   : > { %v2520_v50 = vadd.f32 %v2426_v48, %v560_v45  ;;  %v2270_v33 = vadd.f32 %v3283_v49, %v4166_v37  ;;  %v3396_v56 = vpop.f32.mrf.mxu1  ;;  %v565_v49 = vld [vmem:[#allocation2 + $0x38] sm:$0xff] }
 0x20b   : > { %v3285_v59 = vpop.f32.mrf.mxu0 }
 0x20c   : > { %2552 = vst [vmem:[#allocation2 + $0xb8] sm:$0xff] %v2520_v50  ;;  %v2431_v61 = vadd.f32 %v3395_v55, %v2270_v33  ;;  %v3286_v62 = vadd.f32 %v3285_v59, %v3284_v52  ;;  %v3397_v26 = vpop.f32.mrf.mxu1 }
 0x20d   : > { %v3287_v3 = vpop.f32.mrf.mxu0  ;;  %v3398_v42 = vadd.f32 %v3397_v26, %v3396_v56 }
 0x20e   : > { %v2521_v4 = vadd.f32 %v2431_v61, %v561_v58  ;;  %v2273_v60 = vadd.f32 %v3286_v62, %v4168_v46  ;;  %v3399_v5 = vpop.f32.mrf.mxu1  ;;  %v566_v61 = vld [vmem:[#allocation2 + $0x58] sm:$0xff] }
 0x20f   : > { %v3288_v8 = vpop.f32.mrf.mxu0 }
 0x210   : > { %2553 = vst [vmem:[#allocation2 + $0x60] sm:$0xff] %v2521_v4  ;;  %v2434_v11 = vadd.f32 %v3398_v42, %v2273_v60  ;;  %v3289_v13 = vadd.f32 %v3288_v8, %v3287_v3  ;;  %v3400_v37 = vpop.f32.mrf.mxu1  ;;  %v567_v8 = vld [vmem:[#allocation2 + $0x40] sm:$0xff] }
 0x211   : > { %v3290_v14 = vpop.f32.mrf.mxu0  ;;  %v3401_v19 = vadd.f32 %v3400_v37, %v3399_v5 }
 0x212   : > { %v2522_v30 = vadd.f32 %v2434_v11, %v562_v6  ;;  %v2278_v16 = vadd.f32 %v3289_v13, %v4170_v54  ;;  %v3402_v57 = vpop.f32.mrf.mxu1 }
 0x213   : > { %v3291_v21 = vpop.f32.mrf.mxu0 }
 0x214   : > { %2554 = vst [vmem:[#allocation2 + $0xf0] sm:$0xff] %v2522_v30  ;;  %v2439_v22 = vadd.f32 %v3401_v19, %v2278_v16  ;;  %v3292_v25 = vadd.f32 %v3291_v21, %v3290_v14  ;;  %v3403_v46 = vpop.f32.mrf.mxu1 }
 0x215   : > { %v3293_v27 = vpop.f32.mrf.mxu0  ;;  %v3404_v38 = vadd.f32 %v3403_v46, %v3402_v57 }
 0x216   : > { %v2523_v28 = vadd.f32 %v2439_v22, %v563_v10  ;;  %v2281_v31 = vadd.f32 %v3292_v25, %v4172_v63  ;;  %v3405_v32 = vpop.f32.mrf.mxu1  ;;  %v568_v10 = vld [vmem:[#allocation2 + $0xc8] sm:$0xff] }
 0x217   : > { %v3294_v35 = vpop.f32.mrf.mxu0 }
 0x218   : > { %2555 = vst [vmem:[#allocation2 + $0x8] sm:$0xff] %v2523_v28  ;;  %v2442_v18 = vadd.f32 %v3404_v38, %v2281_v31  ;;  %v3295_v39 = vadd.f32 %v3294_v35, %v3293_v27  ;;  %v3406_v54 = vpop.f32.mrf.mxu1 }
 0x219   : > { %v3296_v40 = vpop.f32.mrf.mxu0  ;;  %v3407_v47 = vadd.f32 %v3406_v54, %v3405_v32  ;;  %v569_v32 = vld [vmem:[#allocation2 + $0xe0] sm:$0xff] }
 0x21a   : > { %v2524_v43 = vadd.f32 %v2442_v18, %v564_v2  ;;  %v2286_v45 = vadd.f32 %v3295_v39, %v4174_v7  ;;  %v3408_v48 = vpop.f32.mrf.mxu1 }
 0x21b   : > { %v3297_v17 = vpop.f32.mrf.mxu0 }
 0x21c   : > { %2556 = vst [vmem:[#allocation2 + $0x78] sm:$0xff] %v2524_v43  ;;  %v2447_v52 = vadd.f32 %v3407_v47, %v2286_v45  ;;  %v3298_v50 = vadd.f32 %v3297_v17, %v3296_v40  ;;  %v3409_v63 = vpop.f32.mrf.mxu1  ;;  %v570_v47 = vld [vmem:[#allocation2 + $0x90] sm:$0xff] }
 0x21d   : > { %v3299_v33 = vpop.f32.mrf.mxu0  ;;  %v3410_v58 = vadd.f32 %v3409_v63, %v3408_v48 }
 0x21e   : > { %v2525_v55 = vadd.f32 %v2447_v52, %v565_v49  ;;  %v2289_v56 = vadd.f32 %v3298_v50, %v4176_v15  ;;  %v3411_v59 = vpop.f32.mrf.mxu1 }
 0x21f   : > { %v3300_v62 = vpop.f32.mrf.mxu0 }
 0x220   : > { %2557 = vst [vmem:[#allocation2 + $0x38] sm:$0xff] %v2525_v55  ;;  %v2450_v26 = vadd.f32 %v3410_v58, %v2289_v56  ;;  %v3301_v3 = vadd.f32 %v3300_v62, %v3299_v33  ;;  %v3412_v7 = vpop.f32.mrf.mxu1  ;;  %v571_v56 = vld [vmem:[#allocation2 + $0x70] sm:$0xff] }
 0x221   : > { %v3302_v4 = vpop.f32.mrf.mxu0  ;;  %v3413_v5 = vadd.f32 %v3412_v7, %v3411_v59 }
 0x222   : > { %v2526_v60 = vadd.f32 %v2450_v26, %v566_v61  ;;  %v2294_v42 = vadd.f32 %v3301_v3, %v4178_v24  ;;  %v3414_v6 = vpop.f32.mrf.mxu1 }
 0x223   : > { %v3303_v11 = vpop.f32.mrf.mxu0 }
 0x224   : > { %2558 = vst [vmem:[#allocation2 + $0x58] sm:$0xff] %v2526_v60  ;;  %v2455_v13 = vadd.f32 %v3413_v5, %v2294_v42  ;;  %v3304_v37 = vadd.f32 %v3303_v11, %v3302_v4  ;;  %v3415_v15 = vpop.f32.mrf.mxu1  ;;  %v572_v60 = vld [vmem:[#allocation2 + $0xc0] sm:$0xff] }
 0x225   : > { %v3305_v14 = vpop.f32.mrf.mxu0  ;;  %v3416_v19 = vadd.f32 %v3415_v15, %v3414_v6 }
 0x226   : > { %v2527_v30 = vadd.f32 %v2455_v13, %v567_v8  ;;  %v2297_v16 = vadd.f32 %v3304_v37, %v4180_v34  ;;  %v3417_v57 = vpop.f32.mrf.mxu1 }
 0x227   : > { %v3306_v21 = vpop.f32.mrf.mxu0 }
 0x228   : > { %2559 = vst [vmem:[#allocation2 + $0x40] sm:$0xff] %v2527_v30  ;;  %v2458_v22 = vadd.f32 %v3416_v19, %v2297_v16  ;;  %v3307_v25 = vadd.f32 %v3306_v21, %v3305_v14  ;;  %v3418_v24 = vpop.f32.mrf.mxu1  ;;  %v573_v14 = vld [vmem:[#allocation2 + $0xa8] sm:$0xff] }
 0x229   : > { %v3308_v46 = vpop.f32.mrf.mxu0  ;;  %v3419_v31 = vadd.f32 %v3418_v24, %v3417_v57  ;;  %v574_v24 = vld [vmem:[#allocation2 + $0xd0] sm:$0xff] }
 0x22a   : > { %v2528_v27 = vadd.f32 %v2458_v22, %v568_v10  ;;  %v2302_v28 = vadd.f32 %v3307_v25, %v4182_v44  ;;  %v3420_v38 = vpop.f32.mrf.mxu1 }
 0x22b   : > { %v3309_v2 = vpop.f32.mrf.mxu0 }
 0x22c   : > { %2560 = vst [vmem:[#allocation2 + $0xc8] sm:$0xff] %v2528_v27  ;;  %v2463_v35 = vadd.f32 %v3419_v31, %v2302_v28  ;;  %v3310_v18 = vadd.f32 %v3309_v2, %v3308_v46  ;;  %v3421_v34 = vpop.f32.mrf.mxu1 }
 0x22d   : > { %v3311_v39 = vpop.f32.mrf.mxu0  ;;  %v3422_v43 = vadd.f32 %v3421_v34, %v3420_v38 }
 0x22e   : > { %v2529_v54 = vadd.f32 %v2463_v35, %v569_v32  ;;  %v2305_v40 = vadd.f32 %v3310_v18, %v4184_v53  ;;  %v3423_v45 = vpop.f32.mrf.mxu1  ;;  %v575_v18 = vld [vmem:[#allocation2 + $0x10] sm:$0xff] }
 0x22f   : > { %v3312_v48 = vpop.f32.mrf.mxu0 }
 0x230   : > { %2561 = vst [vmem:[#allocation2 + $0xe0] sm:$0xff] %v2529_v54  ;;  %v2466_v49 = vadd.f32 %v3422_v43, %v2305_v40  ;;  %v3313_v17 = vadd.f32 %v3312_v48, %v3311_v39  ;;  %v3424_v44 = vpop.f32.mrf.mxu1 }
 0x231   : > { %v3314_v52 = vpop.f32.mrf.mxu0  ;;  %v3425_v33 = vadd.f32 %v3424_v44, %v3423_v45 }
 0x232   : > { %v2530_v50 = vadd.f32 %v2466_v49, %v570_v47  ;;  %v2310_v63 = vadd.f32 %v3313_v17, %v4186_v0  ;;  %v3426_v55 = vpop.f32.mrf.mxu1  ;;  %v576_v49 = vld [vmem:[#allocation2 + $0x28] sm:$0xff] }
 0x233   : > { %v3315_v58 = vpop.f32.mrf.mxu0 }
 0x234   : > { %2562 = vst [vmem:[#allocation2 + $0x90] sm:$0xff] %v2530_v50  ;;  %v2471_v59 = vadd.f32 %v3425_v33, %v2310_v63  ;;  %v3316_v61 = vadd.f32 %v3315_v58, %v3314_v52  ;;  %v3427_v53 = vpop.f32.mrf.mxu1  ;;  %v577_v58 = vld [vmem:[#allocation2 + $0xa0] sm:$0xff] }
 0x235   : > { %v3317_v62 = vpop.f32.mrf.mxu0  ;;  %v3428_v7 = vadd.f32 %v3427_v53, %v3426_v55 }
 0x236   : > { %v2531_v26 = vadd.f32 %v2471_v59, %v571_v56  ;;  %v2313_v3 = vadd.f32 %v3316_v61, %v4188_v9  ;;  %v3429_v4 = vpop.f32.mrf.mxu1 }
 0x237   : > { %v3318_v42 = vpop.f32.mrf.mxu0 }
 0x238   : > { %2563 = vst [vmem:[#allocation2 + $0x70] sm:$0xff] %v2531_v26  ;;  %v2474_v5 = vadd.f32 %v3428_v7, %v2313_v3  ;;  %v3319_v6 = vadd.f32 %v3318_v42, %v3317_v62  ;;  %v3430_v0 = vpop.f32.mrf.mxu1 }
 0x239   : > { %v3320_v8 = vpop.f32.mrf.mxu0  ;;  %v3431_v37 = vadd.f32 %v3430_v0, %v3429_v4 }
 0x23a   : > { %v2532_v11 = vadd.f32 %v2474_v5, %v572_v60  ;;  %v2318_v13 = vadd.f32 %v3319_v6, %v4190_v20  ;;  %v3432_v15 = vpop.f32.mrf.mxu1  ;;  %v578_v60 = vld [vmem:[#allocation2 + $0xf8] sm:$0xff] }
 0x23b   : > { %v3321_v30 = vpop.f32.mrf.mxu0 }
 0x23c   : > { %2564 = vst [vmem:[#allocation2 + $0xc0] sm:$0xff] %v2532_v11  ;;  %v2479_v16 = vadd.f32 %v3431_v37, %v2318_v13  ;;  %v3322_v19 = vadd.f32 %v3321_v30, %v3320_v8  ;;  %v3433_v9 = vpop.f32.mrf.mxu1 }
 0x23d   : > { %v3323_v57 = vpop.f32.mrf.mxu0  ;;  %v3434_v22 = vadd.f32 %v3433_v9, %v3432_v15  ;;  %v579_v15 = vld [vmem:[#allocation2 + $0x20] sm:$0xff] }
 0x23e   : > { %v2533_v10 = vadd.f32 %v2479_v16, %v573_v14  ;;  %v2321_v21 = vadd.f32 %v3322_v19, %v4192_v29  ;;  %v3435_v25 = vpop.f32.mrf.mxu1 }
 0x23f   : > { %v3324_v46 = vpop.f32.mrf.mxu0 }
 0x240   : > { %2565 = vst [vmem:[#allocation2 + $0xa8] sm:$0xff] %v2533_v10  ;;  %v2482_v27 = vadd.f32 %v3434_v22, %v2321_v21  ;;  %v3325_v28 = vadd.f32 %v3324_v46, %v3323_v57  ;;  %v3436_v20 = vpop.f32.mrf.mxu1  ;;  %v580_v10 = vld [vmem:[#allocation2 + $0x98] sm:$0xff] }
 0x241   : > { %v3326_v31 = vpop.f32.mrf.mxu0  ;;  %v3437_v2 = vadd.f32 %v3436_v20, %v3435_v25 }
 0x242   : > { %v2534_v38 = vadd.f32 %v2482_v27, %v574_v24  ;;  %v2326_v32 = vadd.f32 %v3325_v28, %v4194_v41  ;;  %v3438_v35 = vpop.f32.mrf.mxu1 }
 0x243   : > { %v3327_v34 = vpop.f32.mrf.mxu0 }
 0x244   : > { %2566 = vst [vmem:[#allocation2 + $0xd0] sm:$0xff] %v2534_v38  ;;  %v2487_v39 = vadd.f32 %v3437_v2, %v2326_v32  ;;  %v3328_v54 = vadd.f32 %v3327_v34, %v3326_v31  ;;  %v3439_v29 = vpop.f32.mrf.mxu1 }
 0x245   : > { %v3329_v40 = vpop.f32.mrf.mxu0  ;;  %v3440_v47 = vadd.f32 %v3439_v29, %v3438_v35 }
 0x246   : > { %v2535_v43 = vadd.f32 %v2487_v39, %v575_v18  ;;  %v2329_v45 = vadd.f32 %v3328_v54, %v4196_v51  ;;  %v3441_v48 = vpop.f32.mrf.mxu1 }
 0x247   : > { %v3330_v17 = vpop.f32.mrf.mxu0 }
 0x248   : > { %2567 = vst [vmem:[#allocation2 + $0x10] sm:$0xff] %v2535_v43  ;;  %v2490_v44 = vadd.f32 %v3440_v47, %v2329_v45  ;;  %v3331_v52 = vadd.f32 %v3330_v17, %v3329_v40  ;;  %v3442_v41 = vpop.f32.mrf.mxu1 }
 0x249   : > { %v3332_v50 = vpop.f32.mrf.mxu0  ;;  %v3443_v55 = vadd.f32 %v3442_v41, %v3441_v48 }
 0x24a   : > { %v2536_v63 = vadd.f32 %v2490_v44, %v576_v49  ;;  %v2334_v33 = vadd.f32 %v3331_v52, %v4198_v1  ;;  %v3444_v56 = vpop.f32.mrf.mxu1 }
 0x24b   : > { %v3333_v59 = vpop.f32.mrf.mxu0 }
 0x24c   : > { %2568 = vst [vmem:[#allocation2 + $0x28] sm:$0xff] %v2536_v63  ;;  %v2495_v61 = vadd.f32 %v3443_v55, %v2334_v33  ;;  %v3334_v53 = vadd.f32 %v3333_v59, %v3332_v50  ;;  %v3445_v51 = vpop.f32.mrf.mxu1 }
 0x24d   : > { %v3335_v62 = vpop.f32.mrf.mxu0  ;;  %v3446_v7 = vadd.f32 %v3445_v51, %v3444_v56 }
 0x24e   : > { %v2537_v26 = vadd.f32 %v2495_v61, %v577_v58  ;;  %v2337_v3 = vadd.f32 %v3334_v53, %v4200_v12  ;;  %v3447_v4 = vpop.f32.mrf.mxu1 }
 0x24f   : > { %v3336_v42 = vpop.f32.mrf.mxu0 }
 0x250   : > { %2569 = vst [vmem:[#allocation2 + $0xa0] sm:$0xff] %v2537_v26  ;;  %v2498_v5 = vadd.f32 %v3446_v7, %v2337_v3  ;;  %v3337_v6 = vadd.f32 %v3336_v42, %v3335_v62  ;;  %v3448_v1 = vpop.f32.mrf.mxu1 }
 0x251   : > { %v3338_v0 = vpop.f32.mrf.mxu0  ;;  %v3449_v13 = vadd.f32 %v3448_v1, %v3447_v4 }
 0x252   : > { %v2538_v8 = vadd.f32 %v2498_v5, %v578_v60  ;;  %v2342_v11 = vadd.f32 %v3337_v6, %v4202_v23  ;;  %v3450_v37 = vpop.f32.mrf.mxu1 }
 0x253   : > { %v3339_v14 = vpop.f32.mrf.mxu0 }
 0x254   : > { %2570 = vst [vmem:[#allocation2 + $0xf8] sm:$0xff] %v2538_v8  ;;  %v2503_v30 = vadd.f32 %v3449_v13, %v2342_v11  ;;  %v3340_v16 = vadd.f32 %v3339_v14, %v3338_v0  ;;  %v3451_v12 = vpop.f32.mrf.mxu1 }
 0x255   : > { %v3452_v57 = vadd.f32 %v3451_v12, %v3450_v37 }
 0x256   : > { %v2539_v19 = vadd.f32 %v2503_v30, %v579_v15  ;;  %v2345_v9 = vadd.f32 %v3340_v16, %v4204_v36 }
 0x258   : > { %2571 = vst [vmem:[#allocation2 + $0x20] sm:$0xff] %v2539_v19  ;;  %v2506_v21 = vadd.f32 %v3452_v57, %v2345_v9  ;;  %2576 = sbr.rel (%p2998_p10) target bundleno = 624 (0x270), region = 63 }
 0x25a   : > { %v2540_v22 = vadd.f32 %v2506_v21, %v580_v10 }
 0x25c   : > { %2572 = vst [vmem:[#allocation2 + $0x98] sm:$0xff] %v2540_v22 }
 0x25d   : > { %v2577_v23 = vld [vmem:[#allocation2 + $0xb0] sm:$0xff]  ;;  %v4242_v25 = vld [vmem:[%s4389_s2] ss:$0 sm:$0xff]  ;;  %v2579_v27 = vld [vmem:[#allocation2 + $0xd8] sm:$0xff] }
 0x25e   : > { %v2578_v24 = vld [vmem:[#allocation2] sm:$0xff]  ;;  %v2616_v46 = vadd.f32 %v4242_v25, %v2577_v23  ;;  %v2580_v28 = vld [vmem:[#allocation2 + $0x18] sm:$0xff]  ;;  %v2581_v20 = vld [vmem:[#allocation2 + $0x50] sm:$0xff]  ;;  %v2618_v31 = vadd.f32 %v4242_v25, %v2579_v27 }
 0x25f   : > { %v2617_v36 = vadd.f32 %v4242_v25, %v2578_v24  ;;  %v2619_v38 = vadd.f32 %v4242_v25, %v2580_v28  ;;  %v2620_v32 = vadd.f32 %v4242_v25, %v2581_v20  ;;  %v2582_v2 = vld [vmem:[#allocation2 + $0x68] sm:$0xff]  ;;  %v2583_v35 = vld [vmem:[#allocation2 + $0x30] sm:$0xff]  ;;  %v2585_v29 = vld [vmem:[#allocation2 + $0x80] sm:$0xff] }
 0x260   : > { %v2584_v18 = vld [vmem:[#allocation2 + $0x48] sm:$0xff]  ;;  %2648 = vst [vmem:[%s4390_s3] sm:$0xff] %v2616_v46  ;;  %v2621_v34 = vadd.f32 %v4242_v25, %v2582_v2  ;;  %v2622_v39 = vadd.f32 %v4242_v25, %v2583_v35  ;;  %2650 = vst [vmem:[%s4390_s3 + $0x10] sm:$0xff] %v2618_v31  ;;  %v2624_v45 = vadd.f32 %v4242_v25, %v2585_v29  ;;  %v2588_v49 = vld [vmem:[#allocation2 + $0xb8] sm:$0xff] }
 0x261   : > { %2649 = vst [vmem:[%s4390_s3 + $0x8] sm:$0xff] %v2617_v36  ;;  %v2623_v54 = vadd.f32 %v4242_v25, %v2584_v18  ;;  %v2586_v40 = vld [vmem:[#allocation2 + $0x88] sm:$0xff]  ;;  %2651 = vst [vmem:[%s4390_s3 + $0x18] sm:$0xff] %v2619_v38  ;;  %v2589_v17 = vld [vmem:[#allocation2 + $0x60] sm:$0xff]  ;;  %v2627_v52 = vadd.f32 %v4242_v25, %v2588_v49 }
 0x262   : > { %v2587_v43 = vld [vmem:[#allocation2 + $0xe8] sm:$0xff]  ;;  %2652 = vst [vmem:[%s4390_s3 + $0x20] sm:$0xff] %v2620_v32  ;;  %v2625_v47 = vadd.f32 %v4242_v25, %v2586_v40  ;;  %v2590_v44 = vld [vmem:[#allocation2 + $0xf0] sm:$0xff]  ;;  %2653 = vst [vmem:[%s4390_s3 + $0x28] sm:$0xff] %v2621_v34  ;;  %v2628_v41 = vadd.f32 %v4242_v25, %v2589_v17 }
 0x263   : > { %v2626_v48 = vadd.f32 %v4242_v25, %v2587_v43  ;;  %2654 = vst [vmem:[%s4390_s3 + $0x30] sm:$0xff] %v2622_v39  ;;  %2655 = vst [vmem:[%s4390_s3 + $0x38] sm:$0xff] %v2623_v54  ;;  %v2629_v50 = vadd.f32 %v4242_v25, %v2590_v44  ;;  %v2591_v63 = vld [vmem:[#allocation2 + $0x8] sm:$0xff]  ;;  %v2592_v33 = vld [vmem:[#allocation2 + $0x78] sm:$0xff] }
 0x264   : > { %v2593_v55 = vld [vmem:[#allocation2 + $0x38] sm:$0xff]  ;;  %2656 = vst [vmem:[%s4390_s3 + $0x40] sm:$0xff] %v2624_v45  ;;  %2657 = vst [vmem:[%s4390_s3 + $0x48] sm:$0xff] %v2625_v47  ;;  %v2630_v56 = vadd.f32 %v4242_v25, %v2591_v63  ;;  %v2631_v58 = vadd.f32 %v4242_v25, %v2592_v33  ;;  %v2595_v53 = vld [vmem:[#allocation2 + $0x40] sm:$0xff] }
 0x265   : > { %2658 = vst [vmem:[%s4390_s3 + $0x50] sm:$0xff] %v2626_v48  ;;  %v2632_v59 = vadd.f32 %v4242_v25, %v2593_v55  ;;  %v2594_v61 = vld [vmem:[#allocation2 + $0x58] sm:$0xff]  ;;  %v2596_v51 = vld [vmem:[#allocation2 + $0xc8] sm:$0xff]  ;;  %2659 = vst [vmem:[%s4390_s3 + $0x58] sm:$0xff] %v2627_v52  ;;  %v2634_v26 = vadd.f32 %v4242_v25, %v2595_v53 }
 0x266   : > { %2660 = vst [vmem:[%s4390_s3 + $0x60] sm:$0xff] %v2628_v41  ;;  %2661 = vst [vmem:[%s4390_s3 + $0x68] sm:$0xff] %v2629_v50  ;;  %v2633_v62 = vadd.f32 %v4242_v25, %v2594_v61  ;;  %v2635_v3 = vadd.f32 %v4242_v25, %v2596_v51  ;;  %v2597_v7 = vld [vmem:[#allocation2 + $0xe0] sm:$0xff]  ;;  %v2598_v4 = vld [vmem:[#allocation2 + $0x90] sm:$0xff] }
 0x267   : > { %v2599_v60 = vld [vmem:[#allocation2 + $0x70] sm:$0xff]  ;;  %2662 = vst [vmem:[%s4390_s3 + $0x70] sm:$0xff] %v2630_v56  ;;  %2663 = vst [vmem:[%s4390_s3 + $0x78] sm:$0xff] %v2631_v58  ;;  %v2636_v42 = vadd.f32 %v4242_v25, %v2597_v7  ;;  %v2637_v5 = vadd.f32 %v4242_v25, %v2598_v4  ;;  %v2600_v1 = vld [vmem:[#allocation2 + $0xc0] sm:$0xff] }
 0x268   : > { %2664 = vst [vmem:[%s4390_s3 + $0x80] sm:$0xff] %v2632_v59  ;;  %v2638_v6 = vadd.f32 %v4242_v25, %v2599_v60  ;;  %v2601_v0 = vld [vmem:[#allocation2 + $0xa8] sm:$0xff]  ;;  %v2602_v8 = vld [vmem:[#allocation2 + $0xd0] sm:$0xff]  ;;  %2665 = vst [vmem:[%s4390_s3 + $0x88] sm:$0xff] %v2633_v62  ;;  %v2639_v11 = vadd.f32 %v4242_v25, %v2600_v1 }
 0x269   : > { %2666 = vst [vmem:[%s4390_s3 + $0x90] sm:$0xff] %v2634_v26  ;;  %2667 = vst [vmem:[%s4390_s3 + $0x98] sm:$0xff] %v2635_v3  ;;  %v2640_v13 = vadd.f32 %v4242_v25, %v2601_v0  ;;  %v2641_v37 = vadd.f32 %v4242_v25, %v2602_v8  ;;  %v2603_v15 = vld [vmem:[#allocation2 + $0x10] sm:$0xff]  ;;  %v2604_v14 = vld [vmem:[#allocation2 + $0x28] sm:$0xff] }
 0x26a   : > { %v2605_v30 = vld [vmem:[#allocation2 + $0xa0] sm:$0xff]  ;;  %2668 = vst [vmem:[%s4390_s3 + $0xa0] sm:$0xff] %v2636_v42  ;;  %2669 = vst [vmem:[%s4390_s3 + $0xa8] sm:$0xff] %v2637_v5  ;;  %v2642_v16 = vadd.f32 %v4242_v25, %v2603_v15  ;;  %v2643_v12 = vadd.f32 %v4242_v25, %v2604_v14  ;;  %v2606_v9 = vld [vmem:[#allocation2 + $0xf8] sm:$0xff] }
 0x26b   : > { %2670 = vst [vmem:[%s4390_s3 + $0xb0] sm:$0xff] %v2638_v6  ;;  %v2644_v19 = vadd.f32 %v4242_v25, %v2605_v30  ;;  %v2607_v57 = vld [vmem:[#allocation2 + $0x20] sm:$0xff]  ;;  %v2608_v10 = vld [vmem:[#allocation2 + $0x98] sm:$0xff]  ;;  %2671 = vst [vmem:[%s4390_s3 + $0xb8] sm:$0xff] %v2639_v11  ;;  %v2645_v21 = vadd.f32 %v4242_v25, %v2606_v9 }
 0x26c   : > { %2672 = vst [vmem:[%s4390_s3 + $0xc0] sm:$0xff] %v2640_v13  ;;  %2673 = vst [vmem:[%s4390_s3 + $0xc8] sm:$0xff] %v2641_v37  ;;  %v2646_v22 = vadd.f32 %v4242_v25, %v2607_v57  ;;  %v2647_v23 = vadd.f32 %v4242_v25, %v2608_v10 }
 0x26d   : > { %2674 = vst [vmem:[%s4390_s3 + $0xd0] sm:$0xff] %v2642_v16  ;;  %2675 = vst [vmem:[%s4390_s3 + $0xd8] sm:$0xff] %v2643_v12 }
 0x26e   : > { %2676 = vst [vmem:[%s4390_s3 + $0xe0] sm:$0xff] %v2644_v19  ;;  %2677 = vst [vmem:[%s4390_s3 + $0xe8] sm:$0xff] %v2645_v21 }
 0x26f   : > { %2678 = vst [vmem:[%s4390_s3 + $0xf0] sm:$0xff] %v2646_v22  ;;  %2679 = vst [vmem:[%s4390_s3 + $0xf8] sm:$0xff] %v2647_v23 }
 0x270 PF: > { %s13_s16 = sadd.s32 1, %s3596_s16   ;;  %s4391_s12 = smov %s3584_s13 }
 0x271   : > { %p10_p11 = scmp.ge.s32.totalorder %s13_s16, 4   ;;  %s4392_s13 = smov %s3654_s20 }
 0x272   : > { %s4393_s14 = smov %s3592_s15  ;;  %s4394_s15 = smov %s4396_s17 }
 0x273   :  { %12 = sbr.rel (!%p10_p11) target bundleno = 3 (0x3), region = 105 }

</bundles_post_ra>
